<compile_context>
chip_gen: v7x
topology: tpu7x:2x2x1
jax: 0.10.0
libtpu: 0.0.40
codegen_flags: <defaults>
</compile_context>

<pallas_src>
import functools

import numpy as np
import jax
import jax.numpy as jnp
from jax import lax
from jax.experimental import pallas as pl
from jax.experimental.pallas import tpu as pltpu

# Scaled-down VGG16 (channels /16, same 13-conv / 4-maxpool structure as
# torchvision vgg16.features[:-1], i.e. the final MaxPool is dropped).
VGG_CFG = [4, 4, "M", 8, 8, "M", 16, 16, 16, "M", 32, 32, 32, "M", 32, 32, 32]
NUM_CLASSES = 4            # fc_cls: C+1 = 5 ; fc_reg: 4*(C+1) = 20
HIDDEN = 256               # scaled-down "4096" of the VGG classifier head
ROI_POOL = 7


# ------------------------------ static helpers --------------------------------
def _adaptive_bins(n_in, n_out):
    # torch.nn.AdaptiveMaxPool2d bin boundaries (static)
    return tuple((int(np.floor(i * n_in / n_out)),
                  int(np.ceil((i + 1) * n_in / n_out))) for i in range(n_out))


def _layer_plan(h, w):
    """Static sequence of ('conv', H, W, Cin, Cout) / ('pool', H, W, C) steps."""
    plan = []
    H, W, cin = h, w, 3
    for v in VGG_CFG:
        if v == "M":
            plan.append(("pool", H, W, cin))
            H //= 2
            W //= 2
        else:
            plan.append(("conv", H, W, cin, v))
            cin = v
    return tuple(plan), (H, W, cin)


def _banded_conv_matrix(w_hwio, W):
    """Expand a (3,3,Cin,Cout) conv weight into 3 stacked banded matrices.

    Row block sy pairs with activation row (h + sy - 1); within a block
    A[w_in*Cin + ci, w*Cout + co] = w[sy, w_in - w + 1, ci, co] for |w_in-w|<=1,
    so y[h, w*Cout+co] = sum_sy (row-shifted x) @ A_sy  ==  3x3 'same' conv.
    """
    Cin, Cout = int(w_hwio.shape[2]), int(w_hwio.shape[3])
    A = np.zeros((3, W * Cin, W * Cout), np.float32)
    for sy in range(3):
        for kx in range(3):
            blk = np.asarray(w_hwio[sy, kx], np.float32)
            for wo in range(W):
                wi = wo + kx - 1
                if 0 <= wi < W:
                    A[sy, wi * Cin:(wi + 1) * Cin, wo * Cout:(wo + 1) * Cout] = blk
    return A.reshape(3 * W * Cin, W * Cout)


def _full_spec(shape):
    nd = len(shape)
    return pl.BlockSpec(shape, lambda i, _nd=nd: (0,) * _nd)


# --------------------------- in-kernel building blocks -------------------------
def _one_hot(cond, dtype):
    return jnp.where(cond, 1.0, 0.0).astype(dtype)


def _row_shift_mats(H):
    """0/1 matrices D such that (D @ x)[h] = x[h +/- 1] with zero padding."""
    r = lax.broadcasted_iota(jnp.int32, (H, H), 0)
    c = lax.broadcasted_iota(jnp.int32, (H, H), 1)
    d_m1 = _one_hot(c == r - 1, jnp.bfloat16)   # out[h] = x[h-1]
    d_p1 = _one_hot(c == r + 1, jnp.bfloat16)   # out[h] = x[h+1]
    return d_m1, d_p1


def _conv3x3(x, a_ref, bias, W, Cin, d_m1, d_p1):
    """'same' 3x3 conv + bias + ReLU in the (H, W*C) layout via 3 banded matmuls."""
    WCin = W * Cin
    xb = x.astype(jnp.bfloat16)
    y = bias                                                     # (1, W*Cout) f32
    for sy, dmat in ((0, d_m1), (1, None), (2, d_p1)):
        if dmat is None:
            xs = xb
        else:
            xs = jnp.dot(dmat, xb,
                         preferred_element_type=jnp.float32).astype(jnp.bfloat16)
        a_blk = a_ref[pl.ds(sy * WCin, WCin), :]                 # (W*Cin, W*Cout) bf16
        y = y + jnp.dot(xs, a_blk, preferred_element_type=jnp.float32)
    return jnp.maximum(y, 0.0)


def _maxpool2x2(x, H, W, C):
    """Exact 2x2/stride-2 max pool in the (H, W*C) layout via selector matmuls."""
    assert H % 2 == 0 and W % 2 == 0 and (C & (C - 1)) == 0
    WC, Ho, Wo = W * C, H // 2, W // 2
    WoC = Wo * C
    r = lax.broadcasted_iota(jnp.int32, (WC, WoC), 0)
    c = lax.broadcasted_iota(jnp.int32, (WC, WoC), 1)
    ch = c & (C - 1)                                   # channel of the output lane
    s_even = _one_hot(r == 2 * c - ch, jnp.float32)    # picks column 2*wo
    s_odd = _one_hot(r == 2 * c - ch + C, jnp.float32)  # picks column 2*wo + 1
    col = jnp.maximum(
        jnp.dot(x, s_even, preferred_element_type=jnp.float32),
        jnp.dot(x, s_odd, preferred_element_type=jnp.float32))   # (H, Wo*C)
    r2 = lax.broadcasted_iota(jnp.int32, (Ho, H), 0)
    c2 = lax.broadcasted_iota(jnp.int32, (Ho, H), 1)
    t_even = _one_hot(c2 == 2 * r2, jnp.float32)
    t_odd = _one_hot(c2 == 2 * r2 + 1, jnp.float32)
    return jnp.maximum(
        jnp.dot(t_even, col, preferred_element_type=jnp.float32),
        jnp.dot(t_odd, col, preferred_element_type=jnp.float32))  # (Ho, Wo*C)


# ---------------------------------- kernel ------------------------------------
def _frcnn_fused_kernel(*refs, plan, roi, n_conv, hidden, n_cls1):
    x_ref = refs[0]
    conv_refs = refs[1:1 + n_conv]
    cbias_ref = refs[1 + n_conv]
    fc6_ref = refs[2 + n_conv]
    fc7_ref = refs[3 + n_conv]
    clsw_ref = refs[4 + n_conv]
    regw_ref = refs[5 + n_conv]
    fcb_ref = refs[6 + n_conv]
    o_cls_ref, o_reg_ref, o_sm_ref = refs[7 + n_conv:]

    # ---- VGG16 features[:-1] trunk (activations live in VMEM the whole time) --
    x = x_ref[...]                                    # (H, W*3) f32
    li = 0
    cur_h = None
    d_m1 = d_p1 = None
    for step in plan:
        if step[0] == "conv":
            _, H, W, cin, cout = step
            if H != cur_h:
                d_m1, d_p1 = _row_shift_mats(H)
                cur_h = H
            bias = cbias_ref[pl.ds(li, 1), pl.ds(0, W * cout)]   # (1, W*Cout) f32
            x = _conv3x3(x, conv_refs[li], bias, W, cin, d_m1, d_p1)
            li += 1
        else:
            _, H, W, C = step
            x = _maxpool2x2(x, H, W, C)
            cur_h = None

    # ---- RoI adaptive max-pool (7x7) on the (static) test proposal ------------
    C = roi["C"]
    corners = {}
    for hh in range(roi["Hin"]):
        for ww in range(roi["Win"]):
            h0 = roi["ry"] + hh
            l0 = (roi["rx"] + ww) * C
            corners[(hh, ww)] = x[h0:h0 + 1, l0:l0 + C]          # (1, C)

    cache = {}
    pooled = []                                      # bin-major, 49 x (1, C)
    for (ys, ye) in roi["ybins"]:
        for (xs0, xe) in roi["xbins"]:
            key = (ys, ye, xs0, xe)
            if key not in cache:
                v = None
                for hh in range(ys, ye):
                    for ww in range(xs0, xe):
                        cc = corners[(hh, ww)]
                        v = cc if v is None else jnp.maximum(v, cc)
                cache[key] = v
            pooled.append(cache[key])

    # ---- fc head (fc6 consumes the pooled bins directly; flatten order is
    # ---- handled by a host-side permutation of the fc6 weight rows) -----------
    acc = fcb_ref[pl.ds(0, 1), pl.ds(0, hidden)]                 # (1, hidden) f32
    for b, p in enumerate(pooled):
        wblk = fc6_ref[pl.ds(b * C, C), :]                       # (C, hidden) bf16
        acc = acc + jnp.dot(p.astype(jnp.bfloat16), wblk,
                            preferred_element_type=jnp.float32)
    h6 = jnp.maximum(acc, 0.0)

    h7 = jnp.dot(h6.astype(jnp.bfloat16), fc7_ref[...],
                 preferred_element_type=jnp.float32)
    h7 = jnp.maximum(h7 + fcb_ref[pl.ds(1, 1), pl.ds(0, hidden)], 0.0)

    y_cls = jnp.dot(h7, clsw_ref[...], preferred_element_type=jnp.float32)
    y_cls = y_cls + fcb_ref[pl.ds(2, 1), pl.ds(0, n_cls1)]
    y_reg = jnp.dot(h7, regw_ref[...], preferred_element_type=jnp.float32)
    y_reg = y_reg + fcb_ref[pl.ds(3, 1), pl.ds(0, 4 * n_cls1)]

    o_cls_ref[...] = y_cls
    o_reg_ref[...] = y_reg

    # softmax(RCNN_cls, dim=1)
    m = jnp.max(y_cls, axis=-1, keepdims=True)
    e = jnp.exp(y_cls - m)
    o_sm_ref[...] = e / jnp.sum(e, axis=-1, keepdims=True)


# ------------------------------ params / packing -------------------------------
def init_params(key):
    params = {"convs": []}
    cin = 3
    for v in VGG_CFG:
        if v == "M":
            continue
        key, kw = jax.random.split(key)
        w = jax.random.normal(kw, (3, 3, cin, v), jnp.float32) * np.sqrt(2.0 / (9 * cin))
        params["convs"].append((w, jnp.zeros((v,), jnp.float32)))
        cin = v
    in_fc = cin * ROI_POOL * ROI_POOL

    def linear_w(k, fan_in, fan_out, std=None):
        std = (1.0 / np.sqrt(fan_in)) if std is None else std
        return jax.random.normal(k, (fan_out, fan_in), jnp.float32) * std  # (out, in)

    key, k6, k7, kc, kr = jax.random.split(key, 5)
    params["fc6_w"] = linear_w(k6, in_fc, HIDDEN)
    params["fc6_b"] = jnp.zeros((HIDDEN,), jnp.float32)
    params["fc7_w"] = linear_w(k7, HIDDEN, HIDDEN)
    params["fc7_b"] = jnp.zeros((HIDDEN,), jnp.float32)
    # FastRCNN.weight_init(): normal(0, 0.01) / normal(0, 0.001)
    params["cls_w"] = linear_w(kc, HIDDEN, NUM_CLASSES + 1, std=0.01)
    params["cls_b"] = jnp.zeros((NUM_CLASSES + 1,), jnp.float32)
    params["reg_w"] = linear_w(kr, HIDDEN, 4 * (NUM_CLASSES + 1), std=0.001)
    params["reg_b"] = jnp.zeros((4 * (NUM_CLASSES + 1),), jnp.float32)
    return params


def prepare_inputs(params, h_img, w_img):
    """One-time host-side packing: banded conv matrices, tiled biases, permuted fc6."""
    plan, (_, _, c_feat) = _layer_plan(h_img, w_img)

    conv_mats = []
    n_conv = len(params["convs"])
    max_wcout = max(s[2] * s[4] for s in plan if s[0] == "conv")
    bias_tab = np.zeros((n_conv, max_wcout), np.float32)
    li = 0
    for step in plan:
        if step[0] != "conv":
            continue
        _, H, W, cin, cout = step
        w, b = params["convs"][li]
        A = _banded_conv_matrix(np.asarray(w), W)                # (3*W*Cin, W*Cout)
        conv_mats.append(jnp.asarray(A, dtype=jnp.bfloat16))
        bias_tab[li, :W * cout] = np.tile(np.asarray(b, np.float32), W)
        li += 1

    # fc6: PyTorch flatten of (C,7,7) has input index c*49 + (i*7+j);
    # the kernel consumes bins in bin-major order (i*7+j)*C + c.
    nb = ROI_POOL * ROI_POOL
    w6 = np.asarray(params["fc6_w"], np.float32).T               # (C*49, HIDDEN)
    perm = np.empty(c_feat * nb, np.int32)
    for b in range(nb):
        for c in range(c_feat):
            perm[b * c_feat + c] = c * nb + b
    fc6_packed = w6[perm]

    n_cls1 = NUM_CLASSES + 1
    fc_bias = np.zeros((4, HIDDEN), np.float32)
    fc_bias[0, :HIDDEN] = np.asarray(params["fc6_b"])
    fc_bias[1, :HIDDEN] = np.asarray(params["fc7_b"])
    fc_bias[2, :n_cls1] = np.asarray(params["cls_b"])
    fc_bias[3, :4 * n_cls1] = np.asarray(params["reg_b"])

    return {
        "img_hw": (h_img, w_img),
        "conv_mats": tuple(conv_mats),
        "conv_bias": jnp.asarray(bias_tab),
        "fc6_w": jnp.asarray(fc6_packed, dtype=jnp.bfloat16),
        "fc7_w": jnp.asarray(np.asarray(params["fc7_w"], np.float32).T,
                             dtype=jnp.bfloat16),
        "cls_w": jnp.asarray(np.asarray(params["cls_w"], np.float32).T),
        "reg_w": jnp.asarray(np.asarray(params["reg_w"], np.float32).T),
        "fc_bias": jnp.asarray(fc_bias),
    }


# --------------------------------- forward ------------------------------------
def faster_rcnn_head_forward(prepared, a, x_nchw):
    """FasterRCNNHead.forward(a, x, y=None)  (inference / test_RCNN path).

    a:      anchors (unused on the test path, kept for interface fidelity)
    x_nchw: image, (1, 3, h, w) float32 (PyTorch NCHW)
    Returns (y_cls, y_reg, roi_scores) for the single test proposal.
    """
    del a
    assert x_nchw.shape[0] == 1 and x_nchw.shape[1] == 3
    h_img, w_img = int(x_nchw.shape[2]), int(x_nchw.shape[3])
    assert (h_img, w_img) == prepared["img_hw"], "prepared weights are size-specific"

    # NCHW -> (H, W*3)  (lane-dense HWC, flattened over the lane dim)
    x = jnp.transpose(x_nchw[0], (1, 2, 0)).reshape(h_img, w_img * 3)

    plan, (Hf, Wf, Cf) = _layer_plan(h_img, w_img)

    # --- static RoI geometry of the test path: proposal = [w/3, h/3, w/3, h/3] ---
    wscale, hscale = Wf / w_img, Hf / h_img
    rx = int((w_img / 3.0) * wscale)                 # .long() truncation (coords >= 0)
    ry = int((h_img / 3.0) * hscale)
    rw = int((w_img / 3.0) * wscale)
    rh = int((h_img / 3.0) * hscale)
    Hin = min(rh + 1, Hf - ry)
    Win = min(rw + 1, Wf - rx)
    roi = dict(C=Cf, rx=rx, ry=ry, Hin=Hin, Win=Win,
               ybins=_adaptive_bins(Hin, ROI_POOL),
               xbins=_adaptive_bins(Win, ROI_POOL))

    n_conv = len(prepared["conv_mats"])
    n_cls1 = NUM_CLASSES + 1

    inputs = ([x] + list(prepared["conv_mats"]) +
              [prepared["conv_bias"], prepared["fc6_w"], prepared["fc7_w"],
               prepared["cls_w"], prepared["reg_w"], prepared["fc_bias"]])
    in_specs = [_full_spec(tuple(v.shape)) for v in inputs]

    out_shape = (jax.ShapeDtypeStruct((1, n_cls1), jnp.float32),
                 jax.ShapeDtypeStruct((1, 4 * n_cls1), jnp.float32),
                 jax.ShapeDtypeStruct((1, n_cls1), jnp.float32))
    out_specs = (_full_spec((1, n_cls1)),
                 _full_spec((1, 4 * n_cls1)),
                 _full_spec((1, n_cls1)))

    kernel = functools.partial(_frcnn_fused_kernel, plan=plan, roi=roi,
                               n_conv=n_conv, hidden=HIDDEN, n_cls1=n_cls1)

    y_cls, y_reg, roi_scores = pl.pallas_call(
        kernel,
        out_shape=out_shape,
        grid=(1,),
        in_specs=in_specs,
        out_specs=out_specs,
        compiler_params=pltpu.CompilerParams(
            dimension_semantics=("arbitrary",)),
    )(*inputs)

    # TODO(synk): bbox de-normalization, inv_parameterize and _NMS of test_RCNN rely
    # on globals undefined in the reference plus host-side Python loops; not modeled.
    return y_cls, y_reg, roi_scores


if __name__ == "__main__":
    key = jax.random.PRNGKey(0)
    kp, kx, ka = jax.random.split(key, 3)
    params = init_params(kp)

    img = jax.random.normal(kx, (1, 3, 64, 64), jnp.float32)     # small NCHW image
    anchors = jax.random.normal(ka, (1, 4), jnp.float32)         # unused on test path

    prepared = prepare_inputs(params, 64, 64)                    # one-time packing

    fwd = jax.jit(functools.partial(faster_rcnn_head_forward, prepared))
    y_cls, y_reg, roi_scores = fwd(anchors, img)
    jax.block_until_ready((y_cls, y_reg, roi_scores))

    assert y_cls.shape == (1, NUM_CLASSES + 1)
    assert y_reg.shape == (1, 4 * (NUM_CLASSES + 1))
    assert roi_scores.shape == (1, NUM_CLASSES + 1)
    assert bool(jnp.all(jnp.isfinite(y_cls))) and bool(jnp.all(jnp.isfinite(y_reg)))
    assert bool(jnp.all(jnp.isfinite(roi_scores)))
    assert abs(float(jnp.sum(roi_scores)) - 1.0) < 1e-3
    print("KERNEL_OK")
</pallas_src>

<mosaic_0001>
module attributes {stable_mosaic.version = 11 : i64} {
  func.func @_frcnn_fused_kernel(%arg0: i32, %arg1: memref<64x192xf32, #tpu.memory_space<vmem>>, %arg2: memref<576x256xbf16, #tpu.memory_space<vmem>>, %arg3: memref<768x256xbf16, #tpu.memory_space<vmem>>, %arg4: memref<384x256xbf16, #tpu.memory_space<vmem>>, %arg5: memref<768x256xbf16, #tpu.memory_space<vmem>>, %arg6: memref<384x256xbf16, #tpu.memory_space<vmem>>, %arg7: memref<768x256xbf16, #tpu.memory_space<vmem>>, %arg8: memref<768x256xbf16, #tpu.memory_space<vmem>>, %arg9: memref<384x256xbf16, #tpu.memory_space<vmem>>, %arg10: memref<768x256xbf16, #tpu.memory_space<vmem>>, %arg11: memref<768x256xbf16, #tpu.memory_space<vmem>>, %arg12: memref<384x128xbf16, #tpu.memory_space<vmem>>, %arg13: memref<384x128xbf16, #tpu.memory_space<vmem>>, %arg14: memref<384x128xbf16, #tpu.memory_space<vmem>>, %arg15: memref<13x256xf32, #tpu.memory_space<vmem>>, %arg16: memref<1568x256xbf16, #tpu.memory_space<vmem>>, %arg17: memref<256x256xbf16, #tpu.memory_space<vmem>>, %arg18: memref<256x5xf32, #tpu.memory_space<vmem>>, %arg19: memref<256x20xf32, #tpu.memory_space<vmem>>, %arg20: memref<4x256xf32, #tpu.memory_space<vmem>>, %arg21: memref<1x5xf32, #tpu.memory_space<vmem>>, %arg22: memref<1x20xf32, #tpu.memory_space<vmem>>, %arg23: memref<1x5xf32, #tpu.memory_space<vmem>>) attributes {dimension_semantics = [#tpu.dimension_semantics<arbitrary>], iteration_bounds = array<i64: 1>, scalar_prefetch = 0 : i64, scratch_operands = 0 : i64, tpu.core_type = #tpu.core_type<tc>, window_params = [{pipeline_mode = #tpu.pipeline_mode<synchronous>, transform_indices = @transform_0, window_bounds = array<i64: 64, 192>}, {pipeline_mode = #tpu.pipeline_mode<synchronous>, transform_indices = @transform_1, window_bounds = array<i64: 576, 256>}, {pipeline_mode = #tpu.pipeline_mode<synchronous>, transform_indices = @transform_2, window_bounds = array<i64: 768, 256>}, {pipeline_mode = #tpu.pipeline_mode<synchronous>, transform_indices = @transform_3, window_bounds = array<i64: 384, 256>}, {pipeline_mode = #tpu.pipeline_mode<synchronous>, transform_indices = @transform_4, window_bounds = array<i64: 768, 256>}, {pipeline_mode = #tpu.pipeline_mode<synchronous>, transform_indices = @transform_5, window_bounds = array<i64: 384, 256>}, {pipeline_mode = #tpu.pipeline_mode<synchronous>, transform_indices = @transform_6, window_bounds = array<i64: 768, 256>}, {pipeline_mode = #tpu.pipeline_mode<synchronous>, transform_indices = @transform_7, window_bounds = array<i64: 768, 256>}, {pipeline_mode = #tpu.pipeline_mode<synchronous>, transform_indices = @transform_8, window_bounds = array<i64: 384, 256>}, {pipeline_mode = #tpu.pipeline_mode<synchronous>, transform_indices = @transform_9, window_bounds = array<i64: 768, 256>}, {pipeline_mode = #tpu.pipeline_mode<synchronous>, transform_indices = @transform_10, window_bounds = array<i64: 768, 256>}, {pipeline_mode = #tpu.pipeline_mode<synchronous>, transform_indices = @transform_11, window_bounds = array<i64: 384, 128>}, {pipeline_mode = #tpu.pipeline_mode<synchronous>, transform_indices = @transform_12, window_bounds = array<i64: 384, 128>}, {pipeline_mode = #tpu.pipeline_mode<synchronous>, transform_indices = @transform_13, window_bounds = array<i64: 384, 128>}, {pipeline_mode = #tpu.pipeline_mode<synchronous>, transform_indices = @transform_14, window_bounds = array<i64: 13, 256>}, {pipeline_mode = #tpu.pipeline_mode<synchronous>, transform_indices = @transform_15, window_bounds = array<i64: 1568, 256>}, {pipeline_mode = #tpu.pipeline_mode<synchronous>, transform_indices = @transform_16, window_bounds = array<i64: 256, 256>}, {pipeline_mode = #tpu.pipeline_mode<synchronous>, transform_indices = @transform_17, window_bounds = array<i64: 256, 5>}, {pipeline_mode = #tpu.pipeline_mode<synchronous>, transform_indices = @transform_18, window_bounds = array<i64: 256, 20>}, {pipeline_mode = #tpu.pipeline_mode<synchronous>, transform_indices = @transform_19, window_bounds = array<i64: 4, 256>}, {pipeline_mode = #tpu.pipeline_mode<synchronous>, transform_indices = @transform_20, window_bounds = array<i64: 1, 5>}, {pipeline_mode = #tpu.pipeline_mode<synchronous>, transform_indices = @transform_21, window_bounds = array<i64: 1, 20>}, {pipeline_mode = #tpu.pipeline_mode<synchronous>, transform_indices = @transform_22, window_bounds = array<i64: 1, 5>}]} {
    %c0 = arith.constant 0 : index
    %c0_0 = arith.constant 0 : index
    %0 = vector.load %arg1[%c0, %c0_0] : memref<64x192xf32, #tpu.memory_space<vmem>>, vector<64x192xf32>
    %1 = tpu.iota {dimensions = array<i32: 0>} : vector<64x64xi32>
    %2 = tpu.iota {dimensions = array<i32: 1>} : vector<64x64xi32>
    %c1_i32 = arith.constant 1 : i32
    %3 = vector.broadcast %c1_i32 : i32 to vector<64x64xi32>
    %4 = arith.subi %1, %3 : vector<64x64xi32>
    %5 = arith.cmpi eq, %2, %4 : vector<64x64xi32>
    %cst = arith.constant 1.000000e+00 : f32
    %cst_1 = arith.constant 0.000000e+00 : f32
    %6 = vector.broadcast %cst : f32 to vector<64x64xf32>
    %7 = vector.broadcast %cst_1 : f32 to vector<64x64xf32>
    %8 = arith.select %5, %6, %7 : vector<64x64xi1>, vector<64x64xf32>
    %9 = arith.truncf %8 : vector<64x64xf32> to vector<64x64xbf16>
    %c1_i32_2 = arith.constant 1 : i32
    %10 = vector.broadcast %c1_i32_2 : i32 to vector<64x64xi32>
    %11 = arith.addi %1, %10 : vector<64x64xi32>
    %12 = arith.cmpi eq, %2, %11 : vector<64x64xi32>
    %cst_3 = arith.constant 1.000000e+00 : f32
    %cst_4 = arith.constant 0.000000e+00 : f32
    %13 = vector.broadcast %cst_3 : f32 to vector<64x64xf32>
    %14 = vector.broadcast %cst_4 : f32 to vector<64x64xf32>
    %15 = arith.select %12, %13, %14 : vector<64x64xi1>, vector<64x64xf32>
    %16 = arith.truncf %15 : vector<64x64xf32> to vector<64x64xbf16>
    %c0_5 = arith.constant 0 : index
    %c0_6 = arith.constant 0 : index
    %17 = vector.load %arg15[%c0_5, %c0_6] : memref<13x256xf32, #tpu.memory_space<vmem>>, vector<1x256xf32>
    %18 = arith.truncf %0 : vector<64x192xf32> to vector<64x192xbf16>
    %cst_7 = arith.constant dense<0.000000e+00> : vector<64x192xf32>
    %19 = tpu.matmul %9, %18, %cst_7 {dimension_numbers = #tpu.dot_dimension_numbers<[1], [0], [0], [1], [0, 0, 1, 1], [], []>} : vector<64x64xbf16>, vector<64x192xbf16>, vector<64x192xf32> -> vector<64x192xf32>
    %20 = arith.truncf %19 : vector<64x192xf32> to vector<64x192xbf16>
    %c0_8 = arith.constant 0 : index
    %c0_9 = arith.constant 0 : index
    %21 = vector.load %arg2[%c0_8, %c0_9] : memref<576x256xbf16, #tpu.memory_space<vmem>>, vector<192x256xbf16>
    %cst_10 = arith.constant dense<0.000000e+00> : vector<64x256xf32>
    %22 = tpu.matmul %20, %21, %cst_10 {dimension_numbers = #tpu.dot_dimension_numbers<[1], [0], [0], [1], [0, 0, 1, 1], [], []>} : vector<64x192xbf16>, vector<192x256xbf16>, vector<64x256xf32> -> vector<64x256xf32>
    %23 = vector.broadcast %17 : vector<1x256xf32> to vector<64x256xf32>
    %24 = arith.addf %23, %22 : vector<64x256xf32>
    %c192 = arith.constant 192 : index
    %c0_11 = arith.constant 0 : index
    %25 = vector.load %arg2[%c192, %c0_11] : memref<576x256xbf16, #tpu.memory_space<vmem>>, vector<192x256xbf16>
    %cst_12 = arith.constant dense<0.000000e+00> : vector<64x256xf32>
    %26 = tpu.matmul %18, %25, %cst_12 {dimension_numbers = #tpu.dot_dimension_numbers<[1], [0], [0], [1], [0, 0, 1, 1], [], []>} : vector<64x192xbf16>, vector<192x256xbf16>, vector<64x256xf32> -> vector<64x256xf32>
    %27 = arith.addf %24, %26 : vector<64x256xf32>
    %cst_13 = arith.constant dense<0.000000e+00> : vector<64x192xf32>
    %28 = tpu.matmul %16, %18, %cst_13 {dimension_numbers = #tpu.dot_dimension_numbers<[1], [0], [0], [1], [0, 0, 1, 1], [], []>} : vector<64x64xbf16>, vector<64x192xbf16>, vector<64x192xf32> -> vector<64x192xf32>
    %29 = arith.truncf %28 : vector<64x192xf32> to vector<64x192xbf16>
    %c384 = arith.constant 384 : index
    %c0_14 = arith.constant 0 : index
    %30 = vector.load %arg2[%c384, %c0_14] : memref<576x256xbf16, #tpu.memory_space<vmem>>, vector<192x256xbf16>
    %cst_15 = arith.constant dense<0.000000e+00> : vector<64x256xf32>
    %31 = tpu.matmul %29, %30, %cst_15 {dimension_numbers = #tpu.dot_dimension_numbers<[1], [0], [0], [1], [0, 0, 1, 1], [], []>} : vector<64x192xbf16>, vector<192x256xbf16>, vector<64x256xf32> -> vector<64x256xf32>
    %32 = arith.addf %27, %31 : vector<64x256xf32>
    %cst_16 = arith.constant 0.000000e+00 : f32
    %33 = vector.broadcast %cst_16 : f32 to vector<64x256xf32>
    %34 = arith.maximumf %32, %33 : vector<64x256xf32>
    %c1 = arith.constant 1 : index
    %c0_17 = arith.constant 0 : index
    %35 = vector.load %arg15[%c1, %c0_17] : memref<13x256xf32, #tpu.memory_space<vmem>>, vector<1x256xf32>
    %36 = arith.truncf %34 : vector<64x256xf32> to vector<64x256xbf16>
    %cst_18 = arith.constant dense<0.000000e+00> : vector<64x256xf32>
    %37 = tpu.matmul %9, %36, %cst_18 {dimension_numbers = #tpu.dot_dimension_numbers<[1], [0], [0], [1], [0, 0, 1, 1], [], []>} : vector<64x64xbf16>, vector<64x256xbf16>, vector<64x256xf32> -> vector<64x256xf32>
    %38 = arith.truncf %37 : vector<64x256xf32> to vector<64x256xbf16>
    %c0_19 = arith.constant 0 : index
    %c0_20 = arith.constant 0 : index
    %39 = vector.load %arg3[%c0_19, %c0_20] : memref<768x256xbf16, #tpu.memory_space<vmem>>, vector<256x256xbf16>
    %cst_21 = arith.constant dense<0.000000e+00> : vector<64x256xf32>
    %40 = tpu.matmul %38, %39, %cst_21 {dimension_numbers = #tpu.dot_dimension_numbers<[1], [0], [0], [1], [0, 0, 1, 1], [], []>} : vector<64x256xbf16>, vector<256x256xbf16>, vector<64x256xf32> -> vector<64x256xf32>
    %41 = vector.broadcast %35 : vector<1x256xf32> to vector<64x256xf32>
    %42 = arith.addf %41, %40 : vector<64x256xf32>
    %c256 = arith.constant 256 : index
    %c0_22 = arith.constant 0 : index
    %43 = vector.load %arg3[%c256, %c0_22] : memref<768x256xbf16, #tpu.memory_space<vmem>>, vector<256x256xbf16>
    %cst_23 = arith.constant dense<0.000000e+00> : vector<64x256xf32>
    %44 = tpu.matmul %36, %43, %cst_23 {dimension_numbers = #tpu.dot_dimension_numbers<[1], [0], [0], [1], [0, 0, 1, 1], [], []>} : vector<64x256xbf16>, vector<256x256xbf16>, vector<64x256xf32> -> vector<64x256xf32>
    %45 = arith.addf %42, %44 : vector<64x256xf32>
    %cst_24 = arith.constant dense<0.000000e+00> : vector<64x256xf32>
    %46 = tpu.matmul %16, %36, %cst_24 {dimension_numbers = #tpu.dot_dimension_numbers<[1], [0], [0], [1], [0, 0, 1, 1], [], []>} : vector<64x64xbf16>, vector<64x256xbf16>, vector<64x256xf32> -> vector<64x256xf32>
    %47 = arith.truncf %46 : vector<64x256xf32> to vector<64x256xbf16>
    %c512 = arith.constant 512 : index
    %c0_25 = arith.constant 0 : index
    %48 = vector.load %arg3[%c512, %c0_25] : memref<768x256xbf16, #tpu.memory_space<vmem>>, vector<256x256xbf16>
    %cst_26 = arith.constant dense<0.000000e+00> : vector<64x256xf32>
    %49 = tpu.matmul %47, %48, %cst_26 {dimension_numbers = #tpu.dot_dimension_numbers<[1], [0], [0], [1], [0, 0, 1, 1], [], []>} : vector<64x256xbf16>, vector<256x256xbf16>, vector<64x256xf32> -> vector<64x256xf32>
    %50 = arith.addf %45, %49 : vector<64x256xf32>
    %cst_27 = arith.constant 0.000000e+00 : f32
    %51 = vector.broadcast %cst_27 : f32 to vector<64x256xf32>
    %52 = arith.maximumf %50, %51 : vector<64x256xf32>
    %53 = tpu.iota {dimensions = array<i32: 0>} : vector<256x128xi32>
    %54 = tpu.iota {dimensions = array<i32: 1>} : vector<256x128xi32>
    %c3_i32 = arith.constant 3 : i32
    %55 = vector.broadcast %c3_i32 : i32 to vector<256x128xi32>
    %56 = arith.andi %54, %55 : vector<256x128xi32>
    %c2_i32 = arith.constant 2 : i32
    %57 = vector.broadcast %c2_i32 : i32 to vector<256x128xi32>
    %58 = arith.muli %57, %54 : vector<256x128xi32>
    %59 = arith.subi %58, %56 : vector<256x128xi32>
    %60 = arith.cmpi eq, %53, %59 : vector<256x128xi32>
    %cst_28 = arith.constant 1.000000e+00 : f32
    %cst_29 = arith.constant 0.000000e+00 : f32
    %61 = vector.broadcast %cst_28 : f32 to vector<256x128xf32>
    %62 = vector.broadcast %cst_29 : f32 to vector<256x128xf32>
    %63 = arith.select %60, %61, %62 : vector<256x128xi1>, vector<256x128xf32>
    %c2_i32_30 = arith.constant 2 : i32
    %64 = vector.broadcast %c2_i32_30 : i32 to vector<256x128xi32>
    %65 = arith.muli %64, %54 : vector<256x128xi32>
    %66 = arith.subi %65, %56 : vector<256x128xi32>
    %c4_i32 = arith.constant 4 : i32
    %67 = vector.broadcast %c4_i32 : i32 to vector<256x128xi32>
    %68 = arith.addi %66, %67 : vector<256x128xi32>
    %69 = arith.cmpi eq, %53, %68 : vector<256x128xi32>
    %cst_31 = arith.constant 1.000000e+00 : f32
    %cst_32 = arith.constant 0.000000e+00 : f32
    %70 = vector.broadcast %cst_31 : f32 to vector<256x128xf32>
    %71 = vector.broadcast %cst_32 : f32 to vector<256x128xf32>
    %72 = arith.select %69, %70, %71 : vector<256x128xi1>, vector<256x128xf32>
    %cst_33 = arith.constant dense<0.000000e+00> : vector<64x128xf32>
    %73 = tpu.matmul %52, %63, %cst_33 {dimension_numbers = #tpu.dot_dimension_numbers<[1], [0], [0], [1], [0, 0, 1, 1], [], []>} : vector<64x256xf32>, vector<256x128xf32>, vector<64x128xf32> -> vector<64x128xf32>
    %cst_34 = arith.constant dense<0.000000e+00> : vector<64x128xf32>
    %74 = tpu.matmul %52, %72, %cst_34 {dimension_numbers = #tpu.dot_dimension_numbers<[1], [0], [0], [1], [0, 0, 1, 1], [], []>} : vector<64x256xf32>, vector<256x128xf32>, vector<64x128xf32> -> vector<64x128xf32>
    %75 = arith.maximumf %73, %74 : vector<64x128xf32>
    %76 = tpu.iota {dimensions = array<i32: 0>} : vector<32x64xi32>
    %77 = tpu.iota {dimensions = array<i32: 1>} : vector<32x64xi32>
    %c2_i32_35 = arith.constant 2 : i32
    %78 = vector.broadcast %c2_i32_35 : i32 to vector<32x64xi32>
    %79 = arith.muli %78, %76 : vector<32x64xi32>
    %80 = arith.cmpi eq, %77, %79 : vector<32x64xi32>
    %cst_36 = arith.constant 1.000000e+00 : f32
    %cst_37 = arith.constant 0.000000e+00 : f32
    %81 = vector.broadcast %cst_36 : f32 to vector<32x64xf32>
    %82 = vector.broadcast %cst_37 : f32 to vector<32x64xf32>
    %83 = arith.select %80, %81, %82 : vector<32x64xi1>, vector<32x64xf32>
    %c2_i32_38 = arith.constant 2 : i32
    %84 = vector.broadcast %c2_i32_38 : i32 to vector<32x64xi32>
    %85 = arith.muli %84, %76 : vector<32x64xi32>
    %c1_i32_39 = arith.constant 1 : i32
    %86 = vector.broadcast %c1_i32_39 : i32 to vector<32x64xi32>
    %87 = arith.addi %85, %86 : vector<32x64xi32>
    %88 = arith.cmpi eq, %77, %87 : vector<32x64xi32>
    %cst_40 = arith.constant 1.000000e+00 : f32
    %cst_41 = arith.constant 0.000000e+00 : f32
    %89 = vector.broadcast %cst_40 : f32 to vector<32x64xf32>
    %90 = vector.broadcast %cst_41 : f32 to vector<32x64xf32>
    %91 = arith.select %88, %89, %90 : vector<32x64xi1>, vector<32x64xf32>
    %cst_42 = arith.constant dense<0.000000e+00> : vector<32x128xf32>
    %92 = tpu.matmul %83, %75, %cst_42 {dimension_numbers = #tpu.dot_dimension_numbers<[1], [0], [0], [1], [0, 0, 1, 1], [], []>} : vector<32x64xf32>, vector<64x128xf32>, vector<32x128xf32> -> vector<32x128xf32>
    %cst_43 = arith.constant dense<0.000000e+00> : vector<32x128xf32>
    %93 = tpu.matmul %91, %75, %cst_43 {dimension_numbers = #tpu.dot_dimension_numbers<[1], [0], [0], [1], [0, 0, 1, 1], [], []>} : vector<32x64xf32>, vector<64x128xf32>, vector<32x128xf32> -> vector<32x128xf32>
    %94 = arith.maximumf %92, %93 : vector<32x128xf32>
    %95 = tpu.iota {dimensions = array<i32: 0>} : vector<32x32xi32>
    %96 = tpu.iota {dimensions = array<i32: 1>} : vector<32x32xi32>
    %c1_i32_44 = arith.constant 1 : i32
    %97 = vector.broadcast %c1_i32_44 : i32 to vector<32x32xi32>
    %98 = arith.subi %95, %97 : vector<32x32xi32>
    %99 = arith.cmpi eq, %96, %98 : vector<32x32xi32>
    %cst_45 = arith.constant 1.000000e+00 : f32
    %cst_46 = arith.constant 0.000000e+00 : f32
    %100 = vector.broadcast %cst_45 : f32 to vector<32x32xf32>
    %101 = vector.broadcast %cst_46 : f32 to vector<32x32xf32>
    %102 = arith.select %99, %100, %101 : vector<32x32xi1>, vector<32x32xf32>
    %103 = arith.truncf %102 : vector<32x32xf32> to vector<32x32xbf16>
    %c1_i32_47 = arith.constant 1 : i32
    %104 = vector.broadcast %c1_i32_47 : i32 to vector<32x32xi32>
    %105 = arith.addi %95, %104 : vector<32x32xi32>
    %106 = arith.cmpi eq, %96, %105 : vector<32x32xi32>
    %cst_48 = arith.constant 1.000000e+00 : f32
    %cst_49 = arith.constant 0.000000e+00 : f32
    %107 = vector.broadcast %cst_48 : f32 to vector<32x32xf32>
    %108 = vector.broadcast %cst_49 : f32 to vector<32x32xf32>
    %109 = arith.select %106, %107, %108 : vector<32x32xi1>, vector<32x32xf32>
    %110 = arith.truncf %109 : vector<32x32xf32> to vector<32x32xbf16>
    %c2 = arith.constant 2 : index
    %c0_50 = arith.constant 0 : index
    %111 = vector.load %arg15[%c2, %c0_50] : memref<13x256xf32, #tpu.memory_space<vmem>>, vector<1x256xf32>
    %112 = arith.truncf %94 : vector<32x128xf32> to vector<32x128xbf16>
    %cst_51 = arith.constant dense<0.000000e+00> : vector<32x128xf32>
    %113 = tpu.matmul %103, %112, %cst_51 {dimension_numbers = #tpu.dot_dimension_numbers<[1], [0], [0], [1], [0, 0, 1, 1], [], []>} : vector<32x32xbf16>, vector<32x128xbf16>, vector<32x128xf32> -> vector<32x128xf32>
    %114 = arith.truncf %113 : vector<32x128xf32> to vector<32x128xbf16>
    %c0_52 = arith.constant 0 : index
    %c0_53 = arith.constant 0 : index
    %115 = vector.load %arg4[%c0_52, %c0_53] : memref<384x256xbf16, #tpu.memory_space<vmem>>, vector<128x256xbf16>
    %cst_54 = arith.constant dense<0.000000e+00> : vector<32x256xf32>
    %116 = tpu.matmul %114, %115, %cst_54 {dimension_numbers = #tpu.dot_dimension_numbers<[1], [0], [0], [1], [0, 0, 1, 1], [], []>} : vector<32x128xbf16>, vector<128x256xbf16>, vector<32x256xf32> -> vector<32x256xf32>
    %117 = vector.broadcast %111 : vector<1x256xf32> to vector<32x256xf32>
    %118 = arith.addf %117, %116 : vector<32x256xf32>
    %c128 = arith.constant 128 : index
    %c0_55 = arith.constant 0 : index
    %119 = vector.load %arg4[%c128, %c0_55] : memref<384x256xbf16, #tpu.memory_space<vmem>>, vector<128x256xbf16>
    %cst_56 = arith.constant dense<0.000000e+00> : vector<32x256xf32>
    %120 = tpu.matmul %112, %119, %cst_56 {dimension_numbers = #tpu.dot_dimension_numbers<[1], [0], [0], [1], [0, 0, 1, 1], [], []>} : vector<32x128xbf16>, vector<128x256xbf16>, vector<32x256xf32> -> vector<32x256xf32>
    %121 = arith.addf %118, %120 : vector<32x256xf32>
    %cst_57 = arith.constant dense<0.000000e+00> : vector<32x128xf32>
    %122 = tpu.matmul %110, %112, %cst_57 {dimension_numbers = #tpu.dot_dimension_numbers<[1], [0], [0], [1], [0, 0, 1, 1], [], []>} : vector<32x32xbf16>, vector<32x128xbf16>, vector<32x128xf32> -> vector<32x128xf32>
    %123 = arith.truncf %122 : vector<32x128xf32> to vector<32x128xbf16>
    %c256_58 = arith.constant 256 : index
    %c0_59 = arith.constant 0 : index
    %124 = vector.load %arg4[%c256_58, %c0_59] : memref<384x256xbf16, #tpu.memory_space<vmem>>, vector<128x256xbf16>
    %cst_60 = arith.constant dense<0.000000e+00> : vector<32x256xf32>
    %125 = tpu.matmul %123, %124, %cst_60 {dimension_numbers = #tpu.dot_dimension_numbers<[1], [0], [0], [1], [0, 0, 1, 1], [], []>} : vector<32x128xbf16>, vector<128x256xbf16>, vector<32x256xf32> -> vector<32x256xf32>
    %126 = arith.addf %121, %125 : vector<32x256xf32>
    %cst_61 = arith.constant 0.000000e+00 : f32
    %127 = vector.broadcast %cst_61 : f32 to vector<32x256xf32>
    %128 = arith.maximumf %126, %127 : vector<32x256xf32>
    %c3 = arith.constant 3 : index
    %c0_62 = arith.constant 0 : index
    %129 = vector.load %arg15[%c3, %c0_62] : memref<13x256xf32, #tpu.memory_space<vmem>>, vector<1x256xf32>
    %130 = arith.truncf %128 : vector<32x256xf32> to vector<32x256xbf16>
    %cst_63 = arith.constant dense<0.000000e+00> : vector<32x256xf32>
    %131 = tpu.matmul %103, %130, %cst_63 {dimension_numbers = #tpu.dot_dimension_numbers<[1], [0], [0], [1], [0, 0, 1, 1], [], []>} : vector<32x32xbf16>, vector<32x256xbf16>, vector<32x256xf32> -> vector<32x256xf32>
    %132 = arith.truncf %131 : vector<32x256xf32> to vector<32x256xbf16>
    %c0_64 = arith.constant 0 : index
    %c0_65 = arith.constant 0 : index
    %133 = vector.load %arg5[%c0_64, %c0_65] : memref<768x256xbf16, #tpu.memory_space<vmem>>, vector<256x256xbf16>
    %cst_66 = arith.constant dense<0.000000e+00> : vector<32x256xf32>
    %134 = tpu.matmul %132, %133, %cst_66 {dimension_numbers = #tpu.dot_dimension_numbers<[1], [0], [0], [1], [0, 0, 1, 1], [], []>} : vector<32x256xbf16>, vector<256x256xbf16>, vector<32x256xf32> -> vector<32x256xf32>
    %135 = vector.broadcast %129 : vector<1x256xf32> to vector<32x256xf32>
    %136 = arith.addf %135, %134 : vector<32x256xf32>
    %c256_67 = arith.constant 256 : index
    %c0_68 = arith.constant 0 : index
    %137 = vector.load %arg5[%c256_67, %c0_68] : memref<768x256xbf16, #tpu.memory_space<vmem>>, vector<256x256xbf16>
    %cst_69 = arith.constant dense<0.000000e+00> : vector<32x256xf32>
    %138 = tpu.matmul %130, %137, %cst_69 {dimension_numbers = #tpu.dot_dimension_numbers<[1], [0], [0], [1], [0, 0, 1, 1], [], []>} : vector<32x256xbf16>, vector<256x256xbf16>, vector<32x256xf32> -> vector<32x256xf32>
    %139 = arith.addf %136, %138 : vector<32x256xf32>
    %cst_70 = arith.constant dense<0.000000e+00> : vector<32x256xf32>
    %140 = tpu.matmul %110, %130, %cst_70 {dimension_numbers = #tpu.dot_dimension_numbers<[1], [0], [0], [1], [0, 0, 1, 1], [], []>} : vector<32x32xbf16>, vector<32x256xbf16>, vector<32x256xf32> -> vector<32x256xf32>
    %141 = arith.truncf %140 : vector<32x256xf32> to vector<32x256xbf16>
    %c512_71 = arith.constant 512 : index
    %c0_72 = arith.constant 0 : index
    %142 = vector.load %arg5[%c512_71, %c0_72] : memref<768x256xbf16, #tpu.memory_space<vmem>>, vector<256x256xbf16>
    %cst_73 = arith.constant dense<0.000000e+00> : vector<32x256xf32>
    %143 = tpu.matmul %141, %142, %cst_73 {dimension_numbers = #tpu.dot_dimension_numbers<[1], [0], [0], [1], [0, 0, 1, 1], [], []>} : vector<32x256xbf16>, vector<256x256xbf16>, vector<32x256xf32> -> vector<32x256xf32>
    %144 = arith.addf %139, %143 : vector<32x256xf32>
    %cst_74 = arith.constant 0.000000e+00 : f32
    %145 = vector.broadcast %cst_74 : f32 to vector<32x256xf32>
    %146 = arith.maximumf %144, %145 : vector<32x256xf32>
    %147 = tpu.iota {dimensions = array<i32: 0>} : vector<256x128xi32>
    %148 = tpu.iota {dimensions = array<i32: 1>} : vector<256x128xi32>
    %c7_i32 = arith.constant 7 : i32
    %149 = vector.broadcast %c7_i32 : i32 to vector<256x128xi32>
    %150 = arith.andi %148, %149 : vector<256x128xi32>
    %c2_i32_75 = arith.constant 2 : i32
    %151 = vector.broadcast %c2_i32_75 : i32 to vector<256x128xi32>
    %152 = arith.muli %151, %148 : vector<256x128xi32>
    %153 = arith.subi %152, %150 : vector<256x128xi32>
    %154 = arith.cmpi eq, %147, %153 : vector<256x128xi32>
    %cst_76 = arith.constant 1.000000e+00 : f32
    %cst_77 = arith.constant 0.000000e+00 : f32
    %155 = vector.broadcast %cst_76 : f32 to vector<256x128xf32>
    %156 = vector.broadcast %cst_77 : f32 to vector<256x128xf32>
    %157 = arith.select %154, %155, %156 : vector<256x128xi1>, vector<256x128xf32>
    %c2_i32_78 = arith.constant 2 : i32
    %158 = vector.broadcast %c2_i32_78 : i32 to vector<256x128xi32>
    %159 = arith.muli %158, %148 : vector<256x128xi32>
    %160 = arith.subi %159, %150 : vector<256x128xi32>
    %c8_i32 = arith.constant 8 : i32
    %161 = vector.broadcast %c8_i32 : i32 to vector<256x128xi32>
    %162 = arith.addi %160, %161 : vector<256x128xi32>
    %163 = arith.cmpi eq, %147, %162 : vector<256x128xi32>
    %cst_79 = arith.constant 1.000000e+00 : f32
    %cst_80 = arith.constant 0.000000e+00 : f32
    %164 = vector.broadcast %cst_79 : f32 to vector<256x128xf32>
    %165 = vector.broadcast %cst_80 : f32 to vector<256x128xf32>
    %166 = arith.select %163, %164, %165 : vector<256x128xi1>, vector<256x128xf32>
    %cst_81 = arith.constant dense<0.000000e+00> : vector<32x128xf32>
    %167 = tpu.matmul %146, %157, %cst_81 {dimension_numbers = #tpu.dot_dimension_numbers<[1], [0], [0], [1], [0, 0, 1, 1], [], []>} : vector<32x256xf32>, vector<256x128xf32>, vector<32x128xf32> -> vector<32x128xf32>
    %cst_82 = arith.constant dense<0.000000e+00> : vector<32x128xf32>
    %168 = tpu.matmul %146, %166, %cst_82 {dimension_numbers = #tpu.dot_dimension_numbers<[1], [0], [0], [1], [0, 0, 1, 1], [], []>} : vector<32x256xf32>, vector<256x128xf32>, vector<32x128xf32> -> vector<32x128xf32>
    %169 = arith.maximumf %167, %168 : vector<32x128xf32>
    %170 = tpu.iota {dimensions = array<i32: 0>} : vector<16x32xi32>
    %171 = tpu.iota {dimensions = array<i32: 1>} : vector<16x32xi32>
    %c2_i32_83 = arith.constant 2 : i32
    %172 = vector.broadcast %c2_i32_83 : i32 to vector<16x32xi32>
    %173 = arith.muli %172, %170 : vector<16x32xi32>
    %174 = arith.cmpi eq, %171, %173 : vector<16x32xi32>
    %cst_84 = arith.constant 1.000000e+00 : f32
    %cst_85 = arith.constant 0.000000e+00 : f32
    %175 = vector.broadcast %cst_84 : f32 to vector<16x32xf32>
    %176 = vector.broadcast %cst_85 : f32 to vector<16x32xf32>
    %177 = arith.select %174, %175, %176 : vector<16x32xi1>, vector<16x32xf32>
    %c2_i32_86 = arith.constant 2 : i32
    %178 = vector.broadcast %c2_i32_86 : i32 to vector<16x32xi32>
    %179 = arith.muli %178, %170 : vector<16x32xi32>
    %c1_i32_87 = arith.constant 1 : i32
    %180 = vector.broadcast %c1_i32_87 : i32 to vector<16x32xi32>
    %181 = arith.addi %179, %180 : vector<16x32xi32>
    %182 = arith.cmpi eq, %171, %181 : vector<16x32xi32>
    %cst_88 = arith.constant 1.000000e+00 : f32
    %cst_89 = arith.constant 0.000000e+00 : f32
    %183 = vector.broadcast %cst_88 : f32 to vector<16x32xf32>
    %184 = vector.broadcast %cst_89 : f32 to vector<16x32xf32>
    %185 = arith.select %182, %183, %184 : vector<16x32xi1>, vector<16x32xf32>
    %cst_90 = arith.constant dense<0.000000e+00> : vector<16x128xf32>
    %186 = tpu.matmul %177, %169, %cst_90 {dimension_numbers = #tpu.dot_dimension_numbers<[1], [0], [0], [1], [0, 0, 1, 1], [], []>} : vector<16x32xf32>, vector<32x128xf32>, vector<16x128xf32> -> vector<16x128xf32>
    %cst_91 = arith.constant dense<0.000000e+00> : vector<16x128xf32>
    %187 = tpu.matmul %185, %169, %cst_91 {dimension_numbers = #tpu.dot_dimension_numbers<[1], [0], [0], [1], [0, 0, 1, 1], [], []>} : vector<16x32xf32>, vector<32x128xf32>, vector<16x128xf32> -> vector<16x128xf32>
    %188 = arith.maximumf %186, %187 : vector<16x128xf32>
    %189 = tpu.iota {dimensions = array<i32: 0>} : vector<16x16xi32>
    %190 = tpu.iota {dimensions = array<i32: 1>} : vector<16x16xi32>
    %c1_i32_92 = arith.constant 1 : i32
    %191 = vector.broadcast %c1_i32_92 : i32 to vector<16x16xi32>
    %192 = arith.subi %189, %191 : vector<16x16xi32>
    %193 = arith.cmpi eq, %190, %192 : vector<16x16xi32>
    %cst_93 = arith.constant 1.000000e+00 : f32
    %cst_94 = arith.constant 0.000000e+00 : f32
    %194 = vector.broadcast %cst_93 : f32 to vector<16x16xf32>
    %195 = vector.broadcast %cst_94 : f32 to vector<16x16xf32>
    %196 = arith.select %193, %194, %195 : vector<16x16xi1>, vector<16x16xf32>
    %197 = arith.truncf %196 : vector<16x16xf32> to vector<16x16xbf16>
    %c1_i32_95 = arith.constant 1 : i32
    %198 = vector.broadcast %c1_i32_95 : i32 to vector<16x16xi32>
    %199 = arith.addi %189, %198 : vector<16x16xi32>
    %200 = arith.cmpi eq, %190, %199 : vector<16x16xi32>
    %cst_96 = arith.constant 1.000000e+00 : f32
    %cst_97 = arith.constant 0.000000e+00 : f32
    %201 = vector.broadcast %cst_96 : f32 to vector<16x16xf32>
    %202 = vector.broadcast %cst_97 : f32 to vector<16x16xf32>
    %203 = arith.select %200, %201, %202 : vector<16x16xi1>, vector<16x16xf32>
    %204 = arith.truncf %203 : vector<16x16xf32> to vector<16x16xbf16>
    %c4 = arith.constant 4 : index
    %c0_98 = arith.constant 0 : index
    %205 = vector.load %arg15[%c4, %c0_98] : memref<13x256xf32, #tpu.memory_space<vmem>>, vector<1x256xf32>
    %206 = arith.truncf %188 : vector<16x128xf32> to vector<16x128xbf16>
    %cst_99 = arith.constant dense<0.000000e+00> : vector<16x128xf32>
    %207 = tpu.matmul %197, %206, %cst_99 {dimension_numbers = #tpu.dot_dimension_numbers<[1], [0], [0], [1], [0, 0, 1, 1], [], []>} : vector<16x16xbf16>, vector<16x128xbf16>, vector<16x128xf32> -> vector<16x128xf32>
    %208 = arith.truncf %207 : vector<16x128xf32> to vector<16x128xbf16>
    %c0_100 = arith.constant 0 : index
    %c0_101 = arith.constant 0 : index
    %209 = vector.load %arg6[%c0_100, %c0_101] : memref<384x256xbf16, #tpu.memory_space<vmem>>, vector<128x256xbf16>
    %cst_102 = arith.constant dense<0.000000e+00> : vector<16x256xf32>
    %210 = tpu.matmul %208, %209, %cst_102 {dimension_numbers = #tpu.dot_dimension_numbers<[1], [0], [0], [1], [0, 0, 1, 1], [], []>} : vector<16x128xbf16>, vector<128x256xbf16>, vector<16x256xf32> -> vector<16x256xf32>
    %211 = vector.broadcast %205 : vector<1x256xf32> to vector<16x256xf32>
    %212 = arith.addf %211, %210 : vector<16x256xf32>
    %c128_103 = arith.constant 128 : index
    %c0_104 = arith.constant 0 : index
    %213 = vector.load %arg6[%c128_103, %c0_104] : memref<384x256xbf16, #tpu.memory_space<vmem>>, vector<128x256xbf16>
    %cst_105 = arith.constant dense<0.000000e+00> : vector<16x256xf32>
    %214 = tpu.matmul %206, %213, %cst_105 {dimension_numbers = #tpu.dot_dimension_numbers<[1], [0], [0], [1], [0, 0, 1, 1], [], []>} : vector<16x128xbf16>, vector<128x256xbf16>, vector<16x256xf32> -> vector<16x256xf32>
    %215 = arith.addf %212, %214 : vector<16x256xf32>
    %cst_106 = arith.constant dense<0.000000e+00> : vector<16x128xf32>
    %216 = tpu.matmul %204, %206, %cst_106 {dimension_numbers = #tpu.dot_dimension_numbers<[1], [0], [0], [1], [0, 0, 1, 1], [], []>} : vector<16x16xbf16>, vector<16x128xbf16>, vector<16x128xf32> -> vector<16x128xf32>
    %217 = arith.truncf %216 : vector<16x128xf32> to vector<16x128xbf16>
    %c256_107 = arith.constant 256 : index
    %c0_108 = arith.constant 0 : index
    %218 = vector.load %arg6[%c256_107, %c0_108] : memref<384x256xbf16, #tpu.memory_space<vmem>>, vector<128x256xbf16>
    %cst_109 = arith.constant dense<0.000000e+00> : vector<16x256xf32>
    %219 = tpu.matmul %217, %218, %cst_109 {dimension_numbers = #tpu.dot_dimension_numbers<[1], [0], [0], [1], [0, 0, 1, 1], [], []>} : vector<16x128xbf16>, vector<128x256xbf16>, vector<16x256xf32> -> vector<16x256xf32>
    %220 = arith.addf %215, %219 : vector<16x256xf32>
    %cst_110 = arith.constant 0.000000e+00 : f32
    %221 = vector.broadcast %cst_110 : f32 to vector<16x256xf32>
    %222 = arith.maximumf %220, %221 : vector<16x256xf32>
    %c5 = arith.constant 5 : index
    %c0_111 = arith.constant 0 : index
    %223 = vector.load %arg15[%c5, %c0_111] : memref<13x256xf32, #tpu.memory_space<vmem>>, vector<1x256xf32>
    %224 = arith.truncf %222 : vector<16x256xf32> to vector<16x256xbf16>
    %cst_112 = arith.constant dense<0.000000e+00> : vector<16x256xf32>
    %225 = tpu.matmul %197, %224, %cst_112 {dimension_numbers = #tpu.dot_dimension_numbers<[1], [0], [0], [1], [0, 0, 1, 1], [], []>} : vector<16x16xbf16>, vector<16x256xbf16>, vector<16x256xf32> -> vector<16x256xf32>
    %226 = arith.truncf %225 : vector<16x256xf32> to vector<16x256xbf16>
    %c0_113 = arith.constant 0 : index
    %c0_114 = arith.constant 0 : index
    %227 = vector.load %arg7[%c0_113, %c0_114] : memref<768x256xbf16, #tpu.memory_space<vmem>>, vector<256x256xbf16>
    %cst_115 = arith.constant dense<0.000000e+00> : vector<16x256xf32>
    %228 = tpu.matmul %226, %227, %cst_115 {dimension_numbers = #tpu.dot_dimension_numbers<[1], [0], [0], [1], [0, 0, 1, 1], [], []>} : vector<16x256xbf16>, vector<256x256xbf16>, vector<16x256xf32> -> vector<16x256xf32>
    %229 = vector.broadcast %223 : vector<1x256xf32> to vector<16x256xf32>
    %230 = arith.addf %229, %228 : vector<16x256xf32>
    %c256_116 = arith.constant 256 : index
    %c0_117 = arith.constant 0 : index
    %231 = vector.load %arg7[%c256_116, %c0_117] : memref<768x256xbf16, #tpu.memory_space<vmem>>, vector<256x256xbf16>
    %cst_118 = arith.constant dense<0.000000e+00> : vector<16x256xf32>
    %232 = tpu.matmul %224, %231, %cst_118 {dimension_numbers = #tpu.dot_dimension_numbers<[1], [0], [0], [1], [0, 0, 1, 1], [], []>} : vector<16x256xbf16>, vector<256x256xbf16>, vector<16x256xf32> -> vector<16x256xf32>
    %233 = arith.addf %230, %232 : vector<16x256xf32>
    %cst_119 = arith.constant dense<0.000000e+00> : vector<16x256xf32>
    %234 = tpu.matmul %204, %224, %cst_119 {dimension_numbers = #tpu.dot_dimension_numbers<[1], [0], [0], [1], [0, 0, 1, 1], [], []>} : vector<16x16xbf16>, vector<16x256xbf16>, vector<16x256xf32> -> vector<16x256xf32>
    %235 = arith.truncf %234 : vector<16x256xf32> to vector<16x256xbf16>
    %c512_120 = arith.constant 512 : index
    %c0_121 = arith.constant 0 : index
    %236 = vector.load %arg7[%c512_120, %c0_121] : memref<768x256xbf16, #tpu.memory_space<vmem>>, vector<256x256xbf16>
    %cst_122 = arith.constant dense<0.000000e+00> : vector<16x256xf32>
    %237 = tpu.matmul %235, %236, %cst_122 {dimension_numbers = #tpu.dot_dimension_numbers<[1], [0], [0], [1], [0, 0, 1, 1], [], []>} : vector<16x256xbf16>, vector<256x256xbf16>, vector<16x256xf32> -> vector<16x256xf32>
    %238 = arith.addf %233, %237 : vector<16x256xf32>
    %cst_123 = arith.constant 0.000000e+00 : f32
    %239 = vector.broadcast %cst_123 : f32 to vector<16x256xf32>
    %240 = arith.maximumf %238, %239 : vector<16x256xf32>
    %c6 = arith.constant 6 : index
    %c0_124 = arith.constant 0 : index
    %241 = vector.load %arg15[%c6, %c0_124] : memref<13x256xf32, #tpu.memory_space<vmem>>, vector<1x256xf32>
    %242 = arith.truncf %240 : vector<16x256xf32> to vector<16x256xbf16>
    %cst_125 = arith.constant dense<0.000000e+00> : vector<16x256xf32>
    %243 = tpu.matmul %197, %242, %cst_125 {dimension_numbers = #tpu.dot_dimension_numbers<[1], [0], [0], [1], [0, 0, 1, 1], [], []>} : vector<16x16xbf16>, vector<16x256xbf16>, vector<16x256xf32> -> vector<16x256xf32>
    %244 = arith.truncf %243 : vector<16x256xf32> to vector<16x256xbf16>
    %c0_126 = arith.constant 0 : index
    %c0_127 = arith.constant 0 : index
    %245 = vector.load %arg8[%c0_126, %c0_127] : memref<768x256xbf16, #tpu.memory_space<vmem>>, vector<256x256xbf16>
    %cst_128 = arith.constant dense<0.000000e+00> : vector<16x256xf32>
    %246 = tpu.matmul %244, %245, %cst_128 {dimension_numbers = #tpu.dot_dimension_numbers<[1], [0], [0], [1], [0, 0, 1, 1], [], []>} : vector<16x256xbf16>, vector<256x256xbf16>, vector<16x256xf32> -> vector<16x256xf32>
    %247 = vector.broadcast %241 : vector<1x256xf32> to vector<16x256xf32>
    %248 = arith.addf %247, %246 : vector<16x256xf32>
    %c256_129 = arith.constant 256 : index
    %c0_130 = arith.constant 0 : index
    %249 = vector.load %arg8[%c256_129, %c0_130] : memref<768x256xbf16, #tpu.memory_space<vmem>>, vector<256x256xbf16>
    %cst_131 = arith.constant dense<0.000000e+00> : vector<16x256xf32>
    %250 = tpu.matmul %242, %249, %cst_131 {dimension_numbers = #tpu.dot_dimension_numbers<[1], [0], [0], [1], [0, 0, 1, 1], [], []>} : vector<16x256xbf16>, vector<256x256xbf16>, vector<16x256xf32> -> vector<16x256xf32>
    %251 = arith.addf %248, %250 : vector<16x256xf32>
    %cst_132 = arith.constant dense<0.000000e+00> : vector<16x256xf32>
    %252 = tpu.matmul %204, %242, %cst_132 {dimension_numbers = #tpu.dot_dimension_numbers<[1], [0], [0], [1], [0, 0, 1, 1], [], []>} : vector<16x16xbf16>, vector<16x256xbf16>, vector<16x256xf32> -> vector<16x256xf32>
    %253 = arith.truncf %252 : vector<16x256xf32> to vector<16x256xbf16>
    %c512_133 = arith.constant 512 : index
    %c0_134 = arith.constant 0 : index
    %254 = vector.load %arg8[%c512_133, %c0_134] : memref<768x256xbf16, #tpu.memory_space<vmem>>, vector<256x256xbf16>
    %cst_135 = arith.constant dense<0.000000e+00> : vector<16x256xf32>
    %255 = tpu.matmul %253, %254, %cst_135 {dimension_numbers = #tpu.dot_dimension_numbers<[1], [0], [0], [1], [0, 0, 1, 1], [], []>} : vector<16x256xbf16>, vector<256x256xbf16>, vector<16x256xf32> -> vector<16x256xf32>
    %256 = arith.addf %251, %255 : vector<16x256xf32>
    %cst_136 = arith.constant 0.000000e+00 : f32
    %257 = vector.broadcast %cst_136 : f32 to vector<16x256xf32>
    %258 = arith.maximumf %256, %257 : vector<16x256xf32>
    %259 = tpu.iota {dimensions = array<i32: 0>} : vector<256x128xi32>
    %260 = tpu.iota {dimensions = array<i32: 1>} : vector<256x128xi32>
    %c15_i32 = arith.constant 15 : i32
    %261 = vector.broadcast %c15_i32 : i32 to vector<256x128xi32>
    %262 = arith.andi %260, %261 : vector<256x128xi32>
    %c2_i32_137 = arith.constant 2 : i32
    %263 = vector.broadcast %c2_i32_137 : i32 to vector<256x128xi32>
    %264 = arith.muli %263, %260 : vector<256x128xi32>
    %265 = arith.subi %264, %262 : vector<256x128xi32>
    %266 = arith.cmpi eq, %259, %265 : vector<256x128xi32>
    %cst_138 = arith.constant 1.000000e+00 : f32
    %cst_139 = arith.constant 0.000000e+00 : f32
    %267 = vector.broadcast %cst_138 : f32 to vector<256x128xf32>
    %268 = vector.broadcast %cst_139 : f32 to vector<256x128xf32>
    %269 = arith.select %266, %267, %268 : vector<256x128xi1>, vector<256x128xf32>
    %c2_i32_140 = arith.constant 2 : i32
    %270 = vector.broadcast %c2_i32_140 : i32 to vector<256x128xi32>
    %271 = arith.muli %270, %260 : vector<256x128xi32>
    %272 = arith.subi %271, %262 : vector<256x128xi32>
    %c16_i32 = arith.constant 16 : i32
    %273 = vector.broadcast %c16_i32 : i32 to vector<256x128xi32>
    %274 = arith.addi %272, %273 : vector<256x128xi32>
    %275 = arith.cmpi eq, %259, %274 : vector<256x128xi32>
    %cst_141 = arith.constant 1.000000e+00 : f32
    %cst_142 = arith.constant 0.000000e+00 : f32
    %276 = vector.broadcast %cst_141 : f32 to vector<256x128xf32>
    %277 = vector.broadcast %cst_142 : f32 to vector<256x128xf32>
    %278 = arith.select %275, %276, %277 : vector<256x128xi1>, vector<256x128xf32>
    %cst_143 = arith.constant dense<0.000000e+00> : vector<16x128xf32>
    %279 = tpu.matmul %258, %269, %cst_143 {dimension_numbers = #tpu.dot_dimension_numbers<[1], [0], [0], [1], [0, 0, 1, 1], [], []>} : vector<16x256xf32>, vector<256x128xf32>, vector<16x128xf32> -> vector<16x128xf32>
    %cst_144 = arith.constant dense<0.000000e+00> : vector<16x128xf32>
    %280 = tpu.matmul %258, %278, %cst_144 {dimension_numbers = #tpu.dot_dimension_numbers<[1], [0], [0], [1], [0, 0, 1, 1], [], []>} : vector<16x256xf32>, vector<256x128xf32>, vector<16x128xf32> -> vector<16x128xf32>
    %281 = arith.maximumf %279, %280 : vector<16x128xf32>
    %282 = tpu.iota {dimensions = array<i32: 0>} : vector<8x16xi32>
    %283 = tpu.iota {dimensions = array<i32: 1>} : vector<8x16xi32>
    %c2_i32_145 = arith.constant 2 : i32
    %284 = vector.broadcast %c2_i32_145 : i32 to vector<8x16xi32>
    %285 = arith.muli %284, %282 : vector<8x16xi32>
    %286 = arith.cmpi eq, %283, %285 : vector<8x16xi32>
    %cst_146 = arith.constant 1.000000e+00 : f32
    %cst_147 = arith.constant 0.000000e+00 : f32
    %287 = vector.broadcast %cst_146 : f32 to vector<8x16xf32>
    %288 = vector.broadcast %cst_147 : f32 to vector<8x16xf32>
    %289 = arith.select %286, %287, %288 : vector<8x16xi1>, vector<8x16xf32>
    %c2_i32_148 = arith.constant 2 : i32
    %290 = vector.broadcast %c2_i32_148 : i32 to vector<8x16xi32>
    %291 = arith.muli %290, %282 : vector<8x16xi32>
    %c1_i32_149 = arith.constant 1 : i32
    %292 = vector.broadcast %c1_i32_149 : i32 to vector<8x16xi32>
    %293 = arith.addi %291, %292 : vector<8x16xi32>
    %294 = arith.cmpi eq, %283, %293 : vector<8x16xi32>
    %cst_150 = arith.constant 1.000000e+00 : f32
    %cst_151 = arith.constant 0.000000e+00 : f32
    %295 = vector.broadcast %cst_150 : f32 to vector<8x16xf32>
    %296 = vector.broadcast %cst_151 : f32 to vector<8x16xf32>
    %297 = arith.select %294, %295, %296 : vector<8x16xi1>, vector<8x16xf32>
    %cst_152 = arith.constant dense<0.000000e+00> : vector<8x128xf32>
    %298 = tpu.matmul %289, %281, %cst_152 {dimension_numbers = #tpu.dot_dimension_numbers<[1], [0], [0], [1], [0, 0, 1, 1], [], []>} : vector<8x16xf32>, vector<16x128xf32>, vector<8x128xf32> -> vector<8x128xf32>
    %cst_153 = arith.constant dense<0.000000e+00> : vector<8x128xf32>
    %299 = tpu.matmul %297, %281, %cst_153 {dimension_numbers = #tpu.dot_dimension_numbers<[1], [0], [0], [1], [0, 0, 1, 1], [], []>} : vector<8x16xf32>, vector<16x128xf32>, vector<8x128xf32> -> vector<8x128xf32>
    %300 = arith.maximumf %298, %299 : vector<8x128xf32>
    %301 = tpu.iota {dimensions = array<i32: 0>} : vector<8x8xi32>
    %302 = tpu.iota {dimensions = array<i32: 1>} : vector<8x8xi32>
    %c1_i32_154 = arith.constant 1 : i32
    %303 = vector.broadcast %c1_i32_154 : i32 to vector<8x8xi32>
    %304 = arith.subi %301, %303 : vector<8x8xi32>
    %305 = arith.cmpi eq, %302, %304 : vector<8x8xi32>
    %cst_155 = arith.constant 1.000000e+00 : f32
    %cst_156 = arith.constant 0.000000e+00 : f32
    %306 = vector.broadcast %cst_155 : f32 to vector<8x8xf32>
    %307 = vector.broadcast %cst_156 : f32 to vector<8x8xf32>
    %308 = arith.select %305, %306, %307 : vector<8x8xi1>, vector<8x8xf32>
    %309 = arith.truncf %308 : vector<8x8xf32> to vector<8x8xbf16>
    %c1_i32_157 = arith.constant 1 : i32
    %310 = vector.broadcast %c1_i32_157 : i32 to vector<8x8xi32>
    %311 = arith.addi %301, %310 : vector<8x8xi32>
    %312 = arith.cmpi eq, %302, %311 : vector<8x8xi32>
    %cst_158 = arith.constant 1.000000e+00 : f32
    %cst_159 = arith.constant 0.000000e+00 : f32
    %313 = vector.broadcast %cst_158 : f32 to vector<8x8xf32>
    %314 = vector.broadcast %cst_159 : f32 to vector<8x8xf32>
    %315 = arith.select %312, %313, %314 : vector<8x8xi1>, vector<8x8xf32>
    %316 = arith.truncf %315 : vector<8x8xf32> to vector<8x8xbf16>
    %c7 = arith.constant 7 : index
    %c0_160 = arith.constant 0 : index
    %317 = vector.load %arg15[%c7, %c0_160] : memref<13x256xf32, #tpu.memory_space<vmem>>, vector<1x256xf32>
    %318 = arith.truncf %300 : vector<8x128xf32> to vector<8x128xbf16>
    %cst_161 = arith.constant dense<0.000000e+00> : vector<8x128xf32>
    %319 = tpu.matmul %309, %318, %cst_161 {dimension_numbers = #tpu.dot_dimension_numbers<[1], [0], [0], [1], [0, 0, 1, 1], [], []>} : vector<8x8xbf16>, vector<8x128xbf16>, vector<8x128xf32> -> vector<8x128xf32>
    %320 = arith.truncf %319 : vector<8x128xf32> to vector<8x128xbf16>
    %c0_162 = arith.constant 0 : index
    %c0_163 = arith.constant 0 : index
    %321 = vector.load %arg9[%c0_162, %c0_163] : memref<384x256xbf16, #tpu.memory_space<vmem>>, vector<128x256xbf16>
    %cst_164 = arith.constant dense<0.000000e+00> : vector<8x256xf32>
    %322 = tpu.matmul %320, %321, %cst_164 {dimension_numbers = #tpu.dot_dimension_numbers<[1], [0], [0], [1], [0, 0, 1, 1], [], []>} : vector<8x128xbf16>, vector<128x256xbf16>, vector<8x256xf32> -> vector<8x256xf32>
    %323 = vector.broadcast %317 : vector<1x256xf32> to vector<8x256xf32>
    %324 = arith.addf %323, %322 : vector<8x256xf32>
    %c128_165 = arith.constant 128 : index
    %c0_166 = arith.constant 0 : index
    %325 = vector.load %arg9[%c128_165, %c0_166] : memref<384x256xbf16, #tpu.memory_space<vmem>>, vector<128x256xbf16>
    %cst_167 = arith.constant dense<0.000000e+00> : vector<8x256xf32>
    %326 = tpu.matmul %318, %325, %cst_167 {dimension_numbers = #tpu.dot_dimension_numbers<[1], [0], [0], [1], [0, 0, 1, 1], [], []>} : vector<8x128xbf16>, vector<128x256xbf16>, vector<8x256xf32> -> vector<8x256xf32>
    %327 = arith.addf %324, %326 : vector<8x256xf32>
    %cst_168 = arith.constant dense<0.000000e+00> : vector<8x128xf32>
    %328 = tpu.matmul %316, %318, %cst_168 {dimension_numbers = #tpu.dot_dimension_numbers<[1], [0], [0], [1], [0, 0, 1, 1], [], []>} : vector<8x8xbf16>, vector<8x128xbf16>, vector<8x128xf32> -> vector<8x128xf32>
    %329 = arith.truncf %328 : vector<8x128xf32> to vector<8x128xbf16>
    %c256_169 = arith.constant 256 : index
    %c0_170 = arith.constant 0 : index
    %330 = vector.load %arg9[%c256_169, %c0_170] : memref<384x256xbf16, #tpu.memory_space<vmem>>, vector<128x256xbf16>
    %cst_171 = arith.constant dense<0.000000e+00> : vector<8x256xf32>
    %331 = tpu.matmul %329, %330, %cst_171 {dimension_numbers = #tpu.dot_dimension_numbers<[1], [0], [0], [1], [0, 0, 1, 1], [], []>} : vector<8x128xbf16>, vector<128x256xbf16>, vector<8x256xf32> -> vector<8x256xf32>
    %332 = arith.addf %327, %331 : vector<8x256xf32>
    %cst_172 = arith.constant 0.000000e+00 : f32
    %333 = vector.broadcast %cst_172 : f32 to vector<8x256xf32>
    %334 = arith.maximumf %332, %333 : vector<8x256xf32>
    %c8 = arith.constant 8 : index
    %c0_173 = arith.constant 0 : index
    %335 = vector.load %arg15[%c8, %c0_173] : memref<13x256xf32, #tpu.memory_space<vmem>>, vector<1x256xf32>
    %336 = arith.truncf %334 : vector<8x256xf32> to vector<8x256xbf16>
    %cst_174 = arith.constant dense<0.000000e+00> : vector<8x256xf32>
    %337 = tpu.matmul %309, %336, %cst_174 {dimension_numbers = #tpu.dot_dimension_numbers<[1], [0], [0], [1], [0, 0, 1, 1], [], []>} : vector<8x8xbf16>, vector<8x256xbf16>, vector<8x256xf32> -> vector<8x256xf32>
    %338 = arith.truncf %337 : vector<8x256xf32> to vector<8x256xbf16>
    %c0_175 = arith.constant 0 : index
    %c0_176 = arith.constant 0 : index
    %339 = vector.load %arg10[%c0_175, %c0_176] : memref<768x256xbf16, #tpu.memory_space<vmem>>, vector<256x256xbf16>
    %cst_177 = arith.constant dense<0.000000e+00> : vector<8x256xf32>
    %340 = tpu.matmul %338, %339, %cst_177 {dimension_numbers = #tpu.dot_dimension_numbers<[1], [0], [0], [1], [0, 0, 1, 1], [], []>} : vector<8x256xbf16>, vector<256x256xbf16>, vector<8x256xf32> -> vector<8x256xf32>
    %341 = vector.broadcast %335 : vector<1x256xf32> to vector<8x256xf32>
    %342 = arith.addf %341, %340 : vector<8x256xf32>
    %c256_178 = arith.constant 256 : index
    %c0_179 = arith.constant 0 : index
    %343 = vector.load %arg10[%c256_178, %c0_179] : memref<768x256xbf16, #tpu.memory_space<vmem>>, vector<256x256xbf16>
    %cst_180 = arith.constant dense<0.000000e+00> : vector<8x256xf32>
    %344 = tpu.matmul %336, %343, %cst_180 {dimension_numbers = #tpu.dot_dimension_numbers<[1], [0], [0], [1], [0, 0, 1, 1], [], []>} : vector<8x256xbf16>, vector<256x256xbf16>, vector<8x256xf32> -> vector<8x256xf32>
    %345 = arith.addf %342, %344 : vector<8x256xf32>
    %cst_181 = arith.constant dense<0.000000e+00> : vector<8x256xf32>
    %346 = tpu.matmul %316, %336, %cst_181 {dimension_numbers = #tpu.dot_dimension_numbers<[1], [0], [0], [1], [0, 0, 1, 1], [], []>} : vector<8x8xbf16>, vector<8x256xbf16>, vector<8x256xf32> -> vector<8x256xf32>
    %347 = arith.truncf %346 : vector<8x256xf32> to vector<8x256xbf16>
    %c512_182 = arith.constant 512 : index
    %c0_183 = arith.constant 0 : index
    %348 = vector.load %arg10[%c512_182, %c0_183] : memref<768x256xbf16, #tpu.memory_space<vmem>>, vector<256x256xbf16>
    %cst_184 = arith.constant dense<0.000000e+00> : vector<8x256xf32>
    %349 = tpu.matmul %347, %348, %cst_184 {dimension_numbers = #tpu.dot_dimension_numbers<[1], [0], [0], [1], [0, 0, 1, 1], [], []>} : vector<8x256xbf16>, vector<256x256xbf16>, vector<8x256xf32> -> vector<8x256xf32>
    %350 = arith.addf %345, %349 : vector<8x256xf32>
    %cst_185 = arith.constant 0.000000e+00 : f32
    %351 = vector.broadcast %cst_185 : f32 to vector<8x256xf32>
    %352 = arith.maximumf %350, %351 : vector<8x256xf32>
    %c9 = arith.constant 9 : index
    %c0_186 = arith.constant 0 : index
    %353 = vector.load %arg15[%c9, %c0_186] : memref<13x256xf32, #tpu.memory_space<vmem>>, vector<1x256xf32>
    %354 = arith.truncf %352 : vector<8x256xf32> to vector<8x256xbf16>
    %cst_187 = arith.constant dense<0.000000e+00> : vector<8x256xf32>
    %355 = tpu.matmul %309, %354, %cst_187 {dimension_numbers = #tpu.dot_dimension_numbers<[1], [0], [0], [1], [0, 0, 1, 1], [], []>} : vector<8x8xbf16>, vector<8x256xbf16>, vector<8x256xf32> -> vector<8x256xf32>
    %356 = arith.truncf %355 : vector<8x256xf32> to vector<8x256xbf16>
    %c0_188 = arith.constant 0 : index
    %c0_189 = arith.constant 0 : index
    %357 = vector.load %arg11[%c0_188, %c0_189] : memref<768x256xbf16, #tpu.memory_space<vmem>>, vector<256x256xbf16>
    %cst_190 = arith.constant dense<0.000000e+00> : vector<8x256xf32>
    %358 = tpu.matmul %356, %357, %cst_190 {dimension_numbers = #tpu.dot_dimension_numbers<[1], [0], [0], [1], [0, 0, 1, 1], [], []>} : vector<8x256xbf16>, vector<256x256xbf16>, vector<8x256xf32> -> vector<8x256xf32>
    %359 = vector.broadcast %353 : vector<1x256xf32> to vector<8x256xf32>
    %360 = arith.addf %359, %358 : vector<8x256xf32>
    %c256_191 = arith.constant 256 : index
    %c0_192 = arith.constant 0 : index
    %361 = vector.load %arg11[%c256_191, %c0_192] : memref<768x256xbf16, #tpu.memory_space<vmem>>, vector<256x256xbf16>
    %cst_193 = arith.constant dense<0.000000e+00> : vector<8x256xf32>
    %362 = tpu.matmul %354, %361, %cst_193 {dimension_numbers = #tpu.dot_dimension_numbers<[1], [0], [0], [1], [0, 0, 1, 1], [], []>} : vector<8x256xbf16>, vector<256x256xbf16>, vector<8x256xf32> -> vector<8x256xf32>
    %363 = arith.addf %360, %362 : vector<8x256xf32>
    %cst_194 = arith.constant dense<0.000000e+00> : vector<8x256xf32>
    %364 = tpu.matmul %316, %354, %cst_194 {dimension_numbers = #tpu.dot_dimension_numbers<[1], [0], [0], [1], [0, 0, 1, 1], [], []>} : vector<8x8xbf16>, vector<8x256xbf16>, vector<8x256xf32> -> vector<8x256xf32>
    %365 = arith.truncf %364 : vector<8x256xf32> to vector<8x256xbf16>
    %c512_195 = arith.constant 512 : index
    %c0_196 = arith.constant 0 : index
    %366 = vector.load %arg11[%c512_195, %c0_196] : memref<768x256xbf16, #tpu.memory_space<vmem>>, vector<256x256xbf16>
    %cst_197 = arith.constant dense<0.000000e+00> : vector<8x256xf32>
    %367 = tpu.matmul %365, %366, %cst_197 {dimension_numbers = #tpu.dot_dimension_numbers<[1], [0], [0], [1], [0, 0, 1, 1], [], []>} : vector<8x256xbf16>, vector<256x256xbf16>, vector<8x256xf32> -> vector<8x256xf32>
    %368 = arith.addf %363, %367 : vector<8x256xf32>
    %cst_198 = arith.constant 0.000000e+00 : f32
    %369 = vector.broadcast %cst_198 : f32 to vector<8x256xf32>
    %370 = arith.maximumf %368, %369 : vector<8x256xf32>
    %371 = tpu.iota {dimensions = array<i32: 0>} : vector<256x128xi32>
    %372 = tpu.iota {dimensions = array<i32: 1>} : vector<256x128xi32>
    %c31_i32 = arith.constant 31 : i32
    %373 = vector.broadcast %c31_i32 : i32 to vector<256x128xi32>
    %374 = arith.andi %372, %373 : vector<256x128xi32>
    %c2_i32_199 = arith.constant 2 : i32
    %375 = vector.broadcast %c2_i32_199 : i32 to vector<256x128xi32>
    %376 = arith.muli %375, %372 : vector<256x128xi32>
    %377 = arith.subi %376, %374 : vector<256x128xi32>
    %378 = arith.cmpi eq, %371, %377 : vector<256x128xi32>
    %cst_200 = arith.constant 1.000000e+00 : f32
    %cst_201 = arith.constant 0.000000e+00 : f32
    %379 = vector.broadcast %cst_200 : f32 to vector<256x128xf32>
    %380 = vector.broadcast %cst_201 : f32 to vector<256x128xf32>
    %381 = arith.select %378, %379, %380 : vector<256x128xi1>, vector<256x128xf32>
    %c2_i32_202 = arith.constant 2 : i32
    %382 = vector.broadcast %c2_i32_202 : i32 to vector<256x128xi32>
    %383 = arith.muli %382, %372 : vector<256x128xi32>
    %384 = arith.subi %383, %374 : vector<256x128xi32>
    %c32_i32 = arith.constant 32 : i32
    %385 = vector.broadcast %c32_i32 : i32 to vector<256x128xi32>
    %386 = arith.addi %384, %385 : vector<256x128xi32>
    %387 = arith.cmpi eq, %371, %386 : vector<256x128xi32>
    %cst_203 = arith.constant 1.000000e+00 : f32
    %cst_204 = arith.constant 0.000000e+00 : f32
    %388 = vector.broadcast %cst_203 : f32 to vector<256x128xf32>
    %389 = vector.broadcast %cst_204 : f32 to vector<256x128xf32>
    %390 = arith.select %387, %388, %389 : vector<256x128xi1>, vector<256x128xf32>
    %cst_205 = arith.constant dense<0.000000e+00> : vector<8x128xf32>
    %391 = tpu.matmul %370, %381, %cst_205 {dimension_numbers = #tpu.dot_dimension_numbers<[1], [0], [0], [1], [0, 0, 1, 1], [], []>} : vector<8x256xf32>, vector<256x128xf32>, vector<8x128xf32> -> vector<8x128xf32>
    %cst_206 = arith.constant dense<0.000000e+00> : vector<8x128xf32>
    %392 = tpu.matmul %370, %390, %cst_206 {dimension_numbers = #tpu.dot_dimension_numbers<[1], [0], [0], [1], [0, 0, 1, 1], [], []>} : vector<8x256xf32>, vector<256x128xf32>, vector<8x128xf32> -> vector<8x128xf32>
    %393 = arith.maximumf %391, %392 : vector<8x128xf32>
    %394 = tpu.iota {dimensions = array<i32: 0>} : vector<4x8xi32>
    %395 = tpu.iota {dimensions = array<i32: 1>} : vector<4x8xi32>
    %c2_i32_207 = arith.constant 2 : i32
    %396 = vector.broadcast %c2_i32_207 : i32 to vector<4x8xi32>
    %397 = arith.muli %396, %394 : vector<4x8xi32>
    %398 = arith.cmpi eq, %395, %397 : vector<4x8xi32>
    %cst_208 = arith.constant 1.000000e+00 : f32
    %cst_209 = arith.constant 0.000000e+00 : f32
    %399 = vector.broadcast %cst_208 : f32 to vector<4x8xf32>
    %400 = vector.broadcast %cst_209 : f32 to vector<4x8xf32>
    %401 = arith.select %398, %399, %400 : vector<4x8xi1>, vector<4x8xf32>
    %c2_i32_210 = arith.constant 2 : i32
    %402 = vector.broadcast %c2_i32_210 : i32 to vector<4x8xi32>
    %403 = arith.muli %402, %394 : vector<4x8xi32>
    %c1_i32_211 = arith.constant 1 : i32
    %404 = vector.broadcast %c1_i32_211 : i32 to vector<4x8xi32>
    %405 = arith.addi %403, %404 : vector<4x8xi32>
    %406 = arith.cmpi eq, %395, %405 : vector<4x8xi32>
    %cst_212 = arith.constant 1.000000e+00 : f32
    %cst_213 = arith.constant 0.000000e+00 : f32
    %407 = vector.broadcast %cst_212 : f32 to vector<4x8xf32>
    %408 = vector.broadcast %cst_213 : f32 to vector<4x8xf32>
    %409 = arith.select %406, %407, %408 : vector<4x8xi1>, vector<4x8xf32>
    %cst_214 = arith.constant dense<0.000000e+00> : vector<4x128xf32>
    %410 = tpu.matmul %401, %393, %cst_214 {dimension_numbers = #tpu.dot_dimension_numbers<[1], [0], [0], [1], [0, 0, 1, 1], [], []>} : vector<4x8xf32>, vector<8x128xf32>, vector<4x128xf32> -> vector<4x128xf32>
    %cst_215 = arith.constant dense<0.000000e+00> : vector<4x128xf32>
    %411 = tpu.matmul %409, %393, %cst_215 {dimension_numbers = #tpu.dot_dimension_numbers<[1], [0], [0], [1], [0, 0, 1, 1], [], []>} : vector<4x8xf32>, vector<8x128xf32>, vector<4x128xf32> -> vector<4x128xf32>
    %412 = arith.maximumf %410, %411 : vector<4x128xf32>
    %413 = tpu.iota {dimensions = array<i32: 0>} : vector<4x4xi32>
    %414 = tpu.iota {dimensions = array<i32: 1>} : vector<4x4xi32>
    %c1_i32_216 = arith.constant 1 : i32
    %415 = vector.broadcast %c1_i32_216 : i32 to vector<4x4xi32>
    %416 = arith.subi %413, %415 : vector<4x4xi32>
    %417 = arith.cmpi eq, %414, %416 : vector<4x4xi32>
    %cst_217 = arith.constant 1.000000e+00 : f32
    %cst_218 = arith.constant 0.000000e+00 : f32
    %418 = vector.broadcast %cst_217 : f32 to vector<4x4xf32>
    %419 = vector.broadcast %cst_218 : f32 to vector<4x4xf32>
    %420 = arith.select %417, %418, %419 : vector<4x4xi1>, vector<4x4xf32>
    %421 = arith.truncf %420 : vector<4x4xf32> to vector<4x4xbf16>
    %c1_i32_219 = arith.constant 1 : i32
    %422 = vector.broadcast %c1_i32_219 : i32 to vector<4x4xi32>
    %423 = arith.addi %413, %422 : vector<4x4xi32>
    %424 = arith.cmpi eq, %414, %423 : vector<4x4xi32>
    %cst_220 = arith.constant 1.000000e+00 : f32
    %cst_221 = arith.constant 0.000000e+00 : f32
    %425 = vector.broadcast %cst_220 : f32 to vector<4x4xf32>
    %426 = vector.broadcast %cst_221 : f32 to vector<4x4xf32>
    %427 = arith.select %424, %425, %426 : vector<4x4xi1>, vector<4x4xf32>
    %428 = arith.truncf %427 : vector<4x4xf32> to vector<4x4xbf16>
    %c10 = arith.constant 10 : index
    %c0_222 = arith.constant 0 : index
    %429 = vector.load %arg15[%c10, %c0_222] : memref<13x256xf32, #tpu.memory_space<vmem>>, vector<1x128xf32>
    %430 = arith.truncf %412 : vector<4x128xf32> to vector<4x128xbf16>
    %cst_223 = arith.constant dense<0.000000e+00> : vector<4x128xf32>
    %431 = tpu.matmul %421, %430, %cst_223 {dimension_numbers = #tpu.dot_dimension_numbers<[1], [0], [0], [1], [0, 0, 1, 1], [], []>} : vector<4x4xbf16>, vector<4x128xbf16>, vector<4x128xf32> -> vector<4x128xf32>
    %432 = arith.truncf %431 : vector<4x128xf32> to vector<4x128xbf16>
    %c0_224 = arith.constant 0 : index
    %c0_225 = arith.constant 0 : index
    %433 = vector.load %arg12[%c0_224, %c0_225] : memref<384x128xbf16, #tpu.memory_space<vmem>>, vector<128x128xbf16>
    %cst_226 = arith.constant dense<0.000000e+00> : vector<4x128xf32>
    %434 = tpu.matmul %432, %433, %cst_226 {dimension_numbers = #tpu.dot_dimension_numbers<[1], [0], [0], [1], [0, 0, 1, 1], [], []>} : vector<4x128xbf16>, vector<128x128xbf16>, vector<4x128xf32> -> vector<4x128xf32>
    %435 = vector.broadcast %429 : vector<1x128xf32> to vector<4x128xf32>
    %436 = arith.addf %435, %434 : vector<4x128xf32>
    %c128_227 = arith.constant 128 : index
    %c0_228 = arith.constant 0 : index
    %437 = vector.load %arg12[%c128_227, %c0_228] : memref<384x128xbf16, #tpu.memory_space<vmem>>, vector<128x128xbf16>
    %cst_229 = arith.constant dense<0.000000e+00> : vector<4x128xf32>
    %438 = tpu.matmul %430, %437, %cst_229 {dimension_numbers = #tpu.dot_dimension_numbers<[1], [0], [0], [1], [0, 0, 1, 1], [], []>} : vector<4x128xbf16>, vector<128x128xbf16>, vector<4x128xf32> -> vector<4x128xf32>
    %439 = arith.addf %436, %438 : vector<4x128xf32>
    %cst_230 = arith.constant dense<0.000000e+00> : vector<4x128xf32>
    %440 = tpu.matmul %428, %430, %cst_230 {dimension_numbers = #tpu.dot_dimension_numbers<[1], [0], [0], [1], [0, 0, 1, 1], [], []>} : vector<4x4xbf16>, vector<4x128xbf16>, vector<4x128xf32> -> vector<4x128xf32>
    %441 = arith.truncf %440 : vector<4x128xf32> to vector<4x128xbf16>
    %c256_231 = arith.constant 256 : index
    %c0_232 = arith.constant 0 : index
    %442 = vector.load %arg12[%c256_231, %c0_232] : memref<384x128xbf16, #tpu.memory_space<vmem>>, vector<128x128xbf16>
    %cst_233 = arith.constant dense<0.000000e+00> : vector<4x128xf32>
    %443 = tpu.matmul %441, %442, %cst_233 {dimension_numbers = #tpu.dot_dimension_numbers<[1], [0], [0], [1], [0, 0, 1, 1], [], []>} : vector<4x128xbf16>, vector<128x128xbf16>, vector<4x128xf32> -> vector<4x128xf32>
    %444 = arith.addf %439, %443 : vector<4x128xf32>
    %cst_234 = arith.constant 0.000000e+00 : f32
    %445 = vector.broadcast %cst_234 : f32 to vector<4x128xf32>
    %446 = arith.maximumf %444, %445 : vector<4x128xf32>
    %c11 = arith.constant 11 : index
    %c0_235 = arith.constant 0 : index
    %447 = vector.load %arg15[%c11, %c0_235] : memref<13x256xf32, #tpu.memory_space<vmem>>, vector<1x128xf32>
    %448 = arith.truncf %446 : vector<4x128xf32> to vector<4x128xbf16>
    %cst_236 = arith.constant dense<0.000000e+00> : vector<4x128xf32>
    %449 = tpu.matmul %421, %448, %cst_236 {dimension_numbers = #tpu.dot_dimension_numbers<[1], [0], [0], [1], [0, 0, 1, 1], [], []>} : vector<4x4xbf16>, vector<4x128xbf16>, vector<4x128xf32> -> vector<4x128xf32>
    %450 = arith.truncf %449 : vector<4x128xf32> to vector<4x128xbf16>
    %c0_237 = arith.constant 0 : index
    %c0_238 = arith.constant 0 : index
    %451 = vector.load %arg13[%c0_237, %c0_238] : memref<384x128xbf16, #tpu.memory_space<vmem>>, vector<128x128xbf16>
    %cst_239 = arith.constant dense<0.000000e+00> : vector<4x128xf32>
    %452 = tpu.matmul %450, %451, %cst_239 {dimension_numbers = #tpu.dot_dimension_numbers<[1], [0], [0], [1], [0, 0, 1, 1], [], []>} : vector<4x128xbf16>, vector<128x128xbf16>, vector<4x128xf32> -> vector<4x128xf32>
    %453 = vector.broadcast %447 : vector<1x128xf32> to vector<4x128xf32>
    %454 = arith.addf %453, %452 : vector<4x128xf32>
    %c128_240 = arith.constant 128 : index
    %c0_241 = arith.constant 0 : index
    %455 = vector.load %arg13[%c128_240, %c0_241] : memref<384x128xbf16, #tpu.memory_space<vmem>>, vector<128x128xbf16>
    %cst_242 = arith.constant dense<0.000000e+00> : vector<4x128xf32>
    %456 = tpu.matmul %448, %455, %cst_242 {dimension_numbers = #tpu.dot_dimension_numbers<[1], [0], [0], [1], [0, 0, 1, 1], [], []>} : vector<4x128xbf16>, vector<128x128xbf16>, vector<4x128xf32> -> vector<4x128xf32>
    %457 = arith.addf %454, %456 : vector<4x128xf32>
    %cst_243 = arith.constant dense<0.000000e+00> : vector<4x128xf32>
    %458 = tpu.matmul %428, %448, %cst_243 {dimension_numbers = #tpu.dot_dimension_numbers<[1], [0], [0], [1], [0, 0, 1, 1], [], []>} : vector<4x4xbf16>, vector<4x128xbf16>, vector<4x128xf32> -> vector<4x128xf32>
    %459 = arith.truncf %458 : vector<4x128xf32> to vector<4x128xbf16>
    %c256_244 = arith.constant 256 : index
    %c0_245 = arith.constant 0 : index
    %460 = vector.load %arg13[%c256_244, %c0_245] : memref<384x128xbf16, #tpu.memory_space<vmem>>, vector<128x128xbf16>
    %cst_246 = arith.constant dense<0.000000e+00> : vector<4x128xf32>
    %461 = tpu.matmul %459, %460, %cst_246 {dimension_numbers = #tpu.dot_dimension_numbers<[1], [0], [0], [1], [0, 0, 1, 1], [], []>} : vector<4x128xbf16>, vector<128x128xbf16>, vector<4x128xf32> -> vector<4x128xf32>
    %462 = arith.addf %457, %461 : vector<4x128xf32>
    %cst_247 = arith.constant 0.000000e+00 : f32
    %463 = vector.broadcast %cst_247 : f32 to vector<4x128xf32>
    %464 = arith.maximumf %462, %463 : vector<4x128xf32>
    %c12 = arith.constant 12 : index
    %c0_248 = arith.constant 0 : index
    %465 = vector.load %arg15[%c12, %c0_248] : memref<13x256xf32, #tpu.memory_space<vmem>>, vector<1x128xf32>
    %466 = arith.truncf %464 : vector<4x128xf32> to vector<4x128xbf16>
    %cst_249 = arith.constant dense<0.000000e+00> : vector<4x128xf32>
    %467 = tpu.matmul %421, %466, %cst_249 {dimension_numbers = #tpu.dot_dimension_numbers<[1], [0], [0], [1], [0, 0, 1, 1], [], []>} : vector<4x4xbf16>, vector<4x128xbf16>, vector<4x128xf32> -> vector<4x128xf32>
    %468 = arith.truncf %467 : vector<4x128xf32> to vector<4x128xbf16>
    %c0_250 = arith.constant 0 : index
    %c0_251 = arith.constant 0 : index
    %469 = vector.load %arg14[%c0_250, %c0_251] : memref<384x128xbf16, #tpu.memory_space<vmem>>, vector<128x128xbf16>
    %cst_252 = arith.constant dense<0.000000e+00> : vector<4x128xf32>
    %470 = tpu.matmul %468, %469, %cst_252 {dimension_numbers = #tpu.dot_dimension_numbers<[1], [0], [0], [1], [0, 0, 1, 1], [], []>} : vector<4x128xbf16>, vector<128x128xbf16>, vector<4x128xf32> -> vector<4x128xf32>
    %471 = vector.broadcast %465 : vector<1x128xf32> to vector<4x128xf32>
    %472 = arith.addf %471, %470 : vector<4x128xf32>
    %c128_253 = arith.constant 128 : index
    %c0_254 = arith.constant 0 : index
    %473 = vector.load %arg14[%c128_253, %c0_254] : memref<384x128xbf16, #tpu.memory_space<vmem>>, vector<128x128xbf16>
    %cst_255 = arith.constant dense<0.000000e+00> : vector<4x128xf32>
    %474 = tpu.matmul %466, %473, %cst_255 {dimension_numbers = #tpu.dot_dimension_numbers<[1], [0], [0], [1], [0, 0, 1, 1], [], []>} : vector<4x128xbf16>, vector<128x128xbf16>, vector<4x128xf32> -> vector<4x128xf32>
    %475 = arith.addf %472, %474 : vector<4x128xf32>
    %cst_256 = arith.constant dense<0.000000e+00> : vector<4x128xf32>
    %476 = tpu.matmul %428, %466, %cst_256 {dimension_numbers = #tpu.dot_dimension_numbers<[1], [0], [0], [1], [0, 0, 1, 1], [], []>} : vector<4x4xbf16>, vector<4x128xbf16>, vector<4x128xf32> -> vector<4x128xf32>
    %477 = arith.truncf %476 : vector<4x128xf32> to vector<4x128xbf16>
    %c256_257 = arith.constant 256 : index
    %c0_258 = arith.constant 0 : index
    %478 = vector.load %arg14[%c256_257, %c0_258] : memref<384x128xbf16, #tpu.memory_space<vmem>>, vector<128x128xbf16>
    %cst_259 = arith.constant dense<0.000000e+00> : vector<4x128xf32>
    %479 = tpu.matmul %477, %478, %cst_259 {dimension_numbers = #tpu.dot_dimension_numbers<[1], [0], [0], [1], [0, 0, 1, 1], [], []>} : vector<4x128xbf16>, vector<128x128xbf16>, vector<4x128xf32> -> vector<4x128xf32>
    %480 = arith.addf %475, %479 : vector<4x128xf32>
    %cst_260 = arith.constant 0.000000e+00 : f32
    %481 = vector.broadcast %cst_260 : f32 to vector<4x128xf32>
    %482 = arith.maximumf %480, %481 : vector<4x128xf32>
    %483 = vector.extract_strided_slice %482 {offsets = [1, 32], sizes = [1, 32], strides = [1, 1]} : vector<4x128xf32> to vector<1x32xf32>
    %484 = vector.extract_strided_slice %482 {offsets = [1, 64], sizes = [1, 32], strides = [1, 1]} : vector<4x128xf32> to vector<1x32xf32>
    %485 = vector.extract_strided_slice %482 {offsets = [2, 32], sizes = [1, 32], strides = [1, 1]} : vector<4x128xf32> to vector<1x32xf32>
    %486 = vector.extract_strided_slice %482 {offsets = [2, 64], sizes = [1, 32], strides = [1, 1]} : vector<4x128xf32> to vector<1x32xf32>
    %487 = arith.maximumf %483, %484 : vector<1x32xf32>
    %488 = arith.maximumf %483, %485 : vector<1x32xf32>
    %489 = arith.maximumf %483, %484 : vector<1x32xf32>
    %490 = arith.maximumf %489, %485 : vector<1x32xf32>
    %491 = arith.maximumf %490, %486 : vector<1x32xf32>
    %492 = arith.maximumf %484, %486 : vector<1x32xf32>
    %493 = arith.maximumf %485, %486 : vector<1x32xf32>
    %c0_261 = arith.constant 0 : index
    %c0_262 = arith.constant 0 : index
    %494 = vector.load %arg20[%c0_261, %c0_262] : memref<4x256xf32, #tpu.memory_space<vmem>>, vector<1x256xf32>
    %c0_263 = arith.constant 0 : index
    %c0_264 = arith.constant 0 : index
    %495 = vector.load %arg16[%c0_263, %c0_264] : memref<1568x256xbf16, #tpu.memory_space<vmem>>, vector<32x256xbf16>
    %496 = arith.truncf %483 : vector<1x32xf32> to vector<1x32xbf16>
    %cst_265 = arith.constant dense<0.000000e+00> : vector<1x256xf32>
    %497 = tpu.matmul %496, %495, %cst_265 {dimension_numbers = #tpu.dot_dimension_numbers<[1], [0], [0], [1], [0, 0, 1, 1], [], []>} : vector<1x32xbf16>, vector<32x256xbf16>, vector<1x256xf32> -> vector<1x256xf32>
    %498 = arith.addf %494, %497 : vector<1x256xf32>
    %c32 = arith.constant 32 : index
    %c0_266 = arith.constant 0 : index
    %499 = vector.load %arg16[%c32, %c0_266] : memref<1568x256xbf16, #tpu.memory_space<vmem>>, vector<32x256xbf16>
    %500 = arith.truncf %483 : vector<1x32xf32> to vector<1x32xbf16>
    %cst_267 = arith.constant dense<0.000000e+00> : vector<1x256xf32>
    %501 = tpu.matmul %500, %499, %cst_267 {dimension_numbers = #tpu.dot_dimension_numbers<[1], [0], [0], [1], [0, 0, 1, 1], [], []>} : vector<1x32xbf16>, vector<32x256xbf16>, vector<1x256xf32> -> vector<1x256xf32>
    %502 = arith.addf %498, %501 : vector<1x256xf32>
    %c64 = arith.constant 64 : index
    %c0_268 = arith.constant 0 : index
    %503 = vector.load %arg16[%c64, %c0_268] : memref<1568x256xbf16, #tpu.memory_space<vmem>>, vector<32x256xbf16>
    %504 = arith.truncf %483 : vector<1x32xf32> to vector<1x32xbf16>
    %cst_269 = arith.constant dense<0.000000e+00> : vector<1x256xf32>
    %505 = tpu.matmul %504, %503, %cst_269 {dimension_numbers = #tpu.dot_dimension_numbers<[1], [0], [0], [1], [0, 0, 1, 1], [], []>} : vector<1x32xbf16>, vector<32x256xbf16>, vector<1x256xf32> -> vector<1x256xf32>
    %506 = arith.addf %502, %505 : vector<1x256xf32>
    %c96 = arith.constant 96 : index
    %c0_270 = arith.constant 0 : index
    %507 = vector.load %arg16[%c96, %c0_270] : memref<1568x256xbf16, #tpu.memory_space<vmem>>, vector<32x256xbf16>
    %508 = arith.truncf %487 : vector<1x32xf32> to vector<1x32xbf16>
    %cst_271 = arith.constant dense<0.000000e+00> : vector<1x256xf32>
    %509 = tpu.matmul %508, %507, %cst_271 {dimension_numbers = #tpu.dot_dimension_numbers<[1], [0], [0], [1], [0, 0, 1, 1], [], []>} : vector<1x32xbf16>, vector<32x256xbf16>, vector<1x256xf32> -> vector<1x256xf32>
    %510 = arith.addf %506, %509 : vector<1x256xf32>
    %c128_272 = arith.constant 128 : index
    %c0_273 = arith.constant 0 : index
    %511 = vector.load %arg16[%c128_272, %c0_273] : memref<1568x256xbf16, #tpu.memory_space<vmem>>, vector<32x256xbf16>
    %512 = arith.truncf %484 : vector<1x32xf32> to vector<1x32xbf16>
    %cst_274 = arith.constant dense<0.000000e+00> : vector<1x256xf32>
    %513 = tpu.matmul %512, %511, %cst_274 {dimension_numbers = #tpu.dot_dimension_numbers<[1], [0], [0], [1], [0, 0, 1, 1], [], []>} : vector<1x32xbf16>, vector<32x256xbf16>, vector<1x256xf32> -> vector<1x256xf32>
    %514 = arith.addf %510, %513 : vector<1x256xf32>
    %c160 = arith.constant 160 : index
    %c0_275 = arith.constant 0 : index
    %515 = vector.load %arg16[%c160, %c0_275] : memref<1568x256xbf16, #tpu.memory_space<vmem>>, vector<32x256xbf16>
    %516 = arith.truncf %484 : vector<1x32xf32> to vector<1x32xbf16>
    %cst_276 = arith.constant dense<0.000000e+00> : vector<1x256xf32>
    %517 = tpu.matmul %516, %515, %cst_276 {dimension_numbers = #tpu.dot_dimension_numbers<[1], [0], [0], [1], [0, 0, 1, 1], [], []>} : vector<1x32xbf16>, vector<32x256xbf16>, vector<1x256xf32> -> vector<1x256xf32>
    %518 = arith.addf %514, %517 : vector<1x256xf32>
    %c192_277 = arith.constant 192 : index
    %c0_278 = arith.constant 0 : index
    %519 = vector.load %arg16[%c192_277, %c0_278] : memref<1568x256xbf16, #tpu.memory_space<vmem>>, vector<32x256xbf16>
    %520 = arith.truncf %484 : vector<1x32xf32> to vector<1x32xbf16>
    %cst_279 = arith.constant dense<0.000000e+00> : vector<1x256xf32>
    %521 = tpu.matmul %520, %519, %cst_279 {dimension_numbers = #tpu.dot_dimension_numbers<[1], [0], [0], [1], [0, 0, 1, 1], [], []>} : vector<1x32xbf16>, vector<32x256xbf16>, vector<1x256xf32> -> vector<1x256xf32>
    %522 = arith.addf %518, %521 : vector<1x256xf32>
    %c224 = arith.constant 224 : index
    %c0_280 = arith.constant 0 : index
    %523 = vector.load %arg16[%c224, %c0_280] : memref<1568x256xbf16, #tpu.memory_space<vmem>>, vector<32x256xbf16>
    %524 = arith.truncf %483 : vector<1x32xf32> to vector<1x32xbf16>
    %cst_281 = arith.constant dense<0.000000e+00> : vector<1x256xf32>
    %525 = tpu.matmul %524, %523, %cst_281 {dimension_numbers = #tpu.dot_dimension_numbers<[1], [0], [0], [1], [0, 0, 1, 1], [], []>} : vector<1x32xbf16>, vector<32x256xbf16>, vector<1x256xf32> -> vector<1x256xf32>
    %526 = arith.addf %522, %525 : vector<1x256xf32>
    %c256_282 = arith.constant 256 : index
    %c0_283 = arith.constant 0 : index
    %527 = vector.load %arg16[%c256_282, %c0_283] : memref<1568x256xbf16, #tpu.memory_space<vmem>>, vector<32x256xbf16>
    %528 = arith.truncf %483 : vector<1x32xf32> to vector<1x32xbf16>
    %cst_284 = arith.constant dense<0.000000e+00> : vector<1x256xf32>
    %529 = tpu.matmul %528, %527, %cst_284 {dimension_numbers = #tpu.dot_dimension_numbers<[1], [0], [0], [1], [0, 0, 1, 1], [], []>} : vector<1x32xbf16>, vector<32x256xbf16>, vector<1x256xf32> -> vector<1x256xf32>
    %530 = arith.addf %526, %529 : vector<1x256xf32>
    %c288 = arith.constant 288 : index
    %c0_285 = arith.constant 0 : index
    %531 = vector.load %arg16[%c288, %c0_285] : memref<1568x256xbf16, #tpu.memory_space<vmem>>, vector<32x256xbf16>
    %532 = arith.truncf %483 : vector<1x32xf32> to vector<1x32xbf16>
    %cst_286 = arith.constant dense<0.000000e+00> : vector<1x256xf32>
    %533 = tpu.matmul %532, %531, %cst_286 {dimension_numbers = #tpu.dot_dimension_numbers<[1], [0], [0], [1], [0, 0, 1, 1], [], []>} : vector<1x32xbf16>, vector<32x256xbf16>, vector<1x256xf32> -> vector<1x256xf32>
    %534 = arith.addf %530, %533 : vector<1x256xf32>
    %c320 = arith.constant 320 : index
    %c0_287 = arith.constant 0 : index
    %535 = vector.load %arg16[%c320, %c0_287] : memref<1568x256xbf16, #tpu.memory_space<vmem>>, vector<32x256xbf16>
    %536 = arith.truncf %487 : vector<1x32xf32> to vector<1x32xbf16>
    %cst_288 = arith.constant dense<0.000000e+00> : vector<1x256xf32>
    %537 = tpu.matmul %536, %535, %cst_288 {dimension_numbers = #tpu.dot_dimension_numbers<[1], [0], [0], [1], [0, 0, 1, 1], [], []>} : vector<1x32xbf16>, vector<32x256xbf16>, vector<1x256xf32> -> vector<1x256xf32>
    %538 = arith.addf %534, %537 : vector<1x256xf32>
    %c352 = arith.constant 352 : index
    %c0_289 = arith.constant 0 : index
    %539 = vector.load %arg16[%c352, %c0_289] : memref<1568x256xbf16, #tpu.memory_space<vmem>>, vector<32x256xbf16>
    %540 = arith.truncf %484 : vector<1x32xf32> to vector<1x32xbf16>
    %cst_290 = arith.constant dense<0.000000e+00> : vector<1x256xf32>
    %541 = tpu.matmul %540, %539, %cst_290 {dimension_numbers = #tpu.dot_dimension_numbers<[1], [0], [0], [1], [0, 0, 1, 1], [], []>} : vector<1x32xbf16>, vector<32x256xbf16>, vector<1x256xf32> -> vector<1x256xf32>
    %542 = arith.addf %538, %541 : vector<1x256xf32>
    %c384_291 = arith.constant 384 : index
    %c0_292 = arith.constant 0 : index
    %543 = vector.load %arg16[%c384_291, %c0_292] : memref<1568x256xbf16, #tpu.memory_space<vmem>>, vector<32x256xbf16>
    %544 = arith.truncf %484 : vector<1x32xf32> to vector<1x32xbf16>
    %cst_293 = arith.constant dense<0.000000e+00> : vector<1x256xf32>
    %545 = tpu.matmul %544, %543, %cst_293 {dimension_numbers = #tpu.dot_dimension_numbers<[1], [0], [0], [1], [0, 0, 1, 1], [], []>} : vector<1x32xbf16>, vector<32x256xbf16>, vector<1x256xf32> -> vector<1x256xf32>
    %546 = arith.addf %542, %545 : vector<1x256xf32>
    %c416 = arith.constant 416 : index
    %c0_294 = arith.constant 0 : index
    %547 = vector.load %arg16[%c416, %c0_294] : memref<1568x256xbf16, #tpu.memory_space<vmem>>, vector<32x256xbf16>
    %548 = arith.truncf %484 : vector<1x32xf32> to vector<1x32xbf16>
    %cst_295 = arith.constant dense<0.000000e+00> : vector<1x256xf32>
    %549 = tpu.matmul %548, %547, %cst_295 {dimension_numbers = #tpu.dot_dimension_numbers<[1], [0], [0], [1], [0, 0, 1, 1], [], []>} : vector<1x32xbf16>, vector<32x256xbf16>, vector<1x256xf32> -> vector<1x256xf32>
    %550 = arith.addf %546, %549 : vector<1x256xf32>
    %c448 = arith.constant 448 : index
    %c0_296 = arith.constant 0 : index
    %551 = vector.load %arg16[%c448, %c0_296] : memref<1568x256xbf16, #tpu.memory_space<vmem>>, vector<32x256xbf16>
    %552 = arith.truncf %483 : vector<1x32xf32> to vector<1x32xbf16>
    %cst_297 = arith.constant dense<0.000000e+00> : vector<1x256xf32>
    %553 = tpu.matmul %552, %551, %cst_297 {dimension_numbers = #tpu.dot_dimension_numbers<[1], [0], [0], [1], [0, 0, 1, 1], [], []>} : vector<1x32xbf16>, vector<32x256xbf16>, vector<1x256xf32> -> vector<1x256xf32>
    %554 = arith.addf %550, %553 : vector<1x256xf32>
    %c480 = arith.constant 480 : index
    %c0_298 = arith.constant 0 : index
    %555 = vector.load %arg16[%c480, %c0_298] : memref<1568x256xbf16, #tpu.memory_space<vmem>>, vector<32x256xbf16>
    %556 = arith.truncf %483 : vector<1x32xf32> to vector<1x32xbf16>
    %cst_299 = arith.constant dense<0.000000e+00> : vector<1x256xf32>
    %557 = tpu.matmul %556, %555, %cst_299 {dimension_numbers = #tpu.dot_dimension_numbers<[1], [0], [0], [1], [0, 0, 1, 1], [], []>} : vector<1x32xbf16>, vector<32x256xbf16>, vector<1x256xf32> -> vector<1x256xf32>
    %558 = arith.addf %554, %557 : vector<1x256xf32>
    %c512_300 = arith.constant 512 : index
    %c0_301 = arith.constant 0 : index
    %559 = vector.load %arg16[%c512_300, %c0_301] : memref<1568x256xbf16, #tpu.memory_space<vmem>>, vector<32x256xbf16>
    %560 = arith.truncf %483 : vector<1x32xf32> to vector<1x32xbf16>
    %cst_302 = arith.constant dense<0.000000e+00> : vector<1x256xf32>
    %561 = tpu.matmul %560, %559, %cst_302 {dimension_numbers = #tpu.dot_dimension_numbers<[1], [0], [0], [1], [0, 0, 1, 1], [], []>} : vector<1x32xbf16>, vector<32x256xbf16>, vector<1x256xf32> -> vector<1x256xf32>
    %562 = arith.addf %558, %561 : vector<1x256xf32>
    %c544 = arith.constant 544 : index
    %c0_303 = arith.constant 0 : index
    %563 = vector.load %arg16[%c544, %c0_303] : memref<1568x256xbf16, #tpu.memory_space<vmem>>, vector<32x256xbf16>
    %564 = arith.truncf %487 : vector<1x32xf32> to vector<1x32xbf16>
    %cst_304 = arith.constant dense<0.000000e+00> : vector<1x256xf32>
    %565 = tpu.matmul %564, %563, %cst_304 {dimension_numbers = #tpu.dot_dimension_numbers<[1], [0], [0], [1], [0, 0, 1, 1], [], []>} : vector<1x32xbf16>, vector<32x256xbf16>, vector<1x256xf32> -> vector<1x256xf32>
    %566 = arith.addf %562, %565 : vector<1x256xf32>
    %c576 = arith.constant 576 : index
    %c0_305 = arith.constant 0 : index
    %567 = vector.load %arg16[%c576, %c0_305] : memref<1568x256xbf16, #tpu.memory_space<vmem>>, vector<32x256xbf16>
    %568 = arith.truncf %484 : vector<1x32xf32> to vector<1x32xbf16>
    %cst_306 = arith.constant dense<0.000000e+00> : vector<1x256xf32>
    %569 = tpu.matmul %568, %567, %cst_306 {dimension_numbers = #tpu.dot_dimension_numbers<[1], [0], [0], [1], [0, 0, 1, 1], [], []>} : vector<1x32xbf16>, vector<32x256xbf16>, vector<1x256xf32> -> vector<1x256xf32>
    %570 = arith.addf %566, %569 : vector<1x256xf32>
    %c608 = arith.constant 608 : index
    %c0_307 = arith.constant 0 : index
    %571 = vector.load %arg16[%c608, %c0_307] : memref<1568x256xbf16, #tpu.memory_space<vmem>>, vector<32x256xbf16>
    %572 = arith.truncf %484 : vector<1x32xf32> to vector<1x32xbf16>
    %cst_308 = arith.constant dense<0.000000e+00> : vector<1x256xf32>
    %573 = tpu.matmul %572, %571, %cst_308 {dimension_numbers = #tpu.dot_dimension_numbers<[1], [0], [0], [1], [0, 0, 1, 1], [], []>} : vector<1x32xbf16>, vector<32x256xbf16>, vector<1x256xf32> -> vector<1x256xf32>
    %574 = arith.addf %570, %573 : vector<1x256xf32>
    %c640 = arith.constant 640 : index
    %c0_309 = arith.constant 0 : index
    %575 = vector.load %arg16[%c640, %c0_309] : memref<1568x256xbf16, #tpu.memory_space<vmem>>, vector<32x256xbf16>
    %576 = arith.truncf %484 : vector<1x32xf32> to vector<1x32xbf16>
    %cst_310 = arith.constant dense<0.000000e+00> : vector<1x256xf32>
    %577 = tpu.matmul %576, %575, %cst_310 {dimension_numbers = #tpu.dot_dimension_numbers<[1], [0], [0], [1], [0, 0, 1, 1], [], []>} : vector<1x32xbf16>, vector<32x256xbf16>, vector<1x256xf32> -> vector<1x256xf32>
    %578 = arith.addf %574, %577 : vector<1x256xf32>
    %c672 = arith.constant 672 : index
    %c0_311 = arith.constant 0 : index
    %579 = vector.load %arg16[%c672, %c0_311] : memref<1568x256xbf16, #tpu.memory_space<vmem>>, vector<32x256xbf16>
    %580 = arith.truncf %488 : vector<1x32xf32> to vector<1x32xbf16>
    %cst_312 = arith.constant dense<0.000000e+00> : vector<1x256xf32>
    %581 = tpu.matmul %580, %579, %cst_312 {dimension_numbers = #tpu.dot_dimension_numbers<[1], [0], [0], [1], [0, 0, 1, 1], [], []>} : vector<1x32xbf16>, vector<32x256xbf16>, vector<1x256xf32> -> vector<1x256xf32>
    %582 = arith.addf %578, %581 : vector<1x256xf32>
    %c704 = arith.constant 704 : index
    %c0_313 = arith.constant 0 : index
    %583 = vector.load %arg16[%c704, %c0_313] : memref<1568x256xbf16, #tpu.memory_space<vmem>>, vector<32x256xbf16>
    %584 = arith.truncf %488 : vector<1x32xf32> to vector<1x32xbf16>
    %cst_314 = arith.constant dense<0.000000e+00> : vector<1x256xf32>
    %585 = tpu.matmul %584, %583, %cst_314 {dimension_numbers = #tpu.dot_dimension_numbers<[1], [0], [0], [1], [0, 0, 1, 1], [], []>} : vector<1x32xbf16>, vector<32x256xbf16>, vector<1x256xf32> -> vector<1x256xf32>
    %586 = arith.addf %582, %585 : vector<1x256xf32>
    %c736 = arith.constant 736 : index
    %c0_315 = arith.constant 0 : index
    %587 = vector.load %arg16[%c736, %c0_315] : memref<1568x256xbf16, #tpu.memory_space<vmem>>, vector<32x256xbf16>
    %588 = arith.truncf %488 : vector<1x32xf32> to vector<1x32xbf16>
    %cst_316 = arith.constant dense<0.000000e+00> : vector<1x256xf32>
    %589 = tpu.matmul %588, %587, %cst_316 {dimension_numbers = #tpu.dot_dimension_numbers<[1], [0], [0], [1], [0, 0, 1, 1], [], []>} : vector<1x32xbf16>, vector<32x256xbf16>, vector<1x256xf32> -> vector<1x256xf32>
    %590 = arith.addf %586, %589 : vector<1x256xf32>
    %c768 = arith.constant 768 : index
    %c0_317 = arith.constant 0 : index
    %591 = vector.load %arg16[%c768, %c0_317] : memref<1568x256xbf16, #tpu.memory_space<vmem>>, vector<32x256xbf16>
    %592 = arith.truncf %491 : vector<1x32xf32> to vector<1x32xbf16>
    %cst_318 = arith.constant dense<0.000000e+00> : vector<1x256xf32>
    %593 = tpu.matmul %592, %591, %cst_318 {dimension_numbers = #tpu.dot_dimension_numbers<[1], [0], [0], [1], [0, 0, 1, 1], [], []>} : vector<1x32xbf16>, vector<32x256xbf16>, vector<1x256xf32> -> vector<1x256xf32>
    %594 = arith.addf %590, %593 : vector<1x256xf32>
    %c800 = arith.constant 800 : index
    %c0_319 = arith.constant 0 : index
    %595 = vector.load %arg16[%c800, %c0_319] : memref<1568x256xbf16, #tpu.memory_space<vmem>>, vector<32x256xbf16>
    %596 = arith.truncf %492 : vector<1x32xf32> to vector<1x32xbf16>
    %cst_320 = arith.constant dense<0.000000e+00> : vector<1x256xf32>
    %597 = tpu.matmul %596, %595, %cst_320 {dimension_numbers = #tpu.dot_dimension_numbers<[1], [0], [0], [1], [0, 0, 1, 1], [], []>} : vector<1x32xbf16>, vector<32x256xbf16>, vector<1x256xf32> -> vector<1x256xf32>
    %598 = arith.addf %594, %597 : vector<1x256xf32>
    %c832 = arith.constant 832 : index
    %c0_321 = arith.constant 0 : index
    %599 = vector.load %arg16[%c832, %c0_321] : memref<1568x256xbf16, #tpu.memory_space<vmem>>, vector<32x256xbf16>
    %600 = arith.truncf %492 : vector<1x32xf32> to vector<1x32xbf16>
    %cst_322 = arith.constant dense<0.000000e+00> : vector<1x256xf32>
    %601 = tpu.matmul %600, %599, %cst_322 {dimension_numbers = #tpu.dot_dimension_numbers<[1], [0], [0], [1], [0, 0, 1, 1], [], []>} : vector<1x32xbf16>, vector<32x256xbf16>, vector<1x256xf32> -> vector<1x256xf32>
    %602 = arith.addf %598, %601 : vector<1x256xf32>
    %c864 = arith.constant 864 : index
    %c0_323 = arith.constant 0 : index
    %603 = vector.load %arg16[%c864, %c0_323] : memref<1568x256xbf16, #tpu.memory_space<vmem>>, vector<32x256xbf16>
    %604 = arith.truncf %492 : vector<1x32xf32> to vector<1x32xbf16>
    %cst_324 = arith.constant dense<0.000000e+00> : vector<1x256xf32>
    %605 = tpu.matmul %604, %603, %cst_324 {dimension_numbers = #tpu.dot_dimension_numbers<[1], [0], [0], [1], [0, 0, 1, 1], [], []>} : vector<1x32xbf16>, vector<32x256xbf16>, vector<1x256xf32> -> vector<1x256xf32>
    %606 = arith.addf %602, %605 : vector<1x256xf32>
    %c896 = arith.constant 896 : index
    %c0_325 = arith.constant 0 : index
    %607 = vector.load %arg16[%c896, %c0_325] : memref<1568x256xbf16, #tpu.memory_space<vmem>>, vector<32x256xbf16>
    %608 = arith.truncf %485 : vector<1x32xf32> to vector<1x32xbf16>
    %cst_326 = arith.constant dense<0.000000e+00> : vector<1x256xf32>
    %609 = tpu.matmul %608, %607, %cst_326 {dimension_numbers = #tpu.dot_dimension_numbers<[1], [0], [0], [1], [0, 0, 1, 1], [], []>} : vector<1x32xbf16>, vector<32x256xbf16>, vector<1x256xf32> -> vector<1x256xf32>
    %610 = arith.addf %606, %609 : vector<1x256xf32>
    %c928 = arith.constant 928 : index
    %c0_327 = arith.constant 0 : index
    %611 = vector.load %arg16[%c928, %c0_327] : memref<1568x256xbf16, #tpu.memory_space<vmem>>, vector<32x256xbf16>
    %612 = arith.truncf %485 : vector<1x32xf32> to vector<1x32xbf16>
    %cst_328 = arith.constant dense<0.000000e+00> : vector<1x256xf32>
    %613 = tpu.matmul %612, %611, %cst_328 {dimension_numbers = #tpu.dot_dimension_numbers<[1], [0], [0], [1], [0, 0, 1, 1], [], []>} : vector<1x32xbf16>, vector<32x256xbf16>, vector<1x256xf32> -> vector<1x256xf32>
    %614 = arith.addf %610, %613 : vector<1x256xf32>
    %c960 = arith.constant 960 : index
    %c0_329 = arith.constant 0 : index
    %615 = vector.load %arg16[%c960, %c0_329] : memref<1568x256xbf16, #tpu.memory_space<vmem>>, vector<32x256xbf16>
    %616 = arith.truncf %485 : vector<1x32xf32> to vector<1x32xbf16>
    %cst_330 = arith.constant dense<0.000000e+00> : vector<1x256xf32>
    %617 = tpu.matmul %616, %615, %cst_330 {dimension_numbers = #tpu.dot_dimension_numbers<[1], [0], [0], [1], [0, 0, 1, 1], [], []>} : vector<1x32xbf16>, vector<32x256xbf16>, vector<1x256xf32> -> vector<1x256xf32>
    %618 = arith.addf %614, %617 : vector<1x256xf32>
    %c992 = arith.constant 992 : index
    %c0_331 = arith.constant 0 : index
    %619 = vector.load %arg16[%c992, %c0_331] : memref<1568x256xbf16, #tpu.memory_space<vmem>>, vector<32x256xbf16>
    %620 = arith.truncf %493 : vector<1x32xf32> to vector<1x32xbf16>
    %cst_332 = arith.constant dense<0.000000e+00> : vector<1x256xf32>
    %621 = tpu.matmul %620, %619, %cst_332 {dimension_numbers = #tpu.dot_dimension_numbers<[1], [0], [0], [1], [0, 0, 1, 1], [], []>} : vector<1x32xbf16>, vector<32x256xbf16>, vector<1x256xf32> -> vector<1x256xf32>
    %622 = arith.addf %618, %621 : vector<1x256xf32>
    %c1024 = arith.constant 1024 : index
    %c0_333 = arith.constant 0 : index
    %623 = vector.load %arg16[%c1024, %c0_333] : memref<1568x256xbf16, #tpu.memory_space<vmem>>, vector<32x256xbf16>
    %624 = arith.truncf %486 : vector<1x32xf32> to vector<1x32xbf16>
    %cst_334 = arith.constant dense<0.000000e+00> : vector<1x256xf32>
    %625 = tpu.matmul %624, %623, %cst_334 {dimension_numbers = #tpu.dot_dimension_numbers<[1], [0], [0], [1], [0, 0, 1, 1], [], []>} : vector<1x32xbf16>, vector<32x256xbf16>, vector<1x256xf32> -> vector<1x256xf32>
    %626 = arith.addf %622, %625 : vector<1x256xf32>
    %c1056 = arith.constant 1056 : index
    %c0_335 = arith.constant 0 : index
    %627 = vector.load %arg16[%c1056, %c0_335] : memref<1568x256xbf16, #tpu.memory_space<vmem>>, vector<32x256xbf16>
    %628 = arith.truncf %486 : vector<1x32xf32> to vector<1x32xbf16>
    %cst_336 = arith.constant dense<0.000000e+00> : vector<1x256xf32>
    %629 = tpu.matmul %628, %627, %cst_336 {dimension_numbers = #tpu.dot_dimension_numbers<[1], [0], [0], [1], [0, 0, 1, 1], [], []>} : vector<1x32xbf16>, vector<32x256xbf16>, vector<1x256xf32> -> vector<1x256xf32>
    %630 = arith.addf %626, %629 : vector<1x256xf32>
    %c1088 = arith.constant 1088 : index
    %c0_337 = arith.constant 0 : index
    %631 = vector.load %arg16[%c1088, %c0_337] : memref<1568x256xbf16, #tpu.memory_space<vmem>>, vector<32x256xbf16>
    %632 = arith.truncf %486 : vector<1x32xf32> to vector<1x32xbf16>
    %cst_338 = arith.constant dense<0.000000e+00> : vector<1x256xf32>
    %633 = tpu.matmul %632, %631, %cst_338 {dimension_numbers = #tpu.dot_dimension_numbers<[1], [0], [0], [1], [0, 0, 1, 1], [], []>} : vector<1x32xbf16>, vector<32x256xbf16>, vector<1x256xf32> -> vector<1x256xf32>
    %634 = arith.addf %630, %633 : vector<1x256xf32>
    %c1120 = arith.constant 1120 : index
    %c0_339 = arith.constant 0 : index
    %635 = vector.load %arg16[%c1120, %c0_339] : memref<1568x256xbf16, #tpu.memory_space<vmem>>, vector<32x256xbf16>
    %636 = arith.truncf %485 : vector<1x32xf32> to vector<1x32xbf16>
    %cst_340 = arith.constant dense<0.000000e+00> : vector<1x256xf32>
    %637 = tpu.matmul %636, %635, %cst_340 {dimension_numbers = #tpu.dot_dimension_numbers<[1], [0], [0], [1], [0, 0, 1, 1], [], []>} : vector<1x32xbf16>, vector<32x256xbf16>, vector<1x256xf32> -> vector<1x256xf32>
    %638 = arith.addf %634, %637 : vector<1x256xf32>
    %c1152 = arith.constant 1152 : index
    %c0_341 = arith.constant 0 : index
    %639 = vector.load %arg16[%c1152, %c0_341] : memref<1568x256xbf16, #tpu.memory_space<vmem>>, vector<32x256xbf16>
    %640 = arith.truncf %485 : vector<1x32xf32> to vector<1x32xbf16>
    %cst_342 = arith.constant dense<0.000000e+00> : vector<1x256xf32>
    %641 = tpu.matmul %640, %639, %cst_342 {dimension_numbers = #tpu.dot_dimension_numbers<[1], [0], [0], [1], [0, 0, 1, 1], [], []>} : vector<1x32xbf16>, vector<32x256xbf16>, vector<1x256xf32> -> vector<1x256xf32>
    %642 = arith.addf %638, %641 : vector<1x256xf32>
    %c1184 = arith.constant 1184 : index
    %c0_343 = arith.constant 0 : index
    %643 = vector.load %arg16[%c1184, %c0_343] : memref<1568x256xbf16, #tpu.memory_space<vmem>>, vector<32x256xbf16>
    %644 = arith.truncf %485 : vector<1x32xf32> to vector<1x32xbf16>
    %cst_344 = arith.constant dense<0.000000e+00> : vector<1x256xf32>
    %645 = tpu.matmul %644, %643, %cst_344 {dimension_numbers = #tpu.dot_dimension_numbers<[1], [0], [0], [1], [0, 0, 1, 1], [], []>} : vector<1x32xbf16>, vector<32x256xbf16>, vector<1x256xf32> -> vector<1x256xf32>
    %646 = arith.addf %642, %645 : vector<1x256xf32>
    %c1216 = arith.constant 1216 : index
    %c0_345 = arith.constant 0 : index
    %647 = vector.load %arg16[%c1216, %c0_345] : memref<1568x256xbf16, #tpu.memory_space<vmem>>, vector<32x256xbf16>
    %648 = arith.truncf %493 : vector<1x32xf32> to vector<1x32xbf16>
    %cst_346 = arith.constant dense<0.000000e+00> : vector<1x256xf32>
    %649 = tpu.matmul %648, %647, %cst_346 {dimension_numbers = #tpu.dot_dimension_numbers<[1], [0], [0], [1], [0, 0, 1, 1], [], []>} : vector<1x32xbf16>, vector<32x256xbf16>, vector<1x256xf32> -> vector<1x256xf32>
    %650 = arith.addf %646, %649 : vector<1x256xf32>
    %c1248 = arith.constant 1248 : index
    %c0_347 = arith.constant 0 : index
    %651 = vector.load %arg16[%c1248, %c0_347] : memref<1568x256xbf16, #tpu.memory_space<vmem>>, vector<32x256xbf16>
    %652 = arith.truncf %486 : vector<1x32xf32> to vector<1x32xbf16>
    %cst_348 = arith.constant dense<0.000000e+00> : vector<1x256xf32>
    %653 = tpu.matmul %652, %651, %cst_348 {dimension_numbers = #tpu.dot_dimension_numbers<[1], [0], [0], [1], [0, 0, 1, 1], [], []>} : vector<1x32xbf16>, vector<32x256xbf16>, vector<1x256xf32> -> vector<1x256xf32>
    %654 = arith.addf %650, %653 : vector<1x256xf32>
    %c1280 = arith.constant 1280 : index
    %c0_349 = arith.constant 0 : index
    %655 = vector.load %arg16[%c1280, %c0_349] : memref<1568x256xbf16, #tpu.memory_space<vmem>>, vector<32x256xbf16>
    %656 = arith.truncf %486 : vector<1x32xf32> to vector<1x32xbf16>
    %cst_350 = arith.constant dense<0.000000e+00> : vector<1x256xf32>
    %657 = tpu.matmul %656, %655, %cst_350 {dimension_numbers = #tpu.dot_dimension_numbers<[1], [0], [0], [1], [0, 0, 1, 1], [], []>} : vector<1x32xbf16>, vector<32x256xbf16>, vector<1x256xf32> -> vector<1x256xf32>
    %658 = arith.addf %654, %657 : vector<1x256xf32>
    %c1312 = arith.constant 1312 : index
    %c0_351 = arith.constant 0 : index
    %659 = vector.load %arg16[%c1312, %c0_351] : memref<1568x256xbf16, #tpu.memory_space<vmem>>, vector<32x256xbf16>
    %660 = arith.truncf %486 : vector<1x32xf32> to vector<1x32xbf16>
    %cst_352 = arith.constant dense<0.000000e+00> : vector<1x256xf32>
    %661 = tpu.matmul %660, %659, %cst_352 {dimension_numbers = #tpu.dot_dimension_numbers<[1], [0], [0], [1], [0, 0, 1, 1], [], []>} : vector<1x32xbf16>, vector<32x256xbf16>, vector<1x256xf32> -> vector<1x256xf32>
    %662 = arith.addf %658, %661 : vector<1x256xf32>
    %c1344 = arith.constant 1344 : index
    %c0_353 = arith.constant 0 : index
    %663 = vector.load %arg16[%c1344, %c0_353] : memref<1568x256xbf16, #tpu.memory_space<vmem>>, vector<32x256xbf16>
    %664 = arith.truncf %485 : vector<1x32xf32> to vector<1x32xbf16>
    %cst_354 = arith.constant dense<0.000000e+00> : vector<1x256xf32>
    %665 = tpu.matmul %664, %663, %cst_354 {dimension_numbers = #tpu.dot_dimension_numbers<[1], [0], [0], [1], [0, 0, 1, 1], [], []>} : vector<1x32xbf16>, vector<32x256xbf16>, vector<1x256xf32> -> vector<1x256xf32>
    %666 = arith.addf %662, %665 : vector<1x256xf32>
    %c1376 = arith.constant 1376 : index
    %c0_355 = arith.constant 0 : index
    %667 = vector.load %arg16[%c1376, %c0_355] : memref<1568x256xbf16, #tpu.memory_space<vmem>>, vector<32x256xbf16>
    %668 = arith.truncf %485 : vector<1x32xf32> to vector<1x32xbf16>
    %cst_356 = arith.constant dense<0.000000e+00> : vector<1x256xf32>
    %669 = tpu.matmul %668, %667, %cst_356 {dimension_numbers = #tpu.dot_dimension_numbers<[1], [0], [0], [1], [0, 0, 1, 1], [], []>} : vector<1x32xbf16>, vector<32x256xbf16>, vector<1x256xf32> -> vector<1x256xf32>
    %670 = arith.addf %666, %669 : vector<1x256xf32>
    %c1408 = arith.constant 1408 : index
    %c0_357 = arith.constant 0 : index
    %671 = vector.load %arg16[%c1408, %c0_357] : memref<1568x256xbf16, #tpu.memory_space<vmem>>, vector<32x256xbf16>
    %672 = arith.truncf %485 : vector<1x32xf32> to vector<1x32xbf16>
    %cst_358 = arith.constant dense<0.000000e+00> : vector<1x256xf32>
    %673 = tpu.matmul %672, %671, %cst_358 {dimension_numbers = #tpu.dot_dimension_numbers<[1], [0], [0], [1], [0, 0, 1, 1], [], []>} : vector<1x32xbf16>, vector<32x256xbf16>, vector<1x256xf32> -> vector<1x256xf32>
    %674 = arith.addf %670, %673 : vector<1x256xf32>
    %c1440 = arith.constant 1440 : index
    %c0_359 = arith.constant 0 : index
    %675 = vector.load %arg16[%c1440, %c0_359] : memref<1568x256xbf16, #tpu.memory_space<vmem>>, vector<32x256xbf16>
    %676 = arith.truncf %493 : vector<1x32xf32> to vector<1x32xbf16>
    %cst_360 = arith.constant dense<0.000000e+00> : vector<1x256xf32>
    %677 = tpu.matmul %676, %675, %cst_360 {dimension_numbers = #tpu.dot_dimension_numbers<[1], [0], [0], [1], [0, 0, 1, 1], [], []>} : vector<1x32xbf16>, vector<32x256xbf16>, vector<1x256xf32> -> vector<1x256xf32>
    %678 = arith.addf %674, %677 : vector<1x256xf32>
    %c1472 = arith.constant 1472 : index
    %c0_361 = arith.constant 0 : index
    %679 = vector.load %arg16[%c1472, %c0_361] : memref<1568x256xbf16, #tpu.memory_space<vmem>>, vector<32x256xbf16>
    %680 = arith.truncf %486 : vector<1x32xf32> to vector<1x32xbf16>
    %cst_362 = arith.constant dense<0.000000e+00> : vector<1x256xf32>
    %681 = tpu.matmul %680, %679, %cst_362 {dimension_numbers = #tpu.dot_dimension_numbers<[1], [0], [0], [1], [0, 0, 1, 1], [], []>} : vector<1x32xbf16>, vector<32x256xbf16>, vector<1x256xf32> -> vector<1x256xf32>
    %682 = arith.addf %678, %681 : vector<1x256xf32>
    %c1504 = arith.constant 1504 : index
    %c0_363 = arith.constant 0 : index
    %683 = vector.load %arg16[%c1504, %c0_363] : memref<1568x256xbf16, #tpu.memory_space<vmem>>, vector<32x256xbf16>
    %684 = arith.truncf %486 : vector<1x32xf32> to vector<1x32xbf16>
    %cst_364 = arith.constant dense<0.000000e+00> : vector<1x256xf32>
    %685 = tpu.matmul %684, %683, %cst_364 {dimension_numbers = #tpu.dot_dimension_numbers<[1], [0], [0], [1], [0, 0, 1, 1], [], []>} : vector<1x32xbf16>, vector<32x256xbf16>, vector<1x256xf32> -> vector<1x256xf32>
    %686 = arith.addf %682, %685 : vector<1x256xf32>
    %c1536 = arith.constant 1536 : index
    %c0_365 = arith.constant 0 : index
    %687 = vector.load %arg16[%c1536, %c0_365] : memref<1568x256xbf16, #tpu.memory_space<vmem>>, vector<32x256xbf16>
    %688 = arith.truncf %486 : vector<1x32xf32> to vector<1x32xbf16>
    %cst_366 = arith.constant dense<0.000000e+00> : vector<1x256xf32>
    %689 = tpu.matmul %688, %687, %cst_366 {dimension_numbers = #tpu.dot_dimension_numbers<[1], [0], [0], [1], [0, 0, 1, 1], [], []>} : vector<1x32xbf16>, vector<32x256xbf16>, vector<1x256xf32> -> vector<1x256xf32>
    %690 = arith.addf %686, %689 : vector<1x256xf32>
    %cst_367 = arith.constant 0.000000e+00 : f32
    %691 = vector.broadcast %cst_367 : f32 to vector<1x256xf32>
    %692 = arith.maximumf %690, %691 : vector<1x256xf32>
    %693 = arith.truncf %692 : vector<1x256xf32> to vector<1x256xbf16>
    %c0_368 = arith.constant 0 : index
    %c0_369 = arith.constant 0 : index
    %694 = vector.load %arg17[%c0_368, %c0_369] : memref<256x256xbf16, #tpu.memory_space<vmem>>, vector<256x256xbf16>
    %cst_370 = arith.constant dense<0.000000e+00> : vector<1x256xf32>
    %695 = tpu.matmul %693, %694, %cst_370 {dimension_numbers = #tpu.dot_dimension_numbers<[1], [0], [0], [1], [0, 0, 1, 1], [], []>} : vector<1x256xbf16>, vector<256x256xbf16>, vector<1x256xf32> -> vector<1x256xf32>
    %c1_371 = arith.constant 1 : index
    %c0_372 = arith.constant 0 : index
    %696 = vector.load %arg20[%c1_371, %c0_372] : memref<4x256xf32, #tpu.memory_space<vmem>>, vector<1x256xf32>
    %697 = arith.addf %695, %696 : vector<1x256xf32>
    %cst_373 = arith.constant 0.000000e+00 : f32
    %698 = vector.broadcast %cst_373 : f32 to vector<1x256xf32>
    %699 = arith.maximumf %697, %698 : vector<1x256xf32>
    %c0_374 = arith.constant 0 : index
    %c0_375 = arith.constant 0 : index
    %700 = vector.load %arg18[%c0_374, %c0_375] : memref<256x5xf32, #tpu.memory_space<vmem>>, vector<256x5xf32>
    %cst_376 = arith.constant dense<0.000000e+00> : vector<1x5xf32>
    %701 = tpu.matmul %699, %700, %cst_376 {dimension_numbers = #tpu.dot_dimension_numbers<[1], [0], [0], [1], [0, 0, 1, 1], [], []>} : vector<1x256xf32>, vector<256x5xf32>, vector<1x5xf32> -> vector<1x5xf32>
    %c2_377 = arith.constant 2 : index
    %c0_378 = arith.constant 0 : index
    %702 = vector.load %arg20[%c2_377, %c0_378] : memref<4x256xf32, #tpu.memory_space<vmem>>, vector<1x5xf32>
    %703 = arith.addf %701, %702 : vector<1x5xf32>
    %c0_379 = arith.constant 0 : index
    %c0_380 = arith.constant 0 : index
    %704 = vector.load %arg19[%c0_379, %c0_380] : memref<256x20xf32, #tpu.memory_space<vmem>>, vector<256x20xf32>
    %cst_381 = arith.constant dense<0.000000e+00> : vector<1x20xf32>
    %705 = tpu.matmul %699, %704, %cst_381 {dimension_numbers = #tpu.dot_dimension_numbers<[1], [0], [0], [1], [0, 0, 1, 1], [], []>} : vector<1x256xf32>, vector<256x20xf32>, vector<1x20xf32> -> vector<1x20xf32>
    %c3_382 = arith.constant 3 : index
    %c0_383 = arith.constant 0 : index
    %706 = vector.load %arg20[%c3_382, %c0_383] : memref<4x256xf32, #tpu.memory_space<vmem>>, vector<1x20xf32>
    %707 = arith.addf %705, %706 : vector<1x20xf32>
    %c0_384 = arith.constant 0 : index
    %c0_385 = arith.constant 0 : index
    %708 = vector.load %arg21[%c0_384, %c0_385] : memref<1x5xf32, #tpu.memory_space<vmem>>, vector<1x5xf32>
    tpu.vector_store %arg21[%c0_384, %c0_385], %703 {strides = array<i32>} : memref<1x5xf32, #tpu.memory_space<vmem>>, vector<1x5xf32>,
    %c0_386 = arith.constant 0 : index
    %c0_387 = arith.constant 0 : index
    %709 = vector.load %arg22[%c0_386, %c0_387] : memref<1x20xf32, #tpu.memory_space<vmem>>, vector<1x20xf32>
    tpu.vector_store %arg22[%c0_386, %c0_387], %707 {strides = array<i32>} : memref<1x20xf32, #tpu.memory_space<vmem>>, vector<1x20xf32>,
    %cst_388 = arith.constant dense<0xFF800000> : vector<1xf32>
    %710 = vector.multi_reduction <maximumf>, %703, %cst_388 [1] : vector<1x5xf32> to vector<1xf32>
    %711 = vector.shape_cast %710 : vector<1xf32> to vector<1x1xf32>
    %712 = vector.broadcast %711 : vector<1x1xf32> to vector<1x5xf32>
    %713 = arith.subf %703, %712 : vector<1x5xf32>
    %714 = math.exp %713 : vector<1x5xf32>
    %cst_389 = arith.constant dense<0.000000e+00> : vector<1xf32>
    %715 = vector.multi_reduction <add>, %714, %cst_389 [1] : vector<1x5xf32> to vector<1xf32>
    %716 = vector.shape_cast %715 : vector<1xf32> to vector<1x1xf32>
    %717 = vector.broadcast %716 : vector<1x1xf32> to vector<1x5xf32>
    %718 = arith.divf %714, %717 : vector<1x5xf32>
    %c0_390 = arith.constant 0 : index
    %c0_391 = arith.constant 0 : index
    %719 = vector.load %arg23[%c0_390, %c0_391] : memref<1x5xf32, #tpu.memory_space<vmem>>, vector<1x5xf32>
    tpu.vector_store %arg23[%c0_390, %c0_391], %718 {strides = array<i32>} : memref<1x5xf32, #tpu.memory_space<vmem>>, vector<1x5xf32>,
    return
  }
  func.func @transform_0(%arg0: i32) -> (i32, i32) {
    %c0_i32 = arith.constant 0 : i32
    %c0_i32_0 = arith.constant 0 : i32
    %c0_i32_1 = arith.constant 0 : i32
    return %c0_i32, %c0_i32_0 : i32, i32
  }
  func.func @transform_1(%arg0: i32) -> (i32, i32) {
    %c0_i32 = arith.constant 0 : i32
    %c0_i32_0 = arith.constant 0 : i32
    %c0_i32_1 = arith.constant 0 : i32
    return %c0_i32, %c0_i32_0 : i32, i32
  }
  func.func @transform_2(%arg0: i32) -> (i32, i32) {
    %c0_i32 = arith.constant 0 : i32
    %c0_i32_0 = arith.constant 0 : i32
    %c0_i32_1 = arith.constant 0 : i32
    return %c0_i32, %c0_i32_0 : i32, i32
  }
  func.func @transform_3(%arg0: i32) -> (i32, i32) {
    %c0_i32 = arith.constant 0 : i32
    %c0_i32_0 = arith.constant 0 : i32
    %c0_i32_1 = arith.constant 0 : i32
    return %c0_i32, %c0_i32_0 : i32, i32
  }
  func.func @transform_4(%arg0: i32) -> (i32, i32) {
    %c0_i32 = arith.constant 0 : i32
    %c0_i32_0 = arith.constant 0 : i32
    %c0_i32_1 = arith.constant 0 : i32
    return %c0_i32, %c0_i32_0 : i32, i32
  }
  func.func @transform_5(%arg0: i32) -> (i32, i32) {
    %c0_i32 = arith.constant 0 : i32
    %c0_i32_0 = arith.constant 0 : i32
    %c0_i32_1 = arith.constant 0 : i32
    return %c0_i32, %c0_i32_0 : i32, i32
  }
  func.func @transform_6(%arg0: i32) -> (i32, i32) {
    %c0_i32 = arith.constant 0 : i32
    %c0_i32_0 = arith.constant 0 : i32
    %c0_i32_1 = arith.constant 0 : i32
    return %c0_i32, %c0_i32_0 : i32, i32
  }
  func.func @transform_7(%arg0: i32) -> (i32, i32) {
    %c0_i32 = arith.constant 0 : i32
    %c0_i32_0 = arith.constant 0 : i32
    %c0_i32_1 = arith.constant 0 : i32
    return %c0_i32, %c0_i32_0 : i32, i32
  }
  func.func @transform_8(%arg0: i32) -> (i32, i32) {
    %c0_i32 = arith.constant 0 : i32
    %c0_i32_0 = arith.constant 0 : i32
    %c0_i32_1 = arith.constant 0 : i32
    return %c0_i32, %c0_i32_0 : i32, i32
  }
  func.func @transform_9(%arg0: i32) -> (i32, i32) {
    %c0_i32 = arith.constant 0 : i32
    %c0_i32_0 = arith.constant 0 : i32
    %c0_i32_1 = arith.constant 0 : i32
    return %c0_i32, %c0_i32_0 : i32, i32
  }
  func.func @transform_10(%arg0: i32) -> (i32, i32) {
    %c0_i32 = arith.constant 0 : i32
    %c0_i32_0 = arith.constant 0 : i32
    %c0_i32_1 = arith.constant 0 : i32
    return %c0_i32, %c0_i32_0 : i32, i32
  }
  func.func @transform_11(%arg0: i32) -> (i32, i32) {
    %c0_i32 = arith.constant 0 : i32
    %c0_i32_0 = arith.constant 0 : i32
    %c0_i32_1 = arith.constant 0 : i32
    return %c0_i32, %c0_i32_0 : i32, i32
  }
  func.func @transform_12(%arg0: i32) -> (i32, i32) {
    %c0_i32 = arith.constant 0 : i32
    %c0_i32_0 = arith.constant 0 : i32
    %c0_i32_1 = arith.constant 0 : i32
    return %c0_i32, %c0_i32_0 : i32, i32
  }
  func.func @transform_13(%arg0: i32) -> (i32, i32) {
    %c0_i32 = arith.constant 0 : i32
    %c0_i32_0 = arith.constant 0 : i32
    %c0_i32_1 = arith.constant 0 : i32
    return %c0_i32, %c0_i32_0 : i32, i32
  }
  func.func @transform_14(%arg0: i32) -> (i32, i32) {
    %c0_i32 = arith.constant 0 : i32
    %c0_i32_0 = arith.constant 0 : i32
    %c0_i32_1 = arith.constant 0 : i32
    return %c0_i32, %c0_i32_0 : i32, i32
  }
  func.func @transform_15(%arg0: i32) -> (i32, i32) {
    %c0_i32 = arith.constant 0 : i32
    %c0_i32_0 = arith.constant 0 : i32
    %c0_i32_1 = arith.constant 0 : i32
    return %c0_i32, %c0_i32_0 : i32, i32
  }
  func.func @transform_16(%arg0: i32) -> (i32, i32) {
    %c0_i32 = arith.constant 0 : i32
    %c0_i32_0 = arith.constant 0 : i32
    %c0_i32_1 = arith.constant 0 : i32
    return %c0_i32, %c0_i32_0 : i32, i32
  }
  func.func @transform_17(%arg0: i32) -> (i32, i32) {
    %c0_i32 = arith.constant 0 : i32
    %c0_i32_0 = arith.constant 0 : i32
    %c0_i32_1 = arith.constant 0 : i32
    return %c0_i32, %c0_i32_0 : i32, i32
  }
  func.func @transform_18(%arg0: i32) -> (i32, i32) {
    %c0_i32 = arith.constant 0 : i32
    %c0_i32_0 = arith.constant 0 : i32
    %c0_i32_1 = arith.constant 0 : i32
    return %c0_i32, %c0_i32_0 : i32, i32
  }
  func.func @transform_19(%arg0: i32) -> (i32, i32) {
    %c0_i32 = arith.constant 0 : i32
    %c0_i32_0 = arith.constant 0 : i32
    %c0_i32_1 = arith.constant 0 : i32
    return %c0_i32, %c0_i32_0 : i32, i32
  }
  func.func @transform_20(%arg0: i32) -> (i32, i32) {
    %c0_i32 = arith.constant 0 : i32
    %c0_i32_0 = arith.constant 0 : i32
    %c0_i32_1 = arith.constant 0 : i32
    return %c0_i32, %c0_i32_0 : i32, i32
  }
  func.func @transform_21(%arg0: i32) -> (i32, i32) {
    %c0_i32 = arith.constant 0 : i32
    %c0_i32_0 = arith.constant 0 : i32
    %c0_i32_1 = arith.constant 0 : i32
    return %c0_i32, %c0_i32_0 : i32, i32
  }
  func.func @transform_22(%arg0: i32) -> (i32, i32) {
    %c0_i32 = arith.constant 0 : i32
    %c0_i32_0 = arith.constant 0 : i32
    %c0_i32_1 = arith.constant 0 : i32
    return %c0_i32, %c0_i32_0 : i32, i32
  }
}

</mosaic_0001>

<bundles_post_ra>
// kernel: faster_rcnn_head_forward.1
= control target key start
LH: loop header
LB: loop body
LE: loop exit
PB: predicated region body
PF: predicated region fallthrough
CT: control target
= control target key end

     0   :  { %s26468_s0 = inlined_call_operand.vmem [shape: f32[64,192], index: 0, kind: input, shape index: {}]   ;;  %s26469_s1 = inlined_call_operand.vmem [shape: bf16[576,256], index: 1, kind: input, shape index: {}]   ;;  %s26470_s2 = inlined_call_operand.vmem [shape: bf16[768,256], index: 2, kind: input, shape index: {}]   ;;  %s26471_s3 = inlined_call_operand.vmem [shape: bf16[384,256], index: 3, kind: input, shape index: {}]   ;;  %s26472_s4 = inlined_call_operand.vmem [shape: bf16[768,256], index: 4, kind: input, shape index: {}]   ;;  %s26473_s5 = inlined_call_operand.vmem [shape: bf16[384,256], index: 5, kind: input, shape index: {}]   ;;  %s26474_s6 = inlined_call_operand.vmem [shape: bf16[768,256], index: 6, kind: input, shape index: {}]   ;;  %s26475_s7 = inlined_call_operand.vmem [shape: bf16[768,256], index: 7, kind: input, shape index: {}]   ;;  %s26476_s8 = inlined_call_operand.vmem [shape: bf16[384,256], index: 8, kind: input, shape index: {}]   ;;  %s26477_s9 = inlined_call_operand.vmem [shape: bf16[768,256], index: 9, kind: input, shape index: {}]   ;;  %s26478_s10 = inlined_call_operand.vmem [shape: bf16[768,256], index: 10, kind: input, shape index: {}]   ;;  %s26479_s11 = inlined_call_operand.vmem [shape: bf16[384,128], index: 11, kind: input, shape index: {}]   ;;  %s26480_s12 = inlined_call_operand.vmem [shape: bf16[384,128], index: 12, kind: input, shape index: {}]   ;;  %s26481_s13 = inlined_call_operand.vmem [shape: bf16[384,128], index: 13, kind: input, shape index: {}]   ;;  %s26482_s14 = inlined_call_operand.vmem [shape: f32[13,256], index: 14, kind: input, shape index: {}]   ;;  %s26483_s15 = inlined_call_operand.vmem [shape: bf16[1568,256], index: 15, kind: input, shape index: {}]   ;;  %s26484_s16 = inlined_call_operand.vmem [shape: bf16[256,256], index: 16, kind: input, shape index: {}]   ;;  %s26485_s17 = inlined_call_operand.vmem [shape: f32[256,5], index: 17, kind: input, shape index: {}]   ;;  %s26486_s18 = inlined_call_operand.vmem [shape: f32[256,20], index: 18, kind: input, shape index: {}]   ;;  %s26487_s19 = inlined_call_operand.vmem [shape: f32[4,256], index: 19, kind: input, shape index: {}]   ;;  %s26488_s20 = inlined_call_operand.hbm [shape: f32[1,5], index: 20, kind: output, shape index: {0}]   ;;  %s26489_s21 = inlined_call_operand.hbm [shape: f32[1,20], index: 21, kind: output, shape index: {1}]   ;;  %s26490_s22 = inlined_call_operand.hbm [shape: f32[1,5], index: 22, kind: output, shape index: {2}]  }
   0x1   :  { %26535 = sst [smem:[#allocation19_spill]] %s26468_s0 }
   0x2   :  { %26536 = sst [smem:[#allocation20_spill]] %s26469_s1 }
   0x3   :  { %26537 = sst [smem:[#allocation21_spill]] %s26470_s2 }
   0x4   :  { %26538 = sst [smem:[#allocation22_spill]] %s26471_s3 }
   0x5   :  { %26539 = sst [smem:[#allocation23_spill]] %s26472_s4 }
   0x6   :  { %26540 = sst [smem:[#allocation24_spill]] %s26473_s5 }
   0x7   :  { %26541 = sst [smem:[#allocation25_spill]] %s26474_s6 }
   0x8   :  { %28 = vsyncpa [#allocation3], 0  ;;  %s26542_s29 = sld [smem:[#allocation19_spill]]  ;;  %v87_v3 = vlaneseq  ;;  %v26500_v8 = vmov 0   ;;  %s26543_s30 = sld [smem:[#allocation20_spill]]  ;;  %v26498_v38 = vmov 0.0  }
   0x9   :  { %208 = vmatprep.mubr.bf16.mxu0 %v26500_v8  ;;  %vm163_vm2 = vcmask 523264  }
   0xa   :  { %v20706_v14 = vshrl.u32 %v87_v3, 7  ;;  %v20733_v23 = vand.u32 127, %v87_v3 }
   0xc   :  { %v20725_v20 = vadd.s32 8, %v20706_v14  ;;  %v15842_v24 = vadd.s32 4294967295, %v20706_v14  ;;  %v20761_v33 = vadd.s32 16, %v20706_v14  ;;  %v20764_v34 = vadd.s32 24, %v20706_v14 }
   0xd   :  { %v20798_v47 = vadd.s32 32, %v20706_v14  ;;  %v20801_v48 = vadd.s32 40, %v20706_v14  ;;  %v20834_v59 = vadd.s32 48, %v20706_v14  ;;  %v20837_v60 = vadd.s32 56, %v20706_v14 }
   0xe   :  { %v72_v0 = vld [vmem:[%s26542_s29 + $0x8] sm:$0xff]  ;;  %v74_v1 = vld [vmem:[%s26542_s29 + $0x18] sm:$0xff]  ;;  %v71_v2 = vld [vmem:[%s26542_s29] sm:$0xff]  ;;  %v15843_v25 = vadd.s32 4294967295, %v20725_v20  ;;  %vm106_vm0 = vcmp.eq.s32.totalorder %v20733_v23, %v15842_v24  ;;  %v15844_v41 = vadd.s32 4294967295, %v20761_v33  ;;  %v15845_v42 = vadd.s32 4294967295, %v20764_v34 }
   0xf   :  { %v20681_v4 = vpack.c.bf16 %v74_v1, %v72_v0  ;;  %v73_v5 = vld [vmem:[%s26542_s29 + $0x10] sm:$0xff]  ;;  %v76_v6 = vld [vmem:[%s26542_s29 + $0x28] sm:$0xff]  ;;  %v78_v7 = vld [vmem:[%s26542_s29 + $0x38] sm:$0xff]  ;;  %v20776_v39 = vsel %vm106_vm0, 1.0, %v26498_v38  ;;  %v15846_v52 = vadd.s32 4294967295, %v20798_v47  ;;  %v15847_v53 = vadd.s32 4294967295, %v20801_v48 }
  0x10   :  { %v20693_v9 = vpack.c.bf16 %v73_v5, %v71_v2  ;;  %v20695_v10 = vpack.c.bf16 %v78_v7, %v76_v6  ;;  %v75_v11 = vld [vmem:[%s26542_s29 + $0x20] sm:$0xff]  ;;  %v77_v12 = vld [vmem:[%s26542_s29 + $0x30] sm:$0xff]  ;;  %v80_v13 = vld [vmem:[%s26542_s29 + $0x48] sm:$0xff]  ;;  %vm107_vm1 = vcmp.eq.s32.totalorder %v20733_v23, %v15843_v25  ;;  %26544 = vst [vmem:[#allocation9_spill] sm:$0xff] %v20776_v39  ;;  %vm108_vm3 = vcmp.eq.s32.totalorder %v20733_v23, %v15844_v41 }
  0x11   :  { %176 = vmatprep.subr.bf16.mxu0 %v20681_v4  ;;  %v82_v15 = vld [vmem:[%s26542_s29 + $0x58] sm:$0xff]  ;;  %v20713_v16 = vpack.c.bf16 %v77_v12, %v75_v11  ;;  %v79_v17 = vld [vmem:[%s26542_s29 + $0x40] sm:$0xff]  ;;  %v81_v18 = vld [vmem:[%s26542_s29 + $0x50] sm:$0xff]  ;;  %v115_v40 = vsel %vm107_vm1, 1.0, %v26498_v38  ;;  %vm109_vm4 = vcmp.eq.s32.totalorder %v20733_v23, %v15845_v42  ;;  %v116_v50 = vsel %vm108_vm3, 1.0, %v26498_v38 }
  0x12   :  { %177 = vmatpush1.bf16.msra.mxu0 %v20693_v9  ;;  %v84_v19 = vld [vmem:[%s26542_s29 + $0x68] sm:$0xff]  ;;  %v20728_v21 = vpack.c.bf16 %v82_v15, %v80_v13  ;;  %v86_v22 = vld [vmem:[%s26542_s29 + $0x78] sm:$0xff]  ;;  %v20744_v28 = vpack.c.bf16 %v81_v18, %v79_v17  ;;  %v83_v30 = vld [vmem:[%s26542_s29 + $0x60] sm:$0xff]  ;;  %v20789_v45 = vpack.c.bf16 %v115_v40, %v20776_v39  ;;  %v117_v51 = vsel %vm109_vm4, 1.0, %v26498_v38 }
  0x13   :  { %178 = vmatprep.subr.bf16.mxu0 %v20695_v10  ;;  %v18870_v26 = vld [vmem:[%s26543_s30 + $0x4] ss:$8 sps:$4 sm:$0xff]   ;;  %v18872_v27 = vld [vmem:[%s26543_s30] ss:$8 sps:$4 sm:$0xff]   ;;  %v20746_v29 = vpack.c.bf16 %v86_v22, %v84_v19  ;;  %v18873_v31 = vld [vmem:[%s26543_s30 + $0x14] ss:$8 sps:$4 sm:$0xff]   ;;  %v20822_v56 = vpack.c.bf16 %v117_v51, %v116_v50  ;;  %vm110_vm5 = vcmp.eq.s32.totalorder %v20733_v23, %v15846_v52  ;;  %vm111_vm6 = vcmp.eq.s32.totalorder %v20733_v23, %v15847_v53 }
  0x14   :  { %413 = vmatprep.subr.bf16.mxu1 %v18870_v26  ;;  %v85_v32 = vld [vmem:[%s26542_s29 + $0x70] sm:$0xff]  ;;  %v18876_v36 = vld [vmem:[%s26543_s30 + $0x24] ss:$8 sps:$4 sm:$0xff]   ;;  %v18878_v43 = vld [vmem:[%s26543_s30 + $0x20] ss:$8 sps:$4 sm:$0xff]   ;;  %v118_v62 = vsel %vm110_vm5, 1.0, %v26498_v38 }
  0x15   :  { %414 = vmatpush1.bf16.msra.mxu1 %v18872_v27  ;;  %v18875_v35 = vld [vmem:[%s26543_s30 + $0x10] ss:$8 sps:$4 sm:$0xff]   ;;  %v20773_v37 = vpack.c.bf16 %v85_v32, %v83_v30  ;;  %v18879_v44 = vld [vmem:[%s26543_s30 + $0x34] ss:$8 sps:$4 sm:$0xff]   ;;  %v18882_v49 = vld [vmem:[%s26543_s30 + $0x44] ss:$8 sps:$4 sm:$0xff]  }
  0x16   :  { %179 = vmatpush1.bf16.msra.mxu0 %v20713_v16  ;;  %415 = vmatprep.subr.bf16.mxu1 %v18873_v31  ;;  %v18881_v46 = vld [vmem:[%s26543_s30 + $0x30] ss:$8 sps:$4 sm:$0xff]   ;;  %v18884_v54 = vld [vmem:[%s26543_s30 + $0x40] ss:$8 sps:$4 sm:$0xff]   ;;  %v18885_v55 = vld [vmem:[%s26543_s30 + $0x54] ss:$8 sps:$4 sm:$0xff]  }
  0x17   :  { %180 = vmatprep.subr.bf16.mxu0 %v20728_v21  ;;  %v18887_v57 = vld [vmem:[%s26543_s30 + $0x50] ss:$8 sps:$4 sm:$0xff]   ;;  %v18888_v58 = vld [vmem:[%s26543_s30 + $0x64] ss:$8 sps:$4 sm:$0xff]   ;;  %v18890_v61 = vld [vmem:[%s26543_s30 + $0x60] ss:$8 sps:$4 sm:$0xff]  }
  0x18   :  { %v119_v63 = vsel %vm111_vm6, 1.0, %v26498_v38  ;;  %v18891_v0 = vld [vmem:[%s26543_s30 + $0x74] ss:$8 sps:$4 sm:$0xff]   ;;  %v15848_v1 = vadd.s32 4294967295, %v20834_v59  ;;  %v15849_v2 = vadd.s32 4294967295, %v20837_v60  ;;  %v126_v15 = vadd.s32 1, %v20706_v14 }
  0x19   :  { %416 = vmatpush1.bf16.msra.mxu1 %v18875_v35  ;;  %v20855_v3 = vpack.c.bf16 %v119_v63, %v118_v62  ;;  %v18893_v5 = vld [vmem:[%s26543_s30 + $0x70] ss:$8 sps:$4 sm:$0xff]   ;;  %v18894_v6 = vld [vmem:[%s26543_s30 + $0x84] ss:$8 sps:$4 sm:$0xff]   ;;  %v18896_v7 = vld [vmem:[%s26543_s30 + $0x80] ss:$8 sps:$4 sm:$0xff]  }
  0x1a   :  { %181 = vmatpush1.bf16.msra.mxu0 %v20744_v28  ;;  %417 = vmatprep.subr.bf16.mxu1 %v18876_v36  ;;  %vm112_vm7 = vcmp.eq.s32.totalorder %v20733_v23, %v15848_v1  ;;  %vm113_vm8 = vcmp.eq.s32.totalorder %v20733_v23, %v15849_v2  ;;  %v18897_v13 = vld [vmem:[%s26543_s30 + $0x94] ss:$8 sps:$4 sm:$0xff]   ;;  %v127_v17 = vadd.s32 1, %v20725_v20  ;;  %v18899_v19 = vld [vmem:[%s26543_s30 + $0x90] ss:$8 sps:$4 sm:$0xff]   ;;  %vm134_vm9 = vcmp.eq.s32.totalorder %v20733_v23, %v126_v15 }
  0x1b   :  { %182 = vmatprep.subr.bf16.mxu0 %v20746_v29  ;;  %v120_v11 = vsel %vm112_vm7, 1.0, %v26498_v38  ;;  %v121_v12 = vsel %vm113_vm8, 1.0, %v26498_v38  ;;  %v18900_v22 = vld [vmem:[%s26543_s30 + $0xa4] ss:$8 sps:$4 sm:$0xff]   ;;  %v18902_v24 = vld [vmem:[%s26543_s30 + $0xa0] ss:$8 sps:$4 sm:$0xff]  }
  0x1c   :  { %v20879_v18 = vpack.c.bf16 %v121_v12, %v120_v11  ;;  %vm135_vm10 = vcmp.eq.s32.totalorder %v20733_v23, %v127_v17  ;;  %v20896_v25 = vsel %vm134_vm9, 1.0, %v26498_v38  ;;  %v128_v27 = vadd.s32 1, %v20761_v33  ;;  %v18903_v53 = vld [vmem:[%s26543_s30 + $0xb4] ss:$8 sps:$4 sm:$0xff]   ;;  %v18906_v62 = vld [vmem:[%s26543_s30 + $0xc0] ss:$8 sps:$4 sm:$0xff]  }
  0x1d   :  { %418 = vmatpush1.bf16.msra.mxu1 %v18878_v43  ;;  %26545 = vst [vmem:[#allocation10_spill] sm:$0xff] %v20896_v25  ;;  %v143_v26 = vsel %vm135_vm10, 1.0, %v26498_v38  ;;  %v129_v30 = vadd.s32 1, %v20764_v34  ;;  %v130_v36 = vadd.s32 1, %v20798_v47  ;;  %v131_v40 = vadd.s32 1, %v20801_v48 }
  0x1e   :  { %183 = vmatpush1.bf16.msra.mxu0 %v20773_v37  ;;  %419 = vmatprep.subr.bf16.mxu1 %v18879_v44  ;;  %v20902_v31 = vpack.c.bf16 %v143_v26, %v20896_v25  ;;  %vm136_vm11 = vcmp.eq.s32.totalorder %v20733_v23, %v128_v27  ;;  %v132_v44 = vadd.s32 1, %v20834_v59  ;;  %v18911_v1 = vld [vmem:[%s26543_s30 + $0xd4] ss:$8 sps:$4 sm:$0xff]   ;;  %v18912_v12 = vld [vmem:[%s26543_s30 + $0xe0] ss:$8 sps:$4 sm:$0xff]  }
  0x1f   :  { %770 = vmatprep.subr.bf16.mxu0 %v20681_v4  ;;  %vm137_vm12 = vcmp.eq.s32.totalorder %v20733_v23, %v129_v30  ;;  %v144_v32 = vsel %vm136_vm11, 1.0, %v26498_v38  ;;  %vm138_vm13 = vcmp.eq.s32.totalorder %v20733_v23, %v130_v36  ;;  %vm139_vm14 = vcmp.eq.s32.totalorder %v20733_v23, %v131_v40  ;;  %v18917_v15 = vld [vmem:[%s26543_s30 + $0xf4] ss:$8 sps:$4 sm:$0xff]   ;;  %v18920_v26 = vld [vmem:[%s26543_s30 + $0x104] ss:$8 sps:$4 sm:$0xff]  }
  0x20   :  { %v145_v35 = vsel %vm137_vm12, 1.0, %v26498_v38  ;;  %v146_v42 = vsel %vm138_vm13, 1.0, %v26498_v38  ;;  %v147_v43 = vsel %vm139_vm14, 1.0, %v26498_v38  ;;  %vm140_vm15 = vcmp.eq.s32.totalorder %v20733_v23, %v132_v44  ;;  %v18923_v36 = vld [vmem:[%s26543_s30 + $0x114] ss:$8 sps:$4 sm:$0xff]  }
  0x21   :  { %15850 = vmatmul.mubr.msk.bf16.vlgmr.msra.gmra.mrb[0].mxu0 %vm163_vm2, %v20789_v45  ;;  %420 = vmatpush1.bf16.msra.mxu1 %v18881_v46  ;;  %v20913_v41 = vpack.c.bf16 %v145_v35, %v144_v32  ;;  %v133_v46 = vadd.s32 1, %v20837_v60  ;;  %v148_v50 = vsel %vm140_vm15, 1.0, %v26498_v38  ;;  %v18918_v32 = vld [vmem:[%s26543_s30 + $0x100] ss:$8 sps:$4 sm:$0xff]   ;;  %v18921_v44 = vld [vmem:[%s26543_s30 + $0x110] ss:$8 sps:$4 sm:$0xff]  }
  0x22   :  { %218 = vmatprep.mubr.bf16.mxu0 %v26500_v8  ;;  %771 = vmatpush1.bf16.msra.mxu0 %v20693_v9 }
  0x23   :  { %772 = vmatprep.subr.bf16.mxu0 %v20695_v10  ;;  %421 = vmatprep.subr.bf16.mxu1 %v18882_v49  ;;  %v20924_v49 = vpack.c.bf16 %v147_v43, %v146_v42  ;;  %vm141_vm0 = vcmp.eq.s32.totalorder %v20733_v23, %v133_v46  ;;  %v18926_v46 = vld [vmem:[%s26543_s30 + $0x124] ss:$8 sps:$4 sm:$0xff]  }
  0x24   :  { %v149_v51 = vsel %vm141_vm0, 1.0, %v26498_v38 }
  0x25   :  { %422 = vmatpush1.bf16.msra.mxu1 %v18884_v54  ;;  %v20933_v52 = vpack.c.bf16 %v149_v51, %v148_v50  ;;  %v18905_v54 = vld [vmem:[%s26543_s30 + $0xb0] ss:$8 sps:$4 sm:$0xff]  }
  0x26   :  { %773 = vmatpush1.bf16.msra.mxu0 %v20713_v16  ;;  %423 = vmatprep.subr.bf16.mxu1 %v18885_v55  ;;  %v18908_v55 = vld [vmem:[%s26543_s30 + $0xc4] ss:$8 sps:$4 sm:$0xff]  }
  0x27   :  { %774 = vmatprep.subr.bf16.mxu0 %v20728_v21 }
  0x29   :  { %15851 = vmatmul.mubr.msk.bf16.gmra.mrb[4].mxu0 %vm163_vm2, %v20822_v56  ;;  %424 = vmatpush1.bf16.msra.mxu1 %v18887_v57 }
  0x2a   :  { %228 = vmatprep.mubr.bf16.mxu0 %v26500_v8  ;;  %775 = vmatpush1.bf16.msra.mxu0 %v20744_v28 }
  0x2b   :  { %776 = vmatprep.subr.bf16.mxu0 %v20746_v29  ;;  %425 = vmatprep.subr.bf16.mxu1 %v18888_v58 }
  0x2d   :  { %426 = vmatpush1.bf16.msra.mxu1 %v18890_v61 }
  0x2e   :  { %777 = vmatpush1.bf16.msra.mxu0 %v20773_v37  ;;  %427 = vmatprep.subr.bf16.mxu1 %v18891_v0 }
  0x31   :  { %15852 = vmatmul.mubr.msk.bf16.gmra.mrb[8].mxu0 %vm163_vm2, %v20855_v3  ;;  %428 = vmatpush1.bf16.msra.mxu1 %v18893_v5  ;;  %v18909_v5 = vld [vmem:[%s26543_s30 + $0xd0] ss:$8 sps:$4 sm:$0xff]  }
  0x32   :  { %238 = vmatprep.mubr.bf16.mxu0 %v26500_v8  ;;  %429 = vmatprep.subr.bf16.mxu1 %v18894_v6  ;;  %v18914_v6 = vld [vmem:[%s26543_s30 + $0xe4] ss:$8 sps:$4 sm:$0xff]  }
  0x35   :  { %430 = vmatpush1.bf16.msra.mxu1 %v18896_v7 }
  0x36   :  { %431 = vmatprep.subr.bf16.mxu1 %v18897_v13 }
  0x39   :  { %15853 = vmatmul.mubr.msk.bf16.gmra.mrb[12].mxu0 %vm163_vm2, %v20879_v18  ;;  %432 = vmatpush1.bf16.msra.mxu1 %v18899_v19 }
  0x3a   :  { %802 = vmatprep.mubr.bf16.mxu0 %v26500_v8  ;;  %433 = vmatprep.subr.bf16.mxu1 %v18900_v22 }
  0x3d   :  { %434 = vmatpush1.bf16.msra.mxu1 %v18902_v24  ;;  %v18915_v24 = vld [vmem:[%s26543_s30 + $0xf0] ss:$8 sps:$4 sm:$0xff]  }
  0x3e   :  { %435 = vmatprep.subr.bf16.mxu1 %v18903_v53  ;;  %v18924_v53 = vld [vmem:[%s26543_s30 + $0x120] ss:$8 sps:$4 sm:$0xff]  }
  0x41   :  { %15910 = vmatmul.mubr.msk.bf16.vlgmr.msra.gmra.mrb[16].mxu0 %vm163_vm2, %v20902_v31  ;;  %436 = vmatpush1.bf16.msra.mxu1 %v18905_v54 }
  0x42   :  { %812 = vmatprep.mubr.bf16.mxu0 %v26500_v8  ;;  %669 = vmatprep.subr.bf16.mxu1 %v18908_v55  ;;  %v18929_v55 = vld [vmem:[%s26543_s30 + $0x134] ss:$8 sps:$4 sm:$0xff]  }
  0x49   :  { %15911 = vmatmul.mubr.msk.bf16.gmra.mrb[20].mxu0 %vm163_vm2, %v20913_v41 }
  0x4a   :  { %822 = vmatprep.mubr.bf16.mxu0 %v26500_v8 }
  0x51   :  { %15912 = vmatmul.mubr.msk.bf16.gmra.mrb[24].mxu0 %vm163_vm2, %v20924_v49 }
  0x52   :  { %832 = vmatprep.mubr.bf16.mxu0 %v26500_v8 }
  0x59   :  { %15913 = vmatmul.mubr.msk.bf16.gmra.mrb[28].mxu0 %vm163_vm2, %v20933_v52 }
  0x5a   :  { %1154 = vmatprep.mubr.bf16.mxu0 %v26500_v8 }
  0xf4   :  { %v210_v57 = vpop.f32.mrb[0].mxu0 }
  0xf5   :  { %v212_v58 = vpop.f32.mrb[1].mxu0 }
  0xf6   :  { %v214_v61 = vpop.f32.mrb[2].mxu0 }
  0xf7   :  { %v249_v63 = vpack.c.bf16 %v214_v61, %v210_v57  ;;  %v216_v0 = vpop.f32.mrb[3].mxu0 }
  0xf8   :  { %v250_v2 = vpack.c.bf16 %v216_v0, %v212_v58 }
  0xfa   :  { %15878 = vmatprep.mubr.msk.bf16.mxu1 %vm163_vm2, %v250_v2  ;;  %v18930_v2 = vld [vmem:[%s26543_s30 + $0x140] ss:$8 sps:$4 sm:$0xff]  }
  0xfb   :  { %446 = vmatmul.mubr.bf16.vlgmr.msra.gmra.mrb[0].mxu1 %v249_v63  ;;  %v18932_v63 = vld [vmem:[%s26543_s30 + $0x144] ss:$8 sps:$4 sm:$0xff]  }
  0xfc   :  { %670 = vmatpush1.bf16.msra.mxu1 %v18906_v62  ;;  %v220_v7 = vpop.f32.mrb[4].mxu0  ;;  %v18927_v62 = vld [vmem:[%s26543_s30 + $0x130] ss:$8 sps:$4 sm:$0xff]  }
  0xfd   :  { %671 = vmatprep.subr.bf16.mxu1 %v18911_v1  ;;  %v222_v11 = vpop.f32.mrb[5].mxu0 }
  0xfe   :  { %v224_v13 = vpop.f32.mrb[6].mxu0 }
  0xff   :  { %v251_v17 = vpack.c.bf16 %v224_v13, %v220_v7  ;;  %v226_v19 = vpop.f32.mrb[7].mxu0  ;;  %v18938_v13 = vld [vmem:[%s26543_s30 + $0x164] ss:$8 sps:$4 sm:$0xff]  }
 0x100   :  { %672 = vmatpush1.bf16.msra.mxu1 %v18909_v5  ;;  %v252_v22 = vpack.c.bf16 %v226_v19, %v222_v11  ;;  %v18936_v19 = vld [vmem:[%s26543_s30 + $0x160] ss:$8 sps:$4 sm:$0xff]  }
 0x101   :  { %673 = vmatprep.subr.bf16.mxu1 %v18914_v6  ;;  %v18935_v6 = vld [vmem:[%s26543_s30 + $0x154] ss:$8 sps:$4 sm:$0xff]  }
 0x102   :  { %15879 = vmatprep.mubr.msk.bf16.mxu1 %vm163_vm2, %v252_v22 }
 0x103   :  { %456 = vmatmul.mubr.bf16.gmra.mrb[4].mxu1 %v251_v17 }
 0x104   :  { %674 = vmatpush1.bf16.msra.mxu1 %v18912_v12  ;;  %v230_v27 = vpop.f32.mrb[8].mxu0  ;;  %v18933_v12 = vld [vmem:[%s26543_s30 + $0x150] ss:$8 sps:$4 sm:$0xff]  }
 0x105   :  { %675 = vmatprep.subr.bf16.mxu1 %v18917_v15  ;;  %v232_v30 = vpop.f32.mrb[9].mxu0 }
 0x106   :  { %v234_v35 = vpop.f32.mrb[10].mxu0 }
 0x107   :  { %v253_v40 = vpack.c.bf16 %v234_v35, %v230_v27  ;;  %v236_v42 = vpop.f32.mrb[11].mxu0  ;;  %v18944_v35 = vld [vmem:[%s26543_s30 + $0x184] ss:$8 sps:$4 sm:$0xff]  }
 0x108   :  { %676 = vmatpush1.bf16.msra.mxu1 %v18915_v24  ;;  %v254_v43 = vpack.c.bf16 %v236_v42, %v232_v30  ;;  %v18941_v24 = vld [vmem:[%s26543_s30 + $0x174] ss:$8 sps:$4 sm:$0xff]   ;;  %v18942_v42 = vld [vmem:[%s26543_s30 + $0x180] ss:$8 sps:$4 sm:$0xff]  }
 0x109   :  { %677 = vmatprep.subr.bf16.mxu1 %v18920_v26 }
 0x10a   :  { %15880 = vmatprep.mubr.msk.bf16.mxu1 %vm163_vm2, %v254_v43 }
 0x10b   :  { %466 = vmatmul.mubr.bf16.gmra.mrb[8].mxu1 %v253_v40 }
 0x10c   :  { %678 = vmatpush1.bf16.msra.mxu1 %v18918_v32  ;;  %v240_v50 = vpop.f32.mrb[12].mxu0  ;;  %v18939_v32 = vld [vmem:[%s26543_s30 + $0x170] ss:$8 sps:$4 sm:$0xff]  }
 0x10d   :  { %679 = vmatprep.subr.bf16.mxu1 %v18923_v36  ;;  %v242_v51 = vpop.f32.mrb[13].mxu0 }
 0x10e   :  { %v244_v54 = vpop.f32.mrb[14].mxu0 }
 0x10f   :  { %v255_v57 = vpack.c.bf16 %v244_v54, %v240_v50  ;;  %v246_v58 = vpop.f32.mrb[15].mxu0  ;;  %v18950_v54 = vld [vmem:[%s26543_s30 + $0x1a4] ss:$8 sps:$4 sm:$0xff]  }
 0x110   :  { %680 = vmatpush1.bf16.msra.mxu1 %v18921_v44  ;;  %v256_v61 = vpack.c.bf16 %v246_v58, %v242_v51  ;;  %v18947_v44 = vld [vmem:[%s26543_s30 + $0x194] ss:$8 sps:$4 sm:$0xff]   ;;  %v18948_v58 = vld [vmem:[%s26543_s30 + $0x1a0] ss:$8 sps:$4 sm:$0xff]  }
 0x111   :  { %681 = vmatprep.subr.bf16.mxu1 %v18926_v46 }
 0x112   :  { %15881 = vmatprep.mubr.msk.bf16.mxu1 %vm163_vm2, %v256_v61 }
 0x113   :  { %476 = vmatmul.mubr.bf16.gmra.mrb[12].mxu1 %v255_v57 }
 0x114   :  { %682 = vmatpush1.bf16.msra.mxu1 %v18924_v53  ;;  %15906 = vmatprep.mubr.msk.bf16.mxu1 %vm163_vm2, %v20681_v4  ;;  %v21001_v0 = vpop.f32.mrb[16].mxu0  ;;  %v18945_v53 = vld [vmem:[%s26543_s30 + $0x190] ss:$8 sps:$4 sm:$0xff]  }
 0x115   :  { %683 = vmatprep.subr.bf16.mxu1 %v18929_v55  ;;  %v21003_v1 = vpop.f32.mrb[17].mxu0 }
 0x116   :  { %v21008_v5 = vpop.f32.mrb[18].mxu0 }
 0x117   :  { %v843_v7 = vpack.c.bf16 %v21008_v5, %v21001_v0  ;;  %v21015_v11 = vpop.f32.mrb[19].mxu0 }
 0x118   :  { %684 = vmatpush1.bf16.msra.mxu1 %v18927_v62  ;;  %v844_v4 = vpack.c.bf16 %v21015_v11, %v21003_v1  ;;  %v18974_v1 = vld [vmem:[%s26543_s30 + $0x224] ss:$8 sps:$4 sm:$0xff]   ;;  %v18972_v11 = vld [vmem:[%s26543_s30 + $0x220] ss:$8 sps:$4 sm:$0xff]  }
 0x119   :  { %685 = vmatprep.subr.bf16.mxu1 %v18932_v63 }
 0x11c   :  { %686 = vmatpush1.bf16.msra.mxu1 %v18930_v2  ;;  %v21025_v15 = vpop.f32.mrb[20].mxu0 }
 0x11d   :  { %687 = vmatprep.subr.bf16.mxu1 %v18935_v6  ;;  %v21027_v17 = vpop.f32.mrb[21].mxu0  ;;  %v18956_v6 = vld [vmem:[%s26543_s30 + $0x1c4] ss:$8 sps:$4 sm:$0xff]  }
 0x11e   :  { %v21032_v22 = vpop.f32.mrb[22].mxu0 }
 0x11f   :  { %v845_v26 = vpack.c.bf16 %v21032_v22, %v21025_v15  ;;  %v21039_v27 = vpop.f32.mrb[23].mxu0 }
 0x120   :  { %688 = vmatpush1.bf16.msra.mxu1 %v18933_v12  ;;  %v846_v30 = vpack.c.bf16 %v21039_v27, %v21027_v17  ;;  %v18954_v12 = vld [vmem:[%s26543_s30 + $0x1c0] ss:$8 sps:$4 sm:$0xff]  }
 0x121   :  { %689 = vmatprep.subr.bf16.mxu1 %v18938_v13  ;;  %v18959_v13 = vld [vmem:[%s26543_s30 + $0x1d4] ss:$8 sps:$4 sm:$0xff]  }
 0x124   :  { %690 = vmatpush1.bf16.msra.mxu1 %v18936_v19  ;;  %v21049_v36 = vpop.f32.mrb[24].mxu0  ;;  %v18957_v19 = vld [vmem:[%s26543_s30 + $0x1d0] ss:$8 sps:$4 sm:$0xff]  }
 0x125   :  { %691 = vmatprep.subr.bf16.mxu1 %v18941_v24  ;;  %v21051_v40 = vpop.f32.mrb[25].mxu0  ;;  %v18965_v24 = vld [vmem:[%s26543_s30 + $0x1f4] ss:$8 sps:$4 sm:$0xff]  }
 0x126   :  { %v21056_v43 = vpop.f32.mrb[26].mxu0 }
 0x127   :  { %v847_v46 = vpack.c.bf16 %v21056_v43, %v21049_v36  ;;  %v21063_v50 = vpop.f32.mrb[27].mxu0 }
 0x128   :  { %692 = vmatpush1.bf16.msra.mxu1 %v18939_v32  ;;  %v848_v51 = vpack.c.bf16 %v21063_v50, %v21051_v40  ;;  %v18963_v32 = vld [vmem:[%s26543_s30 + $0x1f0] ss:$8 sps:$4 sm:$0xff]  }
 0x129   :  { %1007 = vmatprep.subr.bf16.mxu1 %v18944_v35  ;;  %v18971_v35 = vld [vmem:[%s26543_s30 + $0x214] ss:$8 sps:$4 sm:$0xff]  }
 0x12b   :  { %702 = vmatmul.mubr.bf16.vlgmr.msra.gmra.mrb[0].mxu1 %v20693_v9  ;;  %v18953_v9 = vld [vmem:[%s26543_s30 + $0x1b4] ss:$8 sps:$4 sm:$0xff]  }
 0x12c   :  { %1008 = vmatpush1.bf16.msra.mxu1 %v18942_v42  ;;  %15907 = vmatprep.mubr.msk.bf16.mxu1 %vm163_vm2, %v20695_v10  ;;  %v834_v55 = vpop.f32.mrb[28].mxu0  ;;  %v18951_v10 = vld [vmem:[%s26543_s30 + $0x1b0] ss:$8 sps:$4 sm:$0xff]  }
 0x12d   :  { %1009 = vmatprep.subr.bf16.mxu1 %v18947_v44  ;;  %v836_v57 = vpop.f32.mrb[29].mxu0  ;;  %v18975_v42 = vld [vmem:[%s26543_s30 + $0x230] ss:$8 sps:$4 sm:$0xff]  }
 0x12e   :  { %v838_v61 = vpop.f32.mrb[30].mxu0 }
 0x12f   :  { %v849_v62 = vpack.c.bf16 %v838_v61, %v834_v55  ;;  %v840_v63 = vpop.f32.mrb[31].mxu0 }
 0x130   :  { %1010 = vmatpush1.bf16.msra.mxu1 %v18945_v53  ;;  %v850_v2 = vpack.c.bf16 %v840_v63, %v836_v57 }
 0x131   :  { %1011 = vmatprep.subr.bf16.mxu1 %v18950_v54 }
 0x133   :  { %712 = vmatmul.mubr.bf16.gmra.mrb[4].mxu1 %v20713_v16  ;;  %v18962_v16 = vld [vmem:[%s26543_s30 + $0x1e4] ss:$8 sps:$4 sm:$0xff]  }
 0x134   :  { %1012 = vmatpush1.bf16.msra.mxu1 %v18948_v58  ;;  %15908 = vmatprep.mubr.msk.bf16.mxu1 %vm163_vm2, %v20728_v21  ;;  %v18960_v21 = vld [vmem:[%s26543_s30 + $0x1e0] ss:$8 sps:$4 sm:$0xff]  }
 0x135   :  { %1013 = vmatprep.subr.bf16.mxu1 %v18953_v9 }
 0x138   :  { %1014 = vmatpush1.bf16.msra.mxu1 %v18951_v10 }
 0x139   :  { %1015 = vmatprep.subr.bf16.mxu1 %v18956_v6 }
 0x13b   :  { %722 = vmatmul.mubr.bf16.gmra.mrb[8].mxu1 %v20744_v28  ;;  %v18968_v28 = vld [vmem:[%s26543_s30 + $0x204] ss:$8 sps:$4 sm:$0xff]  }
 0x13c   :  { %1016 = vmatpush1.bf16.msra.mxu1 %v18954_v12  ;;  %15909 = vmatprep.mubr.msk.bf16.mxu1 %vm163_vm2, %v20746_v29  ;;  %v18966_v29 = vld [vmem:[%s26543_s30 + $0x200] ss:$8 sps:$4 sm:$0xff]  }
 0x13d   :  { %1017 = vmatprep.subr.bf16.mxu1 %v18959_v13 }
 0x140   :  { %1018 = vmatpush1.bf16.msra.mxu1 %v18957_v19 }
 0x141   :  { %1019 = vmatprep.subr.bf16.mxu1 %v18962_v16 }
 0x143   :  { %732 = vmatmul.mubr.bf16.gmra.mrb[12].mxu1 %v20773_v37  ;;  %v18969_v37 = vld [vmem:[%s26543_s30 + $0x210] ss:$8 sps:$4 sm:$0xff]  }
 0x144   :  { %1020 = vmatpush1.bf16.msra.mxu1 %v18960_v21  ;;  %15938 = vmatprep.mubr.msk.bf16.mxu1 %vm163_vm2, %v844_v4  ;;  %v18977_v4 = vld [vmem:[%s26543_s30 + $0x234] ss:$8 sps:$4 sm:$0xff]  }
 0x145   :  { %1021 = vmatprep.subr.bf16.mxu1 %v18965_v24 }
 0x148   :  { %1022 = vmatpush1.bf16.msra.mxu1 %v18963_v32 }
 0x149   :  { %1023 = vmatprep.subr.bf16.mxu1 %v18968_v28 }
 0x14c   :  { %1024 = vmatpush1.bf16.msra.mxu1 %v18966_v29 }
 0x14d   :  { %1025 = vmatprep.subr.bf16.mxu1 %v18971_v35 }
 0x150   :  { %1026 = vmatpush1.bf16.msra.mxu1 %v18969_v37 }
 0x151   :  { %1027 = vmatprep.subr.bf16.mxu1 %v18974_v1 }
 0x154   :  { %1028 = vmatpush1.bf16.msra.mxu1 %v18972_v11 }
 0x155   :  { %1029 = vmatprep.subr.bf16.mxu1 %v18977_v4 }
 0x158   :  { %1030 = vmatpush1.bf16.msra.mxu1 %v18975_v42 }
 0x15b   :  { %1040 = vmatmul.mubr.bf16.vlgmr.msra.gmra.mrb[0].mxu1 %v843_v7 }
 0x15c   :  { %15939 = vmatprep.mubr.msk.bf16.mxu1 %vm163_vm2, %v846_v30 }
 0x163   :  { %1050 = vmatmul.mubr.bf16.gmra.mrb[4].mxu1 %v845_v26 }
 0x164   :  { %15940 = vmatprep.mubr.msk.bf16.mxu1 %vm163_vm2, %v848_v51 }
 0x16b   :  { %1060 = vmatmul.mubr.bf16.gmra.mrb[8].mxu1 %v847_v46 }
 0x16c   :  { %15941 = vmatprep.mubr.msk.bf16.mxu1 %vm163_vm2, %v850_v2 }
 0x173   :  { %1070 = vmatmul.mubr.bf16.gmra.mrb[12].mxu1 %v849_v62 }
 0x174   :  { %1808 = vmatprep.mubr.bf16.mxu1 %v26500_v8 }
 0x175   :  { %29 = vsyncpa [#allocation5], 0  ;;  %v21164_v0 = vsub.s32 0, %v20706_v14  ;;  %v154_v5 = vld [vmem:[%s26482_s14] ss:$8 sm:$0x3] }
 0x176   :  { %v21170_v7 = vsub.s32 1, %v20706_v14  ;;  %s26546_s2 = sld [smem:[#allocation21_spill]]  ;;  %s26575_s6 = sld [smem:[#allocation22_spill]] }
 0x177   :  { %v490_v15 = vrot.slane %v154_v5, %v21164_v0  ;;  %s26576_s30 = sld [smem:[#allocation23_spill]]  ;;  %s26585_s5 = sld [smem:[#allocation24_spill]] }
 0x178   :  { %v494_v17 = vrot.slane %v154_v5, %v21170_v7  ;;  %s20552_s1 = smov 64   ;;  %s20554_s29 = smov [#allocation4]  }
 0x17c   :  { %v19058_v38 = vld [vmem:[%s26546_s2 + $0x1a4] ss:$8 sps:$4 sm:$0xff]   ;;  %v19067_v25 = vld [vmem:[%s26546_s2 + $0x1d4] ss:$8 sps:$4 sm:$0xff]   ;;  %v19068_v39 = vld [vmem:[%s26546_s2 + $0x1e0] ss:$8 sps:$4 sm:$0xff]  }
 0x22e   :  { %v1041_v22 = vpop.f32.mrb[0].mxu1 }
 0x22f   :  { %v18622_v26 = vadd.f32 %v1041_v22, %v490_v15  ;;  %v1043_v27 = vpop.f32.mrb[1].mxu1 }
 0x230   :  { %v18623_v30 = vadd.f32 %v1043_v27, %v494_v17  ;;  %v1045_v36 = vpop.f32.mrb[2].mxu1 }
 0x231   :  { %v18624_v40 = vadd.f32 %v1045_v36, %v490_v15  ;;  %v1047_v43 = vpop.f32.mrb[3].mxu1  ;;  %v1096_v46 = vmax.f32 %v18622_v26, 0.0 }
 0x232   :  { %v18625_v44 = vadd.f32 %v1047_v43, %v494_v17  ;;  %v1097_v51 = vmax.f32 %v18623_v30, 0.0 }
 0x233   :  { %v1098_v50 = vmax.f32 %v18624_v40, 0.0 }
 0x234   :  { %v1099_v53 = vmax.f32 %v18625_v44, 0.0 }
 0x235   :  { %v21174_v54 = vpack.c.bf16 %v1098_v50, %v1096_v46 }
 0x236   :  { %v21176_v55 = vpack.c.bf16 %v1099_v53, %v1097_v51  ;;  %v1051_v57 = vpop.f32.mrb[4].mxu1 }
 0x237   :  { %v18626_v58 = vadd.f32 %v1051_v57, %v490_v15  ;;  %v1053_v61 = vpop.f32.mrb[5].mxu1 }
 0x238   :  { %v18627_v9 = vadd.f32 %v1053_v61, %v494_v17  ;;  %v1055_v62 = vpop.f32.mrb[6].mxu1  ;;  %1122 = vmatprep.subr.bf16.mxu0 %v21176_v55  ;;  %1776 = vmatprep.subr.bf16.mxu1 %v21176_v55 }
 0x239   :  { %v18628_v63 = vadd.f32 %v1055_v62, %v490_v15  ;;  %v1057_v2 = vpop.f32.mrb[7].mxu1  ;;  %1123 = vmatpush1.bf16.msra.mxu0 %v21174_v54  ;;  %1777 = vmatpush1.bf16.msra.mxu1 %v21174_v54  ;;  %v1100_v6 = vmax.f32 %v18626_v58, 0.0 }
 0x23a   :  { %v18629_v10 = vadd.f32 %v1057_v2, %v494_v17  ;;  %v1101_v13 = vmax.f32 %v18627_v9, 0.0  ;;  %v18981_v2 = vld [vmem:[%s26546_s2 + $0x10] ss:$8 sps:$4 sm:$0xff]  }
 0x23b   :  { %v1102_v12 = vmax.f32 %v18628_v63, 0.0  ;;  %v18980_v63 = vld [vmem:[%s26546_s2 + $0x4] ss:$8 sps:$4 sm:$0xff]  }
 0x23c   :  { %v1103_v19 = vmax.f32 %v18629_v10, 0.0  ;;  %v18986_v10 = vld [vmem:[%s26546_s2 + $0x24] ss:$8 sps:$4 sm:$0xff]  }
 0x23d   :  { %v21182_v16 = vpack.c.bf16 %v1102_v12, %v1100_v6  ;;  %v18984_v6 = vld [vmem:[%s26546_s2 + $0x20] ss:$8 sps:$4 sm:$0xff]   ;;  %v18989_v12 = vld [vmem:[%s26546_s2 + $0x34] ss:$8 sps:$4 sm:$0xff]  }
 0x23e   :  { %v21184_v21 = vpack.c.bf16 %v1103_v19, %v1101_v13  ;;  %v1061_v24 = vpop.f32.mrb[8].mxu1  ;;  %v18987_v13 = vld [vmem:[%s26546_s2 + $0x30] ss:$8 sps:$4 sm:$0xff]   ;;  %v18992_v19 = vld [vmem:[%s26546_s2 + $0x44] ss:$8 sps:$4 sm:$0xff]  }
 0x23f   :  { %v18630_v32 = vadd.f32 %v1061_v24, %v490_v15  ;;  %v1063_v28 = vpop.f32.mrb[9].mxu1  ;;  %v18990_v24 = vld [vmem:[%s26546_s2 + $0x40] ss:$8 sps:$4 sm:$0xff]  }
 0x240   :  { %v18631_v29 = vadd.f32 %v1063_v28, %v494_v17  ;;  %v1065_v35 = vpop.f32.mrb[10].mxu1  ;;  %1124 = vmatprep.subr.bf16.mxu0 %v21184_v21  ;;  %1778 = vmatprep.subr.bf16.mxu1 %v21184_v21  ;;  %v18993_v28 = vld [vmem:[%s26546_s2 + $0x50] ss:$8 sps:$4 sm:$0xff]  }
 0x241   :  { %v18632_v37 = vadd.f32 %v1065_v35, %v490_v15  ;;  %v1067_v1 = vpop.f32.mrb[11].mxu1  ;;  %1125 = vmatpush1.bf16.msra.mxu0 %v21182_v16  ;;  %1779 = vmatpush1.bf16.msra.mxu1 %v21182_v16  ;;  %v1104_v4 = vmax.f32 %v18630_v32, 0.0  ;;  %v18995_v32 = vld [vmem:[%s26546_s2 + $0x54] ss:$8 sps:$4 sm:$0xff]   ;;  %v18999_v35 = vld [vmem:[%s26546_s2 + $0x70] ss:$8 sps:$4 sm:$0xff]  }
 0x242   :  { %v18633_v11 = vadd.f32 %v1067_v1, %v494_v17  ;;  %v1105_v5 = vmax.f32 %v18631_v29, 0.0  ;;  %v18998_v29 = vld [vmem:[%s26546_s2 + $0x64] ss:$8 sps:$4 sm:$0xff]   ;;  %v19002_v1 = vld [vmem:[%s26546_s2 + $0x80] ss:$8 sps:$4 sm:$0xff]  }
 0x243   :  { %v1106_v42 = vmax.f32 %v18632_v37, 0.0  ;;  %v19004_v37 = vld [vmem:[%s26546_s2 + $0x84] ss:$8 sps:$4 sm:$0xff]  }
 0x244   :  { %v1107_v22 = vmax.f32 %v18633_v11, 0.0  ;;  %v19010_v11 = vld [vmem:[%s26546_s2 + $0xa4] ss:$8 sps:$4 sm:$0xff]  }
 0x245   :  { %v21190_v26 = vpack.c.bf16 %v1106_v42, %v1104_v4  ;;  %v19008_v4 = vld [vmem:[%s26546_s2 + $0xa0] ss:$8 sps:$4 sm:$0xff]   ;;  %v19013_v42 = vld [vmem:[%s26546_s2 + $0xb4] ss:$8 sps:$4 sm:$0xff]  }
 0x246   :  { %v21192_v27 = vpack.c.bf16 %v1107_v22, %v1105_v5  ;;  %v1071_v30 = vpop.f32.mrb[12].mxu1  ;;  %v19011_v5 = vld [vmem:[%s26546_s2 + $0xb0] ss:$8 sps:$4 sm:$0xff]   ;;  %v19016_v22 = vld [vmem:[%s26546_s2 + $0xc4] ss:$8 sps:$4 sm:$0xff]  }
 0x247   :  { %v18634_v36 = vadd.f32 %v1071_v30, %v490_v15  ;;  %v1073_v40 = vpop.f32.mrb[13].mxu1  ;;  %v19014_v30 = vld [vmem:[%s26546_s2 + $0xc0] ss:$8 sps:$4 sm:$0xff]  }
 0x248   :  { %v18635_v43 = vadd.f32 %v1073_v40, %v494_v17  ;;  %v1075_v44 = vpop.f32.mrb[14].mxu1  ;;  %1126 = vmatprep.subr.bf16.mxu0 %v21192_v27  ;;  %1780 = vmatprep.subr.bf16.mxu1 %v21192_v27  ;;  %v19017_v40 = vld [vmem:[%s26546_s2 + $0xd0] ss:$8 sps:$4 sm:$0xff]  }
 0x249   :  { %v18636_v46 = vadd.f32 %v1075_v44, %v490_v15  ;;  %v1077_v50 = vpop.f32.mrb[15].mxu1  ;;  %1127 = vmatpush1.bf16.msra.mxu0 %v21190_v26  ;;  %1781 = vmatpush1.bf16.msra.mxu1 %v21190_v26  ;;  %v1108_v53 = vmax.f32 %v18634_v36, 0.0  ;;  %v18978_v15 = vld [vmem:[%s26546_s2] ss:$8 sps:$4 sm:$0xff]   ;;  %v19019_v36 = vld [vmem:[%s26546_s2 + $0xd4] ss:$8 sps:$4 sm:$0xff]  }
 0x24a   :  { %v18637_v51 = vadd.f32 %v1077_v50, %v494_v17  ;;  %v1109_v58 = vmax.f32 %v18635_v43, 0.0  ;;  %v18983_v17 = vld [vmem:[%s26546_s2 + $0x14] ss:$8 sps:$4 sm:$0xff]   ;;  %v19022_v43 = vld [vmem:[%s26546_s2 + $0xe4] ss:$8 sps:$4 sm:$0xff]  }
 0x24b   :  { %v1110_v57 = vmax.f32 %v18636_v46, 0.0  ;;  %v19020_v44 = vld [vmem:[%s26546_s2 + $0xe0] ss:$8 sps:$4 sm:$0xff]   ;;  %v19025_v46 = vld [vmem:[%s26546_s2 + $0xf4] ss:$8 sps:$4 sm:$0xff]  }
 0x24c   :  { %v1111_v61 = vmax.f32 %v18637_v51, 0.0  ;;  %v19023_v50 = vld [vmem:[%s26546_s2 + $0xf0] ss:$8 sps:$4 sm:$0xff]   ;;  %v19028_v51 = vld [vmem:[%s26546_s2 + $0x104] ss:$8 sps:$4 sm:$0xff]  }
 0x24d   :  { %v21198_v9 = vpack.c.bf16 %v1110_v57, %v1108_v53 }
 0x24e   :  { %v21200_v62 = vpack.c.bf16 %v1111_v61, %v1109_v58 }
 0x250   :  { %1128 = vmatprep.subr.bf16.mxu0 %v21200_v62  ;;  %1782 = vmatprep.subr.bf16.mxu1 %v21200_v62 }
 0x251   :  { %1129 = vmatpush1.bf16.msra.mxu0 %v21198_v9  ;;  %1783 = vmatpush1.bf16.msra.mxu1 %v21198_v9 }
 0x252   :  { %1395 = vmatprep.subr.bf16.mxu0 %v18980_v63 }
 0x254   :  { %15943 = vmatmul.mubr.msk.bf16.vlgmr.msra.gmra.mrb[32].mxu0 %vm163_vm2, %v20789_v45  ;;  %16011 = vmatmul.mubr.msk.bf16.vlgmr.msra.gmra.mrb[16].mxu1 %vm163_vm2, %v20902_v31 }
 0x255   :  { %1164 = vmatprep.mubr.bf16.mxu0 %v26500_v8  ;;  %1818 = vmatprep.mubr.bf16.mxu1 %v26500_v8 }
 0x256   :  { %1396 = vmatpush1.bf16.msra.mxu0 %v18978_v15 }
 0x257   :  { %1397 = vmatprep.subr.bf16.mxu0 %v18983_v17 }
 0x25a   :  { %1398 = vmatpush1.bf16.msra.mxu0 %v18981_v2 }
 0x25b   :  { %1399 = vmatprep.subr.bf16.mxu0 %v18986_v10  ;;  %v21555_v10 = vadd.s32 224, %v20706_v14 }
 0x25c   :  { %15944 = vmatmul.mubr.msk.bf16.gmra.mrb[36].mxu0 %vm163_vm2, %v20822_v56  ;;  %16012 = vmatmul.mubr.msk.bf16.gmra.mrb[20].mxu1 %vm163_vm2, %v20913_v41 }
 0x25d   :  { %1174 = vmatprep.mubr.bf16.mxu0 %v26500_v8  ;;  %1828 = vmatprep.mubr.bf16.mxu1 %v26500_v8 }
 0x25e   :  { %1400 = vmatpush1.bf16.msra.mxu0 %v18984_v6 }
 0x25f   :  { %1401 = vmatprep.subr.bf16.mxu0 %v18989_v12 }
 0x262   :  { %1402 = vmatpush1.bf16.msra.mxu0 %v18987_v13  ;;  %v19026_v13 = vld [vmem:[%s26546_s2 + $0x100] ss:$8 sps:$4 sm:$0xff]  }
 0x263   :  { %1403 = vmatprep.subr.bf16.mxu0 %v18992_v19  ;;  %v21558_v19 = vadd.s32 232, %v20706_v14 }
 0x264   :  { %15945 = vmatmul.mubr.msk.bf16.gmra.mrb[40].mxu0 %vm163_vm2, %v20855_v3  ;;  %16013 = vmatmul.mubr.msk.bf16.gmra.mrb[24].mxu1 %vm163_vm2, %v20924_v49  ;;  %v18996_v3 = vld [vmem:[%s26546_s2 + $0x60] ss:$8 sps:$4 sm:$0xff]   ;;  %v19001_v49 = vld [vmem:[%s26546_s2 + $0x74] ss:$8 sps:$4 sm:$0xff]  }
 0x265   :  { %1184 = vmatprep.mubr.bf16.mxu0 %v26500_v8  ;;  %1838 = vmatprep.mubr.bf16.mxu1 %v26500_v8  ;;  %v21502_v8 = vadd.s32 200, %v20706_v14  ;;  %26547 = vst [vmem:[#allocation11_spill] sm:$0xff] %v21558_v19 }
 0x266   :  { %1404 = vmatpush1.bf16.msra.mxu0 %v18990_v24  ;;  %v19031_v24 = vld [vmem:[%s26546_s2 + $0x114] ss:$8 sps:$4 sm:$0xff]  }
 0x267   :  { %1405 = vmatprep.subr.bf16.mxu0 %v18995_v32 }
 0x26a   :  { %1406 = vmatpush1.bf16.msra.mxu0 %v18993_v28  ;;  %v19029_v28 = vld [vmem:[%s26546_s2 + $0x110] ss:$8 sps:$4 sm:$0xff]  }
 0x26b   :  { %1407 = vmatprep.subr.bf16.mxu0 %v18998_v29 }
 0x26c   :  { %15946 = vmatmul.mubr.msk.bf16.gmra.mrb[44].mxu0 %vm163_vm2, %v20879_v18  ;;  %16014 = vmatmul.mubr.msk.bf16.gmra.mrb[28].mxu1 %vm163_vm2, %v20933_v52  ;;  %v19007_v18 = vld [vmem:[%s26546_s2 + $0x94] ss:$8 sps:$4 sm:$0xff]   ;;  %v19005_v52 = vld [vmem:[%s26546_s2 + $0x90] ss:$8 sps:$4 sm:$0xff]  }
 0x26e   :  { %1408 = vmatpush1.bf16.msra.mxu0 %v18996_v3 }
 0x26f   :  { %1409 = vmatprep.subr.bf16.mxu0 %v19001_v49  ;;  %v19034_v49 = vld [vmem:[%s26546_s2 + $0x124] ss:$8 sps:$4 sm:$0xff]  }
 0x272   :  { %1410 = vmatpush1.bf16.msra.mxu0 %v18999_v35 }
 0x273   :  { %1411 = vmatprep.subr.bf16.mxu0 %v19004_v37 }
 0x276   :  { %1412 = vmatpush1.bf16.msra.mxu0 %v19002_v1 }
 0x277   :  { %1413 = vmatprep.subr.bf16.mxu0 %v19007_v18 }
 0x27a   :  { %1414 = vmatpush1.bf16.msra.mxu0 %v19005_v52 }
 0x27b   :  { %1415 = vmatprep.subr.bf16.mxu0 %v19010_v11  ;;  %v21542_v11 = vadd.s32 80, %v20706_v14 }
 0x27e   :  { %1416 = vmatpush1.bf16.msra.mxu0 %v19008_v4 }
 0x27f   :  { %1417 = vmatprep.subr.bf16.mxu0 %v19013_v42 }
 0x282   :  { %1418 = vmatpush1.bf16.msra.mxu0 %v19011_v5  ;;  %v19032_v5 = vld [vmem:[%s26546_s2 + $0x120] ss:$8 sps:$4 sm:$0xff]  }
 0x283   :  { %1419 = vmatprep.subr.bf16.mxu0 %v19016_v22  ;;  %v21545_v22 = vadd.s32 88, %v20706_v14 }
 0x286   :  { %1420 = vmatpush1.bf16.msra.mxu0 %v19014_v30  ;;  %v19037_v30 = vld [vmem:[%s26546_s2 + $0x134] ss:$8 sps:$4 sm:$0xff]  }
 0x287   :  { %1421 = vmatprep.subr.bf16.mxu0 %v19019_v36 }
 0x28a   :  { %1422 = vmatpush1.bf16.msra.mxu0 %v19017_v40  ;;  %v19035_v40 = vld [vmem:[%s26546_s2 + $0x130] ss:$8 sps:$4 sm:$0xff]  }
 0x28b   :  { %1423 = vmatprep.subr.bf16.mxu0 %v19022_v43 }
 0x28e   :  { %1424 = vmatpush1.bf16.msra.mxu0 %v19020_v44 }
 0x28f   :  { %1425 = vmatprep.subr.bf16.mxu0 %v19025_v46  ;;  %v19040_v46 = vld [vmem:[%s26546_s2 + $0x144] ss:$8 sps:$4 sm:$0xff]  }
 0x292   :  { %1426 = vmatpush1.bf16.msra.mxu0 %v19023_v50 }
 0x293   :  { %1687 = vmatprep.subr.bf16.mxu0 %v19028_v51 }
 0x327   :  { %v1156_v53 = vpop.f32.mrb[32].mxu0  ;;  %v21327_v57 = vpop.f32.mrb[16].mxu1 }
 0x328   :  { %v1158_v58 = vpop.f32.mrb[33].mxu0  ;;  %v21329_v61 = vpop.f32.mrb[17].mxu1 }
 0x329   :  { %v1160_v63 = vpop.f32.mrb[34].mxu0  ;;  %v21331_v15 = vpop.f32.mrb[18].mxu1 }
 0x32a   :  { %v1195_v17 = vpack.c.bf16 %v1160_v63, %v1156_v53  ;;  %v1162_v2 = vpop.f32.mrb[35].mxu0  ;;  %v21335_v6 = vpop.f32.mrb[19].mxu1 }
 0x32b   :  { %v1196_v12 = vpack.c.bf16 %v1162_v2, %v1158_v58 }
 0x32d   :  { %1427 = vmatprep.mubr.bf16.mxu0 %v1196_v12 }
 0x32e   :  { %1428 = vmatmul.mubr.bf16.vlgmr.msra.gmra.mrb[48].mxu0 %v1195_v17  ;;  %v21527_v17 = vadd.s32 208, %v20706_v14 }
 0x32f   :  { %1688 = vmatpush1.bf16.msra.mxu0 %v19026_v13  ;;  %v1166_v32 = vpop.f32.mrb[36].mxu0  ;;  %v21348_v29 = vpop.f32.mrb[20].mxu1  ;;  %v19038_v13 = vld [vmem:[%s26546_s2 + $0x140] ss:$8 sps:$4 sm:$0xff]  }
 0x330   :  { %v1168_v3 = vpop.f32.mrb[37].mxu0  ;;  %1689 = vmatprep.subr.bf16.mxu0 %v19031_v24  ;;  %v21353_v35 = vpop.f32.mrb[21].mxu1  ;;  %v21530_v24 = vadd.s32 216, %v20706_v14 }
 0x331   :  { %v1170_v37 = vpop.f32.mrb[38].mxu0  ;;  %v21355_v1 = vpop.f32.mrb[22].mxu1 }
 0x332   :  { %v1197_v18 = vpack.c.bf16 %v1170_v37, %v1166_v32  ;;  %v1172_v52 = vpop.f32.mrb[39].mxu0  ;;  %v21359_v4 = vpop.f32.mrb[23].mxu1  ;;  %v19043_v32 = vld [vmem:[%s26546_s2 + $0x154] ss:$8 sps:$4 sm:$0xff]  }
 0x333   :  { %v1198_v42 = vpack.c.bf16 %v1172_v52, %v1168_v3  ;;  %1690 = vmatpush1.bf16.msra.mxu0 %v19029_v28  ;;  %v19041_v3 = vld [vmem:[%s26546_s2 + $0x150] ss:$8 sps:$4 sm:$0xff]  }
 0x334   :  { %1691 = vmatprep.subr.bf16.mxu0 %v19034_v49 }
 0x335   :  { %1437 = vmatprep.mubr.bf16.mxu0 %v1198_v42 }
 0x336   :  { %1438 = vmatmul.mubr.bf16.gmra.mrb[52].mxu0 %v1197_v18  ;;  %v19046_v18 = vld [vmem:[%s26546_s2 + $0x164] ss:$8 sps:$4 sm:$0xff]  }
 0x337   :  { %1692 = vmatpush1.bf16.msra.mxu0 %v19032_v5  ;;  %v1176_v36 = vpop.f32.mrb[40].mxu0  ;;  %v21372_v43 = vpop.f32.mrb[24].mxu1 }
 0x338   :  { %v1178_v44 = vpop.f32.mrb[41].mxu0  ;;  %1693 = vmatprep.subr.bf16.mxu0 %v19037_v30  ;;  %v21377_v50 = vpop.f32.mrb[25].mxu1 }
 0x339   :  { %v1180_v51 = vpop.f32.mrb[42].mxu0  ;;  %v21379_v53 = vpop.f32.mrb[26].mxu1 }
 0x33a   :  { %v1199_v58 = vpack.c.bf16 %v1180_v51, %v1176_v36  ;;  %v1182_v63 = vpop.f32.mrb[43].mxu0  ;;  %v21383_v2 = vpop.f32.mrb[27].mxu1  ;;  %v19044_v51 = vld [vmem:[%s26546_s2 + $0x160] ss:$8 sps:$4 sm:$0xff]  }
 0x33b   :  { %v1200_v12 = vpack.c.bf16 %v1182_v63, %v1178_v44  ;;  %1694 = vmatpush1.bf16.msra.mxu0 %v19035_v40  ;;  %v19049_v63 = vld [vmem:[%s26546_s2 + $0x174] ss:$8 sps:$4 sm:$0xff]   ;;  %v21514_v40 = vadd.s32 64, %v20706_v14 }
 0x33c   :  { %1695 = vmatprep.subr.bf16.mxu0 %v19040_v46 }
 0x33d   :  { %1447 = vmatprep.mubr.bf16.mxu0 %v1200_v12  ;;  %v21418_v12 = vadd.s32 128, %v20706_v14 }
 0x33e   :  { %1448 = vmatmul.mubr.bf16.gmra.mrb[56].mxu0 %v1199_v58  ;;  %v21517_v58 = vadd.s32 72, %v20706_v14 }
 0x33f   :  { %1696 = vmatpush1.bf16.msra.mxu0 %v19038_v13  ;;  %v1186_v28 = vpop.f32.mrb[44].mxu0  ;;  %v21396_v49 = vpop.f32.mrb[28].mxu1  ;;  %v21421_v13 = vadd.s32 136, %v20706_v14 }
 0x340   :  { %v1188_v37 = vpop.f32.mrb[45].mxu0  ;;  %1697 = vmatprep.subr.bf16.mxu0 %v19043_v32  ;;  %v21401_v52 = vpop.f32.mrb[29].mxu1  ;;  %v2178_v32 = vand.u32 3, %v20733_v23 }
 0x341   :  { %v1190_v42 = vpop.f32.mrb[46].mxu0  ;;  %v21403_v5 = vpop.f32.mrb[30].mxu1 }
 0x342   :  { %v1201_v30 = vpack.c.bf16 %v1190_v42, %v1186_v28  ;;  %v1192_v36 = vpop.f32.mrb[47].mxu0  ;;  %v21407_v44 = vpop.f32.mrb[31].mxu1  ;;  %v21425_v28 = vmul.u32 2, %v20733_v23  ;;  %v19052_v42 = vld [vmem:[%s26546_s2 + $0x184] ss:$8 sps:$4 sm:$0xff]  }
 0x343   :  { %v1202_v46 = vpack.c.bf16 %v1192_v36, %v1188_v37  ;;  %1698 = vmatpush1.bf16.msra.mxu0 %v19041_v3  ;;  %v19047_v3 = vld [vmem:[%s26546_s2 + $0x170] ss:$8 sps:$4 sm:$0xff]   ;;  %v21432_v37 = vadd.s32 144, %v20706_v14  ;;  %v21447_v36 = vadd.s32 168, %v20706_v14 }
 0x344   :  { %1699 = vmatprep.subr.bf16.mxu0 %v19046_v18  ;;  %v21435_v18 = vadd.s32 152, %v20706_v14 }
 0x345   :  { %1457 = vmatprep.mubr.bf16.mxu0 %v1202_v46  ;;  %v19050_v46 = vld [vmem:[%s26546_s2 + $0x180] ss:$8 sps:$4 sm:$0xff]  }
 0x346   :  { %1458 = vmatmul.mubr.bf16.gmra.mrb[60].mxu0 %v1201_v30  ;;  %v21441_v30 = vsub.s32 %v21425_v28, %v2178_v32  ;;  %v21477_v32 = vadd.s32 176, %v20706_v14 }
 0x347   :  { %1700 = vmatpush1.bf16.msra.mxu0 %v19044_v51  ;;  %1719 = vmatprep.mubr.bf16.mxu0 %v21176_v55  ;;  %v21444_v55 = vadd.s32 160, %v20706_v14  ;;  %v19055_v51 = vld [vmem:[%s26546_s2 + $0x194] ss:$8 sps:$4 sm:$0xff]  }
 0x348   :  { %1701 = vmatprep.subr.bf16.mxu0 %v19049_v63  ;;  %vm2197_vm1 = vcmp.eq.s32.totalorder %v21418_v12, %v21441_v30  ;;  %vm2198_vm3 = vcmp.eq.s32.totalorder %v21421_v13, %v21441_v30  ;;  %vm2181_vm4 = vcmp.eq.s32.totalorder %v20706_v14, %v21441_v30  ;;  %vm2182_vm5 = vcmp.eq.s32.totalorder %v20725_v20, %v21441_v30 }
 0x349   :  { %vm18248_vm6 = vmpackc.low %vm2198_vm3, %vm2197_vm1  ;;  %vm2199_vm7 = vcmp.eq.s32.totalorder %v21432_v37, %v21441_v30  ;;  %vm2200_vm8 = vcmp.eq.s32.totalorder %v21435_v18, %v21441_v30  ;;  %vm2183_vm9 = vcmp.eq.s32.totalorder %v20761_v33, %v21441_v30  ;;  %vm2184_vm10 = vcmp.eq.s32.totalorder %v20764_v34, %v21441_v30 }
 0x34a   :  { %v26504_v63 = vmov 1.0|1.0   ;;  %vm18250_vm11 = vmpackc.low %vm2182_vm5, %vm2181_vm4  ;;  %vm2201_vm12 = vcmp.eq.s32.totalorder %v21444_v55, %v21441_v30  ;;  %vm2202_vm13 = vcmp.eq.s32.totalorder %v21447_v36, %v21441_v30  ;;  %vm2185_vm1 = vcmp.eq.s32.totalorder %v20798_v47, %v21441_v30 }
 0x34b   :  { %1702 = vmatpush1.bf16.msra.mxu0 %v19047_v3  ;;  %18249 = vmatprep.subr.msk.bf16.mxu1 %vm18248_vm6, %v26504_v63  ;;  %v21480_v3 = vadd.s32 184, %v20706_v14  ;;  %vm18252_vm14 = vmpackc.low %vm2200_vm8, %vm2199_vm7  ;;  %vm2186_vm3 = vcmp.eq.s32.totalorder %v20801_v48, %v21441_v30  ;;  %vm2203_vm4 = vcmp.eq.s32.totalorder %v21477_v32, %v21441_v30  ;;  %vm2187_vm8 = vcmp.eq.s32.totalorder %v20834_v59, %v21441_v30 }
 0x34c   :  { %1703 = vmatprep.subr.bf16.mxu0 %v19052_v42  ;;  %18251 = vmatpush3.bf16.msk.msra.mxu1 %vm18250_vm11, %v26504_v63  ;;  %vm18254_vm15 = vmpackc.low %vm2184_vm10, %vm2183_vm9  ;;  %v19053_v42 = vld [vmem:[%s26546_s2 + $0x190] ss:$8 sps:$4 sm:$0xff]   ;;  %vm2188_vm9 = vcmp.eq.s32.totalorder %v20837_v60, %v21441_v30  ;;  %vm2206_vm11 = vcmp.eq.s32.totalorder %v21502_v8, %v21441_v30 }
 0x34d   :  { %18253 = vmatprep.subr.msk.bf16.mxu1 %vm18252_vm14, %v26504_v63  ;;  %vm18256_vm0 = vmpackc.low %vm2202_vm13, %vm2201_vm12  ;;  %vm2204_vm5 = vcmp.eq.s32.totalorder %v21480_v3, %v21441_v30  ;;  %vm2189_vm14 = vcmp.eq.s32.totalorder %v21514_v40, %v21441_v30 }
 0x34e   :  { %vm18258_vm6 = vmpackc.low %vm2186_vm3, %vm2185_vm1  ;;  %vm2208_vm1 = vcmp.eq.s32.totalorder %v21530_v24, %v21441_v30 }
 0x34f   :  { %1704 = vmatpush1.bf16.msra.mxu0 %v19050_v46  ;;  %v21499_v46 = vadd.s32 192, %v20706_v14  ;;  %vm18260_vm7 = vmpackc.low %vm2204_vm5, %vm2203_vm4  ;;  %vm2191_vm5 = vcmp.eq.s32.totalorder %v21542_v11, %v21441_v30 }
 0x350   :  { %1705 = vmatprep.subr.bf16.mxu0 %v19055_v51  ;;  %18255 = vmatpush3.bf16.msk.msra.mxu1 %vm18254_vm15, %v26504_v63  ;;  %v19056_v51 = vld [vmem:[%s26546_s2 + $0x1a0] ss:$8 sps:$4 sm:$0xff]   ;;  %vm18262_vm12 = vmpackc.low %vm2188_vm9, %vm2187_vm8  ;;  %vm2190_vm15 = vcmp.eq.s32.totalorder %v21517_v58, %v21441_v30  ;;  %vm2210_vm8 = vcmp.eq.s32.totalorder %v21558_v19, %v21441_v30 }
 0x351   :  { %18257 = vmatprep.subr.msk.bf16.mxu1 %vm18256_vm0, %v26504_v63  ;;  %vm2205_vm10 = vcmp.eq.s32.totalorder %v21499_v46, %v21441_v30  ;;  %vm2207_vm0 = vcmp.eq.s32.totalorder %v21527_v17, %v21441_v30  ;;  %vm18266_vm3 = vmpackc.low %vm2190_vm15, %vm2189_vm14 }
 0x352   :  { %vm18264_vm13 = vmpackc.low %vm2206_vm11, %vm2205_vm10 }
 0x353   :  { %1706 = vmatpush1.bf16.msra.mxu0 %v19053_v42  ;;  %v19061_v42 = vld [vmem:[%s26546_s2 + $0x1b4] ss:$8 sps:$4 sm:$0xff]   ;;  %vm18268_vm4 = vmpackc.low %vm2208_vm1, %vm2207_vm0 }
 0x354   :  { %1707 = vmatprep.subr.bf16.mxu0 %v19058_v38  ;;  %18259 = vmatpush3.bf16.msk.msra.mxu1 %vm18258_vm6, %v26504_v63  ;;  %v19059_v38 = vld [vmem:[%s26546_s2 + $0x1b0] ss:$8 sps:$4 sm:$0xff]   ;;  %vm2192_vm6 = vcmp.eq.s32.totalorder %v21545_v22, %v21441_v30 }
 0x355   :  { %18261 = vmatprep.subr.msk.bf16.mxu1 %vm18260_vm7, %v26504_v63  ;;  %vm2209_vm7 = vcmp.eq.s32.totalorder %v21555_v10, %v21441_v30  ;;  %vm18270_vm9 = vmpackc.low %vm2192_vm6, %vm2191_vm5 }
 0x356   :  { %vm18272_vm10 = vmpackc.low %vm2210_vm8, %vm2209_vm7 }
 0x357   :  { %1708 = vmatpush1.bf16.msra.mxu0 %v19056_v51  ;;  %v19064_v51 = vld [vmem:[%s26546_s2 + $0x1c4] ss:$8 sps:$4 sm:$0xff]  }
 0x358   :  { %1709 = vmatprep.subr.bf16.mxu0 %v19061_v42  ;;  %18263 = vmatpush3.bf16.msk.msra.mxu1 %vm18262_vm12, %v26504_v63  ;;  %v19062_v42 = vld [vmem:[%s26546_s2 + $0x1c0] ss:$8 sps:$4 sm:$0xff]  }
 0x359   :  { %18265 = vmatprep.subr.msk.bf16.mxu1 %vm18264_vm13, %v26504_v63 }
 0x35b   :  { %1710 = vmatpush1.bf16.msra.mxu0 %v19059_v38  ;;  %v19065_v38 = vld [vmem:[%s26546_s2 + $0x1d0] ss:$8 sps:$4 sm:$0xff]  }
 0x35c   :  { %1711 = vmatprep.subr.bf16.mxu0 %v19064_v51  ;;  %18267 = vmatpush3.bf16.msk.msra.mxu1 %vm18266_vm3, %v26504_v63  ;;  %v19070_v51 = vld [vmem:[%s26546_s2 + $0x1e4] ss:$8 sps:$4 sm:$0xff]  }
 0x35d   :  { %18269 = vmatprep.subr.msk.bf16.mxu1 %vm18268_vm4, %v26504_v63 }
 0x35f   :  { %1712 = vmatpush1.bf16.msra.mxu0 %v19062_v42  ;;  %v19073_v42 = vld [vmem:[%s26546_s2 + $0x1f4] ss:$8 sps:$4 sm:$0xff]  }
 0x360   :  { %1713 = vmatprep.subr.bf16.mxu0 %v19067_v25  ;;  %18271 = vmatpush3.bf16.msk.msra.mxu1 %vm18270_vm9, %v26504_v63  ;;  %v19071_v25 = vld [vmem:[%s26546_s2 + $0x1f0] ss:$8 sps:$4 sm:$0xff]  }
 0x361   :  { %18273 = vmatprep.subr.msk.bf16.mxu1 %vm18272_vm10, %v26504_v63  ;;  %v19076_v63 = vld [vmem:[%s26546_s2 + $0x204] ss:$8 sps:$4 sm:$0xff]  }
 0x363   :  { %1714 = vmatpush1.bf16.msra.mxu0 %v19065_v38  ;;  %v19074_v38 = vld [vmem:[%s26546_s2 + $0x200] ss:$8 sps:$4 sm:$0xff]  }
 0x364   :  { %1715 = vmatprep.subr.bf16.mxu0 %v19070_v51  ;;  %v19079_v51 = vld [vmem:[%s26546_s2 + $0x214] ss:$8 sps:$4 sm:$0xff]  }
 0x367   :  { %1716 = vmatpush1.bf16.msra.mxu0 %v19068_v39  ;;  %v19077_v39 = vld [vmem:[%s26546_s2 + $0x210] ss:$8 sps:$4 sm:$0xff]  }
 0x368   :  { %1717 = vmatprep.subr.bf16.mxu0 %v19073_v42  ;;  %v19082_v42 = vld [vmem:[%s26546_s2 + $0x224] ss:$8 sps:$4 sm:$0xff]  }
 0x36b   :  { %1718 = vmatpush1.bf16.msra.mxu0 %v19071_v25  ;;  %v19088_v25 = vld [vmem:[%s26546_s2 + $0x244] ss:$8 sps:$4 sm:$0xff]  }
 0x36c   :  { %2049 = vmatprep.subr.bf16.mxu0 %v19076_v63  ;;  %v19080_v63 = vld [vmem:[%s26546_s2 + $0x220] ss:$8 sps:$4 sm:$0xff]  }
 0x36e   :  { %1720 = vmatmul.mubr.bf16.vlgmr.msra.gmra.mrb[48].mxu0 %v21174_v54  ;;  %v19085_v54 = vld [vmem:[%s26546_s2 + $0x234] ss:$8 sps:$4 sm:$0xff]  }
 0x36f   :  { %1729 = vmatprep.mubr.bf16.mxu0 %v21184_v21  ;;  %2050 = vmatpush1.bf16.msra.mxu0 %v19074_v38  ;;  %v19083_v21 = vld [vmem:[%s26546_s2 + $0x230] ss:$8 sps:$4 sm:$0xff]   ;;  %v19086_v38 = vld [vmem:[%s26546_s2 + $0x240] ss:$8 sps:$4 sm:$0xff]  }
 0x370   :  { %2051 = vmatprep.subr.bf16.mxu0 %v19079_v51  ;;  %v19094_v51 = vld [vmem:[%s26546_s2 + $0x264] ss:$8 sps:$4 sm:$0xff]  }
 0x373   :  { %2052 = vmatpush1.bf16.msra.mxu0 %v19077_v39  ;;  %v19092_v39 = vld [vmem:[%s26546_s2 + $0x260] ss:$8 sps:$4 sm:$0xff]  }
 0x374   :  { %2053 = vmatprep.subr.bf16.mxu0 %v19082_v42  ;;  %v26548_v42 = vpack.c.bf16 %v21335_v6, %v21329_v61  ;;  %v19101_v61 = vld [vmem:[%s26546_s2 + $0x290] ss:$8 sps:$4 sm:$0xff]   ;;  %v19106_v6 = vld [vmem:[%s26546_s2 + $0x2a4] ss:$8 sps:$4 sm:$0xff]  }
 0x376   :  { %1730 = vmatmul.mubr.bf16.gmra.mrb[52].mxu0 %v21182_v16  ;;  %v19091_v16 = vld [vmem:[%s26546_s2 + $0x254] ss:$8 sps:$4 sm:$0xff]  }
 0x377   :  { %1739 = vmatprep.mubr.bf16.mxu0 %v21192_v27  ;;  %2054 = vmatpush1.bf16.msra.mxu0 %v19080_v63  ;;  %v19089_v27 = vld [vmem:[%s26546_s2 + $0x250] ss:$8 sps:$4 sm:$0xff]   ;;  %v19100_v63 = vld [vmem:[%s26546_s2 + $0x284] ss:$8 sps:$4 sm:$0xff]  }
 0x378   :  { %2055 = vmatprep.subr.bf16.mxu0 %v19085_v54  ;;  %v19098_v54 = vld [vmem:[%s26546_s2 + $0x280] ss:$8 sps:$4 sm:$0xff]  }
 0x37b   :  { %2056 = vmatpush1.bf16.msra.mxu0 %v19083_v21  ;;  %v19104_v21 = vld [vmem:[%s26546_s2 + $0x2a0] ss:$8 sps:$4 sm:$0xff]  }
 0x37c   :  { %2057 = vmatprep.subr.bf16.mxu0 %v19088_v25  ;;  %v19109_v25 = vld [vmem:[%s26546_s2 + $0x2b4] ss:$8 sps:$4 sm:$0xff]  }
 0x37e   :  { %1740 = vmatmul.mubr.bf16.gmra.mrb[56].mxu0 %v21190_v26  ;;  %v19097_v26 = vld [vmem:[%s26546_s2 + $0x274] ss:$8 sps:$4 sm:$0xff]  }
 0x37f   :  { %1749 = vmatprep.mubr.bf16.mxu0 %v21200_v62  ;;  %2058 = vmatpush1.bf16.msra.mxu0 %v19086_v38  ;;  %v19095_v62 = vld [vmem:[%s26546_s2 + $0x270] ss:$8 sps:$4 sm:$0xff]  }
 0x380   :  { %2059 = vmatprep.subr.bf16.mxu0 %v19091_v16  ;;  %v19107_v38 = vld [vmem:[%s26546_s2 + $0x2b0] ss:$8 sps:$4 sm:$0xff]   ;;  %v19112_v16 = vld [vmem:[%s26546_s2 + $0x2c4] ss:$8 sps:$4 sm:$0xff]  }
 0x383   :  { %2060 = vmatpush1.bf16.msra.mxu0 %v19089_v27  ;;  %v19110_v27 = vld [vmem:[%s26546_s2 + $0x2c0] ss:$8 sps:$4 sm:$0xff]  }
 0x384   :  { %2061 = vmatprep.subr.bf16.mxu0 %v19094_v51  ;;  %v19115_v51 = vld [vmem:[%s26546_s2 + $0x2d4] ss:$8 sps:$4 sm:$0xff]  }
 0x386   :  { %1750 = vmatmul.mubr.bf16.gmra.mrb[60].mxu0 %v21198_v9  ;;  %v19103_v9 = vld [vmem:[%s26546_s2 + $0x294] ss:$8 sps:$4 sm:$0xff]  }
 0x387   :  { %2062 = vmatpush1.bf16.msra.mxu0 %v19092_v39  ;;  %2081 = vmatprep.mubr.bf16.mxu0 %v26548_v42  ;;  %v19113_v39 = vld [vmem:[%s26546_s2 + $0x2d0] ss:$8 sps:$4 sm:$0xff]   ;;  %v19121_v42 = vld [vmem:[%s26546_s2 + $0x2f4] ss:$8 sps:$4 sm:$0xff]  }
 0x388   :  { %2063 = vmatprep.subr.bf16.mxu0 %v19097_v26  ;;  %v19118_v26 = vld [vmem:[%s26546_s2 + $0x2e4] ss:$8 sps:$4 sm:$0xff]  }
 0x38b   :  { %2064 = vmatpush1.bf16.msra.mxu0 %v19095_v62  ;;  %v19116_v62 = vld [vmem:[%s26546_s2 + $0x2e0] ss:$8 sps:$4 sm:$0xff]  }
 0x38c   :  { %2065 = vmatprep.subr.bf16.mxu0 %v19100_v63  ;;  %v19119_v63 = vld [vmem:[%s26546_s2 + $0x2f0] ss:$8 sps:$4 sm:$0xff]   ;;  %s26586_s2 = sld [smem:[#allocation25_spill]] }
 0x38f   :  { %2066 = vmatpush1.bf16.msra.mxu0 %v19098_v54  ;;  %v26549_v54 = vpack.c.bf16 %v21331_v15, %v21327_v57  ;;  %v26554_v57 = vpack.c.bf16 %v21407_v44, %v21401_v52  ;;  %v26555_v15 = vpack.c.bf16 %v21403_v5, %v21396_v49  ;;  %v21756_v49 = vadd.s32 4, %v21441_v30  ;;  %v15942_v52 = vld [vmem:[%s26482_s14 + $0x1] ss:$8 sm:$0x3] }
 0x390   :  { %2067 = vmatprep.subr.bf16.mxu0 %v19103_v9  ;;  %v26550_v9 = vpack.c.bf16 %v21359_v4, %v21353_v35  ;;  %v26556_v35 = vmov 0   ;;  %v21734_v4 = vadd.s32 240, %v20706_v14  ;;  %v21768_v5 = vrot.slane %v15942_v52, %v21164_v0 }
 0x391   :  { %vm2262_vm5 = vcmp.eq.s32.totalorder %v21418_v12, %v21756_v49  ;;  %vm2263_vm6 = vcmp.eq.s32.totalorder %v21421_v13, %v21756_v49  ;;  %v21771_v44 = vrot.slane %v15942_v52, %v21170_v7  ;;  %vm2246_vm8 = vcmp.eq.s32.totalorder %v20706_v14, %v21756_v49 }
 0x392   :  { %26559 = vst [vmem:[#allocation14_spill] sm:$0xff] %v21734_v4  ;;  %vm2211_vm14 = vcmp.eq.s32.totalorder %v21734_v4, %v21441_v30  ;;  %vm18280_vm7 = vmpackc.low %vm2263_vm6, %vm2262_vm5  ;;  %vm2247_vm9 = vcmp.eq.s32.totalorder %v20725_v20, %v21756_v49  ;;  %vm2264_vm10 = vcmp.eq.s32.totalorder %v21432_v37, %v21756_v49  ;;  %vm2250_vm5 = vcmp.eq.s32.totalorder %v20798_v47, %v21756_v49 }
 0x393   :  { %2068 = vmatpush1.bf16.msra.mxu0 %v19101_v61  ;;  %v26551_v61 = vpack.c.bf16 %v21355_v1, %v21348_v29  ;;  %v21724_v29 = vadd.s32 96, %v20706_v14  ;;  %v21727_v1 = vadd.s32 104, %v20706_v14  ;;  %vm2251_vm6 = vcmp.eq.s32.totalorder %v20801_v48, %v21756_v49 }
 0x394   :  { %2069 = vmatprep.subr.bf16.mxu0 %v19106_v6  ;;  %v26552_v6 = vpack.c.bf16 %v21383_v2, %v21377_v50  ;;  %v26561_v50 = vmov 1.0|1.0   ;;  %v21744_v2 = vadd.s32 120, %v20706_v14 }
 0x395   :  { %26557 = vst [vmem:[#allocation12_spill] sm:$0xff] %v21724_v29  ;;  %26558 = vst [vmem:[#allocation13_spill] sm:$0xff] %v21727_v1  ;;  %vm2193_vm11 = vcmp.eq.s32.totalorder %v21724_v29, %v21441_v30  ;;  %vm2194_vm12 = vcmp.eq.s32.totalorder %v21727_v1, %v21441_v30 }
 0x396   :  { %vm18274_vm13 = vmpackc.low %vm2194_vm12, %vm2193_vm11  ;;  %26563 = vst [vmem:[#allocation17_spill] sm:$0xff] %v21744_v2  ;;  %vm2196_vm3 = vcmp.eq.s32.totalorder %v21744_v2, %v21441_v30  ;;  %vm2265_vm11 = vcmp.eq.s32.totalorder %v21435_v18, %v21756_v49 }
 0x397   :  { %2070 = vmatpush1.bf16.msra.mxu0 %v19104_v21  ;;  %v26553_v21 = vpack.c.bf16 %v21379_v53, %v21372_v43  ;;  %v21737_v43 = vadd.s32 248, %v20706_v14  ;;  %18275 = vmatpush3.bf16.msk.msra.mxu1 %vm18274_vm13, %v26561_v50  ;;  %v21741_v53 = vadd.s32 112, %v20706_v14  ;;  %vm18282_vm12 = vmpackc.low %vm2247_vm9, %vm2246_vm8  ;;  %vm2269_vm8 = vcmp.eq.s32.totalorder %v21480_v3, %v21756_v49 }
 0x398   :  { %2071 = vmatprep.subr.bf16.mxu0 %v19109_v25  ;;  %vm18284_vm13 = vmpackc.low %vm2265_vm11, %vm2264_vm10  ;;  %vm2252_vm11 = vcmp.eq.s32.totalorder %v20834_v59, %v21756_v49 }
 0x399   :  { %26560 = vst [vmem:[#allocation15_spill] sm:$0xff] %v21737_v43  ;;  %26562 = vst [vmem:[#allocation16_spill] sm:$0xff] %v21741_v53  ;;  %vm2212_vm15 = vcmp.eq.s32.totalorder %v21737_v43, %v21441_v30  ;;  %vm2195_vm1 = vcmp.eq.s32.totalorder %v21741_v53, %v21441_v30 }
 0x39a   :  { %vm18276_vm0 = vmpackc.low %vm2212_vm15, %vm2211_vm14  ;;  %vm2248_vm14 = vcmp.eq.s32.totalorder %v20761_v33, %v21756_v49  ;;  %vm2249_vm15 = vcmp.eq.s32.totalorder %v20764_v34, %v21756_v49 }
 0x39b   :  { %2072 = vmatpush1.bf16.msra.mxu0 %v19107_v38  ;;  %18277 = vmatprep.subr.msk.bf16.mxu1 %vm18276_vm0, %v26561_v50  ;;  %vm18278_vm4 = vmpackc.low %vm2196_vm3, %vm2195_vm1  ;;  %vm2266_vm0 = vcmp.eq.s32.totalorder %v21444_v55, %v21756_v49  ;;  %vm2267_vm1 = vcmp.eq.s32.totalorder %v21447_v36, %v21756_v49 }
 0x39c   :  { %2073 = vmatprep.subr.bf16.mxu0 %v19112_v16  ;;  %18279 = vmatpush3.bf16.msk.msra.mxu1 %vm18278_vm4, %v26561_v50  ;;  %vm18286_vm3 = vmpackc.low %vm2249_vm15, %vm2248_vm14  ;;  %vm2271_vm14 = vcmp.eq.s32.totalorder %v21502_v8, %v21756_v49 }
 0x39d   :  { %18281 = vmatprep.subr.msk.bf16.mxu1 %vm18280_vm7, %v26561_v50  ;;  %vm18288_vm4 = vmpackc.low %vm2267_vm1, %vm2266_vm0  ;;  %vm2268_vm7 = vcmp.eq.s32.totalorder %v21477_v32, %v21756_v49  ;;  %vm2254_vm1 = vcmp.eq.s32.totalorder %v21514_v40, %v21756_v49 }
 0x39e   :  { %vm18290_vm9 = vmpackc.low %vm2251_vm6, %vm2250_vm5  ;;  %vm2273_vm5 = vcmp.eq.s32.totalorder %v21530_v24, %v21756_v49 }
 0x39f   :  { %2074 = vmatpush1.bf16.msra.mxu0 %v19110_v27  ;;  %vm18292_vm10 = vmpackc.low %vm2269_vm8, %vm2268_vm7  ;;  %vm2256_vm8 = vcmp.eq.s32.totalorder %v21542_v11, %v21756_v49 }
 0x3a0   :  { %2075 = vmatprep.subr.bf16.mxu0 %v19115_v51 }
 0x3a3   :  { %2076 = vmatpush1.bf16.msra.mxu0 %v19113_v39 }
 0x3a4   :  { %2077 = vmatprep.subr.bf16.mxu0 %v19118_v26 }
 0x3a7   :  { %2078 = vmatpush1.bf16.msra.mxu0 %v19116_v62 }
 0x3a8   :  { %2079 = vmatprep.subr.bf16.mxu0 %v19121_v42 }
 0x3ab   :  { %2080 = vmatpush1.bf16.msra.mxu0 %v19119_v63 }
 0x3ae   :  { %2082 = vmatmul.mubr.bf16.vlgmr.msra.gmra.mrb[48].mxu0 %v26549_v54 }
 0x3af   :  { %2091 = vmatprep.mubr.bf16.mxu0 %v26550_v9 }
 0x3b6   :  { %2092 = vmatmul.mubr.bf16.gmra.mrb[52].mxu0 %v26551_v61 }
 0x3b7   :  { %2101 = vmatprep.mubr.bf16.mxu0 %v26552_v6 }
 0x3be   :  { %2102 = vmatmul.mubr.bf16.gmra.mrb[56].mxu0 %v26553_v21 }
 0x3bf   :  { %2111 = vmatprep.mubr.bf16.mxu0 %v26554_v57 }
 0x3c6   :  { %2112 = vmatmul.mubr.bf16.gmra.mrb[60].mxu0 %v26555_v15 }
 0x3c7   :  { %2938 = vmatprep.mubr.bf16.mxu0 %v26556_v35 }
 0x481   :  { %v2083_v30 = vpop.f32.mrb[48].mxu0 }
 0x482   :  { %v21774_v25 = vadd.f32 %v2083_v30, %v21768_v5  ;;  %v2085_v38 = vpop.f32.mrb[49].mxu0 }
 0x483   :  { %v21777_v16 = vadd.f32 %v2085_v38, %v21771_v44  ;;  %v2087_v27 = vpop.f32.mrb[50].mxu0 }
 0x484   :  { %v2089_v51 = vpop.f32.mrb[51].mxu0  ;;  %v26512_v62 = vmax.f32 %v21774_v25, 0.0  ;;  %v21793_v42 = vadd.f32 %v2087_v27, %v21768_v5 }
 0x485   :  { %v26513_v39 = vmax.f32 %v21777_v16, 0.0  ;;  %v21789_v26 = vadd.f32 %v2089_v51, %v21771_v44 }
 0x486   :  { %v26509_v9 = vmax.f32 %v21793_v42, 0.0 }
 0x487   :  { %v26510_v63 = vmax.f32 %v21789_v26, 0.0  ;;  %2374 = vmatprep.mubr.f32.mxu1 %v26513_v39 }
 0x488   :  { %2375 = vmatmul.mubr.f32.vlgmr.msra.gmra.mrb[32].mxu1 %v26512_v62 }
 0x489   :  { %v2093_v54 = vpop.f32.mrb[52].mxu0  ;;  %2379 = vmatprep.mubr.f32.mxu1 %v26510_v63  ;;  %18283 = vmatpush3.bf16.msk.msra.mxu1 %vm18282_vm12, %v26561_v50  ;;  %vm2253_vm12 = vcmp.eq.s32.totalorder %v20837_v60, %v21756_v49 }
 0x48a   :  { %v21813_v61 = vadd.f32 %v2093_v54, %v21768_v5  ;;  %v2095_v6 = vpop.f32.mrb[53].mxu0  ;;  %18285 = vmatprep.subr.msk.bf16.mxu1 %vm18284_vm13, %v26561_v50  ;;  %vm2270_vm13 = vcmp.eq.s32.totalorder %v21499_v46, %v21756_v49  ;;  %vm18294_vm15 = vmpackc.low %vm2253_vm12, %vm2252_vm11  ;;  %vm2275_vm11 = vcmp.eq.s32.totalorder %v21558_v19, %v21756_v49 }
 0x48b   :  { %v21817_v21 = vadd.f32 %v2095_v6, %v21771_v44  ;;  %v2097_v57 = vpop.f32.mrb[54].mxu0  ;;  %vm18296_vm0 = vmpackc.low %vm2271_vm14, %vm2270_vm13  ;;  %vm2258_vm14 = vcmp.eq.s32.totalorder %v21724_v29, %v21756_v49 }
 0x48c   :  { %v2099_v15 = vpop.f32.mrb[55].mxu0  ;;  %2380 = vmatmul.mubr.f32.gmra.mrb[34].mxu1 %v26509_v9  ;;  %v26506_v38 = vmax.f32 %v21813_v61, 0.0  ;;  %v21836_v27 = vadd.f32 %v2097_v57, %v21768_v5 }
 0x48d   :  { %v26507_v52 = vmax.f32 %v21817_v21, 0.0  ;;  %v21831_v30 = vadd.f32 %v2099_v15, %v21771_v44  ;;  %18287 = vmatpush3.bf16.msk.msra.mxu1 %vm18286_vm3, %v26561_v50  ;;  %vm2255_vm3 = vcmp.eq.s32.totalorder %v21517_v58, %v21756_v49 }
 0x48e   :  { %18289 = vmatprep.subr.msk.bf16.mxu1 %vm18288_vm4, %v26561_v50  ;;  %v26511_v6 = vmax.f32 %v21836_v27, 0.0  ;;  %vm2272_vm4 = vcmp.eq.s32.totalorder %v21527_v17, %v21756_v49  ;;  %vm18298_vm6 = vmpackc.low %vm2255_vm3, %vm2254_vm1  ;;  %vm2277_vm1 = vcmp.eq.s32.totalorder %v21737_v43, %v21756_v49 }
 0x48f   :  { %v26508_v51 = vmax.f32 %v21831_v30, 0.0  ;;  %2384 = vmatprep.mubr.f32.mxu1 %v26507_v52  ;;  %vm18300_vm7 = vmpackc.low %vm2273_vm5, %vm2272_vm4  ;;  %vm2260_vm5 = vcmp.eq.s32.totalorder %v21741_v53, %v21756_v49 }
 0x490   :  { %2385 = vmatmul.mubr.f32.gmra.mrb[36].mxu1 %v26506_v38 }
 0x491   :  { %v2103_v54 = vpop.f32.mrb[56].mxu0  ;;  %2389 = vmatprep.mubr.f32.mxu1 %v26508_v51  ;;  %18291 = vmatpush3.bf16.msk.msra.mxu1 %vm18290_vm9, %v26561_v50  ;;  %vm2257_vm9 = vcmp.eq.s32.totalorder %v21545_v22, %v21756_v49 }
 0x492   :  { %v21857_v57 = vadd.f32 %v2103_v54, %v21768_v5  ;;  %v2105_v15 = vpop.f32.mrb[57].mxu0  ;;  %18293 = vmatprep.subr.msk.bf16.mxu1 %vm18292_vm10, %v26561_v50  ;;  %vm2274_vm10 = vcmp.eq.s32.totalorder %v21555_v10, %v21756_v49  ;;  %vm18302_vm12 = vmpackc.low %vm2257_vm9, %vm2256_vm8 }
 0x493   :  { %v21861_v38 = vadd.f32 %v2105_v15, %v21771_v44  ;;  %v2107_v52 = vpop.f32.mrb[58].mxu0  ;;  %vm18304_vm13 = vmpackc.low %vm2275_vm11, %vm2274_vm10 }
 0x494   :  { %v2109_v51 = vpop.f32.mrb[59].mxu0  ;;  %2390 = vmatmul.mubr.f32.gmra.mrb[38].mxu1 %v26511_v6  ;;  %v2146_v9 = vmax.f32 %v21857_v57, 0.0  ;;  %v18648_v63 = vadd.f32 %v2107_v52, %v21768_v5 }
 0x495   :  { %v2147_v54 = vmax.f32 %v21861_v38, 0.0  ;;  %v18649_v15 = vadd.f32 %v2109_v51, %v21771_v44  ;;  %18295 = vmatpush3.bf16.msk.msra.mxu1 %vm18294_vm15, %v26561_v50  ;;  %vm2259_vm15 = vcmp.eq.s32.totalorder %v21727_v1, %v21756_v49 }
 0x496   :  { %18297 = vmatprep.subr.msk.bf16.mxu1 %vm18296_vm0, %v26561_v50  ;;  %v2148_v38 = vmax.f32 %v18648_v63, 0.0  ;;  %vm2276_vm0 = vcmp.eq.s32.totalorder %v21734_v4, %v21756_v49  ;;  %vm18306_vm3 = vmpackc.low %vm2259_vm15, %vm2258_vm14 }
 0x497   :  { %v2149_v6 = vmax.f32 %v18649_v15, 0.0  ;;  %2394 = vmatprep.mubr.f32.mxu1 %v2147_v54  ;;  %vm18308_vm4 = vmpackc.low %vm2277_vm1, %vm2276_vm0  ;;  %vm26534_vm0 = vcmask 261120  }
 0x498   :  { %2395 = vmatmul.mubr.f32.gmra.mrb[40].mxu1 %v2146_v9 }
 0x499   :  { %v2113_v52 = vpop.f32.mrb[60].mxu0  ;;  %2399 = vmatprep.mubr.f32.mxu1 %v2149_v6  ;;  %18299 = vmatpush3.bf16.msk.msra.mxu1 %vm18298_vm6, %v26561_v50  ;;  %vm2261_vm6 = vcmp.eq.s32.totalorder %v21744_v2, %v21756_v49  ;;  %v26567_v49 = vmax.f32 %v21793_v42, 0.0 }
 0x49a   :  { %v18650_v51 = vadd.f32 %v2113_v52, %v21768_v5  ;;  %v2115_v57 = vpop.f32.mrb[61].mxu0  ;;  %18301 = vmatprep.subr.msk.bf16.mxu1 %vm18300_vm7, %v26561_v50  ;;  %vm18310_vm7 = vmpackc.low %vm2261_vm6, %vm2260_vm5 }
 0x49b   :  { %v18651_v15 = vadd.f32 %v2115_v57, %v21771_v44  ;;  %v2117_v62 = vpop.f32.mrb[62].mxu0 }
 0x49c   :  { %v2119_v39 = vpop.f32.mrb[63].mxu0  ;;  %2400 = vmatmul.mubr.f32.gmra.mrb[42].mxu1 %v2148_v38  ;;  %v2150_v57 = vmax.f32 %v18650_v51, 0.0  ;;  %v18652_v19 = vadd.f32 %v2117_v62, %v21768_v5  ;;  %v26564_v5 = vmax.f32 %v21777_v16, 0.0  ;;  %v26566_v62 = vmax.f32 %v21789_v26, 0.0 }
 0x49d   :  { %v2151_v63 = vmax.f32 %v18651_v15, 0.0  ;;  %v18653_v52 = vadd.f32 %v2119_v39, %v21771_v44  ;;  %18303 = vmatpush3.bf16.msk.msra.mxu1 %vm18302_vm12, %v26561_v50  ;;  %v26565_v39 = vmax.f32 %v21774_v25, 0.0  ;;  %v26569_v51 = vmax.f32 %v21813_v61, 0.0 }
 0x49e   :  { %18305 = vmatprep.subr.msk.bf16.mxu1 %vm18304_vm13, %v26561_v50  ;;  %v2152_v44 = vmax.f32 %v18652_v19, 0.0  ;;  %v26568_v19 = vmax.f32 %v21817_v21, 0.0  ;;  %v26570_v15 = vmax.f32 %v21831_v30, 0.0  ;;  %v26571_v16 = vmax.f32 %v21836_v27, 0.0 }
 0x49f   :  { %v2153_v1 = vmax.f32 %v18653_v52, 0.0  ;;  %2404 = vmatprep.mubr.f32.mxu1 %v2151_v63  ;;  %v26518_v25 = vmul.u32 2, %v20706_v14  ;;  %v26572_v26 = vmov 0.0  }
 0x4a0   :  { %2405 = vmatmul.mubr.f32.gmra.mrb[44].mxu1 %v2150_v57 }
 0x4a1   :  { %2409 = vmatprep.mubr.f32.mxu1 %v2153_v1  ;;  %18307 = vmatpush3.bf16.msk.msra.mxu1 %vm18306_vm3, %v26561_v50  ;;  %vm2532_vm8 = vcmp.eq.s32.totalorder %v20733_v23, %v26518_v25 }
 0x4a2   :  { %18309 = vmatprep.subr.msk.bf16.mxu1 %vm18308_vm4, %v26561_v50  ;;  %v21931_v42 = vsel %vm2532_vm8, 1.0, %v26572_v26 }
 0x4a3   :  { %26573 = vst [vmem:[#allocation18_spill] sm:$0xff] %v21931_v42 }
 0x4a4   :  { %2410 = vmatmul.mubr.f32.gmra.mrb[46].mxu1 %v2152_v44 }
 0x4a5   :  { %18311 = vmatpush3.bf16.msk.msra.mxu1 %vm18310_vm7, %v26561_v50  ;;  %2479 = vmatprep.mubr.f32.mxu1 %v26564_v5 }
 0x4a8   :  { %2480 = vmatmul.mubr.f32.vlgmr.msra.gmra.mrb[48].mxu1 %v26565_v39 }
 0x4a9   :  { %2484 = vmatprep.mubr.f32.mxu1 %v26566_v62 }
 0x4ac   :  { %2485 = vmatmul.mubr.f32.gmra.mrb[50].mxu1 %v26567_v49 }
 0x4ad   :  { %2489 = vmatprep.mubr.f32.mxu1 %v26568_v19 }
 0x4b0   :  { %2490 = vmatmul.mubr.f32.gmra.mrb[52].mxu1 %v26569_v51 }
 0x4b1   :  { %2494 = vmatprep.mubr.f32.mxu1 %v26570_v15 }
 0x4b4   :  { %2495 = vmatmul.mubr.f32.gmra.mrb[54].mxu1 %v26571_v16 }
 0x4b5   :  { %2499 = vmatprep.mubr.f32.mxu1 %v2147_v54 }
 0x4b8   :  { %2500 = vmatmul.mubr.f32.gmra.mrb[56].mxu1 %v2146_v9 }
 0x4b9   :  { %2504 = vmatprep.mubr.f32.mxu1 %v2149_v6 }
 0x4bc   :  { %2505 = vmatmul.mubr.f32.gmra.mrb[58].mxu1 %v2148_v38 }
 0x4bd   :  { %2509 = vmatprep.mubr.f32.mxu1 %v2151_v63 }
 0x4c0   :  { %2510 = vmatmul.mubr.f32.gmra.mrb[60].mxu1 %v2150_v57 }
 0x4c1   :  { %2514 = vmatprep.mubr.f32.mxu1 %v2153_v1 }
 0x4c4   :  { %2515 = vmatmul.mubr.f32.gmra.mrb[62].mxu1 %v2152_v44 }
 0x4c5   :  { %17918 = vmatprep.mubr.msk.f32.mxu1 %vm163_vm2, %v21931_v42 }
 0x55b   :  { %v17363_v61 = vpop.f32.mrb[32].mxu1 }
 0x55c   :  { %v17364_v9 = vpop.f32.mrb[33].mxu1 }
 0x55d   :  { %v17365_v21 = vadd.f32 %v17364_v9, %v17363_v61 }
 0x55f   :  { %v17366_v30 = vpop.f32.mrb[34].mxu1 }
 0x560   :  { %v17367_v27 = vpop.f32.mrb[35].mxu1 }
 0x561   :  { %v17368_v6 = vadd.f32 %v17367_v27, %v17366_v30 }
 0x563   :  { %v17369_v1 = vpop.f32.mrb[36].mxu1 }
 0x564   :  { %v17370_v54 = vpop.f32.mrb[37].mxu1 }
 0x565   :  { %v17371_v38 = vadd.f32 %v17370_v54, %v17369_v1 }
 0x567   :  { %v17372_v63 = vpop.f32.mrb[38].mxu1 }
 0x568   :  { %v17373_v52 = vpop.f32.mrb[39].mxu1 }
 0x569   :  { %v17374_v57 = vadd.f32 %v17373_v52, %v17372_v63 }
 0x56b   :  { %v17375_v44 = vpop.f32.mrb[40].mxu1 }
 0x56c   :  { %v17376_v5 = vpop.f32.mrb[41].mxu1 }
 0x56d   :  { %v17377_v39 = vadd.f32 %v17376_v5, %v17375_v44 }
 0x56f   :  { %v17378_v62 = vpop.f32.mrb[42].mxu1 }
 0x570   :  { %v17379_v49 = vpop.f32.mrb[43].mxu1 }
 0x571   :  { %v17380_v19 = vadd.f32 %v17379_v49, %v17378_v62 }
 0x573   :  { %v17381_v51 = vpop.f32.mrb[44].mxu1 }
 0x574   :  { %v17382_v15 = vpop.f32.mrb[45].mxu1 }
 0x575   :  { %v17383_v16 = vadd.f32 %v17382_v15, %v17381_v51 }
 0x577   :  { %v17384_v25 = vpop.f32.mrb[46].mxu1 }
 0x578   :  { %v17385_v61 = vpop.f32.mrb[47].mxu1 }
 0x579   :  { %v17386_v9 = vadd.f32 %v17385_v61, %v17384_v25 }
 0x57b   :  { %v17419_v42 = vpop.f32.mrb[48].mxu1 }
 0x57c   :  { %v17420_v30 = vpop.f32.mrb[49].mxu1 }
 0x57d   :  { %v17421_v27 = vadd.f32 %v17420_v30, %v17419_v42 }
 0x57f   :  { %v2520_v2 = vmax.f32 %v17365_v21, %v17421_v27  ;;  %v17422_v1 = vpop.f32.mrb[50].mxu1 }
 0x580   :  { %v17423_v54 = vpop.f32.mrb[51].mxu1 }
 0x581   :  { %v17424_v53 = vadd.f32 %v17423_v54, %v17422_v1 }
 0x583   :  { %v2521_v63 = vmax.f32 %v17368_v6, %v17424_v53  ;;  %v17425_v52 = vpop.f32.mrb[52].mxu1 }
 0x584   :  { %v17426_v43 = vpop.f32.mrb[53].mxu1 }
 0x585   :  { %v18312_v44 = vpack.c.bf16 %v2521_v63, %v2520_v2  ;;  %v17427_v5 = vadd.f32 %v17426_v43, %v17425_v52 }
 0x587   :  { %v2522_v4 = vmax.f32 %v17371_v38, %v17427_v5  ;;  %v17428_v62 = vpop.f32.mrb[54].mxu1  ;;  %18313 = vmatprep.subr.bf16.mxu1 %v18312_v44 }
 0x588   :  { %v17429_v49 = vpop.f32.mrb[55].mxu1  ;;  %18315 = vmatpush3.bf16.msra.mxu1 %v18312_v44 }
 0x589   :  { %v17430_v51 = vadd.f32 %v17429_v49, %v17428_v62  ;;  %v26574_v49 = vmul.u32 2, %v20706_v14 }
 0x58b   :  { %v2523_v15 = vmax.f32 %v17374_v57, %v17430_v51  ;;  %v17431_v25 = vpop.f32.mrb[56].mxu1 }
 0x58c   :  { %v17432_v61 = vpop.f32.mrb[57].mxu1 }
 0x58d   :  { %v18316_v29 = vpack.c.bf16 %v2523_v15, %v2522_v4  ;;  %v17433_v42 = vadd.f32 %v17432_v61, %v17431_v25  ;;  %v2529_v4 = vmul.u32 2, %v20725_v20 }
 0x58f   :  { %v2524_v21 = vmax.f32 %v17377_v39, %v17433_v42  ;;  %v17434_v30 = vpop.f32.mrb[58].mxu1  ;;  %18317 = vmatprep.subr.bf16.mxu1 %v18316_v29  ;;  %v2530_v39 = vmul.u32 2, %v20761_v33  ;;  %vm2533_vm9 = vcmp.eq.s32.totalorder %v20733_v23, %v2529_v4  ;;  %v2541_v61 = vadd.s32 1, %v2529_v4  ;;  %v19137_v4 = vld [vmem:[%s26575_s6 + $0x50] ss:$8 sps:$4 sm:$0xff]  }
 0x590   :  { %v17435_v27 = vpop.f32.mrb[59].mxu1  ;;  %18319 = vmatpush3.bf16.msra.mxu1 %v18316_v29  ;;  %v21943_v51 = vsel %vm2533_vm9, 1.0, %v26572_v26 }
 0x591   :  { %v17436_v53 = vadd.f32 %v17435_v27, %v17434_v30  ;;  %vm2534_vm10 = vcmp.eq.s32.totalorder %v20733_v23, %v2530_v39  ;;  %v2542_v42 = vadd.s32 1, %v2530_v39  ;;  %vm2545_vm13 = vcmp.eq.s32.totalorder %v20733_v23, %v2541_v61  ;;  %v19122_v27 = vld [vmem:[%s26575_s6] ss:$8 sps:$4 sm:$0xff]   ;;  %v19142_v39 = vld [vmem:[%s26575_s6 + $0x64] ss:$8 sps:$4 sm:$0xff]  }
 0x592   :  { %v2538_v15 = vsel %vm2534_vm10, 1.0, %v26572_v26 }
 0x593   :  { %v2525_v6 = vmax.f32 %v17380_v19, %v17436_v53  ;;  %v17437_v2 = vpop.f32.mrb[60].mxu1  ;;  %v2531_v19 = vmul.u32 2, %v20764_v34  ;;  %vm2546_vm14 = vcmp.eq.s32.totalorder %v20733_v23, %v2542_v42  ;;  %v19124_v53 = vld [vmem:[%s26575_s6 + $0x4] ss:$8 sps:$4 sm:$0xff]  }
 0x594   :  { %v17438_v43 = vpop.f32.mrb[61].mxu1  ;;  %v2550_v30 = vsel %vm2546_vm14, 1.0, %v26572_v26  ;;  %2906 = vmatprep.subr.bf16.mxu0 %v19124_v53 }
 0x595   :  { %v18320_v38 = vpack.c.bf16 %v2525_v6, %v2524_v21  ;;  %v17439_v1 = vadd.f32 %v17438_v43, %v17437_v2  ;;  %vm2535_vm11 = vcmp.eq.s32.totalorder %v20733_v23, %v2531_v19  ;;  %v21961_v21 = vsel %vm2545_vm13, 1.0, %v26572_v26  ;;  %v19127_v6 = vld [vmem:[%s26575_s6 + $0x14] ss:$8 sps:$4 sm:$0xff]   ;;  %2907 = vmatpush1.bf16.msra.mxu0 %v19122_v27  ;;  %v19125_v2 = vld [vmem:[%s26575_s6 + $0x10] ss:$8 sps:$4 sm:$0xff]  }
 0x596   :  { %2908 = vmatprep.subr.bf16.mxu0 %v19127_v6  ;;  %v19130_v43 = vld [vmem:[%s26575_s6 + $0x24] ss:$8 sps:$4 sm:$0xff]  }
 0x597   :  { %v2526_v54 = vmax.f32 %v17383_v16, %v17439_v1  ;;  %v17440_v63 = vpop.f32.mrb[62].mxu1  ;;  %18321 = vmatprep.subr.bf16.mxu1 %v18320_v38  ;;  %v2540_v16 = vadd.s32 1, %v26574_v49  ;;  %v19133_v1 = vld [vmem:[%s26575_s6 + $0x34] ss:$8 sps:$4 sm:$0xff]  }
 0x598   :  { %v17441_v52 = vpop.f32.mrb[63].mxu1  ;;  %18323 = vmatpush3.bf16.msra.mxu1 %v18320_v38 }
 0x599   :  { %v17442_v57 = vadd.f32 %v17441_v52, %v17440_v63  ;;  %vm2544_vm12 = vcmp.eq.s32.totalorder %v20733_v23, %v2540_v16  ;;  %2909 = vmatpush1.bf16.msra.mxu0 %v19125_v2  ;;  %v19136_v63 = vld [vmem:[%s26575_s6 + $0x44] ss:$8 sps:$4 sm:$0xff]   ;;  %v19134_v52 = vld [vmem:[%s26575_s6 + $0x40] ss:$8 sps:$4 sm:$0xff]   ;;  %v19145_v2 = vld [vmem:[%s26575_s6 + $0x74] ss:$8 sps:$4 sm:$0xff]  }
 0x59a   :  { %v21953_v25 = vsel %vm2544_vm12, 1.0, %v26572_v26  ;;  %2910 = vmatprep.subr.bf16.mxu0 %v19130_v43  ;;  %v19143_v43 = vld [vmem:[%s26575_s6 + $0x70] ss:$8 sps:$4 sm:$0xff]  }
 0x59b   :  { %v2527_v5 = vmax.f32 %v17386_v9, %v17442_v57  ;;  %v2539_v9 = vsel %vm2535_vm11, 1.0, %v26572_v26  ;;  %v19139_v57 = vld [vmem:[%s26575_s6 + $0x54] ss:$8 sps:$4 sm:$0xff]  }
 0x59d   :  { %v18324_v62 = vpack.c.bf16 %v2527_v5, %v2526_v54  ;;  %v19131_v54 = vld [vmem:[%s26575_s6 + $0x30] ss:$8 sps:$4 sm:$0xff]   ;;  %v19140_v5 = vld [vmem:[%s26575_s6 + $0x60] ss:$8 sps:$4 sm:$0xff]  }
 0x59f   :  { %18325 = vmatprep.subr.bf16.mxu1 %v18324_v62 }
 0x5a0   :  { %18327 = vmatpush3.bf16.msra.mxu1 %v18324_v62 }
 0x5a1   :  { %18329 = vmatprep.subr.bf16.mxu1 %v18312_v44 }
 0x5a3   :  { %17919 = vmatmul.mubr.msk.f32.vlgmr.msra.gmra.mrb[64].mxu1 %vm163_vm2, %v21943_v51 }
 0x5a4   :  { %18331 = vmatpush3.bf16.msra.mxu1 %v18312_v44  ;;  %17921 = vmatprep.mubr.msk.f32.mxu1 %vm163_vm2, %v2538_v15  ;;  %v2543_v44 = vadd.s32 1, %v2531_v19 }
 0x5a5   :  { %18333 = vmatprep.subr.bf16.mxu1 %v18316_v29 }
 0x5a6   :  { %vm2547_vm15 = vcmp.eq.s32.totalorder %v20733_v23, %v2543_v44 }
 0x5a7   :  { %17922 = vmatmul.mubr.msk.f32.gmra.mrb[66].mxu1 %vm163_vm2, %v2539_v9 }
 0x5a8   :  { %18335 = vmatpush3.bf16.msra.mxu1 %v18316_v29  ;;  %17940 = vmatprep.mubr.msk.f32.mxu1 %vm163_vm2, %v21953_v25  ;;  %v2551_v29 = vsel %vm2547_vm15, 1.0, %v26572_v26 }
 0x5a9   :  { %18337 = vmatprep.subr.bf16.mxu1 %v18320_v38 }
 0x5ac   :  { %18339 = vmatpush3.bf16.msra.mxu1 %v18320_v38  ;;  %v19128_v38 = vld [vmem:[%s26575_s6 + $0x20] ss:$8 sps:$4 sm:$0xff]  }
 0x5ad   :  { %18341 = vmatprep.subr.bf16.mxu1 %v18324_v62  ;;  %2911 = vmatpush1.bf16.msra.mxu0 %v19128_v38  ;;  %v19148_v38 = vld [vmem:[%s26575_s6 + $0x84] ss:$8 sps:$4 sm:$0xff]  }
 0x5ae   :  { %2912 = vmatprep.subr.bf16.mxu0 %v19133_v1 }
 0x5b0   :  { %18343 = vmatpush3.bf16.msra.mxu1 %v18324_v62 }
 0x5b1   :  { %2913 = vmatpush1.bf16.msra.mxu0 %v19131_v54 }
 0x5b2   :  { %2914 = vmatprep.subr.bf16.mxu0 %v19136_v63 }
 0x5b3   :  { %17941 = vmatmul.mubr.msk.f32.vlgmr.msra.gmra.mrb[68].mxu1 %vm163_vm2, %v21961_v21 }
 0x5b4   :  { %17943 = vmatprep.mubr.msk.f32.mxu1 %vm163_vm2, %v2550_v30 }
 0x5b5   :  { %2915 = vmatpush1.bf16.msra.mxu0 %v19134_v52 }
 0x5b6   :  { %2916 = vmatprep.subr.bf16.mxu0 %v19139_v57 }
 0x5b7   :  { %17944 = vmatmul.mubr.msk.f32.gmra.mrb[70].mxu1 %vm163_vm2, %v2551_v29 }
 0x5b8   :  { %17950 = vmatprep.mubr.msk.bf16.mxu1 %vm26534_vm0, %v20789_v45 }
 0x5b9   :  { %2917 = vmatpush1.bf16.msra.mxu0 %v19137_v4  ;;  %v19146_v4 = vld [vmem:[%s26575_s6 + $0x80] ss:$8 sps:$4 sm:$0xff]  }
 0x5ba   :  { %2918 = vmatprep.subr.bf16.mxu0 %v19142_v39 }
 0x5bd   :  { %2919 = vmatpush1.bf16.msra.mxu0 %v19140_v5  ;;  %v19151_v5 = vld [vmem:[%s26575_s6 + $0x94] ss:$8 sps:$4 sm:$0xff]  }
 0x5be   :  { %2920 = vmatprep.subr.bf16.mxu0 %v19145_v2  ;;  %v19158_v2 = vld [vmem:[%s26575_s6 + $0xc0] ss:$8 sps:$4 sm:$0xff]  }
 0x5c1   :  { %2921 = vmatpush1.bf16.msra.mxu0 %v19143_v43  ;;  %v19163_v43 = vld [vmem:[%s26575_s6 + $0xd4] ss:$8 sps:$4 sm:$0xff]  }
 0x5c2   :  { %3074 = vmatprep.subr.bf16.mxu0 %v19148_v38  ;;  %v19161_v38 = vld [vmem:[%s26575_s6 + $0xd0] ss:$8 sps:$4 sm:$0xff]  }
 0x676   :  { %v17920_v62 = vpop.f32.mrb[64].mxu1 }
 0x677   :  { %v2630_v19 = vpop.f32.mrb[65].mxu1 }
 0x67a   :  { %v17923_v49 = vpop.f32.mrb[66].mxu1 }
 0x67b   :  { %v2640_v16 = vpop.f32.mrb[67].mxu1 }
 0x686   :  { %v17942_v15 = vpop.f32.mrb[68].mxu1 }
 0x687   :  { %v2747_v9 = vmax.f32 %v17920_v62, %v17942_v15  ;;  %v2727_v61 = vpop.f32.mrb[69].mxu1  ;;  %v19149_v62 = vld [vmem:[%s26575_s6 + $0x90] ss:$8 sps:$4 sm:$0xff]  }
 0x688   :  { %v2746_v42 = vmax.f32 %v2630_v19, %v2727_v61  ;;  %v19154_v19 = vld [vmem:[%s26575_s6 + $0xa4] ss:$8 sps:$4 sm:$0xff]  }
 0x68a   :  { %v22014_v44 = vpack.c.bf16 %v2747_v9, %v2746_v42  ;;  %v17945_v30 = vpop.f32.mrb[70].mxu1  ;;  %v19152_v9 = vld [vmem:[%s26575_s6 + $0xa0] ss:$8 sps:$4 sm:$0xff]  }
 0x68b   :  { %v2749_v29 = vmax.f32 %v17923_v49, %v17945_v30  ;;  %v2737_v27 = vpop.f32.mrb[71].mxu1  ;;  %v19157_v30 = vld [vmem:[%s26575_s6 + $0xb4] ss:$8 sps:$4 sm:$0xff]  }
 0x68c   :  { %v2748_v53 = vmax.f32 %v2640_v16, %v2737_v27  ;;  %17946 = vmatprep.subr.bf16.mxu1 %v22014_v44  ;;  %v19155_v27 = vld [vmem:[%s26575_s6 + $0xb0] ss:$8 sps:$4 sm:$0xff]  }
 0x68d   :  { %17947 = vmatpush3.bf16.msra.mxu1 %v22014_v44 }
 0x68e   :  { %v22018_v6 = vpack.c.bf16 %v2749_v29, %v2748_v53  ;;  %v19160_v53 = vld [vmem:[%s26575_s6 + $0xc4] ss:$8 sps:$4 sm:$0xff]  }
 0x690   :  { %17948 = vmatprep.subr.bf16.mxu1 %v22018_v6 }
 0x691   :  { %17949 = vmatpush3.bf16.msra.mxu1 %v22018_v6 }
 0x692   :  { %17954 = vmatprep.subr.bf16.mxu1 %v22014_v44 }
 0x694   :  { %17951 = vmatmul.mubr.msk.bf16.vlgmr.msra.gmra.mrb[72].mxu1 %vm26534_vm0, %v20822_v56 }
 0x695   :  { %17955 = vmatpush3.bf16.msra.mxu1 %v22014_v44  ;;  %17958 = vmatprep.mubr.msk.bf16.mxu1 %vm26534_vm0, %v20902_v31 }
 0x696   :  { %17956 = vmatprep.subr.bf16.mxu1 %v22018_v6 }
 0x699   :  { %17957 = vmatpush3.bf16.msra.mxu1 %v22018_v6 }
 0x69c   :  { %17959 = vmatmul.mubr.msk.bf16.vlgmr.msra.gmra.mrb[76].mxu1 %vm26534_vm0, %v20913_v41 }
 0x69d   :  { %3393 = vmatprep.mubr.bf16.mxu1 %v26556_v35 }
 0x767   :  { %v17952_v1 = vpop.f32.mrb[72].mxu1 }
 0x768   :  { %v2793_v54 = vpop.f32.mrb[73].mxu1 }
 0x769   :  { %v17953_v63 = vpop.f32.mrb[74].mxu1 }
 0x76a   :  { %v2809_v52 = vpack.c.bf16 %v17953_v63, %v17952_v1  ;;  %v2796_v57 = vpop.f32.mrb[75].mxu1  ;;  %v19166_v1 = vld [vmem:[%s26575_s6 + $0xe4] ss:$8 sps:$4 sm:$0xff]   ;;  %v19169_v63 = vld [vmem:[%s26575_s6 + $0xf4] ss:$8 sps:$4 sm:$0xff]  }
 0x76b   :  { %v2808_v39 = vpack.c.bf16 %v2796_v57, %v2793_v54  ;;  %v19164_v54 = vld [vmem:[%s26575_s6 + $0xe0] ss:$8 sps:$4 sm:$0xff]   ;;  %v19172_v57 = vld [vmem:[%s26575_s6 + $0x104] ss:$8 sps:$4 sm:$0xff]  }
 0x76d   :  { %2939 = vmatmul.mubr.bf16.vlgmr.msra.gmra.mrb[64].mxu0 %v2808_v39  ;;  %v19175_v39 = vld [vmem:[%s26575_s6 + $0x114] ss:$8 sps:$4 sm:$0xff]  }
 0x76e   :  { %3075 = vmatpush1.bf16.msra.mxu0 %v19146_v4  ;;  %2948 = vmatprep.mubr.bf16.mxu0 %v26556_v35  ;;  %v19170_v4 = vld [vmem:[%s26575_s6 + $0x100] ss:$8 sps:$4 sm:$0xff]  }
 0x76f   :  { %3076 = vmatprep.subr.bf16.mxu0 %v19151_v5  ;;  %v22055_v49 = vpop.f32.mrb[76].mxu1  ;;  %v19173_v5 = vld [vmem:[%s26575_s6 + $0x110] ss:$8 sps:$4 sm:$0xff]  }
 0x770   :  { %v22057_v16 = vpop.f32.mrb[77].mxu1 }
 0x771   :  { %v22059_v15 = vpop.f32.mrb[78].mxu1 }
 0x772   :  { %3077 = vmatpush1.bf16.msra.mxu0 %v19149_v62  ;;  %v3189_v61 = vpack.c.bf16 %v22059_v15, %v22055_v49  ;;  %v3176_v42 = vpop.f32.mrb[79].mxu1  ;;  %v19178_v62 = vld [vmem:[%s26575_s6 + $0x124] ss:$8 sps:$4 sm:$0xff]  }
 0x773   :  { %3078 = vmatprep.subr.bf16.mxu0 %v19154_v19  ;;  %v3188_v29 = vpack.c.bf16 %v3176_v42, %v22057_v16  ;;  %v19176_v19 = vld [vmem:[%s26575_s6 + $0x120] ss:$8 sps:$4 sm:$0xff]   ;;  %v19179_v16 = vld [vmem:[%s26575_s6 + $0x130] ss:$8 sps:$4 sm:$0xff]  }
 0x774   :  { %v19182_v42 = vld [vmem:[%s26575_s6 + $0x140] ss:$8 sps:$4 sm:$0xff]  }
 0x775   :  { %2949 = vmatmul.mubr.bf16.gmra.mrb[68].mxu0 %v2809_v52  ;;  %v19167_v52 = vld [vmem:[%s26575_s6 + $0xf0] ss:$8 sps:$4 sm:$0xff]  }
 0x776   :  { %3079 = vmatpush1.bf16.msra.mxu0 %v19152_v9  ;;  %3106 = vmatprep.mubr.bf16.mxu0 %v26556_v35  ;;  %v19184_v9 = vld [vmem:[%s26575_s6 + $0x144] ss:$8 sps:$4 sm:$0xff]  }
 0x777   :  { %3080 = vmatprep.subr.bf16.mxu0 %v19157_v30  ;;  %v19185_v30 = vld [vmem:[%s26575_s6 + $0x150] ss:$8 sps:$4 sm:$0xff]  }
 0x77a   :  { %3081 = vmatpush1.bf16.msra.mxu0 %v19155_v27  ;;  %v19190_v27 = vld [vmem:[%s26575_s6 + $0x164] ss:$8 sps:$4 sm:$0xff]  }
 0x77b   :  { %3082 = vmatprep.subr.bf16.mxu0 %v19160_v53  ;;  %v19188_v53 = vld [vmem:[%s26575_s6 + $0x160] ss:$8 sps:$4 sm:$0xff]  }
 0x77e   :  { %3083 = vmatpush1.bf16.msra.mxu0 %v19158_v2  ;;  %v19193_v2 = vld [vmem:[%s26575_s6 + $0x174] ss:$8 sps:$4 sm:$0xff]  }
 0x77f   :  { %3084 = vmatprep.subr.bf16.mxu0 %v19163_v43  ;;  %v19191_v43 = vld [vmem:[%s26575_s6 + $0x170] ss:$8 sps:$4 sm:$0xff]  }
 0x782   :  { %3085 = vmatpush1.bf16.msra.mxu0 %v19161_v38  ;;  %v16119_v38 = vld [vmem:[%s26482_s14 + $0x2] ss:$8 sm:$0x3] }
 0x783   :  { %3086 = vmatprep.subr.bf16.mxu0 %v19166_v1  ;;  %v2963_v1 = vrot.slane %v16119_v38, %v21164_v0 }
 0x786   :  { %3087 = vmatpush1.bf16.msra.mxu0 %v19164_v54  ;;  %v2967_v54 = vrot.slane %v16119_v38, %v21170_v7 }
 0x787   :  { %3088 = vmatprep.subr.bf16.mxu0 %v19169_v63 }
 0x78a   :  { %3089 = vmatpush1.bf16.msra.mxu0 %v19167_v52 }
 0x78b   :  { %3286 = vmatprep.subr.bf16.mxu0 %v19172_v57 }
 0x78d   :  { %3107 = vmatmul.mubr.bf16.vlgmr.msra.gmra.mrb[64].mxu0 %v22014_v44  ;;  %v19181_v44 = vld [vmem:[%s26575_s6 + $0x134] ss:$8 sps:$4 sm:$0xff]  }
 0x78e   :  { %3287 = vmatpush1.bf16.msra.mxu0 %v19170_v4  ;;  %3116 = vmatprep.mubr.bf16.mxu0 %v26556_v35 }
 0x78f   :  { %3288 = vmatprep.subr.bf16.mxu0 %v19175_v39 }
 0x792   :  { %3289 = vmatpush1.bf16.msra.mxu0 %v19173_v5 }
 0x793   :  { %3290 = vmatprep.subr.bf16.mxu0 %v19178_v62 }
 0x795   :  { %3117 = vmatmul.mubr.bf16.gmra.mrb[68].mxu0 %v22018_v6  ;;  %v19187_v6 = vld [vmem:[%s26575_s6 + $0x154] ss:$8 sps:$4 sm:$0xff]  }
 0x796   :  { %3291 = vmatpush1.bf16.msra.mxu0 %v19176_v19  ;;  %3318 = vmatprep.mubr.bf16.mxu0 %v26556_v35 }
 0x797   :  { %3292 = vmatprep.subr.bf16.mxu0 %v19181_v44 }
 0x79a   :  { %3293 = vmatpush1.bf16.msra.mxu0 %v19179_v16 }
 0x79b   :  { %3294 = vmatprep.subr.bf16.mxu0 %v19184_v9 }
 0x79e   :  { %3295 = vmatpush1.bf16.msra.mxu0 %v19182_v42 }
 0x79f   :  { %3296 = vmatprep.subr.bf16.mxu0 %v19187_v6 }
 0x7a2   :  { %3297 = vmatpush1.bf16.msra.mxu0 %v19185_v30 }
 0x7a3   :  { %3298 = vmatprep.subr.bf16.mxu0 %v19190_v27 }
 0x7a6   :  { %3299 = vmatpush1.bf16.msra.mxu0 %v19188_v53 }
 0x7a7   :  { %3300 = vmatprep.subr.bf16.mxu0 %v19193_v2 }
 0x7aa   :  { %3301 = vmatpush1.bf16.msra.mxu0 %v19191_v43 }
 0x7ad   :  { %3319 = vmatmul.mubr.bf16.vlgmr.msra.gmra.mrb[64].mxu0 %v3188_v29 }
 0x7ae   :  { %3328 = vmatprep.mubr.bf16.mxu0 %v26556_v35 }
 0x7b5   :  { %3329 = vmatmul.mubr.bf16.gmra.mrb[68].mxu0 %v3189_v61 }
 0x7b6   :  { %3967 = vmatprep.mubr.bf16.mxu0 %v26556_v35 }
 0x880   :  { %v3320_v63 = vpop.f32.mrb[64].mxu0 }
 0x881   :  { %v18654_v52 = vadd.f32 %v3320_v63, %v2963_v1  ;;  %v3322_v57 = vpop.f32.mrb[65].mxu0 }
 0x882   :  { %v18655_v29 = vadd.f32 %v3322_v57, %v2967_v54  ;;  %v3324_v4 = vpop.f32.mrb[66].mxu0 }
 0x883   :  { %v18656_v39 = vadd.f32 %v3324_v4, %v2963_v1  ;;  %v3326_v5 = vpop.f32.mrb[67].mxu0  ;;  %v3347_v49 = vmax.f32 %v18654_v52, 0.0 }
 0x884   :  { %v18657_v62 = vadd.f32 %v3326_v5, %v2967_v54  ;;  %v3348_v61 = vmax.f32 %v18655_v29, 0.0  ;;  %v19197_v5 = vld [vmem:[%s26576_s30 + $0x10] ss:$8 sps:$4 sm:$0xff]  }
 0x885   :  { %v3349_v15 = vmax.f32 %v18656_v39, 0.0  ;;  %v19196_v39 = vld [vmem:[%s26576_s30 + $0x4] ss:$8 sps:$4 sm:$0xff]  }
 0x886   :  { %v3350_v19 = vmax.f32 %v18657_v62, 0.0  ;;  %v19202_v62 = vld [vmem:[%s26576_s30 + $0x24] ss:$8 sps:$4 sm:$0xff]  }
 0x887   :  { %v22160_v44 = vpack.c.bf16 %v3349_v15, %v3347_v49  ;;  %v19200_v49 = vld [vmem:[%s26576_s30 + $0x20] ss:$8 sps:$4 sm:$0xff]   ;;  %v19205_v15 = vld [vmem:[%s26576_s30 + $0x34] ss:$8 sps:$4 sm:$0xff]  }
 0x888   :  { %v22162_v16 = vpack.c.bf16 %v3350_v19, %v3348_v61  ;;  %v3330_v9 = vpop.f32.mrb[68].mxu0  ;;  %v19203_v61 = vld [vmem:[%s26576_s30 + $0x30] ss:$8 sps:$4 sm:$0xff]   ;;  %v19208_v19 = vld [vmem:[%s26576_s30 + $0x44] ss:$8 sps:$4 sm:$0xff]  }
 0x889   :  { %v18658_v42 = vadd.f32 %v3330_v9, %v2963_v1  ;;  %v3332_v6 = vpop.f32.mrb[69].mxu0  ;;  %v19206_v9 = vld [vmem:[%s26576_s30 + $0x40] ss:$8 sps:$4 sm:$0xff]  }
 0x88a   :  { %v18659_v30 = vadd.f32 %v3332_v6, %v2967_v54  ;;  %v3334_v27 = vpop.f32.mrb[70].mxu0  ;;  %3361 = vmatprep.subr.bf16.mxu1 %v22162_v16  ;;  %3935 = vmatprep.subr.bf16.mxu0 %v22162_v16  ;;  %v19212_v6 = vld [vmem:[%s26576_s30 + $0x60] ss:$8 sps:$4 sm:$0xff]  }
 0x88b   :  { %v18660_v53 = vadd.f32 %v3334_v27, %v2963_v1  ;;  %v3336_v2 = vpop.f32.mrb[71].mxu0  ;;  %3362 = vmatpush1.bf16.msra.mxu1 %v22160_v44  ;;  %3936 = vmatpush1.bf16.msra.mxu0 %v22160_v44  ;;  %v3351_v38 = vmax.f32 %v18658_v42, 0.0  ;;  %v19194_v1 = vld [vmem:[%s26576_s30] ss:$8 sps:$4 sm:$0xff]   ;;  %v19214_v42 = vld [vmem:[%s26576_s30 + $0x64] ss:$8 sps:$4 sm:$0xff]  }
 0x88c   :  { %v18661_v43 = vadd.f32 %v3336_v2, %v2967_v54  ;;  %v3352_v52 = vmax.f32 %v18659_v30, 0.0  ;;  %v19199_v54 = vld [vmem:[%s26576_s30 + $0x14] ss:$8 sps:$4 sm:$0xff]   ;;  %v19215_v27 = vld [vmem:[%s26576_s30 + $0x70] ss:$8 sps:$4 sm:$0xff]  }
 0x88d   :  { %v3353_v63 = vmax.f32 %v18660_v53, 0.0  ;;  %v19217_v30 = vld [vmem:[%s26576_s30 + $0x74] ss:$8 sps:$4 sm:$0xff]   ;;  %v19220_v53 = vld [vmem:[%s26576_s30 + $0x84] ss:$8 sps:$4 sm:$0xff]  }
 0x88e   :  { %v3354_v57 = vmax.f32 %v18661_v43, 0.0  ;;  %v19218_v2 = vld [vmem:[%s26576_s30 + $0x80] ss:$8 sps:$4 sm:$0xff]   ;;  %v19223_v43 = vld [vmem:[%s26576_s30 + $0x94] ss:$8 sps:$4 sm:$0xff]  }
 0x88f   :  { %v22168_v29 = vpack.c.bf16 %v3353_v63, %v3351_v38  ;;  %v19221_v38 = vld [vmem:[%s26576_s30 + $0x90] ss:$8 sps:$4 sm:$0xff]   ;;  %v19226_v63 = vld [vmem:[%s26576_s30 + $0xa4] ss:$8 sps:$4 sm:$0xff]  }
 0x890   :  { %v22170_v4 = vpack.c.bf16 %v3354_v57, %v3352_v52  ;;  %v19224_v52 = vld [vmem:[%s26576_s30 + $0xa0] ss:$8 sps:$4 sm:$0xff]   ;;  %v19229_v57 = vld [vmem:[%s26576_s30 + $0xb4] ss:$8 sps:$4 sm:$0xff]  }
 0x892   :  { %3363 = vmatprep.subr.bf16.mxu1 %v22170_v4  ;;  %3937 = vmatprep.subr.bf16.mxu0 %v22170_v4 }
 0x893   :  { %3364 = vmatpush1.bf16.msra.mxu1 %v22168_v29  ;;  %3938 = vmatpush1.bf16.msra.mxu0 %v22168_v29 }
 0x894   :  { %3610 = vmatprep.subr.bf16.mxu1 %v19196_v39  ;;  %v19227_v39 = vld [vmem:[%s26576_s30 + $0xb0] ss:$8 sps:$4 sm:$0xff]  }
 0x896   :  { %16173 = vmatmul.mubr.msk.bf16.vlgmr.msra.gmra.mrb[80].mxu1 %vm26534_vm0, %v20789_v45  ;;  %16239 = vmatmul.mubr.msk.bf16.vlgmr.msra.gmra.mrb[72].mxu0 %vm26534_vm0, %v20902_v31 }
 0x897   :  { %3403 = vmatprep.mubr.bf16.mxu1 %v26556_v35  ;;  %3977 = vmatprep.mubr.bf16.mxu0 %v26556_v35 }
 0x898   :  { %3611 = vmatpush1.bf16.msra.mxu1 %v19194_v1  ;;  %v19232_v1 = vld [vmem:[%s26576_s30 + $0xc4] ss:$8 sps:$4 sm:$0xff]  }
 0x899   :  { %3612 = vmatprep.subr.bf16.mxu1 %v19199_v54  ;;  %v19230_v54 = vld [vmem:[%s26576_s30 + $0xc0] ss:$8 sps:$4 sm:$0xff]  }
 0x89c   :  { %3613 = vmatpush1.bf16.msra.mxu1 %v19197_v5  ;;  %v19235_v5 = vld [vmem:[%s26576_s30 + $0xd4] ss:$8 sps:$4 sm:$0xff]  }
 0x89d   :  { %3614 = vmatprep.subr.bf16.mxu1 %v19202_v62  ;;  %v19233_v62 = vld [vmem:[%s26576_s30 + $0xd0] ss:$8 sps:$4 sm:$0xff]  }
 0x89e   :  { %16174 = vmatmul.mubr.msk.bf16.gmra.mrb[84].mxu1 %vm26534_vm0, %v20822_v56  ;;  %16240 = vmatmul.mubr.msk.bf16.gmra.mrb[76].mxu0 %vm26534_vm0, %v20913_v41  ;;  %v19211_v56 = vld [vmem:[%s26576_s30 + $0x54] ss:$8 sps:$4 sm:$0xff]   ;;  %v19209_v41 = vld [vmem:[%s26576_s30 + $0x50] ss:$8 sps:$4 sm:$0xff]  }
 0x8a0   :  { %3615 = vmatpush1.bf16.msra.mxu1 %v19200_v49  ;;  %v19238_v49 = vld [vmem:[%s26576_s30 + $0xe4] ss:$8 sps:$4 sm:$0xff]  }
 0x8a1   :  { %3616 = vmatprep.subr.bf16.mxu1 %v19205_v15  ;;  %v19236_v15 = vld [vmem:[%s26576_s30 + $0xe0] ss:$8 sps:$4 sm:$0xff]  }
 0x8a4   :  { %3617 = vmatpush1.bf16.msra.mxu1 %v19203_v61  ;;  %v19241_v61 = vld [vmem:[%s26576_s30 + $0xf4] ss:$8 sps:$4 sm:$0xff]  }
 0x8a5   :  { %3618 = vmatprep.subr.bf16.mxu1 %v19208_v19  ;;  %v19239_v19 = vld [vmem:[%s26576_s30 + $0xf0] ss:$8 sps:$4 sm:$0xff]  }
 0x8a8   :  { %3619 = vmatpush1.bf16.msra.mxu1 %v19206_v9  ;;  %v19244_v9 = vld [vmem:[%s26576_s30 + $0x104] ss:$8 sps:$4 sm:$0xff]  }
 0x8a9   :  { %3620 = vmatprep.subr.bf16.mxu1 %v19211_v56 }
 0x8ac   :  { %3621 = vmatpush1.bf16.msra.mxu1 %v19209_v41 }
 0x8ad   :  { %3622 = vmatprep.subr.bf16.mxu1 %v19214_v42 }
 0x8b0   :  { %3623 = vmatpush1.bf16.msra.mxu1 %v19212_v6 }
 0x8b1   :  { %3624 = vmatprep.subr.bf16.mxu1 %v19217_v30 }
 0x8b4   :  { %3625 = vmatpush1.bf16.msra.mxu1 %v19215_v27 }
 0x8b5   :  { %3626 = vmatprep.subr.bf16.mxu1 %v19220_v53 }
 0x8b8   :  { %3627 = vmatpush1.bf16.msra.mxu1 %v19218_v2 }
 0x8b9   :  { %3628 = vmatprep.subr.bf16.mxu1 %v19223_v43 }
 0x8bc   :  { %3629 = vmatpush1.bf16.msra.mxu1 %v19221_v38 }
 0x8bd   :  { %3630 = vmatprep.subr.bf16.mxu1 %v19226_v63 }
 0x8c0   :  { %3631 = vmatpush1.bf16.msra.mxu1 %v19224_v52  ;;  %v19242_v52 = vld [vmem:[%s26576_s30 + $0x100] ss:$8 sps:$4 sm:$0xff]  }
 0x8c1   :  { %3632 = vmatprep.subr.bf16.mxu1 %v19229_v57 }
 0x8c4   :  { %3633 = vmatpush1.bf16.msra.mxu1 %v19227_v39  ;;  %v19247_v39 = vld [vmem:[%s26576_s30 + $0x114] ss:$8 sps:$4 sm:$0xff]  }
 0x8c5   :  { %3634 = vmatprep.subr.bf16.mxu1 %v19232_v1 }
 0x8c8   :  { %3635 = vmatpush1.bf16.msra.mxu1 %v19230_v54  ;;  %v19245_v54 = vld [vmem:[%s26576_s30 + $0x110] ss:$8 sps:$4 sm:$0xff]  }
 0x8c9   :  { %3636 = vmatprep.subr.bf16.mxu1 %v19235_v5 }
 0x8cc   :  { %3637 = vmatpush1.bf16.msra.mxu1 %v19233_v62 }
 0x8cd   :  { %3638 = vmatprep.subr.bf16.mxu1 %v19238_v49  ;;  %v19250_v49 = vld [vmem:[%s26576_s30 + $0x124] ss:$8 sps:$4 sm:$0xff]  }
 0x8d0   :  { %3639 = vmatpush1.bf16.msra.mxu1 %v19236_v15 }
 0x8d1   :  { %3640 = vmatprep.subr.bf16.mxu1 %v19241_v61 }
 0x8d4   :  { %3641 = vmatpush1.bf16.msra.mxu1 %v19239_v19 }
 0x8d5   :  { %3874 = vmatprep.subr.bf16.mxu1 %v19244_v9 }
 0x969   :  { %v3395_v56 = vpop.f32.mrb[80].mxu1  ;;  %v22285_v41 = vpop.f32.mrb[72].mxu0 }
 0x96a   :  { %v3397_v42 = vpop.f32.mrb[81].mxu1  ;;  %v22287_v6 = vpop.f32.mrb[73].mxu0 }
 0x96b   :  { %v3399_v30 = vpop.f32.mrb[82].mxu1  ;;  %v22289_v27 = vpop.f32.mrb[74].mxu0 }
 0x96c   :  { %v3414_v53 = vpack.c.bf16 %v3399_v30, %v3395_v56  ;;  %v3401_v2 = vpop.f32.mrb[83].mxu1  ;;  %v3988_v43 = vpack.c.bf16 %v22289_v27, %v22285_v41  ;;  %v22293_v38 = vpop.f32.mrb[75].mxu0  ;;  %v26583_v41 = vld [vmem:[#allocation17_spill] sm:$0xff] }
 0x96d   :  { %v3415_v63 = vpack.c.bf16 %v3401_v2, %v3397_v42  ;;  %v3989_v57 = vpack.c.bf16 %v22293_v38, %v22287_v6  ;;  %v19248_v2 = vld [vmem:[%s26576_s30 + $0x120] ss:$8 sps:$4 sm:$0xff]   ;;  %v19305_v6 = vld [vmem:[%s26576_s30 + $0x250] ss:$8 sps:$4 sm:$0xff]   ;;  %v19310_v38 = vld [vmem:[%s26576_s30 + $0x264] ss:$8 sps:$4 sm:$0xff]  }
 0x96f   :  { %3642 = vmatprep.mubr.bf16.mxu1 %v3415_v63 }
 0x970   :  { %3643 = vmatmul.mubr.bf16.vlgmr.msra.gmra.mrb[88].mxu1 %v3414_v53 }
 0x971   :  { %3875 = vmatpush1.bf16.msra.mxu1 %v19242_v52  ;;  %v3405_v1 = vpop.f32.mrb[84].mxu1  ;;  %v22306_v5 = vpop.f32.mrb[76].mxu0  ;;  %v19253_v52 = vld [vmem:[%s26576_s30 + $0x134] ss:$8 sps:$4 sm:$0xff]  }
 0x972   :  { %v3407_v62 = vpop.f32.mrb[85].mxu1  ;;  %3876 = vmatprep.subr.bf16.mxu1 %v19247_v39  ;;  %v22311_v15 = vpop.f32.mrb[77].mxu0  ;;  %v4253_v39 = vand.u32 7, %v20733_v23 }
 0x973   :  { %v3409_v61 = vpop.f32.mrb[86].mxu1  ;;  %v22313_v19 = vpop.f32.mrb[78].mxu0 }
 0x974   :  { %v3416_v9 = vpack.c.bf16 %v3409_v61, %v3405_v1  ;;  %v3411_v56 = vpop.f32.mrb[87].mxu1  ;;  %v3990_v42 = vpack.c.bf16 %v22313_v19, %v22306_v5  ;;  %v22317_v30 = vpop.f32.mrb[79].mxu0  ;;  %v19251_v1 = vld [vmem:[%s26576_s30 + $0x130] ss:$8 sps:$4 sm:$0xff]  }
 0x975   :  { %v3417_v53 = vpack.c.bf16 %v3411_v56, %v3407_v62  ;;  %3877 = vmatpush1.bf16.msra.mxu1 %v19245_v54  ;;  %v3991_v63 = vpack.c.bf16 %v22317_v30, %v22311_v15  ;;  %v19256_v54 = vld [vmem:[%s26576_s30 + $0x144] ss:$8 sps:$4 sm:$0xff]   ;;  %v22336_v62 = vsub.s32 %v21425_v28, %v4253_v39  ;;  %v19257_v61 = vld [vmem:[%s26576_s30 + $0x150] ss:$8 sps:$4 sm:$0xff]   ;;  %v19260_v56 = vld [vmem:[%s26576_s30 + $0x160] ss:$8 sps:$4 sm:$0xff]  }
 0x976   :  { %3878 = vmatprep.subr.bf16.mxu1 %v19250_v49  ;;  %v19259_v49 = vld [vmem:[%s26576_s30 + $0x154] ss:$8 sps:$4 sm:$0xff]   ;;  %v19266_v39 = vld [vmem:[%s26576_s30 + $0x180] ss:$8 sps:$4 sm:$0xff]  }
 0x977   :  { %3652 = vmatprep.mubr.bf16.mxu1 %v3417_v53  ;;  %vm4271_vm2 = vcmp.eq.s32.totalorder %v21418_v12, %v22336_v62  ;;  %vm4272_vm1 = vcmp.eq.s32.totalorder %v21421_v13, %v22336_v62  ;;  %vm4255_vm3 = vcmp.eq.s32.totalorder %v20706_v14, %v22336_v62  ;;  %vm4256_vm4 = vcmp.eq.s32.totalorder %v20725_v20, %v22336_v62  ;;  %v19265_v53 = vld [vmem:[%s26576_s30 + $0x174] ss:$8 sps:$4 sm:$0xff]  }
 0x978   :  { %3653 = vmatmul.mubr.bf16.gmra.mrb[92].mxu1 %v3416_v9  ;;  %vm18344_vm5 = vmpackc.low %vm4272_vm1, %vm4271_vm2  ;;  %vm4273_vm6 = vcmp.eq.s32.totalorder %v21432_v37, %v22336_v62  ;;  %vm4274_vm7 = vcmp.eq.s32.totalorder %v21435_v18, %v22336_v62  ;;  %vm4257_vm8 = vcmp.eq.s32.totalorder %v20761_v33, %v22336_v62  ;;  %vm4258_vm9 = vcmp.eq.s32.totalorder %v20764_v34, %v22336_v62  ;;  %v19262_v9 = vld [vmem:[%s26576_s30 + $0x164] ss:$8 sps:$4 sm:$0xff]  }
 0x979   :  { %3879 = vmatpush1.bf16.msra.mxu1 %v19248_v2  ;;  %3906 = vmatprep.mubr.bf16.mxu1 %v22162_v16  ;;  %v19254_v16 = vld [vmem:[%s26576_s30 + $0x140] ss:$8 sps:$4 sm:$0xff]   ;;  %vm18346_vm10 = vmpackc.low %vm4256_vm4, %vm4255_vm3  ;;  %vm4275_vm11 = vcmp.eq.s32.totalorder %v21444_v55, %v22336_v62  ;;  %vm4276_vm12 = vcmp.eq.s32.totalorder %v21447_v36, %v22336_v62  ;;  %vm4259_vm2 = vcmp.eq.s32.totalorder %v20798_v47, %v22336_v62  ;;  %v19263_v2 = vld [vmem:[%s26576_s30 + $0x170] ss:$8 sps:$4 sm:$0xff]   ;;  %v22599_v27 = vadd.s32 8, %v22336_v62 }
 0x97a   :  { %3880 = vmatprep.subr.bf16.mxu1 %v19253_v52  ;;  %18345 = vmatprep.subr.msk.bf16.mxu0 %vm18344_vm5, %v26561_v50  ;;  %vm18348_vm13 = vmpackc.low %vm4274_vm7, %vm4273_vm6  ;;  %vm4260_vm1 = vcmp.eq.s32.totalorder %v20801_v48, %v22336_v62  ;;  %vm4277_vm3 = vcmp.eq.s32.totalorder %v21477_v32, %v22336_v62  ;;  %vm4278_vm4 = vcmp.eq.s32.totalorder %v21480_v3, %v22336_v62  ;;  %v19268_v52 = vld [vmem:[%s26576_s30 + $0x184] ss:$8 sps:$4 sm:$0xff]  }
 0x97b   :  { %18347 = vmatpush3.bf16.msk.msra.mxu0 %vm18346_vm10, %v26561_v50  ;;  %vm18350_vm14 = vmpackc.low %vm4258_vm9, %vm4257_vm8  ;;  %vm4261_vm7 = vcmp.eq.s32.totalorder %v20834_v59, %v22336_v62  ;;  %vm4262_vm8 = vcmp.eq.s32.totalorder %v20837_v60, %v22336_v62  ;;  %vm4279_vm9 = vcmp.eq.s32.totalorder %v21499_v46, %v22336_v62  ;;  %vm4280_vm10 = vcmp.eq.s32.totalorder %v21502_v8, %v22336_v62 }
 0x97c   :  { %18349 = vmatprep.subr.msk.bf16.mxu0 %vm18348_vm13, %v26561_v50  ;;  %vm18352_vm15 = vmpackc.low %vm4276_vm12, %vm4275_vm11  ;;  %vm4263_vm13 = vcmp.eq.s32.totalorder %v21514_v40, %v22336_v62 }
 0x97d   :  { %3881 = vmatpush1.bf16.msra.mxu1 %v19251_v1  ;;  %vm18354_vm5 = vmpackc.low %vm4260_vm1, %vm4259_vm2  ;;  %vm4282_vm2 = vcmp.eq.s32.totalorder %v21530_v24, %v22336_v62  ;;  %v19271_v1 = vld [vmem:[%s26576_s30 + $0x194] ss:$8 sps:$4 sm:$0xff]  }
 0x97e   :  { %3882 = vmatprep.subr.bf16.mxu1 %v19256_v54  ;;  %vm18356_vm6 = vmpackc.low %vm4278_vm4, %vm4277_vm3  ;;  %vm4265_vm4 = vcmp.eq.s32.totalorder %v21542_v11, %v22336_v62  ;;  %v26577_v54 = vld [vmem:[#allocation11_spill] sm:$0xff] }
 0x97f   :  { %18351 = vmatpush3.bf16.msk.msra.mxu0 %vm18350_vm14, %v26561_v50  ;;  %vm18358_vm11 = vmpackc.low %vm4262_vm8, %vm4261_vm7  ;;  %vm4264_vm14 = vcmp.eq.s32.totalorder %v21517_v58, %v22336_v62  ;;  %vm4284_vm7 = vcmp.eq.s32.totalorder %v26577_v54, %v22336_v62 }
 0x980   :  { %18353 = vmatprep.subr.msk.bf16.mxu0 %vm18352_vm15, %v26561_v50  ;;  %vm18360_vm12 = vmpackc.low %vm4280_vm10, %vm4279_vm9  ;;  %vm4281_vm15 = vcmp.eq.s32.totalorder %v21527_v17, %v22336_v62 }
 0x981   :  { %3883 = vmatpush1.bf16.msra.mxu1 %v19254_v16  ;;  %vm18362_vm1 = vmpackc.low %vm4264_vm14, %vm4263_vm13  ;;  %v19269_v16 = vld [vmem:[%s26576_s30 + $0x190] ss:$8 sps:$4 sm:$0xff]  }
 0x982   :  { %3884 = vmatprep.subr.bf16.mxu1 %v19259_v49  ;;  %vm18364_vm3 = vmpackc.low %vm4282_vm2, %vm4281_vm15  ;;  %v26578_v49 = vld [vmem:[#allocation12_spill] sm:$0xff] }
 0x983   :  { %18355 = vmatpush3.bf16.msk.msra.mxu0 %vm18354_vm5, %v26561_v50  ;;  %vm4266_vm5 = vcmp.eq.s32.totalorder %v21545_v22, %v22336_v62  ;;  %vm4267_vm10 = vcmp.eq.s32.totalorder %v26578_v49, %v22336_v62 }
 0x984   :  { %18357 = vmatprep.subr.msk.bf16.mxu0 %vm18356_vm6, %v26561_v50  ;;  %vm4283_vm6 = vcmp.eq.s32.totalorder %v21555_v10, %v22336_v62  ;;  %vm18366_vm8 = vmpackc.low %vm4266_vm5, %vm4265_vm4  ;;  %vm4336_vm4 = vcmp.eq.s32.totalorder %v21418_v12, %v22599_v27  ;;  %vm4337_vm5 = vcmp.eq.s32.totalorder %v21421_v13, %v22599_v27 }
 0x985   :  { %3885 = vmatpush1.bf16.msra.mxu1 %v19257_v61  ;;  %vm18368_vm9 = vmpackc.low %vm4284_vm7, %vm4283_vm6  ;;  %v26579_v61 = vld [vmem:[#allocation13_spill] sm:$0xff]  ;;  %vm4320_vm7 = vcmp.eq.s32.totalorder %v20706_v14, %v22599_v27 }
 0x986   :  { %3886 = vmatprep.subr.bf16.mxu1 %v19262_v9  ;;  %v19274_v9 = vld [vmem:[%s26576_s30 + $0x1a4] ss:$8 sps:$4 sm:$0xff]   ;;  %vm18376_vm6 = vmpackc.low %vm4337_vm5, %vm4336_vm4  ;;  %vm4324_vm4 = vcmp.eq.s32.totalorder %v20798_v47, %v22599_v27  ;;  %vm4325_vm5 = vcmp.eq.s32.totalorder %v20801_v48, %v22599_v27 }
 0x987   :  { %18359 = vmatpush3.bf16.msk.msra.mxu0 %vm18358_vm11, %v26561_v50  ;;  %vm4268_vm11 = vcmp.eq.s32.totalorder %v26579_v61, %v22336_v62 }
 0x988   :  { %18361 = vmatprep.subr.msk.bf16.mxu0 %vm18360_vm12, %v26561_v50  ;;  %vm18370_vm12 = vmpackc.low %vm4268_vm11, %vm4267_vm10  ;;  %vm4339_vm10 = vcmp.eq.s32.totalorder %v21435_v18, %v22599_v27 }
 0x989   :  { %3887 = vmatpush1.bf16.msra.mxu1 %v19260_v56  ;;  %v19272_v56 = vld [vmem:[%s26576_s30 + $0x1a0] ss:$8 sps:$4 sm:$0xff]  }
 0x98a   :  { %3888 = vmatprep.subr.bf16.mxu1 %v19265_v53  ;;  %v19277_v53 = vld [vmem:[%s26576_s30 + $0x1b4] ss:$8 sps:$4 sm:$0xff]  }
 0x98b   :  { %18363 = vmatpush3.bf16.msk.msra.mxu0 %vm18362_vm1, %v26561_v50  ;;  %vm4270_vm1 = vcmp.eq.s32.totalorder %v26583_v41, %v22336_v62 }
 0x98c   :  { %18365 = vmatprep.subr.msk.bf16.mxu0 %vm18364_vm3, %v26561_v50 }
 0x98d   :  { %3889 = vmatpush1.bf16.msra.mxu1 %v19263_v2  ;;  %v19275_v2 = vld [vmem:[%s26576_s30 + $0x1b0] ss:$8 sps:$4 sm:$0xff]  }
 0x98e   :  { %3890 = vmatprep.subr.bf16.mxu1 %v19268_v52  ;;  %v19280_v52 = vld [vmem:[%s26576_s30 + $0x1c4] ss:$8 sps:$4 sm:$0xff]  }
 0x98f   :  { %18367 = vmatpush3.bf16.msk.msra.mxu0 %vm18366_vm8, %v26561_v50  ;;  %vm4321_vm8 = vcmp.eq.s32.totalorder %v20725_v20, %v22599_v27 }
 0x990   :  { %18369 = vmatprep.subr.msk.bf16.mxu0 %vm18368_vm9, %v26561_v50  ;;  %vm4338_vm9 = vcmp.eq.s32.totalorder %v21432_v37, %v22599_v27  ;;  %vm18378_vm11 = vmpackc.low %vm4321_vm8, %vm4320_vm7  ;;  %vm4343_vm7 = vcmp.eq.s32.totalorder %v21480_v3, %v22599_v27 }
 0x991   :  { %3891 = vmatpush1.bf16.msra.mxu1 %v19266_v39  ;;  %v19278_v39 = vld [vmem:[%s26576_s30 + $0x1c0] ss:$8 sps:$4 sm:$0xff]   ;;  %vm18386_vm8 = vmpackc.low %vm4325_vm5, %vm4324_vm4  ;;  %vm4347_vm4 = vcmp.eq.s32.totalorder %v21530_v24, %v22599_v27 }
 0x992   :  { %3892 = vmatprep.subr.bf16.mxu1 %v19271_v1  ;;  %v19283_v1 = vld [vmem:[%s26576_s30 + $0x1d4] ss:$8 sps:$4 sm:$0xff]  }
 0x993   :  { %18371 = vmatpush3.bf16.msk.msra.mxu0 %vm18370_vm12, %v26561_v50  ;;  %vm18380_vm12 = vmpackc.low %vm4339_vm10, %vm4338_vm9  ;;  %vm4326_vm10 = vcmp.eq.s32.totalorder %v20834_v59, %v22599_v27 }
 0x995   :  { %3893 = vmatpush1.bf16.msra.mxu1 %v19269_v16  ;;  %v19281_v16 = vld [vmem:[%s26576_s30 + $0x1d0] ss:$8 sps:$4 sm:$0xff]  }
 0x996   :  { %3894 = vmatprep.subr.bf16.mxu1 %v19274_v9  ;;  %v19286_v9 = vld [vmem:[%s26576_s30 + $0x1e4] ss:$8 sps:$4 sm:$0xff]  }
 0x999   :  { %3895 = vmatpush1.bf16.msra.mxu1 %v19272_v56  ;;  %v19284_v56 = vld [vmem:[%s26576_s30 + $0x1e0] ss:$8 sps:$4 sm:$0xff]  }
 0x99a   :  { %3896 = vmatprep.subr.bf16.mxu1 %v19277_v53  ;;  %v19289_v53 = vld [vmem:[%s26576_s30 + $0x1f4] ss:$8 sps:$4 sm:$0xff]  }
 0x99d   :  { %3897 = vmatpush1.bf16.msra.mxu1 %v19275_v2  ;;  %v19287_v2 = vld [vmem:[%s26576_s30 + $0x1f0] ss:$8 sps:$4 sm:$0xff]  }
 0x99e   :  { %3898 = vmatprep.subr.bf16.mxu1 %v19280_v52  ;;  %v19292_v52 = vld [vmem:[%s26576_s30 + $0x204] ss:$8 sps:$4 sm:$0xff]  }
 0x9a1   :  { %3899 = vmatpush1.bf16.msra.mxu1 %v19278_v39  ;;  %v19290_v39 = vld [vmem:[%s26576_s30 + $0x200] ss:$8 sps:$4 sm:$0xff]  }
 0x9a2   :  { %3900 = vmatprep.subr.bf16.mxu1 %v19283_v1  ;;  %v19295_v1 = vld [vmem:[%s26576_s30 + $0x214] ss:$8 sps:$4 sm:$0xff]  }
 0x9a5   :  { %3901 = vmatpush1.bf16.msra.mxu1 %v19281_v16  ;;  %v19293_v16 = vld [vmem:[%s26576_s30 + $0x210] ss:$8 sps:$4 sm:$0xff]  }
 0x9a6   :  { %3902 = vmatprep.subr.bf16.mxu1 %v19286_v9  ;;  %v19298_v9 = vld [vmem:[%s26576_s30 + $0x224] ss:$8 sps:$4 sm:$0xff]  }
 0x9a9   :  { %3903 = vmatpush1.bf16.msra.mxu1 %v19284_v56  ;;  %v19296_v56 = vld [vmem:[%s26576_s30 + $0x220] ss:$8 sps:$4 sm:$0xff]  }
 0x9aa   :  { %3904 = vmatprep.subr.bf16.mxu1 %v19289_v53  ;;  %v19304_v53 = vld [vmem:[%s26576_s30 + $0x244] ss:$8 sps:$4 sm:$0xff]  }
 0x9ad   :  { %3905 = vmatpush1.bf16.msra.mxu1 %v19287_v2  ;;  %v19302_v2 = vld [vmem:[%s26576_s30 + $0x240] ss:$8 sps:$4 sm:$0xff]  }
 0x9ae   :  { %4184 = vmatprep.subr.bf16.mxu1 %v19292_v52  ;;  %v19313_v52 = vld [vmem:[%s26576_s30 + $0x274] ss:$8 sps:$4 sm:$0xff]  }
 0x9b0   :  { %3907 = vmatmul.mubr.bf16.vlgmr.msra.gmra.mrb[88].mxu1 %v22160_v44  ;;  %v19301_v44 = vld [vmem:[%s26576_s30 + $0x234] ss:$8 sps:$4 sm:$0xff]  }
 0x9b1   :  { %3916 = vmatprep.mubr.bf16.mxu1 %v22170_v4  ;;  %4185 = vmatpush1.bf16.msra.mxu1 %v19290_v39  ;;  %v19299_v4 = vld [vmem:[%s26576_s30 + $0x230] ss:$8 sps:$4 sm:$0xff]  }
 0x9b2   :  { %4186 = vmatprep.subr.bf16.mxu1 %v19295_v1  ;;  %v19311_v39 = vld [vmem:[%s26576_s30 + $0x270] ss:$8 sps:$4 sm:$0xff]   ;;  %v19316_v1 = vld [vmem:[%s26576_s30 + $0x284] ss:$8 sps:$4 sm:$0xff]  }
 0x9b5   :  { %4187 = vmatpush1.bf16.msra.mxu1 %v19293_v16  ;;  %v19314_v16 = vld [vmem:[%s26576_s30 + $0x280] ss:$8 sps:$4 sm:$0xff]  }
 0x9b6   :  { %4188 = vmatprep.subr.bf16.mxu1 %v19298_v9  ;;  %v19319_v9 = vld [vmem:[%s26576_s30 + $0x294] ss:$8 sps:$4 sm:$0xff]  }
 0x9b8   :  { %3917 = vmatmul.mubr.bf16.gmra.mrb[92].mxu1 %v22168_v29  ;;  %v19307_v29 = vld [vmem:[%s26576_s30 + $0x254] ss:$8 sps:$4 sm:$0xff]  }
 0x9b9   :  { %4189 = vmatpush1.bf16.msra.mxu1 %v19296_v56  ;;  %4216 = vmatprep.mubr.bf16.mxu1 %v3989_v57  ;;  %v19308_v57 = vld [vmem:[%s26576_s30 + $0x260] ss:$8 sps:$4 sm:$0xff]   ;;  %v19317_v56 = vld [vmem:[%s26576_s30 + $0x290] ss:$8 sps:$4 sm:$0xff]  }
 0x9ba   :  { %4190 = vmatprep.subr.bf16.mxu1 %v19301_v44  ;;  %v19322_v44 = vld [vmem:[%s26576_s30 + $0x2a4] ss:$8 sps:$4 sm:$0xff]  }
 0x9bd   :  { %4191 = vmatpush1.bf16.msra.mxu1 %v19299_v4  ;;  %v19320_v4 = vld [vmem:[%s26576_s30 + $0x2a0] ss:$8 sps:$4 sm:$0xff]  }
 0x9be   :  { %4192 = vmatprep.subr.bf16.mxu1 %v19304_v53  ;;  %v19325_v53 = vld [vmem:[%s26576_s30 + $0x2b4] ss:$8 sps:$4 sm:$0xff]  }
 0x9c1   :  { %4193 = vmatpush1.bf16.msra.mxu1 %v19302_v2  ;;  %v19323_v2 = vld [vmem:[%s26576_s30 + $0x2b0] ss:$8 sps:$4 sm:$0xff]  }
 0x9c2   :  { %4194 = vmatprep.subr.bf16.mxu1 %v19307_v29  ;;  %v19328_v29 = vld [vmem:[%s26576_s30 + $0x2c4] ss:$8 sps:$4 sm:$0xff]  }
 0x9c5   :  { %4195 = vmatpush1.bf16.msra.mxu1 %v19305_v6  ;;  %v19326_v6 = vld [vmem:[%s26576_s30 + $0x2c0] ss:$8 sps:$4 sm:$0xff]  }
 0x9c6   :  { %4196 = vmatprep.subr.bf16.mxu1 %v19310_v38  ;;  %v19331_v38 = vld [vmem:[%s26576_s30 + $0x2d4] ss:$8 sps:$4 sm:$0xff]  }
 0x9c9   :  { %4197 = vmatpush1.bf16.msra.mxu1 %v19308_v57  ;;  %v19329_v57 = vld [vmem:[%s26576_s30 + $0x2d0] ss:$8 sps:$4 sm:$0xff]  }
 0x9ca   :  { %4198 = vmatprep.subr.bf16.mxu1 %v19313_v52  ;;  %v19334_v52 = vld [vmem:[%s26576_s30 + $0x2e4] ss:$8 sps:$4 sm:$0xff]  }
 0x9cd   :  { %4199 = vmatpush1.bf16.msra.mxu1 %v19311_v39  ;;  %v19332_v39 = vld [vmem:[%s26576_s30 + $0x2e0] ss:$8 sps:$4 sm:$0xff]  }
 0x9ce   :  { %4200 = vmatprep.subr.bf16.mxu1 %v19316_v1  ;;  %v19337_v1 = vld [vmem:[%s26576_s30 + $0x2f4] ss:$8 sps:$4 sm:$0xff]  }
 0x9d1   :  { %4201 = vmatpush1.bf16.msra.mxu1 %v19314_v16  ;;  %v19335_v16 = vld [vmem:[%s26576_s30 + $0x2f0] ss:$8 sps:$4 sm:$0xff]  }
 0x9d2   :  { %4202 = vmatprep.subr.bf16.mxu1 %v19319_v9  ;;  %v26580_v9 = vld [vmem:[#allocation14_spill] sm:$0xff] }
 0x9d3   :  { %vm4285_vm13 = vcmp.eq.s32.totalorder %v26580_v9, %v22336_v62 }
 0x9d5   :  { %4203 = vmatpush1.bf16.msra.mxu1 %v19317_v56  ;;  %v26581_v56 = vld [vmem:[#allocation15_spill] sm:$0xff] }
 0x9d6   :  { %4204 = vmatprep.subr.bf16.mxu1 %v19322_v44  ;;  %vm4286_vm14 = vcmp.eq.s32.totalorder %v26581_v56, %v22336_v62  ;;  %v26582_v44 = vld [vmem:[#allocation16_spill] sm:$0xff] }
 0x9d7   :  { %vm18372_vm15 = vmpackc.low %vm4286_vm14, %vm4285_vm13  ;;  %vm4269_vm2 = vcmp.eq.s32.totalorder %v26582_v44, %v22336_v62  ;;  %vm4322_vm13 = vcmp.eq.s32.totalorder %v20761_v33, %v22599_v27  ;;  %vm4323_vm14 = vcmp.eq.s32.totalorder %v20764_v34, %v22599_v27 }
 0x9d8   :  { %18373 = vmatprep.subr.msk.bf16.mxu0 %vm18372_vm15, %v26561_v50  ;;  %vm18374_vm3 = vmpackc.low %vm4270_vm1, %vm4269_vm2  ;;  %vm4340_vm15 = vcmp.eq.s32.totalorder %v21444_v55, %v22599_v27  ;;  %vm4341_vm2 = vcmp.eq.s32.totalorder %v21447_v36, %v22599_v27 }
 0x9d9   :  { %4205 = vmatpush1.bf16.msra.mxu1 %v19320_v4  ;;  %18375 = vmatpush3.bf16.msk.msra.mxu0 %vm18374_vm3, %v26561_v50  ;;  %vm18382_vm1 = vmpackc.low %vm4323_vm14, %vm4322_vm13  ;;  %vm4345_vm13 = vcmp.eq.s32.totalorder %v21502_v8, %v22599_v27 }
 0x9da   :  { %4206 = vmatprep.subr.bf16.mxu1 %v19325_v53  ;;  %18377 = vmatprep.subr.msk.bf16.mxu0 %vm18376_vm6, %v26561_v50  ;;  %vm18384_vm3 = vmpackc.low %vm4341_vm2, %vm4340_vm15  ;;  %vm4342_vm6 = vcmp.eq.s32.totalorder %v21477_v32, %v22599_v27  ;;  %vm4328_vm2 = vcmp.eq.s32.totalorder %v21514_v40, %v22599_v27 }
 0x9db   :  { %vm18388_vm9 = vmpackc.low %vm4343_vm7, %vm4342_vm6  ;;  %vm4330_vm7 = vcmp.eq.s32.totalorder %v21542_v11, %v22599_v27 }
 0x9dd   :  { %4207 = vmatpush1.bf16.msra.mxu1 %v19323_v2 }
 0x9de   :  { %4208 = vmatprep.subr.bf16.mxu1 %v19328_v29 }
 0x9e1   :  { %4209 = vmatpush1.bf16.msra.mxu1 %v19326_v6 }
 0x9e2   :  { %4210 = vmatprep.subr.bf16.mxu1 %v19331_v38 }
 0x9e5   :  { %4211 = vmatpush1.bf16.msra.mxu1 %v19329_v57 }
 0x9e6   :  { %4212 = vmatprep.subr.bf16.mxu1 %v19334_v52 }
 0x9e9   :  { %4213 = vmatpush1.bf16.msra.mxu1 %v19332_v39 }
 0x9ea   :  { %4214 = vmatprep.subr.bf16.mxu1 %v19337_v1 }
 0x9ed   :  { %4215 = vmatpush1.bf16.msra.mxu1 %v19335_v16 }
 0x9ee   :  { %17990 = vmatprep.subr.bf16.mxu1 %v26572_v26 }
 0x9f0   :  { %4217 = vmatmul.mubr.bf16.vlgmr.msra.gmra.mrb[88].mxu1 %v3988_v43  ;;  %v16172_v43 = vld [vmem:[%s26482_s14 + $0x3] ss:$8 sm:$0x3] }
 0x9f1   :  { %4226 = vmatprep.mubr.bf16.mxu1 %v3991_v63  ;;  %v3667_v5 = vrot.slane %v16172_v43, %v21164_v0  ;;  %v3671_v15 = vrot.slane %v16172_v43, %v21170_v7 }
 0x9f8   :  { %4227 = vmatmul.mubr.bf16.gmra.mrb[92].mxu1 %v3990_v42 }
 0xac3   :  { %v4218_v19 = vpop.f32.mrb[88].mxu1 }
 0xac4   :  { %v22612_v42 = vadd.f32 %v4218_v19, %v3667_v5  ;;  %v4220_v30 = vpop.f32.mrb[89].mxu1 }
 0xac5   :  { %v22614_v63 = vadd.f32 %v4220_v30, %v3671_v15  ;;  %v4222_v62 = vpop.f32.mrb[90].mxu1 }
 0xac6   :  { %v4224_v4 = vpop.f32.mrb[91].mxu1  ;;  %v4245_v29 = vmax.f32 %v22612_v42, 0.0  ;;  %v22628_v6 = vadd.f32 %v4222_v62, %v3667_v5 }
 0xac7   :  { %v4246_v53 = vmax.f32 %v22614_v63, 0.0  ;;  %v22625_v2 = vadd.f32 %v4224_v4, %v3671_v15 }
 0xac8   :  { %v4247_v52 = vmax.f32 %v22628_v6, 0.0 }
 0xac9   :  { %v4248_v38 = vmax.f32 %v22625_v2, 0.0  ;;  %4448 = vmatprep.mubr.f32.mxu0 %v4246_v53 }
 0xaca   :  { %4449 = vmatmul.mubr.f32.vlgmr.msra.gmra.mrb[80].mxu0 %v4245_v29 }
 0xacb   :  { %18379 = vmatpush3.bf16.msk.msra.mxu0 %vm18378_vm11, %v26561_v50  ;;  %v4228_v57 = vpop.f32.mrb[92].mxu1  ;;  %4453 = vmatprep.mubr.f32.mxu0 %v4248_v38  ;;  %vm4327_vm11 = vcmp.eq.s32.totalorder %v20837_v60, %v22599_v27 }
 0xacc   :  { %v22645_v39 = vadd.f32 %v4228_v57, %v3667_v5  ;;  %v4230_v1 = vpop.f32.mrb[93].mxu1  ;;  %18381 = vmatprep.subr.msk.bf16.mxu0 %vm18380_vm12, %v26561_v50  ;;  %vm4344_vm12 = vcmp.eq.s32.totalorder %v21499_v46, %v22599_v27  ;;  %vm18390_vm14 = vmpackc.low %vm4327_vm11, %vm4326_vm10  ;;  %vm4349_vm10 = vcmp.eq.s32.totalorder %v26577_v54, %v22599_v27 }
 0xacd   :  { %v22648_v16 = vadd.f32 %v4230_v1, %v3671_v15  ;;  %v4232_v43 = vpop.f32.mrb[94].mxu1  ;;  %vm18392_vm15 = vmpackc.low %vm4345_vm13, %vm4344_vm12  ;;  %vm4332_vm13 = vcmp.eq.s32.totalorder %v26578_v49, %v22599_v27 }
 0xace   :  { %v4234_v19 = vpop.f32.mrb[95].mxu1  ;;  %4454 = vmatmul.mubr.f32.gmra.mrb[82].mxu0 %v4247_v52  ;;  %v4249_v62 = vmax.f32 %v22645_v39, 0.0  ;;  %v18668_v4 = vadd.f32 %v4232_v43, %v3667_v5 }
 0xacf   :  { %v4250_v30 = vmax.f32 %v22648_v16, 0.0  ;;  %v18669_v63 = vadd.f32 %v4234_v19, %v3671_v15  ;;  %18383 = vmatpush3.bf16.msk.msra.mxu0 %vm18382_vm1, %v26561_v50  ;;  %vm4329_vm1 = vcmp.eq.s32.totalorder %v21517_v58, %v22599_v27 }
 0xad0   :  { %18385 = vmatprep.subr.msk.bf16.mxu0 %vm18384_vm3, %v26561_v50  ;;  %v4251_v5 = vmax.f32 %v18668_v4, 0.0  ;;  %vm4346_vm3 = vcmp.eq.s32.totalorder %v21527_v17, %v22599_v27  ;;  %vm18394_vm5 = vmpackc.low %vm4329_vm1, %vm4328_vm2  ;;  %vm4351_vm2 = vcmp.eq.s32.totalorder %v26581_v56, %v22599_v27 }
 0xad1   :  { %v4252_v57 = vmax.f32 %v18669_v63, 0.0  ;;  %4458 = vmatprep.mubr.f32.mxu0 %v4250_v30  ;;  %vm18396_vm6 = vmpackc.low %vm4347_vm4, %vm4346_vm3  ;;  %vm4334_vm4 = vcmp.eq.s32.totalorder %v26582_v44, %v22599_v27 }
 0xad2   :  { %4459 = vmatmul.mubr.f32.gmra.mrb[84].mxu0 %v4249_v62 }
 0xad3   :  { %18387 = vmatpush3.bf16.msk.msra.mxu0 %vm18386_vm8, %v26561_v50  ;;  %4463 = vmatprep.mubr.f32.mxu0 %v4252_v57  ;;  %vm4331_vm8 = vcmp.eq.s32.totalorder %v21545_v22, %v22599_v27 }
 0xad4   :  { %18389 = vmatprep.subr.msk.bf16.mxu0 %vm18388_vm9, %v26561_v50  ;;  %vm4348_vm9 = vcmp.eq.s32.totalorder %v21555_v10, %v22599_v27  ;;  %vm18398_vm11 = vmpackc.low %vm4331_vm8, %vm4330_vm7  ;;  %vm20549_vm7 = vmmov 0   ;;  %vm4721_vm8 = vcmask 130048  }
 0xad5   :  { %vm18400_vm12 = vmpackc.low %vm4349_vm10, %vm4348_vm9  ;;  %17992 = vmatprep.mubr.msk.bf16.mxu1 %vm20549_vm7, %v26572_v26 }
 0xad6   :  { %4464 = vmatmul.mubr.f32.gmra.mrb[86].mxu0 %v4251_v5 }
 0xad7   :  { %18391 = vmatpush3.bf16.msk.msra.mxu0 %vm18390_vm14, %v26561_v50  ;;  %4533 = vmatprep.mubr.f32.mxu0 %v4246_v53  ;;  %vm4333_vm14 = vcmp.eq.s32.totalorder %v26579_v61, %v22599_v27 }
 0xad8   :  { %18393 = vmatprep.subr.msk.bf16.mxu0 %vm18392_vm15, %v26561_v50  ;;  %vm4350_vm15 = vcmp.eq.s32.totalorder %v26580_v9, %v22599_v27  ;;  %vm18402_vm1 = vmpackc.low %vm4333_vm14, %vm4332_vm13 }
 0xad9   :  { %vm18404_vm3 = vmpackc.low %vm4351_vm2, %vm4350_vm15 }
 0xadb   :  { %18395 = vmatpush3.bf16.msk.msra.mxu0 %vm18394_vm5, %v26561_v50  ;;  %vm4335_vm5 = vcmp.eq.s32.totalorder %v26583_v41, %v22599_v27  ;;  %v26584_v27 = vld [vmem:[#allocation18_spill] sm:$0xff] }
 0xadc   :  { %18397 = vmatprep.subr.msk.bf16.mxu0 %vm18396_vm6, %v26561_v50  ;;  %vm18406_vm6 = vmpackc.low %vm4335_vm5, %vm4334_vm4 }
 0xadf   :  { %18399 = vmatpush3.bf16.msk.msra.mxu0 %vm18398_vm11, %v26561_v50 }
 0xae0   :  { %18401 = vmatprep.subr.msk.bf16.mxu0 %vm18400_vm12, %v26561_v50 }
 0xae3   :  { %18403 = vmatpush3.bf16.msk.msra.mxu0 %vm18402_vm1, %v26561_v50 }
 0xae4   :  { %18405 = vmatprep.subr.msk.bf16.mxu0 %vm18404_vm3, %v26561_v50 }
 0xae7   :  { %18407 = vmatpush3.bf16.msk.msra.mxu0 %vm18406_vm6, %v26561_v50 }
 0xaea   :  { %4534 = vmatmul.mubr.f32.vlgmr.msra.gmra.mrb[88].mxu0 %v4245_v29 }
 0xaeb   :  { %4538 = vmatprep.mubr.f32.mxu0 %v4248_v38 }
 0xaee   :  { %4539 = vmatmul.mubr.f32.gmra.mrb[90].mxu0 %v4247_v52 }
 0xaef   :  { %4543 = vmatprep.mubr.f32.mxu0 %v4250_v30 }
 0xaf2   :  { %4544 = vmatmul.mubr.f32.gmra.mrb[92].mxu0 %v4249_v62 }
 0xaf3   :  { %4548 = vmatprep.mubr.f32.mxu0 %v4252_v57 }
 0xaf6   :  { %4549 = vmatmul.mubr.f32.gmra.mrb[94].mxu0 %v4251_v5 }
 0xaf7   :  { %17970 = vmatprep.mubr.msk.f32.mxu0 %vm26534_vm0, %v26584_v27 }
 0xb9d   :  { %v17507_v15 = vpop.f32.mrb[80].mxu0 }
 0xb9e   :  { %v17508_v53 = vpop.f32.mrb[81].mxu0 }
 0xb9f   :  { %v17509_v39 = vadd.f32 %v17508_v53, %v17507_v15 }
 0xba1   :  { %v17510_v1 = vpop.f32.mrb[82].mxu0 }
 0xba2   :  { %v17511_v16 = vpop.f32.mrb[83].mxu0 }
 0xba3   :  { %v17512_v42 = vadd.f32 %v17511_v16, %v17510_v1 }
 0xba5   :  { %v17513_v29 = vpop.f32.mrb[84].mxu0 }
 0xba6   :  { %v17514_v43 = vpop.f32.mrb[85].mxu0 }
 0xba7   :  { %v17515_v2 = vadd.f32 %v17514_v43, %v17513_v29 }
 0xba9   :  { %v17516_v38 = vpop.f32.mrb[86].mxu0 }
 0xbaa   :  { %v17517_v19 = vpop.f32.mrb[87].mxu0 }
 0xbab   :  { %v17518_v6 = vadd.f32 %v17517_v19, %v17516_v38  ;;  %v19343_v19 = vld [vmem:[%s26585_s5 + $0x14] ss:$8 sps:$4 sm:$0xff]  }
 0xbbd   :  { %v17551_v52 = vpop.f32.mrb[88].mxu0 }
 0xbbe   :  { %v17552_v30 = vpop.f32.mrb[89].mxu0 }
 0xbbf   :  { %v17553_v63 = vadd.f32 %v17552_v30, %v17551_v52  ;;  %v19346_v52 = vld [vmem:[%s26585_s5 + $0x24] ss:$8 sps:$4 sm:$0xff]   ;;  %v19344_v30 = vld [vmem:[%s26585_s5 + $0x20] ss:$8 sps:$4 sm:$0xff]  }
 0xbc1   :  { %v4554_v62 = vmax.f32 %v17509_v39, %v17553_v63  ;;  %v17554_v4 = vpop.f32.mrb[90].mxu0  ;;  %v19349_v63 = vld [vmem:[%s26585_s5 + $0x34] ss:$8 sps:$4 sm:$0xff]  }
 0xbc2   :  { %v17555_v57 = vpop.f32.mrb[91].mxu0 }
 0xbc3   :  { %v17556_v5 = vadd.f32 %v17555_v57, %v17554_v4  ;;  %v19352_v4 = vld [vmem:[%s26585_s5 + $0x44] ss:$8 sps:$4 sm:$0xff]   ;;  %v19350_v57 = vld [vmem:[%s26585_s5 + $0x40] ss:$8 sps:$4 sm:$0xff]  }
 0xbc5   :  { %v4555_v27 = vmax.f32 %v17512_v42, %v17556_v5  ;;  %v17557_v41 = vpop.f32.mrb[92].mxu0  ;;  %v19340_v42 = vld [vmem:[%s26585_s5 + $0x4] ss:$8 sps:$4 sm:$0xff]   ;;  %v19355_v5 = vld [vmem:[%s26585_s5 + $0x54] ss:$8 sps:$4 sm:$0xff]  }
 0xbc6   :  { %v17558_v44 = vpop.f32.mrb[93].mxu0 }
 0xbc7   :  { %v18408_v15 = vpack.c.bf16 %v4555_v27, %v4554_v62  ;;  %v17559_v53 = vadd.f32 %v17558_v44, %v17557_v41  ;;  %v19347_v62 = vld [vmem:[%s26585_s5 + $0x30] ss:$8 sps:$4 sm:$0xff]  }
 0xbc9   :  { %v4556_v56 = vmax.f32 %v17515_v2, %v17559_v53  ;;  %v17560_v1 = vpop.f32.mrb[94].mxu0  ;;  %18409 = vmatprep.subr.bf16.mxu0 %v18408_v15  ;;  %v19358_v53 = vld [vmem:[%s26585_s5 + $0x64] ss:$8 sps:$4 sm:$0xff]  }
 0xbca   :  { %v17561_v16 = vpop.f32.mrb[95].mxu0  ;;  %18411 = vmatpush3.bf16.msra.mxu0 %v18408_v15 }
 0xbcb   :  { %v17562_v29 = vadd.f32 %v17561_v16, %v17560_v1  ;;  %v19356_v1 = vld [vmem:[%s26585_s5 + $0x60] ss:$8 sps:$4 sm:$0xff]   ;;  %v19361_v16 = vld [vmem:[%s26585_s5 + $0x74] ss:$8 sps:$4 sm:$0xff]  }
 0xbcd   :  { %v4557_v43 = vmax.f32 %v17518_v6, %v17562_v29  ;;  %v19341_v6 = vld [vmem:[%s26585_s5 + $0x10] ss:$8 sps:$4 sm:$0xff]  }
 0xbce   :  { %v19359_v29 = vld [vmem:[%s26585_s5 + $0x70] ss:$8 sps:$4 sm:$0xff]  }
 0xbcf   :  { %v18412_v38 = vpack.c.bf16 %v4557_v43, %v4556_v56  ;;  %v19364_v43 = vld [vmem:[%s26585_s5 + $0x84] ss:$8 sps:$4 sm:$0xff]  }
 0xbd1   :  { %18413 = vmatprep.subr.bf16.mxu0 %v18412_v38 }
 0xbd2   :  { %18415 = vmatpush3.bf16.msra.mxu0 %v18412_v38 }
 0xbd3   :  { %18417 = vmatprep.subr.bf16.mxu0 %v18408_v15 }
 0xbd5   :  { %17971 = vmatmul.mubr.msk.f32.vlgmr.msra.gmra.mrb[96].mxu0 %vm26534_vm0, %v21943_v51 }
 0xbd6   :  { %18419 = vmatpush3.bf16.msra.mxu0 %v18408_v15  ;;  %17981 = vmatprep.mubr.msk.f32.mxu0 %vm26534_vm0, %v21953_v25  ;;  %v19353_v15 = vld [vmem:[%s26585_s5 + $0x50] ss:$8 sps:$4 sm:$0xff]  }
 0xbd7   :  { %18421 = vmatprep.subr.bf16.mxu0 %v18412_v38 }
 0xbda   :  { %18423 = vmatpush3.bf16.msra.mxu0 %v18412_v38 }
 0xbdb   :  { %17984 = vmatprep.subr.bf16.mxu0 %v26572_v26 }
 0xbdd   :  { %17982 = vmatmul.mubr.msk.f32.vlgmr.msra.gmra.mrb[98].mxu0 %vm26534_vm0, %v21961_v21  ;;  %v19338_v21 = vld [vmem:[%s26585_s5] ss:$8 sps:$4 sm:$0xff]  }
 0xbde   :  { %17986 = vmatprep.mubr.msk.bf16.mxu0 %vm20549_vm7, %v26572_v26 }
 0xca8   :  { %v17972_v56 = vpop.f32.mrb[96].mxu0 }
 0xca9   :  { %v4628_v51 = vpop.f32.mrb[97].mxu0 }
 0xcb0   :  { %v17983_v44 = vpop.f32.mrb[98].mxu0 }
 0xcb1   :  { %v4717_v41 = vmax.f32 %v17972_v56, %v17983_v44  ;;  %v4707_v27 = vpop.f32.mrb[99].mxu0 }
 0xcb2   :  { %v4716_v39 = vmax.f32 %v4628_v51, %v4707_v27  ;;  %v19362_v27 = vld [vmem:[%s26585_s5 + $0x80] ss:$8 sps:$4 sm:$0xff]  }
 0xcb4   :  { %v22733_v2 = vpack.c.bf16 %v4717_v41, %v4716_v39 }
 0xcb6   :  { %17985 = vmatpush3.bf16.msra.mxu0 %v22733_v2  ;;  %17991 = vmatpush3.bf16.msra.mxu1 %v22733_v2 }
 0xcb7   :  { %4862 = vmatprep.subr.bf16.mxu0 %v19340_v42 }
 0xcb9   :  { %17987 = vmatmul.mubr.msk.bf16.vlgmr.msra.gmra.mrb[100].mxu0 %vm4721_vm8, %v20789_v45  ;;  %17993 = vmatmul.mubr.msk.bf16.vlgmr.msra.gmra.mrb[96].mxu1 %vm4721_vm8, %v20902_v31 }
 0xcba   :  { %4863 = vmatpush1.bf16.msra.mxu0 %v19338_v21  ;;  %4894 = vmatprep.mubr.bf16.mxu0 %v26556_v35 }
 0xcbb   :  { %4864 = vmatprep.subr.bf16.mxu0 %v19343_v19  ;;  %5290 = vmatprep.mubr.bf16.mxu1 %v26556_v35  ;;  %v19367_v19 = vld [vmem:[%s26585_s5 + $0x94] ss:$8 sps:$4 sm:$0xff]  }
 0xcbe   :  { %4865 = vmatpush1.bf16.msra.mxu0 %v19341_v6 }
 0xcbf   :  { %4866 = vmatprep.subr.bf16.mxu0 %v19346_v52 }
 0xcc2   :  { %4867 = vmatpush1.bf16.msra.mxu0 %v19344_v30  ;;  %v19365_v30 = vld [vmem:[%s26585_s5 + $0x90] ss:$8 sps:$4 sm:$0xff]  }
 0xcc3   :  { %4868 = vmatprep.subr.bf16.mxu0 %v19349_v63  ;;  %v19370_v63 = vld [vmem:[%s26585_s5 + $0xa4] ss:$8 sps:$4 sm:$0xff]  }
 0xcc6   :  { %4869 = vmatpush1.bf16.msra.mxu0 %v19347_v62  ;;  %v19368_v62 = vld [vmem:[%s26585_s5 + $0xa0] ss:$8 sps:$4 sm:$0xff]  }
 0xcc7   :  { %4870 = vmatprep.subr.bf16.mxu0 %v19352_v4  ;;  %v19373_v4 = vld [vmem:[%s26585_s5 + $0xb4] ss:$8 sps:$4 sm:$0xff]  }
 0xcca   :  { %4871 = vmatpush1.bf16.msra.mxu0 %v19350_v57  ;;  %v19371_v57 = vld [vmem:[%s26585_s5 + $0xb0] ss:$8 sps:$4 sm:$0xff]  }
 0xccb   :  { %4872 = vmatprep.subr.bf16.mxu0 %v19355_v5  ;;  %v19376_v5 = vld [vmem:[%s26585_s5 + $0xc4] ss:$8 sps:$4 sm:$0xff]  }
 0xcce   :  { %4873 = vmatpush1.bf16.msra.mxu0 %v19353_v15  ;;  %v19374_v15 = vld [vmem:[%s26585_s5 + $0xc0] ss:$8 sps:$4 sm:$0xff]  }
 0xccf   :  { %4874 = vmatprep.subr.bf16.mxu0 %v19358_v53  ;;  %v19379_v53 = vld [vmem:[%s26585_s5 + $0xd4] ss:$8 sps:$4 sm:$0xff]  }
 0xcd2   :  { %4875 = vmatpush1.bf16.msra.mxu0 %v19356_v1  ;;  %v19377_v1 = vld [vmem:[%s26585_s5 + $0xd0] ss:$8 sps:$4 sm:$0xff]  }
 0xcd3   :  { %4876 = vmatprep.subr.bf16.mxu0 %v19361_v16  ;;  %v19382_v16 = vld [vmem:[%s26585_s5 + $0xe4] ss:$8 sps:$4 sm:$0xff]  }
 0xcd6   :  { %4877 = vmatpush1.bf16.msra.mxu0 %v19359_v29  ;;  %v19380_v29 = vld [vmem:[%s26585_s5 + $0xe0] ss:$8 sps:$4 sm:$0xff]  }
 0xcd7   :  { %5016 = vmatprep.subr.bf16.mxu0 %v19364_v43  ;;  %v19385_v43 = vld [vmem:[%s26585_s5 + $0xf4] ss:$8 sps:$4 sm:$0xff]  }
 0xd8c   :  { %v4758_v38 = vpop.f32.mrb[100].mxu0  ;;  %v22791_v56 = vpop.f32.mrb[96].mxu1 }
 0xd8d   :  { %v17988_v51 = vpop.f32.mrb[101].mxu0  ;;  %v17994_v44 = vpop.f32.mrb[97].mxu1 }
 0xd8e   :  { %v4761_v41 = vpop.f32.mrb[102].mxu0  ;;  %v22796_v39 = vpop.f32.mrb[98].mxu1  ;;  %v19388_v51 = vld [vmem:[%s26585_s5 + $0x104] ss:$8 sps:$4 sm:$0xff]   ;;  %v19386_v44 = vld [vmem:[%s26585_s5 + $0x100] ss:$8 sps:$4 sm:$0xff]  }
 0xd8f   :  { %v4765_v42 = vpack.c.bf16 %v4761_v41, %v4758_v38  ;;  %v17989_v21 = vpop.f32.mrb[103].mxu0  ;;  %v5106_v6 = vpack.c.bf16 %v22796_v39, %v22791_v56  ;;  %v17995_v52 = vpop.f32.mrb[99].mxu1  ;;  %v19383_v38 = vld [vmem:[%s26585_s5 + $0xf0] ss:$8 sps:$4 sm:$0xff]   ;;  %v19391_v41 = vld [vmem:[%s26585_s5 + $0x114] ss:$8 sps:$4 sm:$0xff]  }
 0xd90   :  { %v19392_v21 = vld [vmem:[%s26585_s5 + $0x120] ss:$8 sps:$4 sm:$0xff]   ;;  %v19400_v52 = vld [vmem:[%s26585_s5 + $0x144] ss:$8 sps:$4 sm:$0xff]  }
 0xd91   :  { %4895 = vmatmul.mubr.bf16.vlgmr.msra.gmra.mrb[104].mxu0 %v4765_v42  ;;  %v19394_v42 = vld [vmem:[%s26585_s5 + $0x124] ss:$8 sps:$4 sm:$0xff]  }
 0xd92   :  { %5017 = vmatpush1.bf16.msra.mxu0 %v19362_v27  ;;  %5048 = vmatprep.mubr.bf16.mxu0 %v26556_v35  ;;  %v19389_v27 = vld [vmem:[%s26585_s5 + $0x110] ss:$8 sps:$4 sm:$0xff]  }
 0xd93   :  { %5018 = vmatprep.subr.bf16.mxu0 %v19367_v19  ;;  %v19395_v19 = vld [vmem:[%s26585_s5 + $0x130] ss:$8 sps:$4 sm:$0xff]  }
 0xd96   :  { %5019 = vmatpush1.bf16.msra.mxu0 %v19365_v30  ;;  %v19398_v30 = vld [vmem:[%s26585_s5 + $0x140] ss:$8 sps:$4 sm:$0xff]  }
 0xd97   :  { %5020 = vmatprep.subr.bf16.mxu0 %v19370_v63  ;;  %v19403_v63 = vld [vmem:[%s26585_s5 + $0x154] ss:$8 sps:$4 sm:$0xff]  }
 0xd9a   :  { %5021 = vmatpush1.bf16.msra.mxu0 %v19368_v62  ;;  %v19401_v62 = vld [vmem:[%s26585_s5 + $0x150] ss:$8 sps:$4 sm:$0xff]  }
 0xd9b   :  { %5022 = vmatprep.subr.bf16.mxu0 %v19373_v4  ;;  %v19406_v4 = vld [vmem:[%s26585_s5 + $0x164] ss:$8 sps:$4 sm:$0xff]  }
 0xd9e   :  { %5023 = vmatpush1.bf16.msra.mxu0 %v19371_v57  ;;  %v19404_v57 = vld [vmem:[%s26585_s5 + $0x160] ss:$8 sps:$4 sm:$0xff]  }
 0xd9f   :  { %5024 = vmatprep.subr.bf16.mxu0 %v19376_v5  ;;  %v19409_v5 = vld [vmem:[%s26585_s5 + $0x174] ss:$8 sps:$4 sm:$0xff]  }
 0xda2   :  { %5025 = vmatpush1.bf16.msra.mxu0 %v19374_v15  ;;  %v19407_v15 = vld [vmem:[%s26585_s5 + $0x170] ss:$8 sps:$4 sm:$0xff]  }
 0xda3   :  { %5026 = vmatprep.subr.bf16.mxu0 %v19379_v53  ;;  %v16341_v53 = vld [vmem:[%s26482_s14 + $0x4] ss:$8 sm:$0x3] }
 0xda6   :  { %5027 = vmatpush1.bf16.msra.mxu0 %v19377_v1  ;;  %v4909_v1 = vrot.slane %v16341_v53, %v21164_v0 }
 0xda7   :  { %5028 = vmatprep.subr.bf16.mxu0 %v19382_v16  ;;  %v4913_v16 = vrot.slane %v16341_v53, %v21170_v7  ;;  %v19424_v53 = vld [vmem:[%s26586_s2 + $0x44] ss:$8 sps:$4 sm:$0xff]  }
 0xdaa   :  { %5029 = vmatpush1.bf16.msra.mxu0 %v19380_v29 }
 0xdab   :  { %5030 = vmatprep.subr.bf16.mxu0 %v19385_v43 }
 0xdae   :  { %5031 = vmatpush1.bf16.msra.mxu0 %v19383_v38 }
 0xdaf   :  { %5203 = vmatprep.subr.bf16.mxu0 %v19388_v51 }
 0xdb1   :  { %5049 = vmatmul.mubr.bf16.vlgmr.msra.gmra.mrb[104].mxu0 %v22733_v2  ;;  %v19397_v2 = vld [vmem:[%s26585_s5 + $0x134] ss:$8 sps:$4 sm:$0xff]  }
 0xdb2   :  { %5204 = vmatpush1.bf16.msra.mxu0 %v19386_v44  ;;  %5235 = vmatprep.mubr.bf16.mxu0 %v26556_v35 }
 0xdb3   :  { %5205 = vmatprep.subr.bf16.mxu0 %v19391_v41 }
 0xdb6   :  { %5206 = vmatpush1.bf16.msra.mxu0 %v19389_v27 }
 0xdb7   :  { %5207 = vmatprep.subr.bf16.mxu0 %v19394_v42 }
 0xdba   :  { %5208 = vmatpush1.bf16.msra.mxu0 %v19392_v21 }
 0xdbb   :  { %5209 = vmatprep.subr.bf16.mxu0 %v19397_v2 }
 0xdbe   :  { %5210 = vmatpush1.bf16.msra.mxu0 %v19395_v19 }
 0xdbf   :  { %5211 = vmatprep.subr.bf16.mxu0 %v19400_v52  ;;  %v19412_v52 = vld [vmem:[%s26586_s2 + $0x4] ss:$8 sps:$4 sm:$0xff]  }
 0xdc2   :  { %5212 = vmatpush1.bf16.msra.mxu0 %v19398_v30  ;;  %v19410_v30 = vld [vmem:[%s26586_s2] ss:$8 sps:$4 sm:$0xff]  }
 0xdc3   :  { %5213 = vmatprep.subr.bf16.mxu0 %v19403_v63  ;;  %v19415_v63 = vld [vmem:[%s26586_s2 + $0x14] ss:$8 sps:$4 sm:$0xff]  }
 0xdc6   :  { %5214 = vmatpush1.bf16.msra.mxu0 %v19401_v62  ;;  %v19413_v62 = vld [vmem:[%s26586_s2 + $0x10] ss:$8 sps:$4 sm:$0xff]  }
 0xdc7   :  { %5215 = vmatprep.subr.bf16.mxu0 %v19406_v4  ;;  %v19418_v4 = vld [vmem:[%s26586_s2 + $0x24] ss:$8 sps:$4 sm:$0xff]  }
 0xdca   :  { %5216 = vmatpush1.bf16.msra.mxu0 %v19404_v57  ;;  %v19416_v57 = vld [vmem:[%s26586_s2 + $0x20] ss:$8 sps:$4 sm:$0xff]  }
 0xdcb   :  { %5217 = vmatprep.subr.bf16.mxu0 %v19409_v5  ;;  %v19421_v5 = vld [vmem:[%s26586_s2 + $0x34] ss:$8 sps:$4 sm:$0xff]  }
 0xdce   :  { %5218 = vmatpush1.bf16.msra.mxu0 %v19407_v15  ;;  %v19419_v15 = vld [vmem:[%s26586_s2 + $0x30] ss:$8 sps:$4 sm:$0xff]  }
 0xdd1   :  { %5236 = vmatmul.mubr.bf16.vlgmr.msra.gmra.mrb[104].mxu0 %v5106_v6 }
 0xdd2   :  { %5824 = vmatprep.mubr.bf16.mxu0 %v26556_v35 }
 0xea4   :  { %v5237_v29 = vpop.f32.mrb[104].mxu0 }
 0xea5   :  { %v18670_v43 = vadd.f32 %v5237_v29, %v4909_v1  ;;  %v5239_v38 = vpop.f32.mrb[105].mxu0  ;;  %v19425_v29 = vld [vmem:[%s26586_s2 + $0x50] ss:$8 sps:$4 sm:$0xff]  }
 0xea6   :  { %v18671_v51 = vadd.f32 %v5239_v38, %v4913_v16  ;;  %v5241_v44 = vpop.f32.mrb[106].mxu0  ;;  %v19428_v38 = vld [vmem:[%s26586_s2 + $0x60] ss:$8 sps:$4 sm:$0xff]  }
 0xea7   :  { %v18672_v41 = vadd.f32 %v5241_v44, %v4909_v1  ;;  %v5243_v27 = vpop.f32.mrb[107].mxu0  ;;  %v5250_v56 = vmax.f32 %v18670_v43, 0.0  ;;  %v19422_v1 = vld [vmem:[%s26586_s2 + $0x40] ss:$8 sps:$4 sm:$0xff]   ;;  %v19430_v43 = vld [vmem:[%s26586_s2 + $0x64] ss:$8 sps:$4 sm:$0xff]  }
 0xea8   :  { %v18673_v42 = vadd.f32 %v5243_v27, %v4913_v16  ;;  %v5251_v6 = vmax.f32 %v18671_v51, 0.0  ;;  %v19427_v16 = vld [vmem:[%s26586_s2 + $0x54] ss:$8 sps:$4 sm:$0xff]   ;;  %v19431_v44 = vld [vmem:[%s26586_s2 + $0x70] ss:$8 sps:$4 sm:$0xff]  }
 0xea9   :  { %v5252_v39 = vmax.f32 %v18672_v41, 0.0  ;;  %v19433_v51 = vld [vmem:[%s26586_s2 + $0x74] ss:$8 sps:$4 sm:$0xff]   ;;  %v19436_v41 = vld [vmem:[%s26586_s2 + $0x84] ss:$8 sps:$4 sm:$0xff]  }
 0xeaa   :  { %v5253_v21 = vmax.f32 %v18673_v42, 0.0  ;;  %v19434_v27 = vld [vmem:[%s26586_s2 + $0x80] ss:$8 sps:$4 sm:$0xff]   ;;  %v19439_v42 = vld [vmem:[%s26586_s2 + $0x94] ss:$8 sps:$4 sm:$0xff]  }
 0xeab   :  { %v22902_v2 = vpack.c.bf16 %v5252_v39, %v5250_v56  ;;  %v19437_v56 = vld [vmem:[%s26586_s2 + $0x90] ss:$8 sps:$4 sm:$0xff]   ;;  %v19442_v39 = vld [vmem:[%s26586_s2 + $0xa4] ss:$8 sps:$4 sm:$0xff]  }
 0xeac   :  { %v22904_v19 = vpack.c.bf16 %v5253_v21, %v5251_v6  ;;  %v19440_v6 = vld [vmem:[%s26586_s2 + $0xa0] ss:$8 sps:$4 sm:$0xff]   ;;  %v19445_v21 = vld [vmem:[%s26586_s2 + $0xb4] ss:$8 sps:$4 sm:$0xff]  }
 0xeae   :  { %5258 = vmatprep.subr.bf16.mxu1 %v22904_v19  ;;  %5792 = vmatprep.subr.bf16.mxu0 %v22904_v19 }
 0xeaf   :  { %5259 = vmatpush1.bf16.msra.mxu1 %v22902_v2  ;;  %5793 = vmatpush1.bf16.msra.mxu0 %v22902_v2 }
 0xeb0   :  { %5495 = vmatprep.subr.bf16.mxu1 %v19412_v52  ;;  %v19443_v52 = vld [vmem:[%s26586_s2 + $0xb0] ss:$8 sps:$4 sm:$0xff]  }
 0xeb2   :  { %16393 = vmatmul.mubr.msk.bf16.vlgmr.msra.gmra.mrb[100].mxu1 %vm4721_vm8, %v20789_v45  ;;  %16458 = vmatmul.mubr.msk.bf16.vlgmr.msra.gmra.mrb[108].mxu0 %vm4721_vm8, %v20902_v31 }
 0xeb3   :  { %5496 = vmatpush1.bf16.msra.mxu1 %v19410_v30  ;;  %6116 = vmatprep.mubr.bf16.mxu0 %v26556_v35  ;;  %v19448_v30 = vld [vmem:[%s26586_s2 + $0xc4] ss:$8 sps:$4 sm:$0xff]  }
 0xeb4   :  { %5497 = vmatprep.subr.bf16.mxu1 %v19415_v63  ;;  %v19446_v63 = vld [vmem:[%s26586_s2 + $0xc0] ss:$8 sps:$4 sm:$0xff]  }
 0xeb7   :  { %5498 = vmatpush1.bf16.msra.mxu1 %v19413_v62  ;;  %v19451_v62 = vld [vmem:[%s26586_s2 + $0xd4] ss:$8 sps:$4 sm:$0xff]  }
 0xeb8   :  { %5499 = vmatprep.subr.bf16.mxu1 %v19418_v4  ;;  %v19449_v4 = vld [vmem:[%s26586_s2 + $0xd0] ss:$8 sps:$4 sm:$0xff]  }
 0xebb   :  { %5500 = vmatpush1.bf16.msra.mxu1 %v19416_v57  ;;  %v19454_v57 = vld [vmem:[%s26586_s2 + $0xe4] ss:$8 sps:$4 sm:$0xff]  }
 0xebc   :  { %5501 = vmatprep.subr.bf16.mxu1 %v19421_v5  ;;  %v19452_v5 = vld [vmem:[%s26586_s2 + $0xe0] ss:$8 sps:$4 sm:$0xff]  }
 0xebf   :  { %5502 = vmatpush1.bf16.msra.mxu1 %v19419_v15  ;;  %v19457_v15 = vld [vmem:[%s26586_s2 + $0xf4] ss:$8 sps:$4 sm:$0xff]  }
 0xec0   :  { %5503 = vmatprep.subr.bf16.mxu1 %v19424_v53  ;;  %v19455_v53 = vld [vmem:[%s26586_s2 + $0xf0] ss:$8 sps:$4 sm:$0xff]  }
 0xec3   :  { %5504 = vmatpush1.bf16.msra.mxu1 %v19422_v1  ;;  %v19460_v1 = vld [vmem:[%s26586_s2 + $0x104] ss:$8 sps:$4 sm:$0xff]  }
 0xec4   :  { %5505 = vmatprep.subr.bf16.mxu1 %v19427_v16 }
 0xec7   :  { %5506 = vmatpush1.bf16.msra.mxu1 %v19425_v29 }
 0xec8   :  { %5507 = vmatprep.subr.bf16.mxu1 %v19430_v43 }
 0xecb   :  { %5508 = vmatpush1.bf16.msra.mxu1 %v19428_v38 }
 0xecc   :  { %5509 = vmatprep.subr.bf16.mxu1 %v19433_v51 }
 0xecf   :  { %5510 = vmatpush1.bf16.msra.mxu1 %v19431_v44 }
 0xed0   :  { %5511 = vmatprep.subr.bf16.mxu1 %v19436_v41 }
 0xed3   :  { %5512 = vmatpush1.bf16.msra.mxu1 %v19434_v27 }
 0xed4   :  { %5513 = vmatprep.subr.bf16.mxu1 %v19439_v42 }
 0xed7   :  { %5514 = vmatpush1.bf16.msra.mxu1 %v19437_v56 }
 0xed8   :  { %5515 = vmatprep.subr.bf16.mxu1 %v19442_v39 }
 0xedb   :  { %5516 = vmatpush1.bf16.msra.mxu1 %v19440_v6  ;;  %v19458_v6 = vld [vmem:[%s26586_s2 + $0x100] ss:$8 sps:$4 sm:$0xff]  }
 0xedc   :  { %5517 = vmatprep.subr.bf16.mxu1 %v19445_v21 }
 0xedf   :  { %5518 = vmatpush1.bf16.msra.mxu1 %v19443_v52  ;;  %v19463_v52 = vld [vmem:[%s26586_s2 + $0x114] ss:$8 sps:$4 sm:$0xff]  }
 0xee0   :  { %5519 = vmatprep.subr.bf16.mxu1 %v19448_v30  ;;  %v19461_v30 = vld [vmem:[%s26586_s2 + $0x110] ss:$8 sps:$4 sm:$0xff]  }
 0xee3   :  { %5520 = vmatpush1.bf16.msra.mxu1 %v19446_v63  ;;  %v19466_v63 = vld [vmem:[%s26586_s2 + $0x124] ss:$8 sps:$4 sm:$0xff]  }
 0xee4   :  { %5521 = vmatprep.subr.bf16.mxu1 %v19451_v62  ;;  %v19464_v62 = vld [vmem:[%s26586_s2 + $0x120] ss:$8 sps:$4 sm:$0xff]  }
 0xee7   :  { %5522 = vmatpush1.bf16.msra.mxu1 %v19449_v4  ;;  %v19469_v4 = vld [vmem:[%s26586_s2 + $0x134] ss:$8 sps:$4 sm:$0xff]  }
 0xee8   :  { %5523 = vmatprep.subr.bf16.mxu1 %v19454_v57  ;;  %v19472_v57 = vld [vmem:[%s26586_s2 + $0x144] ss:$8 sps:$4 sm:$0xff]  }
 0xeeb   :  { %5524 = vmatpush1.bf16.msra.mxu1 %v19452_v5  ;;  %v19470_v5 = vld [vmem:[%s26586_s2 + $0x140] ss:$8 sps:$4 sm:$0xff]  }
 0xeec   :  { %5525 = vmatprep.subr.bf16.mxu1 %v19457_v15  ;;  %v19475_v15 = vld [vmem:[%s26586_s2 + $0x154] ss:$8 sps:$4 sm:$0xff]  }
 0xeef   :  { %5526 = vmatpush1.bf16.msra.mxu1 %v19455_v53  ;;  %v19473_v53 = vld [vmem:[%s26586_s2 + $0x150] ss:$8 sps:$4 sm:$0xff]  }
 0xef0   :  { %5745 = vmatprep.subr.bf16.mxu1 %v19460_v1  ;;  %v19478_v1 = vld [vmem:[%s26586_s2 + $0x164] ss:$8 sps:$4 sm:$0xff]  }
 0xf85   :  { %v5292_v16 = vpop.f32.mrb[100].mxu1  ;;  %v23014_v29 = vpop.f32.mrb[108].mxu0 }
 0xf86   :  { %v5294_v43 = vpop.f32.mrb[101].mxu1  ;;  %v23016_v38 = vpop.f32.mrb[109].mxu0 }
 0xf87   :  { %v5296_v51 = vpop.f32.mrb[102].mxu1  ;;  %v23018_v44 = vpop.f32.mrb[110].mxu0 }
 0xf88   :  { %v5301_v41 = vpack.c.bf16 %v5296_v51, %v5292_v16  ;;  %v5298_v27 = vpop.f32.mrb[103].mxu1  ;;  %v5835_v42 = vpack.c.bf16 %v23018_v44, %v23014_v29  ;;  %v23022_v56 = vpop.f32.mrb[111].mxu0  ;;  %v19476_v16 = vld [vmem:[%s26586_s2 + $0x160] ss:$8 sps:$4 sm:$0xff]   ;;  %v19479_v51 = vld [vmem:[%s26586_s2 + $0x170] ss:$8 sps:$4 sm:$0xff]  }
 0xf89   :  { %v5302_v39 = vpack.c.bf16 %v5298_v27, %v5294_v43  ;;  %v5836_v21 = vpack.c.bf16 %v23022_v56, %v23016_v38  ;;  %v19481_v43 = vld [vmem:[%s26586_s2 + $0x174] ss:$8 sps:$4 sm:$0xff]   ;;  %v19482_v27 = vld [vmem:[%s26586_s2 + $0x180] ss:$8 sps:$4 sm:$0xff]   ;;  %v19515_v38 = vld [vmem:[%s26586_s2 + $0x230] ss:$8 sps:$4 sm:$0xff]  }
 0xf8a   :  { %v19520_v56 = vld [vmem:[%s26586_s2 + $0x244] ss:$8 sps:$4 sm:$0xff]  }
 0xf8b   :  { %5527 = vmatprep.mubr.bf16.mxu1 %v5302_v39  ;;  %v19487_v39 = vld [vmem:[%s26586_s2 + $0x194] ss:$8 sps:$4 sm:$0xff]  }
 0xf8c   :  { %5528 = vmatmul.mubr.bf16.vlgmr.msra.gmra.mrb[104].mxu1 %v5301_v41  ;;  %v19484_v41 = vld [vmem:[%s26586_s2 + $0x184] ss:$8 sps:$4 sm:$0xff]  }
 0xf8d   :  { %5746 = vmatpush1.bf16.msra.mxu1 %v19458_v6  ;;  %5777 = vmatprep.mubr.bf16.mxu1 %v22904_v19  ;;  %v19467_v19 = vld [vmem:[%s26586_s2 + $0x130] ss:$8 sps:$4 sm:$0xff]  }
 0xf8e   :  { %5747 = vmatprep.subr.bf16.mxu1 %v19463_v52  ;;  %v19485_v6 = vld [vmem:[%s26586_s2 + $0x190] ss:$8 sps:$4 sm:$0xff]   ;;  %v19490_v52 = vld [vmem:[%s26586_s2 + $0x1a4] ss:$8 sps:$4 sm:$0xff]  }
 0xf91   :  { %5748 = vmatpush1.bf16.msra.mxu1 %v19461_v30  ;;  %v19488_v30 = vld [vmem:[%s26586_s2 + $0x1a0] ss:$8 sps:$4 sm:$0xff]  }
 0xf92   :  { %5749 = vmatprep.subr.bf16.mxu1 %v19466_v63  ;;  %v19493_v63 = vld [vmem:[%s26586_s2 + $0x1b4] ss:$8 sps:$4 sm:$0xff]  }
 0xf95   :  { %5750 = vmatpush1.bf16.msra.mxu1 %v19464_v62  ;;  %v19491_v62 = vld [vmem:[%s26586_s2 + $0x1b0] ss:$8 sps:$4 sm:$0xff]  }
 0xf96   :  { %5751 = vmatprep.subr.bf16.mxu1 %v19469_v4  ;;  %v19496_v4 = vld [vmem:[%s26586_s2 + $0x1c4] ss:$8 sps:$4 sm:$0xff]  }
 0xf99   :  { %5752 = vmatpush1.bf16.msra.mxu1 %v19467_v19  ;;  %v19494_v19 = vld [vmem:[%s26586_s2 + $0x1c0] ss:$8 sps:$4 sm:$0xff]  }
 0xf9a   :  { %5753 = vmatprep.subr.bf16.mxu1 %v19472_v57  ;;  %v19499_v57 = vld [vmem:[%s26586_s2 + $0x1d4] ss:$8 sps:$4 sm:$0xff]  }
 0xf9d   :  { %5754 = vmatpush1.bf16.msra.mxu1 %v19470_v5  ;;  %v19497_v5 = vld [vmem:[%s26586_s2 + $0x1d0] ss:$8 sps:$4 sm:$0xff]  }
 0xf9e   :  { %5755 = vmatprep.subr.bf16.mxu1 %v19475_v15  ;;  %v19502_v15 = vld [vmem:[%s26586_s2 + $0x1e4] ss:$8 sps:$4 sm:$0xff]  }
 0xfa1   :  { %5756 = vmatpush1.bf16.msra.mxu1 %v19473_v53  ;;  %v19500_v53 = vld [vmem:[%s26586_s2 + $0x1e0] ss:$8 sps:$4 sm:$0xff]  }
 0xfa2   :  { %5757 = vmatprep.subr.bf16.mxu1 %v19478_v1  ;;  %v19505_v1 = vld [vmem:[%s26586_s2 + $0x1f4] ss:$8 sps:$4 sm:$0xff]  }
 0xfa5   :  { %5758 = vmatpush1.bf16.msra.mxu1 %v19476_v16  ;;  %v19503_v16 = vld [vmem:[%s26586_s2 + $0x1f0] ss:$8 sps:$4 sm:$0xff]  }
 0xfa6   :  { %5759 = vmatprep.subr.bf16.mxu1 %v19481_v43  ;;  %v19508_v43 = vld [vmem:[%s26586_s2 + $0x204] ss:$8 sps:$4 sm:$0xff]  }
 0xfa9   :  { %5760 = vmatpush1.bf16.msra.mxu1 %v19479_v51  ;;  %v19506_v51 = vld [vmem:[%s26586_s2 + $0x200] ss:$8 sps:$4 sm:$0xff]  }
 0xfaa   :  { %5761 = vmatprep.subr.bf16.mxu1 %v19484_v41  ;;  %v19511_v41 = vld [vmem:[%s26586_s2 + $0x214] ss:$8 sps:$4 sm:$0xff]  }
 0xfad   :  { %5762 = vmatpush1.bf16.msra.mxu1 %v19482_v27  ;;  %v19509_v27 = vld [vmem:[%s26586_s2 + $0x210] ss:$8 sps:$4 sm:$0xff]  }
 0xfae   :  { %5763 = vmatprep.subr.bf16.mxu1 %v19487_v39  ;;  %v19514_v39 = vld [vmem:[%s26586_s2 + $0x224] ss:$8 sps:$4 sm:$0xff]  }
 0xfb1   :  { %5764 = vmatpush1.bf16.msra.mxu1 %v19485_v6  ;;  %v19512_v6 = vld [vmem:[%s26586_s2 + $0x220] ss:$8 sps:$4 sm:$0xff]  }
 0xfb2   :  { %5765 = vmatprep.subr.bf16.mxu1 %v19490_v52  ;;  %v19523_v52 = vld [vmem:[%s26586_s2 + $0x254] ss:$8 sps:$4 sm:$0xff]  }
 0xfb5   :  { %5766 = vmatpush1.bf16.msra.mxu1 %v19488_v30  ;;  %v19521_v30 = vld [vmem:[%s26586_s2 + $0x250] ss:$8 sps:$4 sm:$0xff]  }
 0xfb6   :  { %5767 = vmatprep.subr.bf16.mxu1 %v19493_v63  ;;  %v19526_v63 = vld [vmem:[%s26586_s2 + $0x264] ss:$8 sps:$4 sm:$0xff]  }
 0xfb9   :  { %5768 = vmatpush1.bf16.msra.mxu1 %v19491_v62  ;;  %v19524_v62 = vld [vmem:[%s26586_s2 + $0x260] ss:$8 sps:$4 sm:$0xff]  }
 0xfba   :  { %5769 = vmatprep.subr.bf16.mxu1 %v19496_v4  ;;  %v19529_v4 = vld [vmem:[%s26586_s2 + $0x274] ss:$8 sps:$4 sm:$0xff]  }
 0xfbd   :  { %5770 = vmatpush1.bf16.msra.mxu1 %v19494_v19  ;;  %v19527_v19 = vld [vmem:[%s26586_s2 + $0x270] ss:$8 sps:$4 sm:$0xff]  }
 0xfbe   :  { %5771 = vmatprep.subr.bf16.mxu1 %v19499_v57  ;;  %v19532_v57 = vld [vmem:[%s26586_s2 + $0x284] ss:$8 sps:$4 sm:$0xff]  }
 0xfc1   :  { %5772 = vmatpush1.bf16.msra.mxu1 %v19497_v5  ;;  %v19530_v5 = vld [vmem:[%s26586_s2 + $0x280] ss:$8 sps:$4 sm:$0xff]  }
 0xfc2   :  { %5773 = vmatprep.subr.bf16.mxu1 %v19502_v15  ;;  %v19535_v15 = vld [vmem:[%s26586_s2 + $0x294] ss:$8 sps:$4 sm:$0xff]  }
 0xfc5   :  { %5774 = vmatpush1.bf16.msra.mxu1 %v19500_v53  ;;  %v19533_v53 = vld [vmem:[%s26586_s2 + $0x290] ss:$8 sps:$4 sm:$0xff]  }
 0xfc6   :  { %5775 = vmatprep.subr.bf16.mxu1 %v19505_v1  ;;  %v19538_v1 = vld [vmem:[%s26586_s2 + $0x2a4] ss:$8 sps:$4 sm:$0xff]  }
 0xfc9   :  { %5776 = vmatpush1.bf16.msra.mxu1 %v19503_v16  ;;  %v19536_v16 = vld [vmem:[%s26586_s2 + $0x2a0] ss:$8 sps:$4 sm:$0xff]  }
 0xfca   :  { %6029 = vmatprep.subr.bf16.mxu1 %v19508_v43  ;;  %v19541_v43 = vld [vmem:[%s26586_s2 + $0x2b4] ss:$8 sps:$4 sm:$0xff]  }
 0xfcc   :  { %5778 = vmatmul.mubr.bf16.vlgmr.msra.gmra.mrb[104].mxu1 %v22902_v2  ;;  %v19517_v2 = vld [vmem:[%s26586_s2 + $0x234] ss:$8 sps:$4 sm:$0xff]  }
 0xfcd   :  { %6030 = vmatpush1.bf16.msra.mxu1 %v19506_v51  ;;  %6061 = vmatprep.mubr.bf16.mxu1 %v5836_v21  ;;  %v19518_v21 = vld [vmem:[%s26586_s2 + $0x240] ss:$8 sps:$4 sm:$0xff]   ;;  %v19539_v51 = vld [vmem:[%s26586_s2 + $0x2b0] ss:$8 sps:$4 sm:$0xff]  }
 0xfce   :  { %6031 = vmatprep.subr.bf16.mxu1 %v19511_v41  ;;  %v19544_v41 = vld [vmem:[%s26586_s2 + $0x2c4] ss:$8 sps:$4 sm:$0xff]  }
 0xfd1   :  { %6032 = vmatpush1.bf16.msra.mxu1 %v19509_v27  ;;  %v19542_v27 = vld [vmem:[%s26586_s2 + $0x2c0] ss:$8 sps:$4 sm:$0xff]  }
 0xfd2   :  { %6033 = vmatprep.subr.bf16.mxu1 %v19514_v39  ;;  %v19547_v39 = vld [vmem:[%s26586_s2 + $0x2d4] ss:$8 sps:$4 sm:$0xff]  }
 0xfd5   :  { %6034 = vmatpush1.bf16.msra.mxu1 %v19512_v6  ;;  %v19545_v6 = vld [vmem:[%s26586_s2 + $0x2d0] ss:$8 sps:$4 sm:$0xff]  }
 0xfd6   :  { %6035 = vmatprep.subr.bf16.mxu1 %v19517_v2  ;;  %v19550_v2 = vld [vmem:[%s26586_s2 + $0x2e4] ss:$8 sps:$4 sm:$0xff]  }
 0xfd9   :  { %6036 = vmatpush1.bf16.msra.mxu1 %v19515_v38  ;;  %v19548_v38 = vld [vmem:[%s26586_s2 + $0x2e0] ss:$8 sps:$4 sm:$0xff]  }
 0xfda   :  { %6037 = vmatprep.subr.bf16.mxu1 %v19520_v56  ;;  %v19553_v56 = vld [vmem:[%s26586_s2 + $0x2f4] ss:$8 sps:$4 sm:$0xff]  }
 0xfdd   :  { %6038 = vmatpush1.bf16.msra.mxu1 %v19518_v21  ;;  %v19551_v21 = vld [vmem:[%s26586_s2 + $0x2f0] ss:$8 sps:$4 sm:$0xff]  }
 0xfde   :  { %6039 = vmatprep.subr.bf16.mxu1 %v19523_v52  ;;  %v16392_v52 = vld [vmem:[%s26482_s14 + $0x5] ss:$8 sm:$0x3] }
 0xfe1   :  { %6040 = vmatpush1.bf16.msra.mxu1 %v19521_v30  ;;  %v5542_v30 = vrot.slane %v16392_v52, %v21164_v0 }
 0xfe2   :  { %6041 = vmatprep.subr.bf16.mxu1 %v19526_v63  ;;  %v5546_v63 = vrot.slane %v16392_v52, %v21170_v7  ;;  %v19566_v52 = vld [vmem:[%s26475_s7 + $0x40] ss:$8 sps:$4 sm:$0xff]  }
 0xfe5   :  { %6042 = vmatpush1.bf16.msra.mxu1 %v19524_v62 }
 0xfe6   :  { %6043 = vmatprep.subr.bf16.mxu1 %v19529_v4 }
 0xfe9   :  { %6044 = vmatpush1.bf16.msra.mxu1 %v19527_v19 }
 0xfea   :  { %6045 = vmatprep.subr.bf16.mxu1 %v19532_v57 }
 0xfed   :  { %6046 = vmatpush1.bf16.msra.mxu1 %v19530_v5 }
 0xfee   :  { %6047 = vmatprep.subr.bf16.mxu1 %v19535_v15 }
 0xff1   :  { %6048 = vmatpush1.bf16.msra.mxu1 %v19533_v53 }
 0xff2   :  { %6049 = vmatprep.subr.bf16.mxu1 %v19538_v1 }
 0xff5   :  { %6050 = vmatpush1.bf16.msra.mxu1 %v19536_v16 }
 0xff6   :  { %6051 = vmatprep.subr.bf16.mxu1 %v19541_v43 }
 0xff9   :  { %6052 = vmatpush1.bf16.msra.mxu1 %v19539_v51 }
 0xffa   :  { %6053 = vmatprep.subr.bf16.mxu1 %v19544_v41  ;;  %v19556_v41 = vld [vmem:[%s26475_s7 + $0x4] ss:$8 sps:$4 sm:$0xff]  }
 0xffd   :  { %6054 = vmatpush1.bf16.msra.mxu1 %v19542_v27  ;;  %v19554_v27 = vld [vmem:[%s26475_s7] ss:$8 sps:$4 sm:$0xff]  }
 0xffe   :  { %6055 = vmatprep.subr.bf16.mxu1 %v19547_v39  ;;  %v19559_v39 = vld [vmem:[%s26475_s7 + $0x14] ss:$8 sps:$4 sm:$0xff]  }
0x1001   :  { %6056 = vmatpush1.bf16.msra.mxu1 %v19545_v6  ;;  %v19557_v6 = vld [vmem:[%s26475_s7 + $0x10] ss:$8 sps:$4 sm:$0xff]  }
0x1002   :  { %6057 = vmatprep.subr.bf16.mxu1 %v19550_v2  ;;  %v19562_v2 = vld [vmem:[%s26475_s7 + $0x24] ss:$8 sps:$4 sm:$0xff]  }
0x1005   :  { %6058 = vmatpush1.bf16.msra.mxu1 %v19548_v38  ;;  %v19560_v38 = vld [vmem:[%s26475_s7 + $0x20] ss:$8 sps:$4 sm:$0xff]  }
0x1006   :  { %6059 = vmatprep.subr.bf16.mxu1 %v19553_v56  ;;  %v19563_v56 = vld [vmem:[%s26475_s7 + $0x30] ss:$8 sps:$4 sm:$0xff]  }
0x1009   :  { %6060 = vmatpush1.bf16.msra.mxu1 %v19551_v21  ;;  %v19568_v21 = vld [vmem:[%s26475_s7 + $0x44] ss:$8 sps:$4 sm:$0xff]  }
0x100c   :  { %6062 = vmatmul.mubr.bf16.vlgmr.msra.gmra.mrb[104].mxu1 %v5835_v42 }
0x10df   :  { %v6063_v62 = vpop.f32.mrb[104].mxu1 }
0x10e0   :  { %v18674_v4 = vadd.f32 %v6063_v62, %v5542_v30  ;;  %v6065_v19 = vpop.f32.mrb[105].mxu1  ;;  %v19574_v62 = vld [vmem:[%s26475_s7 + $0x64] ss:$8 sps:$4 sm:$0xff]  }
0x10e1   :  { %v18675_v57 = vadd.f32 %v6065_v19, %v5546_v63  ;;  %v6067_v5 = vpop.f32.mrb[106].mxu1  ;;  %v19577_v19 = vld [vmem:[%s26475_s7 + $0x74] ss:$8 sps:$4 sm:$0xff]  }
0x10e2   :  { %v18676_v15 = vadd.f32 %v6067_v5, %v5542_v30  ;;  %v6069_v53 = vpop.f32.mrb[107].mxu1  ;;  %v6076_v16 = vmax.f32 %v18674_v4, 0.0  ;;  %v19571_v30 = vld [vmem:[%s26475_s7 + $0x54] ss:$8 sps:$4 sm:$0xff]   ;;  %v19572_v4 = vld [vmem:[%s26475_s7 + $0x60] ss:$8 sps:$4 sm:$0xff]  }
0x10e3   :  { %v18677_v1 = vadd.f32 %v6069_v53, %v5546_v63  ;;  %v6077_v29 = vmax.f32 %v18675_v57, 0.0  ;;  %v19569_v63 = vld [vmem:[%s26475_s7 + $0x50] ss:$8 sps:$4 sm:$0xff]   ;;  %v19580_v5 = vld [vmem:[%s26475_s7 + $0x84] ss:$8 sps:$4 sm:$0xff]  }
0x10e4   :  { %v6078_v43 = vmax.f32 %v18676_v15, 0.0  ;;  %v19575_v57 = vld [vmem:[%s26475_s7 + $0x70] ss:$8 sps:$4 sm:$0xff]   ;;  %v19578_v15 = vld [vmem:[%s26475_s7 + $0x80] ss:$8 sps:$4 sm:$0xff]  }
0x10e5   :  { %v6079_v44 = vmax.f32 %v18677_v1, 0.0  ;;  %v19583_v53 = vld [vmem:[%s26475_s7 + $0x94] ss:$8 sps:$4 sm:$0xff]   ;;  %v19581_v1 = vld [vmem:[%s26475_s7 + $0x90] ss:$8 sps:$4 sm:$0xff]  }
0x10e6   :  { %v23228_v42 = vpack.c.bf16 %v6078_v43, %v6076_v16  ;;  %v19586_v16 = vld [vmem:[%s26475_s7 + $0xa4] ss:$8 sps:$4 sm:$0xff]   ;;  %v19584_v43 = vld [vmem:[%s26475_s7 + $0xa0] ss:$8 sps:$4 sm:$0xff]  }
0x10e7   :  { %v23230_v51 = vpack.c.bf16 %v6079_v44, %v6077_v29  ;;  %v19589_v29 = vld [vmem:[%s26475_s7 + $0xb4] ss:$8 sps:$4 sm:$0xff]   ;;  %v19587_v44 = vld [vmem:[%s26475_s7 + $0xb0] ss:$8 sps:$4 sm:$0xff]  }
0x10e9   :  { %6084 = vmatprep.subr.bf16.mxu0 %v23230_v51 }
0x10ea   :  { %6085 = vmatpush1.bf16.msra.mxu0 %v23228_v42 }
0x10eb   :  { %6321 = vmatprep.subr.bf16.mxu0 %v19556_v41  ;;  %v19592_v41 = vld [vmem:[%s26475_s7 + $0xc4] ss:$8 sps:$4 sm:$0xff]  }
0x10ed   :  { %16492 = vmatmul.mubr.msk.bf16.vlgmr.msra.gmra.mrb[112].mxu0 %vm4721_vm8, %v20789_v45  ;;  %v19565_v45 = vld [vmem:[%s26475_s7 + $0x34] ss:$8 sps:$4 sm:$0xff]  }
0x10ee   :  { %6322 = vmatpush1.bf16.msra.mxu0 %v19554_v27  ;;  %v19590_v27 = vld [vmem:[%s26475_s7 + $0xc0] ss:$8 sps:$4 sm:$0xff]  }
0x10ef   :  { %6323 = vmatprep.subr.bf16.mxu0 %v19559_v39  ;;  %v19595_v39 = vld [vmem:[%s26475_s7 + $0xd4] ss:$8 sps:$4 sm:$0xff]  }
0x10f2   :  { %6324 = vmatpush1.bf16.msra.mxu0 %v19557_v6  ;;  %v19593_v6 = vld [vmem:[%s26475_s7 + $0xd0] ss:$8 sps:$4 sm:$0xff]  }
0x10f3   :  { %6325 = vmatprep.subr.bf16.mxu0 %v19562_v2  ;;  %v19598_v2 = vld [vmem:[%s26475_s7 + $0xe4] ss:$8 sps:$4 sm:$0xff]  }
0x10f6   :  { %6326 = vmatpush1.bf16.msra.mxu0 %v19560_v38  ;;  %v19596_v38 = vld [vmem:[%s26475_s7 + $0xe0] ss:$8 sps:$4 sm:$0xff]  }
0x10f7   :  { %6327 = vmatprep.subr.bf16.mxu0 %v19565_v45  ;;  %v19601_v45 = vld [vmem:[%s26475_s7 + $0xf4] ss:$8 sps:$4 sm:$0xff]  }
0x10fa   :  { %6328 = vmatpush1.bf16.msra.mxu0 %v19563_v56  ;;  %v19599_v56 = vld [vmem:[%s26475_s7 + $0xf0] ss:$8 sps:$4 sm:$0xff]  }
0x10fb   :  { %6329 = vmatprep.subr.bf16.mxu0 %v19568_v21  ;;  %v19604_v21 = vld [vmem:[%s26475_s7 + $0x104] ss:$8 sps:$4 sm:$0xff]  }
0x10fe   :  { %6330 = vmatpush1.bf16.msra.mxu0 %v19566_v52 }
0x10ff   :  { %6331 = vmatprep.subr.bf16.mxu0 %v19571_v30 }
0x1102   :  { %6332 = vmatpush1.bf16.msra.mxu0 %v19569_v63 }
0x1103   :  { %6333 = vmatprep.subr.bf16.mxu0 %v19574_v62 }
0x1106   :  { %6334 = vmatpush1.bf16.msra.mxu0 %v19572_v4 }
0x1107   :  { %6335 = vmatprep.subr.bf16.mxu0 %v19577_v19 }
0x110a   :  { %6336 = vmatpush1.bf16.msra.mxu0 %v19575_v57  ;;  %v19602_v57 = vld [vmem:[%s26475_s7 + $0x100] ss:$8 sps:$4 sm:$0xff]  }
0x110b   :  { %6337 = vmatprep.subr.bf16.mxu0 %v19580_v5  ;;  %v19607_v5 = vld [vmem:[%s26475_s7 + $0x114] ss:$8 sps:$4 sm:$0xff]  }
0x110e   :  { %6338 = vmatpush1.bf16.msra.mxu0 %v19578_v15  ;;  %v19605_v15 = vld [vmem:[%s26475_s7 + $0x110] ss:$8 sps:$4 sm:$0xff]  }
0x110f   :  { %6339 = vmatprep.subr.bf16.mxu0 %v19583_v53  ;;  %v19610_v53 = vld [vmem:[%s26475_s7 + $0x124] ss:$8 sps:$4 sm:$0xff]  }
0x1112   :  { %6340 = vmatpush1.bf16.msra.mxu0 %v19581_v1  ;;  %v19608_v1 = vld [vmem:[%s26475_s7 + $0x120] ss:$8 sps:$4 sm:$0xff]  }
0x1113   :  { %6341 = vmatprep.subr.bf16.mxu0 %v19586_v16  ;;  %v19613_v16 = vld [vmem:[%s26475_s7 + $0x134] ss:$8 sps:$4 sm:$0xff]  }
0x1116   :  { %6342 = vmatpush1.bf16.msra.mxu0 %v19584_v43  ;;  %v19611_v43 = vld [vmem:[%s26475_s7 + $0x130] ss:$8 sps:$4 sm:$0xff]  }
0x1117   :  { %6343 = vmatprep.subr.bf16.mxu0 %v19589_v29  ;;  %v19616_v29 = vld [vmem:[%s26475_s7 + $0x144] ss:$8 sps:$4 sm:$0xff]  }
0x111a   :  { %6344 = vmatpush1.bf16.msra.mxu0 %v19587_v44  ;;  %v19614_v44 = vld [vmem:[%s26475_s7 + $0x140] ss:$8 sps:$4 sm:$0xff]  }
0x111b   :  { %6345 = vmatprep.subr.bf16.mxu0 %v19592_v41  ;;  %v19619_v41 = vld [vmem:[%s26475_s7 + $0x154] ss:$8 sps:$4 sm:$0xff]  }
0x111e   :  { %6346 = vmatpush1.bf16.msra.mxu0 %v19590_v27  ;;  %v19617_v27 = vld [vmem:[%s26475_s7 + $0x150] ss:$8 sps:$4 sm:$0xff]  }
0x111f   :  { %6347 = vmatprep.subr.bf16.mxu0 %v19595_v39  ;;  %v19622_v39 = vld [vmem:[%s26475_s7 + $0x164] ss:$8 sps:$4 sm:$0xff]  }
0x1122   :  { %6348 = vmatpush1.bf16.msra.mxu0 %v19593_v6  ;;  %v19620_v6 = vld [vmem:[%s26475_s7 + $0x160] ss:$8 sps:$4 sm:$0xff]  }
0x1123   :  { %6349 = vmatprep.subr.bf16.mxu0 %v19598_v2  ;;  %v19625_v2 = vld [vmem:[%s26475_s7 + $0x174] ss:$8 sps:$4 sm:$0xff]  }
0x1126   :  { %6350 = vmatpush1.bf16.msra.mxu0 %v19596_v38  ;;  %v19623_v38 = vld [vmem:[%s26475_s7 + $0x170] ss:$8 sps:$4 sm:$0xff]  }
0x1127   :  { %6351 = vmatprep.subr.bf16.mxu0 %v19601_v45  ;;  %v19628_v45 = vld [vmem:[%s26475_s7 + $0x184] ss:$8 sps:$4 sm:$0xff]  }
0x112a   :  { %6352 = vmatpush1.bf16.msra.mxu0 %v19599_v56  ;;  %v19626_v56 = vld [vmem:[%s26475_s7 + $0x180] ss:$8 sps:$4 sm:$0xff]  }
0x112b   :  { %6571 = vmatprep.subr.bf16.mxu0 %v19604_v21  ;;  %v19631_v21 = vld [vmem:[%s26475_s7 + $0x194] ss:$8 sps:$4 sm:$0xff]  }
0x11c0   :  { %v6118_v52 = vpop.f32.mrb[112].mxu0 }
0x11c1   :  { %v6120_v30 = vpop.f32.mrb[113].mxu0 }
0x11c2   :  { %v6122_v63 = vpop.f32.mrb[114].mxu0 }
0x11c3   :  { %v6127_v62 = vpack.c.bf16 %v6122_v63, %v6118_v52  ;;  %v6124_v4 = vpop.f32.mrb[115].mxu0  ;;  %v19629_v52 = vld [vmem:[%s26475_s7 + $0x190] ss:$8 sps:$4 sm:$0xff]   ;;  %v19632_v63 = vld [vmem:[%s26475_s7 + $0x1a0] ss:$8 sps:$4 sm:$0xff]  }
0x11c4   :  { %v6128_v19 = vpack.c.bf16 %v6124_v4, %v6120_v30  ;;  %v19634_v30 = vld [vmem:[%s26475_s7 + $0x1a4] ss:$8 sps:$4 sm:$0xff]   ;;  %v19635_v4 = vld [vmem:[%s26475_s7 + $0x1b0] ss:$8 sps:$4 sm:$0xff]  }
0x11c6   :  { %6353 = vmatprep.mubr.bf16.mxu0 %v6128_v19  ;;  %v19640_v19 = vld [vmem:[%s26475_s7 + $0x1c4] ss:$8 sps:$4 sm:$0xff]  }
0x11c7   :  { %6354 = vmatmul.mubr.bf16.vlgmr.msra.gmra.mrb[116].mxu0 %v6127_v62  ;;  %v19637_v62 = vld [vmem:[%s26475_s7 + $0x1b4] ss:$8 sps:$4 sm:$0xff]  }
0x11c8   :  { %6572 = vmatpush1.bf16.msra.mxu0 %v19602_v57  ;;  %6603 = vmatprep.mubr.bf16.mxu0 %v23230_v51  ;;  %v19638_v57 = vld [vmem:[%s26475_s7 + $0x1c0] ss:$8 sps:$4 sm:$0xff]  }
0x11c9   :  { %6573 = vmatprep.subr.bf16.mxu0 %v19607_v5  ;;  %v19643_v5 = vld [vmem:[%s26475_s7 + $0x1d4] ss:$8 sps:$4 sm:$0xff]  }
0x11cc   :  { %6574 = vmatpush1.bf16.msra.mxu0 %v19605_v15  ;;  %v19641_v15 = vld [vmem:[%s26475_s7 + $0x1d0] ss:$8 sps:$4 sm:$0xff]  }
0x11cd   :  { %6575 = vmatprep.subr.bf16.mxu0 %v19610_v53  ;;  %v19646_v53 = vld [vmem:[%s26475_s7 + $0x1e4] ss:$8 sps:$4 sm:$0xff]  }
0x11d0   :  { %6576 = vmatpush1.bf16.msra.mxu0 %v19608_v1  ;;  %v19644_v1 = vld [vmem:[%s26475_s7 + $0x1e0] ss:$8 sps:$4 sm:$0xff]  }
0x11d1   :  { %6577 = vmatprep.subr.bf16.mxu0 %v19613_v16  ;;  %v19649_v16 = vld [vmem:[%s26475_s7 + $0x1f4] ss:$8 sps:$4 sm:$0xff]  }
0x11d4   :  { %6578 = vmatpush1.bf16.msra.mxu0 %v19611_v43  ;;  %v19647_v43 = vld [vmem:[%s26475_s7 + $0x1f0] ss:$8 sps:$4 sm:$0xff]  }
0x11d5   :  { %6579 = vmatprep.subr.bf16.mxu0 %v19616_v29  ;;  %v19652_v29 = vld [vmem:[%s26475_s7 + $0x204] ss:$8 sps:$4 sm:$0xff]  }
0x11d8   :  { %6580 = vmatpush1.bf16.msra.mxu0 %v19614_v44  ;;  %v19650_v44 = vld [vmem:[%s26475_s7 + $0x200] ss:$8 sps:$4 sm:$0xff]  }
0x11d9   :  { %6581 = vmatprep.subr.bf16.mxu0 %v19619_v41  ;;  %v19655_v41 = vld [vmem:[%s26475_s7 + $0x214] ss:$8 sps:$4 sm:$0xff]  }
0x11dc   :  { %6582 = vmatpush1.bf16.msra.mxu0 %v19617_v27  ;;  %v19656_v27 = vld [vmem:[%s26475_s7 + $0x220] ss:$8 sps:$4 sm:$0xff]  }
0x11dd   :  { %6583 = vmatprep.subr.bf16.mxu0 %v19622_v39  ;;  %v19659_v39 = vld [vmem:[%s26475_s7 + $0x230] ss:$8 sps:$4 sm:$0xff]  }
0x11e0   :  { %6584 = vmatpush1.bf16.msra.mxu0 %v19620_v6  ;;  %v19664_v6 = vld [vmem:[%s26475_s7 + $0x244] ss:$8 sps:$4 sm:$0xff]  }
0x11e1   :  { %6585 = vmatprep.subr.bf16.mxu0 %v19625_v2  ;;  %v19662_v2 = vld [vmem:[%s26475_s7 + $0x240] ss:$8 sps:$4 sm:$0xff]  }
0x11e4   :  { %6586 = vmatpush1.bf16.msra.mxu0 %v19623_v38  ;;  %v19667_v38 = vld [vmem:[%s26475_s7 + $0x254] ss:$8 sps:$4 sm:$0xff]  }
0x11e5   :  { %6587 = vmatprep.subr.bf16.mxu0 %v19628_v45  ;;  %v19665_v45 = vld [vmem:[%s26475_s7 + $0x250] ss:$8 sps:$4 sm:$0xff]  }
0x11e8   :  { %6588 = vmatpush1.bf16.msra.mxu0 %v19626_v56  ;;  %v19670_v56 = vld [vmem:[%s26475_s7 + $0x264] ss:$8 sps:$4 sm:$0xff]  }
0x11e9   :  { %6589 = vmatprep.subr.bf16.mxu0 %v19631_v21  ;;  %v19668_v21 = vld [vmem:[%s26475_s7 + $0x260] ss:$8 sps:$4 sm:$0xff]  }
0x11ec   :  { %6590 = vmatpush1.bf16.msra.mxu0 %v19629_v52  ;;  %v19673_v52 = vld [vmem:[%s26475_s7 + $0x274] ss:$8 sps:$4 sm:$0xff]  }
0x11ed   :  { %6591 = vmatprep.subr.bf16.mxu0 %v19634_v30  ;;  %v19671_v30 = vld [vmem:[%s26475_s7 + $0x270] ss:$8 sps:$4 sm:$0xff]  }
0x11f0   :  { %6592 = vmatpush1.bf16.msra.mxu0 %v19632_v63  ;;  %v19676_v63 = vld [vmem:[%s26475_s7 + $0x284] ss:$8 sps:$4 sm:$0xff]  }
0x11f1   :  { %6593 = vmatprep.subr.bf16.mxu0 %v19637_v62  ;;  %v19674_v62 = vld [vmem:[%s26475_s7 + $0x280] ss:$8 sps:$4 sm:$0xff]  }
0x11f4   :  { %6594 = vmatpush1.bf16.msra.mxu0 %v19635_v4  ;;  %v19679_v4 = vld [vmem:[%s26475_s7 + $0x294] ss:$8 sps:$4 sm:$0xff]  }
0x11f5   :  { %6595 = vmatprep.subr.bf16.mxu0 %v19640_v19  ;;  %v19677_v19 = vld [vmem:[%s26475_s7 + $0x290] ss:$8 sps:$4 sm:$0xff]  }
0x11f8   :  { %6596 = vmatpush1.bf16.msra.mxu0 %v19638_v57  ;;  %v19682_v57 = vld [vmem:[%s26475_s7 + $0x2a4] ss:$8 sps:$4 sm:$0xff]  }
0x11f9   :  { %6597 = vmatprep.subr.bf16.mxu0 %v19643_v5  ;;  %v19680_v5 = vld [vmem:[%s26475_s7 + $0x2a0] ss:$8 sps:$4 sm:$0xff]  }
0x11fc   :  { %6598 = vmatpush1.bf16.msra.mxu0 %v19641_v15  ;;  %v19685_v15 = vld [vmem:[%s26475_s7 + $0x2b4] ss:$8 sps:$4 sm:$0xff]  }
0x11fd   :  { %6599 = vmatprep.subr.bf16.mxu0 %v19646_v53  ;;  %v19683_v53 = vld [vmem:[%s26475_s7 + $0x2b0] ss:$8 sps:$4 sm:$0xff]  }
0x1200   :  { %6600 = vmatpush1.bf16.msra.mxu0 %v19644_v1  ;;  %v19688_v1 = vld [vmem:[%s26475_s7 + $0x2c4] ss:$8 sps:$4 sm:$0xff]  }
0x1201   :  { %6601 = vmatprep.subr.bf16.mxu0 %v19649_v16  ;;  %v19686_v16 = vld [vmem:[%s26475_s7 + $0x2c0] ss:$8 sps:$4 sm:$0xff]  }
0x1204   :  { %6602 = vmatpush1.bf16.msra.mxu0 %v19647_v43  ;;  %v19691_v43 = vld [vmem:[%s26475_s7 + $0x2d4] ss:$8 sps:$4 sm:$0xff]  }
0x1205   :  { %6618 = vmatprep.subr.bf16.mxu0 %v23230_v51  ;;  %v19653_v51 = vld [vmem:[%s26475_s7 + $0x210] ss:$8 sps:$4 sm:$0xff]  }
0x1207   :  { %6604 = vmatmul.mubr.bf16.vlgmr.msra.gmra.mrb[116].mxu0 %v23228_v42 }
0x1208   :  { %6619 = vmatpush1.bf16.msra.mxu0 %v23228_v42  ;;  %6650 = vmatprep.mubr.bf16.mxu0 %v26556_v35  ;;  %v19658_v42 = vld [vmem:[%s26475_s7 + $0x224] ss:$8 sps:$4 sm:$0xff]  }
0x1209   :  { %6855 = vmatprep.subr.bf16.mxu0 %v19652_v29  ;;  %v19689_v29 = vld [vmem:[%s26475_s7 + $0x2d0] ss:$8 sps:$4 sm:$0xff]  }
0x120f   :  { %16557 = vmatmul.mubr.msk.bf16.vlgmr.msra.gmra.mrb[120].mxu0 %vm4721_vm8, %v20902_v31  ;;  %v19661_v31 = vld [vmem:[%s26475_s7 + $0x234] ss:$8 sps:$4 sm:$0xff]  }
0x1210   :  { %6856 = vmatpush1.bf16.msra.mxu0 %v19650_v44  ;;  %v19694_v44 = vld [vmem:[%s26475_s7 + $0x2e4] ss:$8 sps:$4 sm:$0xff]  }
0x1211   :  { %6857 = vmatprep.subr.bf16.mxu0 %v19655_v41  ;;  %v19692_v41 = vld [vmem:[%s26475_s7 + $0x2e0] ss:$8 sps:$4 sm:$0xff]  }
0x1214   :  { %6858 = vmatpush1.bf16.msra.mxu0 %v19653_v51  ;;  %v19697_v51 = vld [vmem:[%s26475_s7 + $0x2f4] ss:$8 sps:$4 sm:$0xff]  }
0x1215   :  { %6859 = vmatprep.subr.bf16.mxu0 %v19658_v42  ;;  %v19695_v42 = vld [vmem:[%s26475_s7 + $0x2f0] ss:$8 sps:$4 sm:$0xff]  }
0x1218   :  { %6860 = vmatpush1.bf16.msra.mxu0 %v19656_v27  ;;  %v6906_v27 = vand.u32 15, %v20733_v23 }
0x1219   :  { %6861 = vmatprep.subr.bf16.mxu0 %v19661_v31 }
0x121a   :  { %v23533_v31 = vsub.s32 %v21425_v28, %v6906_v27  ;;  %v20550_v27 = vmov 0.0|0.0  }
0x121c   :  { %6862 = vmatpush1.bf16.msra.mxu0 %v19659_v39  ;;  %vm6924_vm9 = vcmp.eq.s32.totalorder %v21418_v12, %v23533_v31  ;;  %vm6925_vm10 = vcmp.eq.s32.totalorder %v21421_v13, %v23533_v31  ;;  %vm6908_vm11 = vcmp.eq.s32.totalorder %v20706_v14, %v23533_v31  ;;  %vm6909_vm12 = vcmp.eq.s32.totalorder %v20725_v20, %v23533_v31 }
0x121d   :  { %6863 = vmatprep.subr.bf16.mxu0 %v19664_v6  ;;  %vm18424_vm13 = vmpackc.low %vm6925_vm10, %vm6924_vm9  ;;  %vm6926_vm14 = vcmp.eq.s32.totalorder %v21432_v37, %v23533_v31  ;;  %vm6927_vm15 = vcmp.eq.s32.totalorder %v21435_v18, %v23533_v31  ;;  %vm6910_vm2 = vcmp.eq.s32.totalorder %v20761_v33, %v23533_v31  ;;  %vm6911_vm1 = vcmp.eq.s32.totalorder %v20764_v34, %v23533_v31 }
0x121e   :  { %18425 = vmatprep.subr.msk.bf16.mxu1 %vm18424_vm13, %v26561_v50  ;;  %vm18426_vm3 = vmpackc.low %vm6909_vm12, %vm6908_vm11  ;;  %vm6928_vm4 = vcmp.eq.s32.totalorder %v21444_v55, %v23533_v31  ;;  %vm6929_vm5 = vcmp.eq.s32.totalorder %v21447_v36, %v23533_v31  ;;  %vm6912_vm0 = vcmp.eq.s32.totalorder %v20798_v47, %v23533_v31  ;;  %vm6913_vm13 = vcmp.eq.s32.totalorder %v20801_v48, %v23533_v31 }
0x121f   :  { %18427 = vmatpush3.bf16.msk.msra.mxu1 %vm18426_vm3, %v26561_v50  ;;  %vm18428_vm6 = vmpackc.low %vm6927_vm15, %vm6926_vm14  ;;  %vm6930_vm11 = vcmp.eq.s32.totalorder %v21477_v32, %v23533_v31  ;;  %vm6931_vm12 = vcmp.eq.s32.totalorder %v21480_v3, %v23533_v31  ;;  %vm6932_vm3 = vcmp.eq.s32.totalorder %v21499_v46, %v23533_v31 }
0x1220   :  { %6864 = vmatpush1.bf16.msra.mxu0 %v19662_v2  ;;  %18429 = vmatprep.subr.msk.bf16.mxu1 %vm18428_vm6, %v26561_v50  ;;  %vm18430_vm9 = vmpackc.low %vm6911_vm1, %vm6910_vm2  ;;  %vm6914_vm2 = vcmp.eq.s32.totalorder %v20834_v59, %v23533_v31  ;;  %vm6915_vm1 = vcmp.eq.s32.totalorder %v20837_v60, %v23533_v31 }
0x1221   :  { %6865 = vmatprep.subr.bf16.mxu0 %v19667_v38  ;;  %vm18432_vm10 = vmpackc.low %vm6929_vm5, %vm6928_vm4  ;;  %vm6933_vm4 = vcmp.eq.s32.totalorder %v21502_v8, %v23533_v31 }
0x1222   :  { %vm18434_vm14 = vmpackc.low %vm6913_vm13, %vm6912_vm0  ;;  %vm6916_vm0 = vcmp.eq.s32.totalorder %v21514_v40, %v23533_v31  ;;  %vm6935_vm13 = vcmp.eq.s32.totalorder %v21530_v24, %v23533_v31 }
0x1223   :  { %18431 = vmatpush3.bf16.msk.msra.mxu1 %vm18430_vm9, %v26561_v50  ;;  %vm18436_vm15 = vmpackc.low %vm6931_vm12, %vm6930_vm11  ;;  %vm6917_vm9 = vcmp.eq.s32.totalorder %v21517_v58, %v23533_v31 }
0x1224   :  { %6866 = vmatpush1.bf16.msra.mxu0 %v19665_v45  ;;  %18433 = vmatprep.subr.msk.bf16.mxu1 %vm18432_vm10, %v26561_v50  ;;  %vm18438_vm5 = vmpackc.low %vm6915_vm1, %vm6914_vm2  ;;  %vm6934_vm10 = vcmp.eq.s32.totalorder %v21527_v17, %v23533_v31  ;;  %vm6936_vm2 = vcmp.eq.s32.totalorder %v21555_v10, %v23533_v31  ;;  %vm6937_vm1 = vcmp.eq.s32.totalorder %v26577_v54, %v23533_v31 }
0x1225   :  { %6867 = vmatprep.subr.bf16.mxu0 %v19670_v56  ;;  %vm18440_vm6 = vmpackc.low %vm6933_vm4, %vm6932_vm3 }
0x1226   :  { %vm18442_vm11 = vmpackc.low %vm6917_vm9, %vm6916_vm0  ;;  %vm6938_vm9 = vcmp.eq.s32.totalorder %v26580_v9, %v23533_v31 }
0x1227   :  { %18435 = vmatpush3.bf16.msk.msra.mxu1 %vm18434_vm14, %v26561_v50  ;;  %vm18444_vm12 = vmpackc.low %vm6935_vm13, %vm6934_vm10  ;;  %vm6918_vm14 = vcmp.eq.s32.totalorder %v21542_v11, %v23533_v31 }
0x1228   :  { %6868 = vmatpush1.bf16.msra.mxu0 %v19668_v21  ;;  %18437 = vmatprep.subr.msk.bf16.mxu1 %vm18436_vm15, %v26561_v50  ;;  %vm6919_vm15 = vcmp.eq.s32.totalorder %v21545_v22, %v23533_v31  ;;  %vm18448_vm4 = vmpackc.low %vm6937_vm1, %vm6936_vm2  ;;  %v26587_v21 = vld [vmem:[#allocation15_spill] sm:$0xff] }
0x1229   :  { %6869 = vmatprep.subr.bf16.mxu0 %v19673_v52  ;;  %vm18446_vm3 = vmpackc.low %vm6919_vm15, %vm6918_vm14  ;;  %vm6939_vm10 = vcmp.eq.s32.totalorder %v26587_v21, %v23533_v31  ;;  %v26588_v52 = vld [vmem:[#allocation16_spill] sm:$0xff] }
0x122a   :  { %vm18452_vm13 = vmpackc.low %vm6939_vm10, %vm6938_vm9 }
0x122b   :  { %18439 = vmatpush3.bf16.msk.msra.mxu1 %vm18438_vm5, %v26561_v50  ;;  %vm6920_vm5 = vcmp.eq.s32.totalorder %v26578_v49, %v23533_v31 }
0x122c   :  { %6870 = vmatpush1.bf16.msra.mxu0 %v19671_v30  ;;  %18441 = vmatprep.subr.msk.bf16.mxu1 %vm18440_vm6, %v26561_v50  ;;  %vm6921_vm6 = vcmp.eq.s32.totalorder %v26579_v61, %v23533_v31  ;;  %v26589_v30 = vld [vmem:[#allocation17_spill] sm:$0xff] }
0x122d   :  { %6871 = vmatprep.subr.bf16.mxu0 %v19676_v63  ;;  %vm18450_vm0 = vmpackc.low %vm6921_vm6, %vm6920_vm5  ;;  %v23617_v63 = vadd.s32 16, %v23533_v31 }
0x122f   :  { %18443 = vmatpush3.bf16.msk.msra.mxu1 %vm18442_vm11, %v26561_v50  ;;  %vm6922_vm11 = vcmp.eq.s32.totalorder %v26588_v52, %v23533_v31  ;;  %vm6989_vm15 = vcmp.eq.s32.totalorder %v21418_v12, %v23617_v63  ;;  %vm6990_vm2 = vcmp.eq.s32.totalorder %v21421_v13, %v23617_v63  ;;  %vm6991_vm5 = vcmp.eq.s32.totalorder %v21432_v37, %v23617_v63 }
0x1230   :  { %6872 = vmatpush1.bf16.msra.mxu0 %v19674_v62  ;;  %18445 = vmatprep.subr.msk.bf16.mxu1 %vm18444_vm12, %v26561_v50  ;;  %vm6923_vm12 = vcmp.eq.s32.totalorder %v26589_v30, %v23533_v31  ;;  %vm18456_vm1 = vmpackc.low %vm6990_vm2, %vm6989_vm15  ;;  %v16491_v62 = vld [vmem:[%s26482_s14 + $0x6] ss:$8 sm:$0x3]  ;;  %vm6992_vm6 = vcmp.eq.s32.totalorder %v21435_v18, %v23617_v63  ;;  %vm6975_vm10 = vcmp.eq.s32.totalorder %v20761_v33, %v23617_v63 }
0x1231   :  { %6873 = vmatprep.subr.bf16.mxu0 %v19679_v4  ;;  %vm18454_vm14 = vmpackc.low %vm6923_vm12, %vm6922_vm11  ;;  %v6368_v4 = vrot.slane %v16491_v62, %v21164_v0  ;;  %vm6993_vm11 = vcmp.eq.s32.totalorder %v21444_v55, %v23617_v63  ;;  %vm6994_vm12 = vcmp.eq.s32.totalorder %v21447_v36, %v23617_v63  ;;  %vm6977_vm2 = vcmp.eq.s32.totalorder %v20798_v47, %v23617_v63 }
0x1232   :  { %vm18460_vm9 = vmpackc.low %vm6992_vm6, %vm6991_vm5 }
0x1233   :  { %18447 = vmatpush3.bf16.msk.msra.mxu1 %vm18446_vm3, %v26561_v50  ;;  %vm6973_vm3 = vcmp.eq.s32.totalorder %v20706_v14, %v23617_v63  ;;  %vm18464_vm15 = vmpackc.low %vm6994_vm12, %vm6993_vm11 }
0x1234   :  { %6874 = vmatpush1.bf16.msra.mxu0 %v19677_v19  ;;  %18449 = vmatprep.subr.msk.bf16.mxu1 %vm18448_vm4, %v26561_v50  ;;  %v6372_v19 = vrot.slane %v16491_v62, %v21170_v7  ;;  %vm6974_vm4 = vcmp.eq.s32.totalorder %v20725_v20, %v23617_v63 }
0x1235   :  { %6875 = vmatprep.subr.bf16.mxu0 %v19682_v57 }
0x1237   :  { %18451 = vmatpush3.bf16.msk.msra.mxu1 %vm18450_vm0, %v26561_v50  ;;  %vm18458_vm0 = vmpackc.low %vm6974_vm4, %vm6973_vm3  ;;  %vm6995_vm3 = vcmp.eq.s32.totalorder %v21477_v32, %v23617_v63  ;;  %vm6996_vm4 = vcmp.eq.s32.totalorder %v21480_v3, %v23617_v63 }
0x1238   :  { %6876 = vmatpush1.bf16.msra.mxu0 %v19680_v5  ;;  %18453 = vmatprep.subr.msk.bf16.mxu1 %vm18452_vm13, %v26561_v50  ;;  %vm6976_vm13 = vcmp.eq.s32.totalorder %v20764_v34, %v23617_v63  ;;  %vm18468_vm6 = vmpackc.low %vm6996_vm4, %vm6995_vm3 }
0x1239   :  { %6877 = vmatprep.subr.bf16.mxu0 %v19685_v15 }
0x123b   :  { %18455 = vmatpush3.bf16.msk.msra.mxu1 %vm18454_vm14, %v26561_v50  ;;  %vm18462_vm14 = vmpackc.low %vm6976_vm13, %vm6975_vm10  ;;  %vm6997_vm10 = vcmp.eq.s32.totalorder %v21499_v46, %v23617_v63  ;;  %vm6998_vm13 = vcmp.eq.s32.totalorder %v21502_v8, %v23617_v63 }
0x123c   :  { %6878 = vmatpush1.bf16.msra.mxu0 %v19683_v53  ;;  %18457 = vmatprep.subr.msk.bf16.mxu1 %vm18456_vm1, %v26561_v50  ;;  %vm6978_vm1 = vcmp.eq.s32.totalorder %v20801_v48, %v23617_v63  ;;  %vm18472_vm12 = vmpackc.low %vm6998_vm13, %vm6997_vm10 }
0x123d   :  { %6879 = vmatprep.subr.bf16.mxu0 %v19688_v1  ;;  %vm18466_vm5 = vmpackc.low %vm6978_vm1, %vm6977_vm2  ;;  %vm6999_vm2 = vcmp.eq.s32.totalorder %v21527_v17, %v23617_v63  ;;  %vm7000_vm1 = vcmp.eq.s32.totalorder %v21530_v24, %v23617_v63 }
0x123e   :  { %vm18476_vm4 = vmpackc.low %vm7000_vm1, %vm6999_vm2 }
0x1240   :  { %6880 = vmatpush1.bf16.msra.mxu0 %v19686_v16 }
0x1241   :  { %6881 = vmatprep.subr.bf16.mxu0 %v19691_v43 }
0x1244   :  { %6882 = vmatpush1.bf16.msra.mxu0 %v19689_v29 }
0x1245   :  { %6883 = vmatprep.subr.bf16.mxu0 %v19694_v44 }
0x1248   :  { %6884 = vmatpush1.bf16.msra.mxu0 %v19692_v41 }
0x1249   :  { %6885 = vmatprep.subr.bf16.mxu0 %v19697_v51 }
0x124c   :  { %6886 = vmatpush1.bf16.msra.mxu0 %v19695_v42 }
0x124d   :  { %18491 = vmatprep.subr.bf16.mxu0 %v20550_v27 }
0x12e2   :  { %v6652_v39 = vpop.f32.mrb[120].mxu0 }
0x12e3   :  { %v6654_v6 = vpop.f32.mrb[121].mxu0 }
0x12e4   :  { %v6656_v2 = vpop.f32.mrb[122].mxu0 }
0x12e5   :  { %v6661_v38 = vpack.c.bf16 %v6656_v2, %v6652_v39  ;;  %v6658_v45 = vpop.f32.mrb[123].mxu0 }
0x12e6   :  { %v6662_v56 = vpack.c.bf16 %v6658_v45, %v6654_v6 }
0x12e8   :  { %6887 = vmatprep.mubr.bf16.mxu0 %v6662_v56 }
0x12e9   :  { %6888 = vmatmul.mubr.bf16.vlgmr.msra.gmra.mrb[116].mxu0 %v6661_v38 }
0x12ea   :  { %18007 = vmatprep.mubr.msk.f32.mxu0 %vm20549_vm7, %v26572_v26 }
0x13bc   :  { %v6889_v57 = vpop.f32.mrb[116].mxu0 }
0x13bd   :  { %v23630_v5 = vadd.f32 %v6889_v57, %v6368_v4  ;;  %v6891_v15 = vpop.f32.mrb[117].mxu0 }
0x13be   :  { %v18679_v53 = vadd.f32 %v6891_v15, %v6372_v19  ;;  %v6893_v1 = vpop.f32.mrb[118].mxu0 }
0x13bf   :  { %v6895_v16 = vpop.f32.mrb[119].mxu0  ;;  %v6902_v44 = vmax.f32 %v23630_v5, 0.0  ;;  %v23643_v41 = vadd.f32 %v6893_v1, %v6368_v4  ;;  %v26590_v1 = vld [vmem:[#allocation18_spill] sm:$0xff] }
0x13c0   :  { %v6903_v43 = vmax.f32 %v18679_v53, 0.0  ;;  %v23640_v29 = vadd.f32 %v6895_v16, %v6372_v19  ;;  %v19698_v16 = vld [vmem:[%s26476_s8] ss:$8 sps:$4 sm:$0xff]  }
0x13c1   :  { %v6904_v42 = vmax.f32 %v23643_v41, 0.0  ;;  %v19706_v41 = vld [vmem:[%s26476_s8 + $0x24] ss:$8 sps:$4 sm:$0xff]  }
0x13c2   :  { %v6905_v51 = vmax.f32 %v23640_v29, 0.0  ;;  %7101 = vmatprep.mubr.f32.mxu1 %v6903_v43  ;;  %v19703_v29 = vld [vmem:[%s26476_s8 + $0x14] ss:$8 sps:$4 sm:$0xff]  }
0x13c3   :  { %7102 = vmatmul.mubr.f32.vlgmr.msra.gmra.mrb[108].mxu1 %v6902_v44 }
0x13c4   :  { %18459 = vmatpush3.bf16.msk.msra.mxu1 %vm18458_vm0, %v26561_v50  ;;  %7106 = vmatprep.mubr.f32.mxu1 %v6905_v51  ;;  %vm6979_vm0 = vcmp.eq.s32.totalorder %v20834_v59, %v23617_v63 }
0x13c5   :  { %18461 = vmatprep.subr.msk.bf16.mxu1 %vm18460_vm9, %v26561_v50  ;;  %vm6980_vm9 = vcmp.eq.s32.totalorder %v20837_v60, %v23617_v63 }
0x13c6   :  { %vm18470_vm11 = vmpackc.low %vm6980_vm9, %vm6979_vm0  ;;  %vm7001_vm0 = vcmp.eq.s32.totalorder %v21555_v10, %v23617_v63  ;;  %vm7002_vm9 = vcmp.eq.s32.totalorder %v26577_v54, %v23617_v63 }
0x13c7   :  { %7107 = vmatmul.mubr.f32.gmra.mrb[110].mxu1 %v6904_v42  ;;  %vm18480_vm13 = vmpackc.low %vm7002_vm9, %vm7001_vm0 }
0x13c8   :  { %18463 = vmatpush3.bf16.msk.msra.mxu1 %vm18462_vm14, %v26561_v50  ;;  %7176 = vmatprep.mubr.f32.mxu1 %v6903_v43  ;;  %vm6981_vm14 = vcmp.eq.s32.totalorder %v21514_v40, %v23617_v63  ;;  %v19700_v43 = vld [vmem:[%s26476_s8 + $0x4] ss:$8 sps:$4 sm:$0xff]  }
0x13c9   :  { %18465 = vmatprep.subr.msk.bf16.mxu1 %vm18464_vm15, %v26561_v50  ;;  %vm6982_vm15 = vcmp.eq.s32.totalorder %v21517_v58, %v23617_v63 }
0x13ca   :  { %vm18474_vm3 = vmpackc.low %vm6982_vm15, %vm6981_vm14  ;;  %vm7003_vm14 = vcmp.eq.s32.totalorder %v26580_v9, %v23617_v63  ;;  %vm7004_vm15 = vcmp.eq.s32.totalorder %v26587_v21, %v23617_v63 }
0x13cb   :  { %vm18484_vm1 = vmpackc.low %vm7004_vm15, %vm7003_vm14 }
0x13cc   :  { %18467 = vmatpush3.bf16.msk.msra.mxu1 %vm18466_vm5, %v26561_v50  ;;  %vm6983_vm5 = vcmp.eq.s32.totalorder %v21542_v11, %v23617_v63 }
0x13cd   :  { %18469 = vmatprep.subr.msk.bf16.mxu1 %vm18468_vm6, %v26561_v50  ;;  %vm6984_vm6 = vcmp.eq.s32.totalorder %v21545_v22, %v23617_v63 }
0x13ce   :  { %vm18478_vm10 = vmpackc.low %vm6984_vm6, %vm6983_vm5  ;;  %vm7339_vm6 = vcmask 64512  }
0x13d0   :  { %18471 = vmatpush3.bf16.msk.msra.mxu1 %vm18470_vm11, %v26561_v50  ;;  %vm6985_vm11 = vcmp.eq.s32.totalorder %v26578_v49, %v23617_v63 }
0x13d1   :  { %18473 = vmatprep.subr.msk.bf16.mxu1 %vm18472_vm12, %v26561_v50  ;;  %vm6986_vm12 = vcmp.eq.s32.totalorder %v26579_v61, %v23617_v63 }
0x13d2   :  { %vm18482_vm2 = vmpackc.low %vm6986_vm12, %vm6985_vm11 }
0x13d4   :  { %18475 = vmatpush3.bf16.msk.msra.mxu1 %vm18474_vm3, %v26561_v50  ;;  %vm6987_vm3 = vcmp.eq.s32.totalorder %v26588_v52, %v23617_v63 }
0x13d5   :  { %18477 = vmatprep.subr.msk.bf16.mxu1 %vm18476_vm4, %v26561_v50  ;;  %vm6988_vm4 = vcmp.eq.s32.totalorder %v26589_v30, %v23617_v63 }
0x13d6   :  { %vm18486_vm5 = vmpackc.low %vm6988_vm4, %vm6987_vm3 }
0x13d8   :  { %18479 = vmatpush3.bf16.msk.msra.mxu1 %vm18478_vm10, %v26561_v50 }
0x13d9   :  { %18481 = vmatprep.subr.msk.bf16.mxu1 %vm18480_vm13, %v26561_v50 }
0x13dc   :  { %18483 = vmatpush3.bf16.msk.msra.mxu1 %vm18482_vm2, %v26561_v50 }
0x13dd   :  { %18485 = vmatprep.subr.msk.bf16.mxu1 %vm18484_vm1, %v26561_v50 }
0x13e0   :  { %18487 = vmatpush3.bf16.msk.msra.mxu1 %vm18486_vm5, %v26561_v50 }
0x13e1   :  { %18488 = vmatprep.subr.bf16.mxu1 %v20550_v27  ;;  %v19707_v27 = vld [vmem:[%s26476_s8 + $0x30] ss:$8 sps:$4 sm:$0xff]  }
0x13e3   :  { %7177 = vmatmul.mubr.f32.vlgmr.msra.gmra.mrb[112].mxu1 %v6902_v44  ;;  %v19701_v44 = vld [vmem:[%s26476_s8 + $0x10] ss:$8 sps:$4 sm:$0xff]  }
0x13e4   :  { %7181 = vmatprep.mubr.f32.mxu1 %v6905_v51  ;;  %v19704_v51 = vld [vmem:[%s26476_s8 + $0x20] ss:$8 sps:$4 sm:$0xff]  }
0x13e7   :  { %7182 = vmatmul.mubr.f32.gmra.mrb[114].mxu1 %v6904_v42  ;;  %v19709_v42 = vld [vmem:[%s26476_s8 + $0x34] ss:$8 sps:$4 sm:$0xff]  }
0x13e8   :  { %18000 = vmatprep.mubr.msk.f32.mxu1 %vm20549_vm7, %v26572_v26 }
0x1496   :  { %v17611_v31 = vpop.f32.mrb[108].mxu1 }
0x1497   :  { %v17612_v39 = vpop.f32.mrb[109].mxu1 }
0x1498   :  { %v17613_v6 = vadd.f32 %v17612_v39, %v17611_v31  ;;  %v19712_v31 = vld [vmem:[%s26476_s8 + $0x44] ss:$8 sps:$4 sm:$0xff]   ;;  %v19710_v39 = vld [vmem:[%s26476_s8 + $0x40] ss:$8 sps:$4 sm:$0xff]  }
0x149a   :  { %v17614_v2 = vpop.f32.mrb[110].mxu1 }
0x149b   :  { %v17615_v38 = vpop.f32.mrb[111].mxu1 }
0x149c   :  { %v17616_v45 = vadd.f32 %v17615_v38, %v17614_v2  ;;  %v19713_v2 = vld [vmem:[%s26476_s8 + $0x50] ss:$8 sps:$4 sm:$0xff]   ;;  %v19718_v38 = vld [vmem:[%s26476_s8 + $0x64] ss:$8 sps:$4 sm:$0xff]  }
0x14b6   :  { %v17649_v56 = vpop.f32.mrb[112].mxu1 }
0x14b7   :  { %v17650_v63 = vpop.f32.mrb[113].mxu1 }
0x14b8   :  { %v17651_v62 = vadd.f32 %v17650_v63, %v17649_v56  ;;  %v19721_v56 = vld [vmem:[%s26476_s8 + $0x74] ss:$8 sps:$4 sm:$0xff]   ;;  %v19719_v63 = vld [vmem:[%s26476_s8 + $0x70] ss:$8 sps:$4 sm:$0xff]  }
0x14ba   :  { %v7187_v4 = vmax.f32 %v17613_v6, %v17651_v62  ;;  %v17652_v19 = vpop.f32.mrb[114].mxu1  ;;  %v19715_v6 = vld [vmem:[%s26476_s8 + $0x54] ss:$8 sps:$4 sm:$0xff]  }
0x14bb   :  { %v17653_v57 = vpop.f32.mrb[115].mxu1 }
0x14bc   :  { %v17654_v5 = vadd.f32 %v17653_v57, %v17652_v19 }
0x14be   :  { %v7188_v15 = vmax.f32 %v17616_v45, %v17654_v5  ;;  %v19716_v45 = vld [vmem:[%s26476_s8 + $0x60] ss:$8 sps:$4 sm:$0xff]  }
0x14c0   :  { %v18489_v53 = vpack.c.bf16 %v7188_v15, %v7187_v4 }
0x14c2   :  { %18490 = vmatpush3.bf16.msra.mxu1 %v18489_v53  ;;  %18493 = vmatpush3.bf16.msra.mxu0 %v18489_v53 }
0x14c3   :  { %18010 = vmatprep.subr.bf16.mxu1 %v26572_v26  ;;  %7484 = vmatprep.subr.bf16.mxu0 %v19700_v43 }
0x14c5   :  { %18001 = vmatmul.mubr.msk.f32.vlgmr.msra.gmra.mrb[116].mxu1 %vm4721_vm8, %v26590_v1  ;;  %18008 = vmatmul.mubr.msk.f32.vlgmr.msra.gmra.mrb[124].mxu0 %vm4721_vm8, %v21953_v25  ;;  %vm7343_vm8 = vcmask 1043456  }
0x14c6   :  { %18012 = vmatprep.mubr.msk.bf16.mxu1 %vm20549_vm7, %v26572_v26  ;;  %7516 = vmatprep.mubr.bf16.mxu0 %v26556_v35 }
0x14c7   :  { %7485 = vmatpush1.bf16.msra.mxu0 %v19698_v16  ;;  %v26591_v16 = vld [vmem:[#allocation9_spill] sm:$0xff] }
0x14c8   :  { %7486 = vmatprep.subr.bf16.mxu0 %v19703_v29  ;;  %v23779_v43 = vpack.c.bf16 %v26591_v16, %v26591_v16  ;;  %v26592_v29 = vld [vmem:[#allocation10_spill] sm:$0xff]  ;;  %v19734_v16 = vld [vmem:[%s26476_s8 + $0xc0] ss:$8 sps:$4 sm:$0xff]  }
0x14cb   :  { %7487 = vmatpush1.bf16.msra.mxu0 %v19701_v44  ;;  %v23788_v44 = vpack.c.bf16 %v26592_v29, %v26592_v29  ;;  %v19739_v29 = vld [vmem:[%s26476_s8 + $0xd4] ss:$8 sps:$4 sm:$0xff]  }
0x14cc   :  { %7488 = vmatprep.subr.bf16.mxu0 %v19706_v41  ;;  %v19724_v41 = vld [vmem:[%s26476_s8 + $0x84] ss:$8 sps:$4 sm:$0xff]  }
0x14cf   :  { %7489 = vmatpush1.bf16.msra.mxu0 %v19704_v51 }
0x14d0   :  { %7490 = vmatprep.subr.bf16.mxu0 %v19709_v42  ;;  %v19722_v42 = vld [vmem:[%s26476_s8 + $0x80] ss:$8 sps:$4 sm:$0xff]  }
0x14d3   :  { %7491 = vmatpush1.bf16.msra.mxu0 %v19707_v27 }
0x14d4   :  { %7492 = vmatprep.subr.bf16.mxu0 %v19712_v31 }
0x14d7   :  { %7493 = vmatpush1.bf16.msra.mxu0 %v19710_v39  ;;  %v19727_v39 = vld [vmem:[%s26476_s8 + $0x94] ss:$8 sps:$4 sm:$0xff]  }
0x14d8   :  { %7494 = vmatprep.subr.bf16.mxu0 %v19715_v6 }
0x14db   :  { %7495 = vmatpush1.bf16.msra.mxu0 %v19713_v2 }
0x14dc   :  { %7496 = vmatprep.subr.bf16.mxu0 %v19718_v38  ;;  %v19725_v38 = vld [vmem:[%s26476_s8 + $0x90] ss:$8 sps:$4 sm:$0xff]  }
0x14df   :  { %7497 = vmatpush1.bf16.msra.mxu0 %v19716_v45  ;;  %v19730_v45 = vld [vmem:[%s26476_s8 + $0xa4] ss:$8 sps:$4 sm:$0xff]  }
0x14e0   :  { %7498 = vmatprep.subr.bf16.mxu0 %v19721_v56  ;;  %v19728_v56 = vld [vmem:[%s26476_s8 + $0xa0] ss:$8 sps:$4 sm:$0xff]  }
0x14e3   :  { %7499 = vmatpush1.bf16.msra.mxu0 %v19719_v63 }
0x14e4   :  { %7634 = vmatprep.subr.bf16.mxu0 %v19724_v41  ;;  %v19737_v41 = vld [vmem:[%s26476_s8 + $0xd0] ss:$8 sps:$4 sm:$0xff]  }
0x1598   :  { %v7257_v62 = vpop.f32.mrb[116].mxu1  ;;  %v7329_v4 = vpop.f32.mrb[124].mxu0 }
0x1599   :  { %v7333_v19 = vmax.f32 %v7257_v62, %v7329_v4  ;;  %v18002_v57 = vpop.f32.mrb[117].mxu1  ;;  %v18009_v5 = vpop.f32.mrb[125].mxu0  ;;  %v19733_v62 = vld [vmem:[%s26476_s8 + $0xb4] ss:$8 sps:$4 sm:$0xff]  }
0x159a   :  { %v19731_v5 = vld [vmem:[%s26476_s8 + $0xb0] ss:$8 sps:$4 sm:$0xff]  }
0x159b   :  { %v7338_v15 = vpack.c.bf16 %v7333_v19, %v7333_v19 }
0x159d   :  { %v7345_v53 = vsel %vm7343_vm8, %v7338_v15, 0 }
0x159e   :  { %18011 = vmatpush3.bf16.msra.mxu1 %v7345_v53 }
0x159f   :  { %18016 = vmatprep.subr.bf16.mxu1 %v26572_v26 }
0x15a1   :  { %18013 = vmatmul.mubr.msk.bf16.vlgmr.msra.gmra.mrb[120].mxu1 %vm7339_vm6, %v23779_v43 }
0x15a2   :  { %18017 = vmatpush3.bf16.msra.mxu1 %v7345_v53  ;;  %18018 = vmatprep.mubr.msk.bf16.mxu1 %vm20549_vm7, %v26572_v26  ;;  %v19736_v53 = vld [vmem:[%s26476_s8 + $0xc4] ss:$8 sps:$4 sm:$0xff]  }
0x15a9   :  { %18019 = vmatmul.mubr.msk.bf16.vlgmr.msra.gmra.mrb[124].mxu1 %vm7339_vm6, %v23788_v44 }
0x15aa   :  { %7904 = vmatprep.mubr.bf16.mxu1 %v26556_v35 }
0x1674   :  { %v7381_v51 = vpop.f32.mrb[120].mxu1 }
0x1675   :  { %v7387_v27 = vpack.c.bf16 %v7381_v51, %v7381_v51  ;;  %v18014_v31 = vpop.f32.mrb[121].mxu1  ;;  %v19742_v51 = vld [vmem:[%s26476_s8 + $0xe4] ss:$8 sps:$4 sm:$0xff]  }
0x1676   :  { %v7384_v6 = vpop.f32.mrb[122].mxu1  ;;  %v19743_v31 = vld [vmem:[%s26476_s8 + $0xf0] ss:$8 sps:$4 sm:$0xff]  }
0x1677   :  { %v18015_v2 = vpop.f32.mrb[123].mxu1  ;;  %7517 = vmatmul.mubr.bf16.vlgmr.msra.gmra.mrb[128].mxu0 %v7387_v27  ;;  %v19745_v27 = vld [vmem:[%s26476_s8 + $0xf4] ss:$8 sps:$4 sm:$0xff]   ;;  %v19746_v6 = vld [vmem:[%s26476_s8 + $0x100] ss:$8 sps:$4 sm:$0xff]  }
0x1678   :  { %7635 = vmatpush1.bf16.msra.mxu0 %v19722_v42  ;;  %7666 = vmatprep.mubr.bf16.mxu0 %v26556_v35  ;;  %v19740_v42 = vld [vmem:[%s26476_s8 + $0xe0] ss:$8 sps:$4 sm:$0xff]   ;;  %v19751_v2 = vld [vmem:[%s26476_s8 + $0x114] ss:$8 sps:$4 sm:$0xff]  }
0x1679   :  { %7636 = vmatprep.subr.bf16.mxu0 %v19727_v39  ;;  %v19748_v39 = vld [vmem:[%s26476_s8 + $0x104] ss:$8 sps:$4 sm:$0xff]  }
0x167c   :  { %7637 = vmatpush1.bf16.msra.mxu0 %v19725_v38  ;;  %v7714_v63 = vpop.f32.mrb[124].mxu1  ;;  %v19749_v38 = vld [vmem:[%s26476_s8 + $0x110] ss:$8 sps:$4 sm:$0xff]  }
0x167d   :  { %7638 = vmatprep.subr.bf16.mxu0 %v19730_v45  ;;  %v18020_v4 = vpop.f32.mrb[125].mxu1  ;;  %v19754_v45 = vld [vmem:[%s26476_s8 + $0x124] ss:$8 sps:$4 sm:$0xff]  }
0x167e   :  { %v7717_v19 = vpop.f32.mrb[126].mxu1  ;;  %v19760_v4 = vld [vmem:[%s26476_s8 + $0x144] ss:$8 sps:$4 sm:$0xff]  }
0x167f   :  { %v18021_v57 = vpop.f32.mrb[127].mxu1  ;;  %v19758_v19 = vld [vmem:[%s26476_s8 + $0x140] ss:$8 sps:$4 sm:$0xff]  }
0x1680   :  { %7639 = vmatpush1.bf16.msra.mxu0 %v19728_v56  ;;  %v19752_v56 = vld [vmem:[%s26476_s8 + $0x120] ss:$8 sps:$4 sm:$0xff]   ;;  %v19763_v57 = vld [vmem:[%s26476_s8 + $0x154] ss:$8 sps:$4 sm:$0xff]  }
0x1681   :  { %7640 = vmatprep.subr.bf16.mxu0 %v19733_v62  ;;  %v19755_v62 = vld [vmem:[%s26476_s8 + $0x130] ss:$8 sps:$4 sm:$0xff]  }
0x1684   :  { %7641 = vmatpush1.bf16.msra.mxu0 %v19731_v5  ;;  %v19761_v5 = vld [vmem:[%s26476_s8 + $0x150] ss:$8 sps:$4 sm:$0xff]  }
0x1685   :  { %7642 = vmatprep.subr.bf16.mxu0 %v19736_v53  ;;  %v19766_v53 = vld [vmem:[%s26476_s8 + $0x164] ss:$8 sps:$4 sm:$0xff]  }
0x1688   :  { %7643 = vmatpush1.bf16.msra.mxu0 %v19734_v16  ;;  %v19764_v16 = vld [vmem:[%s26476_s8 + $0x160] ss:$8 sps:$4 sm:$0xff]  }
0x1689   :  { %7644 = vmatprep.subr.bf16.mxu0 %v19739_v29  ;;  %v19769_v29 = vld [vmem:[%s26476_s8 + $0x174] ss:$8 sps:$4 sm:$0xff]  }
0x168c   :  { %7645 = vmatpush1.bf16.msra.mxu0 %v19737_v41  ;;  %v19767_v41 = vld [vmem:[%s26476_s8 + $0x170] ss:$8 sps:$4 sm:$0xff]  }
0x168d   :  { %7646 = vmatprep.subr.bf16.mxu0 %v19742_v51  ;;  %v7720_v51 = vpack.c.bf16 %v7714_v63, %v7714_v63 }
0x1690   :  { %7647 = vmatpush1.bf16.msra.mxu0 %v19740_v42  ;;  %v16656_v42 = vld [vmem:[%s26482_s14 + $0x7] ss:$8 sm:$0x3] }
0x1691   :  { %7648 = vmatprep.subr.bf16.mxu0 %v19745_v27  ;;  %v7529_v27 = vrot.slane %v16656_v42, %v21164_v0 }
0x1694   :  { %7649 = vmatpush1.bf16.msra.mxu0 %v19743_v31  ;;  %v7533_v31 = vrot.slane %v16656_v42, %v21170_v7  ;;  %v19779_v42 = vld [vmem:[%s26477_s9 + $0x30] ss:$8 sps:$4 sm:$0xff]  }
0x1695   :  { %7817 = vmatprep.subr.bf16.mxu0 %v19748_v39 }
0x1697   :  { %7667 = vmatmul.mubr.bf16.vlgmr.msra.gmra.mrb[128].mxu0 %v7338_v15  ;;  %v19757_v15 = vld [vmem:[%s26476_s8 + $0x134] ss:$8 sps:$4 sm:$0xff]  }
0x1698   :  { %7818 = vmatpush1.bf16.msra.mxu0 %v19746_v6  ;;  %7849 = vmatprep.mubr.bf16.mxu0 %v26556_v35 }
0x1699   :  { %7819 = vmatprep.subr.bf16.mxu0 %v19751_v2 }
0x169c   :  { %7820 = vmatpush1.bf16.msra.mxu0 %v19749_v38 }
0x169d   :  { %7821 = vmatprep.subr.bf16.mxu0 %v19754_v45 }
0x16a0   :  { %7822 = vmatpush1.bf16.msra.mxu0 %v19752_v56 }
0x16a1   :  { %7823 = vmatprep.subr.bf16.mxu0 %v19757_v15 }
0x16a4   :  { %7824 = vmatpush1.bf16.msra.mxu0 %v19755_v62 }
0x16a5   :  { %7825 = vmatprep.subr.bf16.mxu0 %v19760_v4 }
0x16a8   :  { %7826 = vmatpush1.bf16.msra.mxu0 %v19758_v19  ;;  %v19772_v19 = vld [vmem:[%s26477_s9 + $0x4] ss:$8 sps:$4 sm:$0xff]  }
0x16a9   :  { %7827 = vmatprep.subr.bf16.mxu0 %v19763_v57 }
0x16ac   :  { %7828 = vmatpush1.bf16.msra.mxu0 %v19761_v5  ;;  %v19770_v5 = vld [vmem:[%s26477_s9] ss:$8 sps:$4 sm:$0xff]  }
0x16ad   :  { %7829 = vmatprep.subr.bf16.mxu0 %v19766_v53  ;;  %v19775_v53 = vld [vmem:[%s26477_s9 + $0x14] ss:$8 sps:$4 sm:$0xff]  }
0x16b0   :  { %7830 = vmatpush1.bf16.msra.mxu0 %v19764_v16  ;;  %v19773_v16 = vld [vmem:[%s26477_s9 + $0x10] ss:$8 sps:$4 sm:$0xff]  }
0x16b1   :  { %7831 = vmatprep.subr.bf16.mxu0 %v19769_v29  ;;  %v19778_v29 = vld [vmem:[%s26477_s9 + $0x24] ss:$8 sps:$4 sm:$0xff]  }
0x16b4   :  { %7832 = vmatpush1.bf16.msra.mxu0 %v19767_v41  ;;  %v19776_v41 = vld [vmem:[%s26477_s9 + $0x20] ss:$8 sps:$4 sm:$0xff]  }
0x16b7   :  { %7850 = vmatmul.mubr.bf16.vlgmr.msra.gmra.mrb[128].mxu0 %v7720_v51  ;;  %v19781_v51 = vld [vmem:[%s26477_s9 + $0x34] ss:$8 sps:$4 sm:$0xff]  }
0x16b8   :  { %8428 = vmatprep.mubr.bf16.mxu0 %v26556_v35 }
0x178a   :  { %v7851_v39 = vpop.f32.mrb[128].mxu0 }
0x178b   :  { %v18682_v6 = vadd.f32 %v7851_v39, %v7529_v27  ;;  %v7853_v2 = vpop.f32.mrb[129].mxu0  ;;  %v19784_v27 = vld [vmem:[%s26477_s9 + $0x44] ss:$8 sps:$4 sm:$0xff]   ;;  %v19787_v39 = vld [vmem:[%s26477_s9 + $0x54] ss:$8 sps:$4 sm:$0xff]  }
0x178c   :  { %v18683_v38 = vadd.f32 %v7853_v2, %v7533_v31  ;;  %v7855_v45 = vpop.f32.mrb[130].mxu0  ;;  %v19782_v31 = vld [vmem:[%s26477_s9 + $0x40] ss:$8 sps:$4 sm:$0xff]   ;;  %v19790_v2 = vld [vmem:[%s26477_s9 + $0x64] ss:$8 sps:$4 sm:$0xff]  }
0x178d   :  { %v7860_v56 = vmax.f32 %v18682_v6, 0.0  ;;  %v7856_v15 = vpop.f32.mrb[131].mxu0  ;;  %v19785_v6 = vld [vmem:[%s26477_s9 + $0x50] ss:$8 sps:$4 sm:$0xff]   ;;  %v19793_v45 = vld [vmem:[%s26477_s9 + $0x74] ss:$8 sps:$4 sm:$0xff]  }
0x178e   :  { %v7861_v63 = vmax.f32 %v18683_v38, 0.0  ;;  %v19788_v38 = vld [vmem:[%s26477_s9 + $0x60] ss:$8 sps:$4 sm:$0xff]   ;;  %v19796_v15 = vld [vmem:[%s26477_s9 + $0x84] ss:$8 sps:$4 sm:$0xff]  }
0x178f   :  { %v23897_v62 = vpack.c.bf16 %v7860_v56, %v7860_v56  ;;  %v19791_v56 = vld [vmem:[%s26477_s9 + $0x70] ss:$8 sps:$4 sm:$0xff]  }
0x1790   :  { %v23899_v4 = vpack.c.bf16 %v7861_v63, %v7861_v63  ;;  %v19794_v63 = vld [vmem:[%s26477_s9 + $0x80] ss:$8 sps:$4 sm:$0xff]  }
0x1791   :  { %v7867_v57 = vsel %vm7343_vm8, %v23897_v62, 0 }
0x1792   :  { %16708 = vmatprep.subr.msk.bf16.mxu1 %vm7343_vm8, %v23899_v4  ;;  %16774 = vmatprep.subr.msk.bf16.mxu0 %vm7343_vm8, %v23899_v4 }
0x1793   :  { %7873 = vmatpush1.bf16.msra.mxu1 %v7867_v57  ;;  %8397 = vmatpush1.bf16.msra.mxu0 %v7867_v57  ;;  %v19797_v57 = vld [vmem:[%s26477_s9 + $0x90] ss:$8 sps:$4 sm:$0xff]  }
0x1794   :  { %8107 = vmatprep.subr.bf16.mxu1 %v19772_v19  ;;  %v19799_v19 = vld [vmem:[%s26477_s9 + $0x94] ss:$8 sps:$4 sm:$0xff]  }
0x1796   :  { %16709 = vmatmul.mubr.msk.bf16.vlgmr.msra.gmra.mrb[128].mxu1 %vm7339_vm6, %v23779_v43  ;;  %16775 = vmatmul.mubr.msk.bf16.vlgmr.msra.gmra.mrb[132].mxu0 %vm7339_vm6, %v23788_v44 }
0x1797   :  { %8108 = vmatpush1.bf16.msra.mxu1 %v19770_v5  ;;  %8718 = vmatprep.mubr.bf16.mxu0 %v26556_v35  ;;  %v19802_v5 = vld [vmem:[%s26477_s9 + $0xa4] ss:$8 sps:$4 sm:$0xff]  }
0x1798   :  { %8109 = vmatprep.subr.bf16.mxu1 %v19775_v53  ;;  %v19800_v53 = vld [vmem:[%s26477_s9 + $0xa0] ss:$8 sps:$4 sm:$0xff]  }
0x179b   :  { %8110 = vmatpush1.bf16.msra.mxu1 %v19773_v16  ;;  %v19805_v16 = vld [vmem:[%s26477_s9 + $0xb4] ss:$8 sps:$4 sm:$0xff]  }
0x179c   :  { %8111 = vmatprep.subr.bf16.mxu1 %v19778_v29  ;;  %v19803_v29 = vld [vmem:[%s26477_s9 + $0xb0] ss:$8 sps:$4 sm:$0xff]  }
0x179f   :  { %8112 = vmatpush1.bf16.msra.mxu1 %v19776_v41  ;;  %v19808_v41 = vld [vmem:[%s26477_s9 + $0xc4] ss:$8 sps:$4 sm:$0xff]  }
0x17a0   :  { %8113 = vmatprep.subr.bf16.mxu1 %v19781_v51  ;;  %v19806_v51 = vld [vmem:[%s26477_s9 + $0xc0] ss:$8 sps:$4 sm:$0xff]  }
0x17a3   :  { %8114 = vmatpush1.bf16.msra.mxu1 %v19779_v42  ;;  %v19811_v42 = vld [vmem:[%s26477_s9 + $0xd4] ss:$8 sps:$4 sm:$0xff]  }
0x17a4   :  { %8115 = vmatprep.subr.bf16.mxu1 %v19784_v27  ;;  %v19809_v27 = vld [vmem:[%s26477_s9 + $0xd0] ss:$8 sps:$4 sm:$0xff]  }
0x17a7   :  { %8116 = vmatpush1.bf16.msra.mxu1 %v19782_v31  ;;  %v19814_v31 = vld [vmem:[%s26477_s9 + $0xe4] ss:$8 sps:$4 sm:$0xff]  }
0x17a8   :  { %8117 = vmatprep.subr.bf16.mxu1 %v19787_v39  ;;  %v19812_v39 = vld [vmem:[%s26477_s9 + $0xe0] ss:$8 sps:$4 sm:$0xff]  }
0x17ab   :  { %8118 = vmatpush1.bf16.msra.mxu1 %v19785_v6  ;;  %v19817_v6 = vld [vmem:[%s26477_s9 + $0xf4] ss:$8 sps:$4 sm:$0xff]  }
0x17ac   :  { %8119 = vmatprep.subr.bf16.mxu1 %v19790_v2  ;;  %v19815_v2 = vld [vmem:[%s26477_s9 + $0xf0] ss:$8 sps:$4 sm:$0xff]  }
0x17af   :  { %8120 = vmatpush1.bf16.msra.mxu1 %v19788_v38  ;;  %v19820_v38 = vld [vmem:[%s26477_s9 + $0x104] ss:$8 sps:$4 sm:$0xff]  }
0x17b0   :  { %8121 = vmatprep.subr.bf16.mxu1 %v19793_v45 }
0x17b3   :  { %8122 = vmatpush1.bf16.msra.mxu1 %v19791_v56 }
0x17b4   :  { %8123 = vmatprep.subr.bf16.mxu1 %v19796_v15 }
0x17b7   :  { %8124 = vmatpush1.bf16.msra.mxu1 %v19794_v63 }
0x17b8   :  { %8125 = vmatprep.subr.bf16.mxu1 %v19799_v19 }
0x17bb   :  { %8126 = vmatpush1.bf16.msra.mxu1 %v19797_v57 }
0x17bc   :  { %8127 = vmatprep.subr.bf16.mxu1 %v19802_v5  ;;  %v19818_v5 = vld [vmem:[%s26477_s9 + $0x100] ss:$8 sps:$4 sm:$0xff]  }
0x17bf   :  { %8128 = vmatpush1.bf16.msra.mxu1 %v19800_v53 }
0x17c0   :  { %8129 = vmatprep.subr.bf16.mxu1 %v19805_v16 }
0x17c3   :  { %8130 = vmatpush1.bf16.msra.mxu1 %v19803_v29 }
0x17c4   :  { %8131 = vmatprep.subr.bf16.mxu1 %v19808_v41  ;;  %v19823_v41 = vld [vmem:[%s26477_s9 + $0x114] ss:$8 sps:$4 sm:$0xff]  }
0x17c7   :  { %8132 = vmatpush1.bf16.msra.mxu1 %v19806_v51 }
0x17c8   :  { %8133 = vmatprep.subr.bf16.mxu1 %v19811_v42  ;;  %v19821_v42 = vld [vmem:[%s26477_s9 + $0x110] ss:$8 sps:$4 sm:$0xff]  }
0x17cb   :  { %8134 = vmatpush1.bf16.msra.mxu1 %v19809_v27  ;;  %v19826_v27 = vld [vmem:[%s26477_s9 + $0x124] ss:$8 sps:$4 sm:$0xff]  }
0x17cc   :  { %8135 = vmatprep.subr.bf16.mxu1 %v19814_v31  ;;  %v19824_v31 = vld [vmem:[%s26477_s9 + $0x120] ss:$8 sps:$4 sm:$0xff]  }
0x17cf   :  { %8136 = vmatpush1.bf16.msra.mxu1 %v19812_v39  ;;  %v19829_v39 = vld [vmem:[%s26477_s9 + $0x134] ss:$8 sps:$4 sm:$0xff]  }
0x17d0   :  { %8137 = vmatprep.subr.bf16.mxu1 %v19817_v6  ;;  %v19832_v6 = vld [vmem:[%s26477_s9 + $0x144] ss:$8 sps:$4 sm:$0xff]  }
0x17d3   :  { %8138 = vmatpush1.bf16.msra.mxu1 %v19815_v2  ;;  %v19830_v2 = vld [vmem:[%s26477_s9 + $0x140] ss:$8 sps:$4 sm:$0xff]  }
0x17d4   :  { %8353 = vmatprep.subr.bf16.mxu1 %v19820_v38  ;;  %v19835_v38 = vld [vmem:[%s26477_s9 + $0x154] ss:$8 sps:$4 sm:$0xff]  }
0x1869   :  { %v7906_v45 = vpop.f32.mrb[128].mxu1  ;;  %v24011_v56 = vpop.f32.mrb[132].mxu0 }
0x186a   :  { %v7908_v15 = vpop.f32.mrb[129].mxu1  ;;  %v24013_v63 = vpop.f32.mrb[133].mxu0  ;;  %v7913_v16 = vpack.c.bf16 %v7906_v45, %v7906_v45  ;;  %v19833_v45 = vld [vmem:[%s26477_s9 + $0x150] ss:$8 sps:$4 sm:$0xff]  }
0x186b   :  { %v7914_v19 = vpack.c.bf16 %v7908_v15, %v7908_v15  ;;  %v7910_v57 = vpop.f32.mrb[130].mxu1  ;;  %v8434_v53 = vpop.f32.mrb[134].mxu0  ;;  %v19838_v15 = vld [vmem:[%s26477_s9 + $0x164] ss:$8 sps:$4 sm:$0xff]  }
0x186c   :  { %v7911_v29 = vpop.f32.mrb[131].mxu1  ;;  %v8435_v51 = vpop.f32.mrb[135].mxu0  ;;  %v19841_v57 = vld [vmem:[%s26477_s9 + $0x174] ss:$8 sps:$4 sm:$0xff]   ;;  %v19844_v53 = vld [vmem:[%s26477_s9 + $0x184] ss:$8 sps:$4 sm:$0xff]  }
0x186d   :  { %8139 = vmatprep.mubr.bf16.mxu1 %v7914_v19  ;;  %v19836_v19 = vld [vmem:[%s26477_s9 + $0x160] ss:$8 sps:$4 sm:$0xff]   ;;  %v19847_v29 = vld [vmem:[%s26477_s9 + $0x194] ss:$8 sps:$4 sm:$0xff]   ;;  %v19850_v51 = vld [vmem:[%s26477_s9 + $0x1a4] ss:$8 sps:$4 sm:$0xff]  }
0x186e   :  { %8140 = vmatmul.mubr.bf16.vlgmr.msra.gmra.mrb[132].mxu1 %v7913_v16  ;;  %v19842_v16 = vld [vmem:[%s26477_s9 + $0x180] ss:$8 sps:$4 sm:$0xff]  }
0x186f   :  { %8354 = vmatpush1.bf16.msra.mxu1 %v19818_v5  ;;  %8385 = vmatprep.mubr.bf16.mxu1 %v23899_v4  ;;  %v19827_v4 = vld [vmem:[%s26477_s9 + $0x130] ss:$8 sps:$4 sm:$0xff]  }
0x1870   :  { %8355 = vmatprep.subr.bf16.mxu1 %v19823_v41  ;;  %v19839_v5 = vld [vmem:[%s26477_s9 + $0x170] ss:$8 sps:$4 sm:$0xff]  }
0x1871   :  { %v19845_v41 = vld [vmem:[%s26477_s9 + $0x190] ss:$8 sps:$4 sm:$0xff]  }
0x1873   :  { %8356 = vmatpush1.bf16.msra.mxu1 %v19821_v42  ;;  %v19848_v42 = vld [vmem:[%s26477_s9 + $0x1a0] ss:$8 sps:$4 sm:$0xff]  }
0x1874   :  { %8357 = vmatprep.subr.bf16.mxu1 %v19826_v27  ;;  %v19853_v27 = vld [vmem:[%s26477_s9 + $0x1b4] ss:$8 sps:$4 sm:$0xff]  }
0x1877   :  { %8358 = vmatpush1.bf16.msra.mxu1 %v19824_v31  ;;  %v19851_v31 = vld [vmem:[%s26477_s9 + $0x1b0] ss:$8 sps:$4 sm:$0xff]  }
0x1878   :  { %8359 = vmatprep.subr.bf16.mxu1 %v19829_v39  ;;  %v19856_v39 = vld [vmem:[%s26477_s9 + $0x1c4] ss:$8 sps:$4 sm:$0xff]  }
0x187b   :  { %8360 = vmatpush1.bf16.msra.mxu1 %v19827_v4  ;;  %v19854_v4 = vld [vmem:[%s26477_s9 + $0x1c0] ss:$8 sps:$4 sm:$0xff]  }
0x187c   :  { %8361 = vmatprep.subr.bf16.mxu1 %v19832_v6  ;;  %v19859_v6 = vld [vmem:[%s26477_s9 + $0x1d4] ss:$8 sps:$4 sm:$0xff]  }
0x187f   :  { %8362 = vmatpush1.bf16.msra.mxu1 %v19830_v2  ;;  %v19857_v2 = vld [vmem:[%s26477_s9 + $0x1d0] ss:$8 sps:$4 sm:$0xff]  }
0x1880   :  { %8363 = vmatprep.subr.bf16.mxu1 %v19835_v38  ;;  %v19862_v38 = vld [vmem:[%s26477_s9 + $0x1e4] ss:$8 sps:$4 sm:$0xff]  }
0x1883   :  { %8364 = vmatpush1.bf16.msra.mxu1 %v19833_v45  ;;  %v19860_v45 = vld [vmem:[%s26477_s9 + $0x1e0] ss:$8 sps:$4 sm:$0xff]  }
0x1884   :  { %8365 = vmatprep.subr.bf16.mxu1 %v19838_v15  ;;  %v19865_v15 = vld [vmem:[%s26477_s9 + $0x1f4] ss:$8 sps:$4 sm:$0xff]  }
0x1887   :  { %8366 = vmatpush1.bf16.msra.mxu1 %v19836_v19  ;;  %v19863_v19 = vld [vmem:[%s26477_s9 + $0x1f0] ss:$8 sps:$4 sm:$0xff]  }
0x1888   :  { %8367 = vmatprep.subr.bf16.mxu1 %v19841_v57  ;;  %v19868_v57 = vld [vmem:[%s26477_s9 + $0x204] ss:$8 sps:$4 sm:$0xff]  }
0x188b   :  { %8368 = vmatpush1.bf16.msra.mxu1 %v19839_v5  ;;  %v19866_v5 = vld [vmem:[%s26477_s9 + $0x200] ss:$8 sps:$4 sm:$0xff]  }
0x188c   :  { %8369 = vmatprep.subr.bf16.mxu1 %v19844_v53  ;;  %v8438_v53 = vpack.c.bf16 %v24013_v63, %v24013_v63  ;;  %v19872_v63 = vld [vmem:[%s26477_s9 + $0x220] ss:$8 sps:$4 sm:$0xff]  }
0x188f   :  { %8370 = vmatpush1.bf16.msra.mxu1 %v19842_v16  ;;  %v19871_v16 = vld [vmem:[%s26477_s9 + $0x214] ss:$8 sps:$4 sm:$0xff]  }
0x1890   :  { %8371 = vmatprep.subr.bf16.mxu1 %v19847_v29  ;;  %v19869_v29 = vld [vmem:[%s26477_s9 + $0x210] ss:$8 sps:$4 sm:$0xff]  }
0x1893   :  { %8372 = vmatpush1.bf16.msra.mxu1 %v19845_v41  ;;  %v19874_v41 = vld [vmem:[%s26477_s9 + $0x224] ss:$8 sps:$4 sm:$0xff]  }
0x1894   :  { %8373 = vmatprep.subr.bf16.mxu1 %v19850_v51  ;;  %v19875_v51 = vld [vmem:[%s26477_s9 + $0x230] ss:$8 sps:$4 sm:$0xff]  }
0x1897   :  { %8374 = vmatpush1.bf16.msra.mxu1 %v19848_v42  ;;  %v19880_v42 = vld [vmem:[%s26477_s9 + $0x244] ss:$8 sps:$4 sm:$0xff]  }
0x1898   :  { %8375 = vmatprep.subr.bf16.mxu1 %v19853_v27  ;;  %v19878_v27 = vld [vmem:[%s26477_s9 + $0x240] ss:$8 sps:$4 sm:$0xff]  }
0x189b   :  { %8376 = vmatpush1.bf16.msra.mxu1 %v19851_v31  ;;  %v19883_v31 = vld [vmem:[%s26477_s9 + $0x254] ss:$8 sps:$4 sm:$0xff]  }
0x189c   :  { %8377 = vmatprep.subr.bf16.mxu1 %v19856_v39  ;;  %v19881_v39 = vld [vmem:[%s26477_s9 + $0x250] ss:$8 sps:$4 sm:$0xff]  }
0x189f   :  { %8378 = vmatpush1.bf16.msra.mxu1 %v19854_v4  ;;  %v19886_v4 = vld [vmem:[%s26477_s9 + $0x264] ss:$8 sps:$4 sm:$0xff]  }
0x18a0   :  { %8379 = vmatprep.subr.bf16.mxu1 %v19859_v6  ;;  %v19884_v6 = vld [vmem:[%s26477_s9 + $0x260] ss:$8 sps:$4 sm:$0xff]  }
0x18a3   :  { %8380 = vmatpush1.bf16.msra.mxu1 %v19857_v2  ;;  %v19889_v2 = vld [vmem:[%s26477_s9 + $0x274] ss:$8 sps:$4 sm:$0xff]  }
0x18a4   :  { %8381 = vmatprep.subr.bf16.mxu1 %v19862_v38  ;;  %v19887_v38 = vld [vmem:[%s26477_s9 + $0x270] ss:$8 sps:$4 sm:$0xff]  }
0x18a7   :  { %8382 = vmatpush1.bf16.msra.mxu1 %v19860_v45  ;;  %v19892_v45 = vld [vmem:[%s26477_s9 + $0x284] ss:$8 sps:$4 sm:$0xff]  }
0x18a8   :  { %8383 = vmatprep.subr.bf16.mxu1 %v19865_v15  ;;  %v19890_v15 = vld [vmem:[%s26477_s9 + $0x280] ss:$8 sps:$4 sm:$0xff]  }
0x18ab   :  { %8384 = vmatpush1.bf16.msra.mxu1 %v19863_v19  ;;  %v19895_v19 = vld [vmem:[%s26477_s9 + $0x294] ss:$8 sps:$4 sm:$0xff]  }
0x18ac   :  { %8631 = vmatprep.subr.bf16.mxu1 %v19868_v57  ;;  %v19893_v57 = vld [vmem:[%s26477_s9 + $0x290] ss:$8 sps:$4 sm:$0xff]  }
0x18ae   :  { %8386 = vmatmul.mubr.bf16.vlgmr.msra.gmra.mrb[132].mxu1 %v23897_v62  ;;  %v19877_v62 = vld [vmem:[%s26477_s9 + $0x234] ss:$8 sps:$4 sm:$0xff]  }
0x18af   :  { %8632 = vmatpush1.bf16.msra.mxu1 %v19866_v5  ;;  %8663 = vmatprep.mubr.bf16.mxu1 %v8438_v53  ;;  %v19898_v5 = vld [vmem:[%s26477_s9 + $0x2a4] ss:$8 sps:$4 sm:$0xff]   ;;  %v19896_v53 = vld [vmem:[%s26477_s9 + $0x2a0] ss:$8 sps:$4 sm:$0xff]  }
0x18b0   :  { %8633 = vmatprep.subr.bf16.mxu1 %v19871_v16  ;;  %v19901_v16 = vld [vmem:[%s26477_s9 + $0x2b4] ss:$8 sps:$4 sm:$0xff]  }
0x18b3   :  { %8634 = vmatpush1.bf16.msra.mxu1 %v19869_v29  ;;  %v19899_v29 = vld [vmem:[%s26477_s9 + $0x2b0] ss:$8 sps:$4 sm:$0xff]  }
0x18b4   :  { %8635 = vmatprep.subr.bf16.mxu1 %v19874_v41  ;;  %v19904_v41 = vld [vmem:[%s26477_s9 + $0x2c4] ss:$8 sps:$4 sm:$0xff]  }
0x18b7   :  { %8636 = vmatpush1.bf16.msra.mxu1 %v19872_v63  ;;  %v19902_v63 = vld [vmem:[%s26477_s9 + $0x2c0] ss:$8 sps:$4 sm:$0xff]  }
0x18b8   :  { %8637 = vmatprep.subr.bf16.mxu1 %v19877_v62  ;;  %v19907_v62 = vld [vmem:[%s26477_s9 + $0x2d4] ss:$8 sps:$4 sm:$0xff]  }
0x18bb   :  { %8638 = vmatpush1.bf16.msra.mxu1 %v19875_v51  ;;  %v19905_v51 = vld [vmem:[%s26477_s9 + $0x2d0] ss:$8 sps:$4 sm:$0xff]  }
0x18bc   :  { %8639 = vmatprep.subr.bf16.mxu1 %v19880_v42  ;;  %v19910_v42 = vld [vmem:[%s26477_s9 + $0x2e4] ss:$8 sps:$4 sm:$0xff]  }
0x18bf   :  { %8640 = vmatpush1.bf16.msra.mxu1 %v19878_v27  ;;  %v19908_v27 = vld [vmem:[%s26477_s9 + $0x2e0] ss:$8 sps:$4 sm:$0xff]  }
0x18c0   :  { %8641 = vmatprep.subr.bf16.mxu1 %v19883_v31  ;;  %v19913_v31 = vld [vmem:[%s26477_s9 + $0x2f4] ss:$8 sps:$4 sm:$0xff]  }
0x18c3   :  { %8642 = vmatpush1.bf16.msra.mxu1 %v19881_v39  ;;  %v19911_v39 = vld [vmem:[%s26477_s9 + $0x2f0] ss:$8 sps:$4 sm:$0xff]   ;;  %s20551_s9 = smov 96  }
0x18c4   :  { %8643 = vmatprep.subr.bf16.mxu1 %v19886_v4  ;;  %v8437_v4 = vpack.c.bf16 %v24011_v56, %v24011_v56 }
0x18c7   :  { %8644 = vmatpush1.bf16.msra.mxu1 %v19884_v6  ;;  %v16707_v6 = vld [vmem:[%s26482_s14 + $0x10] ss:$8 sm:$0x3] }
0x18c8   :  { %8645 = vmatprep.subr.bf16.mxu1 %v19889_v2  ;;  %v8152_v2 = vrot.slane %v16707_v6, %v21164_v0 }
0x18cb   :  { %8646 = vmatpush1.bf16.msra.mxu1 %v19887_v38  ;;  %v8156_v38 = vrot.slane %v16707_v6, %v21170_v7  ;;  %v19923_v6 = vld [vmem:[%s26478_s10 + $0x30] ss:$8 sps:$4 sm:$0xff]  }
0x18cc   :  { %8647 = vmatprep.subr.bf16.mxu1 %v19892_v45 }
0x18cf   :  { %8648 = vmatpush1.bf16.msra.mxu1 %v19890_v15 }
0x18d0   :  { %8649 = vmatprep.subr.bf16.mxu1 %v19895_v19 }
0x18d3   :  { %8650 = vmatpush1.bf16.msra.mxu1 %v19893_v57 }
0x18d4   :  { %8651 = vmatprep.subr.bf16.mxu1 %v19898_v5 }
0x18d7   :  { %8652 = vmatpush1.bf16.msra.mxu1 %v19896_v53 }
0x18d8   :  { %8653 = vmatprep.subr.bf16.mxu1 %v19901_v16 }
0x18db   :  { %8654 = vmatpush1.bf16.msra.mxu1 %v19899_v29 }
0x18dc   :  { %8655 = vmatprep.subr.bf16.mxu1 %v19904_v41 }
0x18df   :  { %8656 = vmatpush1.bf16.msra.mxu1 %v19902_v63  ;;  %v19916_v63 = vld [vmem:[%s26478_s10 + $0x4] ss:$8 sps:$4 sm:$0xff]  }
0x18e0   :  { %8657 = vmatprep.subr.bf16.mxu1 %v19907_v62 }
0x18e3   :  { %8658 = vmatpush1.bf16.msra.mxu1 %v19905_v51  ;;  %v19914_v51 = vld [vmem:[%s26478_s10] ss:$8 sps:$4 sm:$0xff]  }
0x18e4   :  { %8659 = vmatprep.subr.bf16.mxu1 %v19910_v42  ;;  %v19919_v42 = vld [vmem:[%s26478_s10 + $0x14] ss:$8 sps:$4 sm:$0xff]  }
0x18e7   :  { %8660 = vmatpush1.bf16.msra.mxu1 %v19908_v27  ;;  %v19917_v27 = vld [vmem:[%s26478_s10 + $0x10] ss:$8 sps:$4 sm:$0xff]  }
0x18e8   :  { %8661 = vmatprep.subr.bf16.mxu1 %v19913_v31  ;;  %v19922_v31 = vld [vmem:[%s26478_s10 + $0x24] ss:$8 sps:$4 sm:$0xff]  }
0x18eb   :  { %8662 = vmatpush1.bf16.msra.mxu1 %v19911_v39  ;;  %v19920_v39 = vld [vmem:[%s26478_s10 + $0x20] ss:$8 sps:$4 sm:$0xff]  }
0x18ee   :  { %8664 = vmatmul.mubr.bf16.vlgmr.msra.gmra.mrb[132].mxu1 %v8437_v4  ;;  %v19925_v4 = vld [vmem:[%s26478_s10 + $0x34] ss:$8 sps:$4 sm:$0xff]  }
0x18ef   :  { %9242 = vmatprep.mubr.bf16.mxu1 %v26556_v35 }
0x19c1   :  { %v8665_v45 = vpop.f32.mrb[132].mxu1 }
0x19c2   :  { %v18684_v15 = vadd.f32 %v8665_v45, %v8152_v2  ;;  %v8667_v19 = vpop.f32.mrb[133].mxu1  ;;  %v19928_v2 = vld [vmem:[%s26478_s10 + $0x44] ss:$8 sps:$4 sm:$0xff]   ;;  %v19931_v45 = vld [vmem:[%s26478_s10 + $0x54] ss:$8 sps:$4 sm:$0xff]  }
0x19c3   :  { %v18685_v57 = vadd.f32 %v8667_v19, %v8156_v38  ;;  %v8669_v5 = vpop.f32.mrb[134].mxu1  ;;  %v19926_v38 = vld [vmem:[%s26478_s10 + $0x40] ss:$8 sps:$4 sm:$0xff]   ;;  %v19934_v19 = vld [vmem:[%s26478_s10 + $0x64] ss:$8 sps:$4 sm:$0xff]  }
0x19c4   :  { %v8674_v53 = vmax.f32 %v18684_v15, 0.0  ;;  %v8670_v16 = vpop.f32.mrb[135].mxu1  ;;  %v19929_v15 = vld [vmem:[%s26478_s10 + $0x50] ss:$8 sps:$4 sm:$0xff]   ;;  %v19937_v5 = vld [vmem:[%s26478_s10 + $0x74] ss:$8 sps:$4 sm:$0xff]  }
0x19c5   :  { %v8675_v29 = vmax.f32 %v18685_v57, 0.0  ;;  %v19932_v57 = vld [vmem:[%s26478_s10 + $0x60] ss:$8 sps:$4 sm:$0xff]   ;;  %v19940_v16 = vld [vmem:[%s26478_s10 + $0x84] ss:$8 sps:$4 sm:$0xff]  }
0x19c6   :  { %v24216_v56 = vpack.c.bf16 %v8674_v53, %v8674_v53  ;;  %v19935_v53 = vld [vmem:[%s26478_s10 + $0x70] ss:$8 sps:$4 sm:$0xff]  }
0x19c7   :  { %v24218_v41 = vpack.c.bf16 %v8675_v29, %v8675_v29  ;;  %v19938_v29 = vld [vmem:[%s26478_s10 + $0x80] ss:$8 sps:$4 sm:$0xff]  }
0x19c8   :  { %v8681_v62 = vsel %vm7343_vm8, %v24216_v56, 0 }
0x19c9   :  { %16809 = vmatprep.subr.msk.bf16.mxu0 %vm7343_vm8, %v24218_v41  ;;  %16875 = vmatprep.subr.msk.bf16.mxu1 %vm7343_vm8, %v24218_v41 }
0x19ca   :  { %8687 = vmatpush1.bf16.msra.mxu0 %v8681_v62  ;;  %9211 = vmatpush1.bf16.msra.mxu1 %v8681_v62  ;;  %v19941_v62 = vld [vmem:[%s26478_s10 + $0x90] ss:$8 sps:$4 sm:$0xff]  }
0x19cb   :  { %8921 = vmatprep.subr.bf16.mxu0 %v19916_v63  ;;  %v19943_v63 = vld [vmem:[%s26478_s10 + $0x94] ss:$8 sps:$4 sm:$0xff]  }
0x19cd   :  { %16810 = vmatmul.mubr.msk.bf16.vlgmr.msra.gmra.mrb[136].mxu0 %vm7339_vm6, %v23779_v43  ;;  %16876 = vmatmul.mubr.msk.bf16.vlgmr.msra.gmra.mrb[136].mxu1 %vm7339_vm6, %v23788_v44 }
0x19ce   :  { %8922 = vmatpush1.bf16.msra.mxu0 %v19914_v51  ;;  %v19946_v51 = vld [vmem:[%s26478_s10 + $0xa4] ss:$8 sps:$4 sm:$0xff]  }
0x19cf   :  { %8923 = vmatprep.subr.bf16.mxu0 %v19919_v42  ;;  %v19944_v42 = vld [vmem:[%s26478_s10 + $0xa0] ss:$8 sps:$4 sm:$0xff]  }
0x19d2   :  { %8924 = vmatpush1.bf16.msra.mxu0 %v19917_v27  ;;  %v19949_v27 = vld [vmem:[%s26478_s10 + $0xb4] ss:$8 sps:$4 sm:$0xff]  }
0x19d3   :  { %8925 = vmatprep.subr.bf16.mxu0 %v19922_v31  ;;  %v19947_v31 = vld [vmem:[%s26478_s10 + $0xb0] ss:$8 sps:$4 sm:$0xff]  }
0x19d6   :  { %8926 = vmatpush1.bf16.msra.mxu0 %v19920_v39  ;;  %v19952_v39 = vld [vmem:[%s26478_s10 + $0xc4] ss:$8 sps:$4 sm:$0xff]  }
0x19d7   :  { %8927 = vmatprep.subr.bf16.mxu0 %v19925_v4  ;;  %v19950_v4 = vld [vmem:[%s26478_s10 + $0xc0] ss:$8 sps:$4 sm:$0xff]  }
0x19da   :  { %8928 = vmatpush1.bf16.msra.mxu0 %v19923_v6  ;;  %v19955_v6 = vld [vmem:[%s26478_s10 + $0xd4] ss:$8 sps:$4 sm:$0xff]  }
0x19db   :  { %8929 = vmatprep.subr.bf16.mxu0 %v19928_v2  ;;  %v19953_v2 = vld [vmem:[%s26478_s10 + $0xd0] ss:$8 sps:$4 sm:$0xff]  }
0x19de   :  { %8930 = vmatpush1.bf16.msra.mxu0 %v19926_v38  ;;  %v19958_v38 = vld [vmem:[%s26478_s10 + $0xe4] ss:$8 sps:$4 sm:$0xff]  }
0x19df   :  { %8931 = vmatprep.subr.bf16.mxu0 %v19931_v45  ;;  %v19956_v45 = vld [vmem:[%s26478_s10 + $0xe0] ss:$8 sps:$4 sm:$0xff]  }
0x19e2   :  { %8932 = vmatpush1.bf16.msra.mxu0 %v19929_v15  ;;  %v19961_v15 = vld [vmem:[%s26478_s10 + $0xf4] ss:$8 sps:$4 sm:$0xff]  }
0x19e3   :  { %8933 = vmatprep.subr.bf16.mxu0 %v19934_v19  ;;  %v19959_v19 = vld [vmem:[%s26478_s10 + $0xf0] ss:$8 sps:$4 sm:$0xff]  }
0x19e6   :  { %8934 = vmatpush1.bf16.msra.mxu0 %v19932_v57  ;;  %v19964_v57 = vld [vmem:[%s26478_s10 + $0x104] ss:$8 sps:$4 sm:$0xff]  }
0x19e7   :  { %8935 = vmatprep.subr.bf16.mxu0 %v19937_v5 }
0x19ea   :  { %8936 = vmatpush1.bf16.msra.mxu0 %v19935_v53 }
0x19eb   :  { %8937 = vmatprep.subr.bf16.mxu0 %v19940_v16 }
0x19ee   :  { %8938 = vmatpush1.bf16.msra.mxu0 %v19938_v29 }
0x19ef   :  { %8939 = vmatprep.subr.bf16.mxu0 %v19943_v63 }
0x19f2   :  { %8940 = vmatpush1.bf16.msra.mxu0 %v19941_v62 }
0x19f3   :  { %8941 = vmatprep.subr.bf16.mxu0 %v19946_v51  ;;  %v19962_v51 = vld [vmem:[%s26478_s10 + $0x100] ss:$8 sps:$4 sm:$0xff]  }
0x19f6   :  { %8942 = vmatpush1.bf16.msra.mxu0 %v19944_v42 }
0x19f7   :  { %8943 = vmatprep.subr.bf16.mxu0 %v19949_v27 }
0x19fa   :  { %8944 = vmatpush1.bf16.msra.mxu0 %v19947_v31 }
0x19fb   :  { %8945 = vmatprep.subr.bf16.mxu0 %v19952_v39  ;;  %v19967_v39 = vld [vmem:[%s26478_s10 + $0x114] ss:$8 sps:$4 sm:$0xff]  }
0x19fe   :  { %8946 = vmatpush1.bf16.msra.mxu0 %v19950_v4 }
0x19ff   :  { %8947 = vmatprep.subr.bf16.mxu0 %v19955_v6  ;;  %v9490_v6 = vand.u32 31, %v20733_v23  ;;  %v19968_v23 = vld [vmem:[%s26478_s10 + $0x120] ss:$8 sps:$4 sm:$0xff]  }
0x1a02   :  { %8948 = vmatpush1.bf16.msra.mxu0 %v19953_v2  ;;  %v19965_v2 = vld [vmem:[%s26478_s10 + $0x110] ss:$8 sps:$4 sm:$0xff]  }
0x1a03   :  { %8949 = vmatprep.subr.bf16.mxu0 %v19958_v38  ;;  %v19970_v38 = vld [vmem:[%s26478_s10 + $0x124] ss:$8 sps:$4 sm:$0xff]  }
0x1a06   :  { %8950 = vmatpush1.bf16.msra.mxu0 %v19956_v45  ;;  %v24348_v45 = vsub.s32 %v21425_v28, %v9490_v6  ;;  %v19973_v28 = vld [vmem:[%s26478_s10 + $0x134] ss:$8 sps:$4 sm:$0xff]   ;;  %v19992_v6 = vld [vmem:[%s26478_s10 + $0x1a0] ss:$8 sps:$4 sm:$0xff]  }
0x1a07   :  { %8951 = vmatprep.subr.bf16.mxu0 %v19961_v15  ;;  %v19976_v15 = vld [vmem:[%s26478_s10 + $0x144] ss:$8 sps:$4 sm:$0xff]  }
0x1a08   :  { %vm9508_vm0 = vcmp.eq.s32.totalorder %v21418_v12, %v24348_v45  ;;  %vm9509_vm9 = vcmp.eq.s32.totalorder %v21421_v13, %v24348_v45  ;;  %vm9492_vm10 = vcmp.eq.s32.totalorder %v20706_v14, %v24348_v45  ;;  %vm9493_vm13 = vcmp.eq.s32.totalorder %v20725_v20, %v24348_v45 }
0x1a09   :  { %vm18494_vm11 = vmpackc.low %vm9509_vm9, %vm9508_vm0  ;;  %vm9510_vm12 = vcmp.eq.s32.totalorder %v21432_v37, %v24348_v45  ;;  %vm9511_vm14 = vcmp.eq.s32.totalorder %v21435_v18, %v24348_v45  ;;  %vm9494_vm15 = vcmp.eq.s32.totalorder %v20761_v33, %v24348_v45  ;;  %vm9495_vm2 = vcmp.eq.s32.totalorder %v20764_v34, %v24348_v45 }
0x1a0a   :  { %8952 = vmatpush1.bf16.msra.mxu0 %v19959_v19  ;;  %18495 = vmatprep.subr.msk.bf16.mxu1 %vm18494_vm11, %v26561_v50  ;;  %vm18496_vm1 = vmpackc.low %vm9493_vm13, %vm9492_vm10  ;;  %vm9512_vm3 = vcmp.eq.s32.totalorder %v21444_v55, %v24348_v45  ;;  %vm9513_vm4 = vcmp.eq.s32.totalorder %v21447_v36, %v24348_v45  ;;  %vm9496_vm9 = vcmp.eq.s32.totalorder %v20798_v47, %v24348_v45  ;;  %v19974_v19 = vld [vmem:[%s26478_s10 + $0x140] ss:$8 sps:$4 sm:$0xff]  }
0x1a0b   :  { %9167 = vmatprep.subr.bf16.mxu0 %v19964_v57  ;;  %18497 = vmatpush3.bf16.msk.msra.mxu1 %vm18496_vm1, %v26561_v50  ;;  %vm18498_vm5 = vmpackc.low %vm9511_vm14, %vm9510_vm12  ;;  %vm9497_vm10 = vcmp.eq.s32.totalorder %v20801_v48, %v24348_v45  ;;  %vm9514_vm13 = vcmp.eq.s32.totalorder %v21477_v32, %v24348_v45  ;;  %vm9515_vm11 = vcmp.eq.s32.totalorder %v21480_v3, %v24348_v45  ;;  %v19979_v57 = vld [vmem:[%s26478_s10 + $0x154] ss:$8 sps:$4 sm:$0xff]  }
0x1a0c   :  { %18499 = vmatprep.subr.msk.bf16.mxu1 %vm18498_vm5, %v26561_v50  ;;  %vm18500_vm8 = vmpackc.low %vm9495_vm2, %vm9494_vm15  ;;  %vm9498_vm15 = vcmp.eq.s32.totalorder %v20834_v59, %v24348_v45  ;;  %vm9499_vm2 = vcmp.eq.s32.totalorder %v20837_v60, %v24348_v45  ;;  %vm9516_vm1 = vcmp.eq.s32.totalorder %v21499_v46, %v24348_v45 }
0x1a0d   :  { %vm18502_vm0 = vmpackc.low %vm9513_vm4, %vm9512_vm3  ;;  %vm9517_vm3 = vcmp.eq.s32.totalorder %v21502_v8, %v24348_v45 }
0x1a0e   :  { %vm18504_vm12 = vmpackc.low %vm9497_vm10, %vm9496_vm9  ;;  %vm9518_vm9 = vcmp.eq.s32.totalorder %v21527_v17, %v24348_v45  ;;  %vm9519_vm10 = vcmp.eq.s32.totalorder %v21530_v24, %v24348_v45 }
0x1a0f   :  { %18501 = vmatpush3.bf16.msk.msra.mxu1 %vm18500_vm8, %v26561_v50  ;;  %vm18506_vm14 = vmpackc.low %vm9515_vm11, %vm9514_vm13  ;;  %vm9500_vm8 = vcmp.eq.s32.totalorder %v21514_v40, %v24348_v45 }
0x1a10   :  { %18503 = vmatprep.subr.msk.bf16.mxu1 %vm18502_vm0, %v26561_v50  ;;  %vm18508_vm4 = vmpackc.low %vm9499_vm2, %vm9498_vm15  ;;  %vm9501_vm0 = vcmp.eq.s32.totalorder %v21517_v58, %v24348_v45  ;;  %vm9520_vm15 = vcmp.eq.s32.totalorder %v21555_v10, %v24348_v45  ;;  %vm9521_vm2 = vcmp.eq.s32.totalorder %v26577_v54, %v24348_v45 }
0x1a11   :  { %vm18510_vm5 = vmpackc.low %vm9517_vm3, %vm9516_vm1 }
0x1a12   :  { %vm18512_vm13 = vmpackc.low %vm9501_vm0, %vm9500_vm8  ;;  %vm9522_vm0 = vcmp.eq.s32.totalorder %v26580_v9, %v24348_v45 }
0x1a13   :  { %18505 = vmatpush3.bf16.msk.msra.mxu1 %vm18504_vm12, %v26561_v50  ;;  %vm18514_vm11 = vmpackc.low %vm9519_vm10, %vm9518_vm9  ;;  %vm9502_vm12 = vcmp.eq.s32.totalorder %v21542_v11, %v24348_v45  ;;  %vm9523_vm9 = vcmp.eq.s32.totalorder %v26587_v21, %v24348_v45 }
0x1a14   :  { %18507 = vmatprep.subr.msk.bf16.mxu1 %vm18506_vm14, %v26561_v50  ;;  %vm9503_vm14 = vcmp.eq.s32.totalorder %v21545_v22, %v24348_v45  ;;  %vm18518_vm3 = vmpackc.low %vm9521_vm2, %vm9520_vm15 }
0x1a15   :  { %vm18516_vm1 = vmpackc.low %vm9503_vm14, %vm9502_vm12 }
0x1a16   :  { %vm18522_vm10 = vmpackc.low %vm9523_vm9, %vm9522_vm0 }
0x1a17   :  { %18509 = vmatpush3.bf16.msk.msra.mxu1 %vm18508_vm4, %v26561_v50  ;;  %vm9504_vm4 = vcmp.eq.s32.totalorder %v26578_v49, %v24348_v45 }
0x1a18   :  { %18511 = vmatprep.subr.msk.bf16.mxu1 %vm18510_vm5, %v26561_v50  ;;  %vm9505_vm5 = vcmp.eq.s32.totalorder %v26579_v61, %v24348_v45 }
0x1a19   :  { %vm18520_vm8 = vmpackc.low %vm9505_vm5, %vm9504_vm4 }
0x1a1b   :  { %18513 = vmatpush3.bf16.msk.msra.mxu1 %vm18512_vm13, %v26561_v50  ;;  %vm9506_vm13 = vcmp.eq.s32.totalorder %v26588_v52, %v24348_v45 }
0x1a1c   :  { %18515 = vmatprep.subr.msk.bf16.mxu1 %vm18514_vm11, %v26561_v50  ;;  %vm9507_vm11 = vcmp.eq.s32.totalorder %v26589_v30, %v24348_v45 }
0x1a1d   :  { %vm18524_vm12 = vmpackc.low %vm9507_vm11, %vm9506_vm13 }
0x1a1f   :  { %18517 = vmatpush3.bf16.msk.msra.mxu1 %vm18516_vm1, %v26561_v50 }
0x1a20   :  { %18519 = vmatprep.subr.msk.bf16.mxu1 %vm18518_vm3, %v26561_v50 }
0x1a23   :  { %18521 = vmatpush3.bf16.msk.msra.mxu1 %vm18520_vm8, %v26561_v50 }
0x1a24   :  { %18523 = vmatprep.subr.msk.bf16.mxu1 %vm18522_vm10, %v26561_v50 }
0x1a27   :  { %18525 = vmatpush3.bf16.msk.msra.mxu1 %vm18524_vm12, %v26561_v50 }
0x1aa0   :  { %v8720_v5 = vpop.f32.mrb[136].mxu0  ;;  %v24329_v53 = vpop.f32.mrb[136].mxu1 }
0x1aa1   :  { %v8722_v16 = vpop.f32.mrb[137].mxu0  ;;  %v24331_v29 = vpop.f32.mrb[137].mxu1  ;;  %v8727_v27 = vpack.c.bf16 %v8720_v5, %v8720_v5  ;;  %v19977_v5 = vld [vmem:[%s26478_s10 + $0x150] ss:$8 sps:$4 sm:$0xff]  }
0x1aa2   :  { %v8728_v63 = vpack.c.bf16 %v8722_v16, %v8722_v16  ;;  %v8724_v62 = vpop.f32.mrb[138].mxu0  ;;  %v9248_v42 = vpop.f32.mrb[138].mxu1  ;;  %v19982_v16 = vld [vmem:[%s26478_s10 + $0x164] ss:$8 sps:$4 sm:$0xff]  }
0x1aa3   :  { %v8725_v31 = vpop.f32.mrb[139].mxu0  ;;  %v9249_v4 = vpop.f32.mrb[139].mxu1  ;;  %v19985_v62 = vld [vmem:[%s26478_s10 + $0x174] ss:$8 sps:$4 sm:$0xff]   ;;  %v19988_v42 = vld [vmem:[%s26478_s10 + $0x184] ss:$8 sps:$4 sm:$0xff]  }
0x1aa4   :  { %8953 = vmatprep.mubr.bf16.mxu0 %v8728_v63  ;;  %v19980_v63 = vld [vmem:[%s26478_s10 + $0x160] ss:$8 sps:$4 sm:$0xff]   ;;  %v19991_v31 = vld [vmem:[%s26478_s10 + $0x194] ss:$8 sps:$4 sm:$0xff]   ;;  %v19994_v4 = vld [vmem:[%s26478_s10 + $0x1a4] ss:$8 sps:$4 sm:$0xff]  }
0x1aa5   :  { %8954 = vmatmul.mubr.bf16.vlgmr.msra.gmra.mrb[140].mxu0 %v8727_v27  ;;  %v19986_v27 = vld [vmem:[%s26478_s10 + $0x180] ss:$8 sps:$4 sm:$0xff]  }
0x1aa6   :  { %9168 = vmatpush1.bf16.msra.mxu0 %v19962_v51  ;;  %9199 = vmatprep.mubr.bf16.mxu0 %v24218_v41  ;;  %v19971_v41 = vld [vmem:[%s26478_s10 + $0x130] ss:$8 sps:$4 sm:$0xff]  }
0x1aa7   :  { %9169 = vmatprep.subr.bf16.mxu0 %v19967_v39  ;;  %v19983_v51 = vld [vmem:[%s26478_s10 + $0x170] ss:$8 sps:$4 sm:$0xff]  }
0x1aa8   :  { %v19989_v39 = vld [vmem:[%s26478_s10 + $0x190] ss:$8 sps:$4 sm:$0xff]  }
0x1aaa   :  { %9170 = vmatpush1.bf16.msra.mxu0 %v19965_v2  ;;  %v19997_v2 = vld [vmem:[%s26478_s10 + $0x1b4] ss:$8 sps:$4 sm:$0xff]  }
0x1aab   :  { %9171 = vmatprep.subr.bf16.mxu0 %v19970_v38  ;;  %v19995_v38 = vld [vmem:[%s26478_s10 + $0x1b0] ss:$8 sps:$4 sm:$0xff]  }
0x1aae   :  { %9172 = vmatpush1.bf16.msra.mxu0 %v19968_v23  ;;  %v20000_v23 = vld [vmem:[%s26478_s10 + $0x1c4] ss:$8 sps:$4 sm:$0xff]  }
0x1aaf   :  { %9173 = vmatprep.subr.bf16.mxu0 %v19973_v28  ;;  %v19998_v28 = vld [vmem:[%s26478_s10 + $0x1c0] ss:$8 sps:$4 sm:$0xff]  }
0x1ab2   :  { %9174 = vmatpush1.bf16.msra.mxu0 %v19971_v41  ;;  %v20003_v41 = vld [vmem:[%s26478_s10 + $0x1d4] ss:$8 sps:$4 sm:$0xff]  }
0x1ab3   :  { %9175 = vmatprep.subr.bf16.mxu0 %v19976_v15  ;;  %v20001_v15 = vld [vmem:[%s26478_s10 + $0x1d0] ss:$8 sps:$4 sm:$0xff]  }
0x1ab6   :  { %9176 = vmatpush1.bf16.msra.mxu0 %v19974_v19  ;;  %v20006_v19 = vld [vmem:[%s26478_s10 + $0x1e4] ss:$8 sps:$4 sm:$0xff]  }
0x1ab7   :  { %9177 = vmatprep.subr.bf16.mxu0 %v19979_v57  ;;  %v20004_v57 = vld [vmem:[%s26478_s10 + $0x1e0] ss:$8 sps:$4 sm:$0xff]  }
0x1aba   :  { %9178 = vmatpush1.bf16.msra.mxu0 %v19977_v5  ;;  %v20009_v5 = vld [vmem:[%s26478_s10 + $0x1f4] ss:$8 sps:$4 sm:$0xff]  }
0x1abb   :  { %9179 = vmatprep.subr.bf16.mxu0 %v19982_v16  ;;  %v20007_v16 = vld [vmem:[%s26478_s10 + $0x1f0] ss:$8 sps:$4 sm:$0xff]  }
0x1abe   :  { %9180 = vmatpush1.bf16.msra.mxu0 %v19980_v63  ;;  %v20012_v63 = vld [vmem:[%s26478_s10 + $0x204] ss:$8 sps:$4 sm:$0xff]  }
0x1abf   :  { %9181 = vmatprep.subr.bf16.mxu0 %v19985_v62  ;;  %v20010_v62 = vld [vmem:[%s26478_s10 + $0x200] ss:$8 sps:$4 sm:$0xff]  }
0x1ac2   :  { %9182 = vmatpush1.bf16.msra.mxu0 %v19983_v51  ;;  %v9252_v51 = vpack.c.bf16 %v24331_v29, %v24331_v29  ;;  %v20016_v29 = vld [vmem:[%s26478_s10 + $0x220] ss:$8 sps:$4 sm:$0xff]  }
0x1ac3   :  { %9183 = vmatprep.subr.bf16.mxu0 %v19988_v42  ;;  %v20015_v42 = vld [vmem:[%s26478_s10 + $0x214] ss:$8 sps:$4 sm:$0xff]  }
0x1ac6   :  { %9184 = vmatpush1.bf16.msra.mxu0 %v19986_v27  ;;  %v20013_v27 = vld [vmem:[%s26478_s10 + $0x210] ss:$8 sps:$4 sm:$0xff]  }
0x1ac7   :  { %9185 = vmatprep.subr.bf16.mxu0 %v19991_v31  ;;  %v20018_v31 = vld [vmem:[%s26478_s10 + $0x224] ss:$8 sps:$4 sm:$0xff]  }
0x1aca   :  { %9186 = vmatpush1.bf16.msra.mxu0 %v19989_v39  ;;  %v20019_v39 = vld [vmem:[%s26478_s10 + $0x230] ss:$8 sps:$4 sm:$0xff]  }
0x1acb   :  { %9187 = vmatprep.subr.bf16.mxu0 %v19994_v4  ;;  %v20024_v4 = vld [vmem:[%s26478_s10 + $0x244] ss:$8 sps:$4 sm:$0xff]  }
0x1ace   :  { %9188 = vmatpush1.bf16.msra.mxu0 %v19992_v6  ;;  %v20022_v6 = vld [vmem:[%s26478_s10 + $0x240] ss:$8 sps:$4 sm:$0xff]  }
0x1acf   :  { %9189 = vmatprep.subr.bf16.mxu0 %v19997_v2  ;;  %v20027_v2 = vld [vmem:[%s26478_s10 + $0x254] ss:$8 sps:$4 sm:$0xff]  }
0x1ad2   :  { %9190 = vmatpush1.bf16.msra.mxu0 %v19995_v38  ;;  %v20025_v38 = vld [vmem:[%s26478_s10 + $0x250] ss:$8 sps:$4 sm:$0xff]  }
0x1ad3   :  { %9191 = vmatprep.subr.bf16.mxu0 %v20000_v23  ;;  %v20030_v23 = vld [vmem:[%s26478_s10 + $0x264] ss:$8 sps:$4 sm:$0xff]  }
0x1ad6   :  { %9192 = vmatpush1.bf16.msra.mxu0 %v19998_v28  ;;  %v20028_v28 = vld [vmem:[%s26478_s10 + $0x260] ss:$8 sps:$4 sm:$0xff]  }
0x1ad7   :  { %9193 = vmatprep.subr.bf16.mxu0 %v20003_v41  ;;  %v20033_v41 = vld [vmem:[%s26478_s10 + $0x274] ss:$8 sps:$4 sm:$0xff]  }
0x1ada   :  { %9194 = vmatpush1.bf16.msra.mxu0 %v20001_v15  ;;  %v20031_v15 = vld [vmem:[%s26478_s10 + $0x270] ss:$8 sps:$4 sm:$0xff]  }
0x1adb   :  { %9195 = vmatprep.subr.bf16.mxu0 %v20006_v19  ;;  %v20036_v19 = vld [vmem:[%s26478_s10 + $0x284] ss:$8 sps:$4 sm:$0xff]  }
0x1ade   :  { %9196 = vmatpush1.bf16.msra.mxu0 %v20004_v57  ;;  %v20034_v57 = vld [vmem:[%s26478_s10 + $0x280] ss:$8 sps:$4 sm:$0xff]  }
0x1adf   :  { %9197 = vmatprep.subr.bf16.mxu0 %v20009_v5  ;;  %v20039_v5 = vld [vmem:[%s26478_s10 + $0x294] ss:$8 sps:$4 sm:$0xff]  }
0x1ae2   :  { %9198 = vmatpush1.bf16.msra.mxu0 %v20007_v16  ;;  %v20037_v16 = vld [vmem:[%s26478_s10 + $0x290] ss:$8 sps:$4 sm:$0xff]  }
0x1ae3   :  { %9445 = vmatprep.subr.bf16.mxu0 %v20012_v63  ;;  %v20042_v63 = vld [vmem:[%s26478_s10 + $0x2a4] ss:$8 sps:$4 sm:$0xff]  }
0x1ae5   :  { %9200 = vmatmul.mubr.bf16.vlgmr.msra.gmra.mrb[140].mxu0 %v24216_v56  ;;  %v20021_v56 = vld [vmem:[%s26478_s10 + $0x234] ss:$8 sps:$4 sm:$0xff]  }
0x1ae6   :  { %9446 = vmatpush1.bf16.msra.mxu0 %v20010_v62  ;;  %9477 = vmatprep.mubr.bf16.mxu0 %v9252_v51  ;;  %v20040_v62 = vld [vmem:[%s26478_s10 + $0x2a0] ss:$8 sps:$4 sm:$0xff]   ;;  %v20045_v51 = vld [vmem:[%s26478_s10 + $0x2b4] ss:$8 sps:$4 sm:$0xff]  }
0x1ae7   :  { %9447 = vmatprep.subr.bf16.mxu0 %v20015_v42  ;;  %v20043_v42 = vld [vmem:[%s26478_s10 + $0x2b0] ss:$8 sps:$4 sm:$0xff]  }
0x1aea   :  { %9448 = vmatpush1.bf16.msra.mxu0 %v20013_v27  ;;  %v20048_v27 = vld [vmem:[%s26478_s10 + $0x2c4] ss:$8 sps:$4 sm:$0xff]  }
0x1aeb   :  { %9449 = vmatprep.subr.bf16.mxu0 %v20018_v31  ;;  %v20046_v31 = vld [vmem:[%s26478_s10 + $0x2c0] ss:$8 sps:$4 sm:$0xff]  }
0x1aee   :  { %9450 = vmatpush1.bf16.msra.mxu0 %v20016_v29  ;;  %v20051_v29 = vld [vmem:[%s26478_s10 + $0x2d4] ss:$8 sps:$4 sm:$0xff]  }
0x1aef   :  { %9451 = vmatprep.subr.bf16.mxu0 %v20021_v56  ;;  %v20049_v56 = vld [vmem:[%s26478_s10 + $0x2d0] ss:$8 sps:$4 sm:$0xff]  }
0x1af2   :  { %9452 = vmatpush1.bf16.msra.mxu0 %v20019_v39  ;;  %v20054_v39 = vld [vmem:[%s26478_s10 + $0x2e4] ss:$8 sps:$4 sm:$0xff]  }
0x1af3   :  { %9453 = vmatprep.subr.bf16.mxu0 %v20024_v4  ;;  %v20052_v4 = vld [vmem:[%s26478_s10 + $0x2e0] ss:$8 sps:$4 sm:$0xff]  }
0x1af6   :  { %9454 = vmatpush1.bf16.msra.mxu0 %v20022_v6  ;;  %v20057_v6 = vld [vmem:[%s26478_s10 + $0x2f4] ss:$8 sps:$4 sm:$0xff]  }
0x1af7   :  { %9455 = vmatprep.subr.bf16.mxu0 %v20027_v2  ;;  %v20055_v2 = vld [vmem:[%s26478_s10 + $0x2f0] ss:$8 sps:$4 sm:$0xff]  }
0x1afa   :  { %9456 = vmatpush1.bf16.msra.mxu0 %v20025_v38  ;;  %v9251_v38 = vpack.c.bf16 %v24329_v53, %v24329_v53  ;;  %v24615_v53 = vadd.s32 32, %v24348_v45 }
0x1afb   :  { %9457 = vmatprep.subr.bf16.mxu0 %v20030_v23  ;;  %v16808_v23 = vld [vmem:[%s26482_s14 + $0x11] ss:$8 sm:$0x3] }
0x1afc   :  { %vm9573_vm14 = vcmp.eq.s32.totalorder %v21418_v12, %v24615_v53  ;;  %vm9574_vm15 = vcmp.eq.s32.totalorder %v21421_v13, %v24615_v53  ;;  %v8970_v45 = vrot.slane %v16808_v23, %v21170_v7  ;;  %vm9557_vm1 = vcmp.eq.s32.totalorder %v20706_v14, %v24615_v53 }
0x1afd   :  { %vm18526_vm2 = vmpackc.low %vm9574_vm15, %vm9573_vm14  ;;  %vm9558_vm3 = vcmp.eq.s32.totalorder %v20725_v20, %v24615_v53  ;;  %vm9575_vm4 = vcmp.eq.s32.totalorder %v21432_v37, %v24615_v53  ;;  %vm9576_vm5 = vcmp.eq.s32.totalorder %v21435_v18, %v24615_v53  ;;  %vm9559_vm9 = vcmp.eq.s32.totalorder %v20761_v33, %v24615_v53  ;;  %v20059_v37 = vld [vmem:[%s26479_s11 + $0x8] sm:$0xff]   ;;  %v20060_v18 = vld [vmem:[%s26479_s11 + $0x10] sm:$0xff]  }
0x1afe   :  { %9458 = vmatpush1.bf16.msra.mxu0 %v20028_v28  ;;  %18527 = vmatprep.subr.msk.bf16.mxu1 %vm18526_vm2, %v26561_v50  ;;  %v8966_v28 = vrot.slane %v16808_v23, %v21164_v0  ;;  %vm18528_vm8 = vmpackc.low %vm9558_vm3, %vm9557_vm1  ;;  %vm9560_vm10 = vcmp.eq.s32.totalorder %v20764_v34, %v24615_v53  ;;  %vm9577_vm13 = vcmp.eq.s32.totalorder %v21444_v55, %v24615_v53  ;;  %v20061_v55 = vld [vmem:[%s26479_s11 + $0x18] sm:$0xff]  }
0x1aff   :  { %9459 = vmatprep.subr.bf16.mxu0 %v20033_v41  ;;  %vm18530_vm0 = vmpackc.low %vm9576_vm5, %vm9575_vm4  ;;  %vm9578_vm11 = vcmp.eq.s32.totalorder %v21447_v36, %v24615_v53  ;;  %vm9561_vm15 = vcmp.eq.s32.totalorder %v20798_v47, %v24615_v53  ;;  %vm9562_vm2 = vcmp.eq.s32.totalorder %v20801_v48, %v24615_v53  ;;  %vm9579_vm1 = vcmp.eq.s32.totalorder %v21477_v32, %v24615_v53  ;;  %v20062_v36 = vld [vmem:[%s26479_s11 + $0x20] sm:$0xff]   ;;  %v20063_v32 = vld [vmem:[%s26479_s11 + $0x28] sm:$0xff]  }
0x1b00   :  { %vm18532_vm12 = vmpackc.low %vm9560_vm10, %vm9559_vm9  ;;  %vm9580_vm3 = vcmp.eq.s32.totalorder %v21480_v3, %v24615_v53  ;;  %vm9581_vm9 = vcmp.eq.s32.totalorder %v21499_v46, %v24615_v53  ;;  %vm9582_vm10 = vcmp.eq.s32.totalorder %v21502_v8, %v24615_v53  ;;  %v20064_v3 = vld [vmem:[%s26479_s11 + $0x30] sm:$0xff]   ;;  %v20065_v46 = vld [vmem:[%s26479_s11 + $0x38] sm:$0xff]  }
0x1b01   :  { %vm18534_vm14 = vmpackc.low %vm9578_vm11, %vm9577_vm13  ;;  %v20081_v23 = vld [vmem:[%s26479_s11 + $0xb8] sm:$0xff]  }
0x1b02   :  { %9460 = vmatpush1.bf16.msra.mxu0 %v20031_v15  ;;  %vm18536_vm4 = vmpackc.low %vm9562_vm2, %vm9561_vm15  ;;  %vm9583_vm15 = vcmp.eq.s32.totalorder %v21527_v17, %v24615_v53  ;;  %vm9584_vm2 = vcmp.eq.s32.totalorder %v21530_v24, %v24615_v53 }
0x1b03   :  { %9461 = vmatprep.subr.bf16.mxu0 %v20036_v19  ;;  %vm18538_vm5 = vmpackc.low %vm9580_vm3, %vm9579_vm1 }
0x1b04   :  { %vm18542_vm11 = vmpackc.low %vm9582_vm10, %vm9581_vm9 }
0x1b05   :  { %vm18546_vm3 = vmpackc.low %vm9584_vm2, %vm9583_vm15 }
0x1b06   :  { %9462 = vmatpush1.bf16.msra.mxu0 %v20034_v57 }
0x1b07   :  { %9463 = vmatprep.subr.bf16.mxu0 %v20039_v5 }
0x1b0a   :  { %9464 = vmatpush1.bf16.msra.mxu0 %v20037_v16 }
0x1b0b   :  { %9465 = vmatprep.subr.bf16.mxu0 %v20042_v63  ;;  %v20067_v63 = vld [vmem:[%s26479_s11 + $0x48] sm:$0xff]  }
0x1b0e   :  { %9466 = vmatpush1.bf16.msra.mxu0 %v20040_v62  ;;  %v20068_v62 = vld [vmem:[%s26479_s11 + $0x50] sm:$0xff]  }
0x1b0f   :  { %9467 = vmatprep.subr.bf16.mxu0 %v20045_v51  ;;  %v20069_v51 = vld [vmem:[%s26479_s11 + $0x58] sm:$0xff]  }
0x1b12   :  { %9468 = vmatpush1.bf16.msra.mxu0 %v20043_v42  ;;  %v20070_v42 = vld [vmem:[%s26479_s11 + $0x60] sm:$0xff]  }
0x1b13   :  { %9469 = vmatprep.subr.bf16.mxu0 %v20048_v27  ;;  %v20071_v27 = vld [vmem:[%s26479_s11 + $0x68] sm:$0xff]  }
0x1b16   :  { %9470 = vmatpush1.bf16.msra.mxu0 %v20046_v31  ;;  %v20072_v31 = vld [vmem:[%s26479_s11 + $0x70] sm:$0xff]  }
0x1b17   :  { %9471 = vmatprep.subr.bf16.mxu0 %v20051_v29  ;;  %v20073_v29 = vld [vmem:[%s26479_s11 + $0x78] sm:$0xff]  }
0x1b1a   :  { %9472 = vmatpush1.bf16.msra.mxu0 %v20049_v56  ;;  %v20074_v56 = vld [vmem:[%s26479_s11 + $0x80] sm:$0xff]  }
0x1b1b   :  { %9473 = vmatprep.subr.bf16.mxu0 %v20054_v39  ;;  %v20075_v39 = vld [vmem:[%s26479_s11 + $0x88] sm:$0xff]  }
0x1b1e   :  { %9474 = vmatpush1.bf16.msra.mxu0 %v20052_v4  ;;  %v20076_v4 = vld [vmem:[%s26479_s11 + $0x90] sm:$0xff]  }
0x1b1f   :  { %9475 = vmatprep.subr.bf16.mxu0 %v20057_v6  ;;  %v20077_v6 = vld [vmem:[%s26479_s11 + $0x98] sm:$0xff]  }
0x1b22   :  { %9476 = vmatpush1.bf16.msra.mxu0 %v20055_v2  ;;  %v20078_v2 = vld [vmem:[%s26479_s11 + $0xa0] sm:$0xff]  }
0x1b23   :  { %18078 = vmatprep.subr.bf16.mxu0 %v26572_v26 }
0x1b25   :  { %9478 = vmatmul.mubr.bf16.vlgmr.msra.gmra.mrb[140].mxu0 %v9251_v38  ;;  %v20079_v38 = vld [vmem:[%s26479_s11 + $0xa8] sm:$0xff]  }
0x1b26   :  { %18080 = vmatprep.mubr.msk.bf16.mxu0 %vm20549_vm7, %v26572_v26 }
0x1bf8   :  { %v9479_v41 = vpop.f32.mrb[140].mxu0 }
0x1bf9   :  { %v24628_v15 = vadd.f32 %v9479_v41, %v8966_v28  ;;  %v9481_v19 = vpop.f32.mrb[141].mxu0 }
0x1bfa   :  { %v18687_v57 = vadd.f32 %v9481_v19, %v8970_v45  ;;  %v9483_v12 = vpop.f32.mrb[142].mxu0  ;;  %v9907_v45 = vld [vmem:[%s26482_s14 + $0x12] ss:$0 sm:$0xff] }
0x1bfb   :  { %v9484_v13 = vpop.f32.mrb[143].mxu0  ;;  %v9488_v16 = vmax.f32 %v24628_v15, 0.0 }
0x1bfc   :  { %v9489_v5 = vmax.f32 %v18687_v57, 0.0 }
0x1bfe   :  { %9685 = vmatprep.mubr.f32.mxu1 %v9489_v5 }
0x1bff   :  { %9686 = vmatmul.mubr.f32.vlgmr.msra.gmra.mrb[118].mxu1 %v9488_v16 }
0x1c00   :  { %18529 = vmatpush3.bf16.msk.msra.mxu1 %vm18528_vm8, %v26561_v50  ;;  %9755 = vmatprep.mubr.f32.mxu1 %v9489_v5  ;;  %vm9563_vm8 = vcmp.eq.s32.totalorder %v20834_v59, %v24615_v53 }
0x1c01   :  { %18531 = vmatprep.subr.msk.bf16.mxu1 %vm18530_vm0, %v26561_v50  ;;  %vm9564_vm0 = vcmp.eq.s32.totalorder %v20837_v60, %v24615_v53 }
0x1c02   :  { %vm18540_vm13 = vmpackc.low %vm9564_vm0, %vm9563_vm8  ;;  %vm9585_vm8 = vcmp.eq.s32.totalorder %v21555_v10, %v24615_v53  ;;  %vm9586_vm0 = vcmp.eq.s32.totalorder %v26577_v54, %v24615_v53 }
0x1c03   :  { %vm18550_vm10 = vmpackc.low %vm9586_vm0, %vm9585_vm8  ;;  %vm9909_vm8 = vcmask 31744  }
0x1c04   :  { %18533 = vmatpush3.bf16.msk.msra.mxu1 %vm18532_vm12, %v26561_v50  ;;  %vm9565_vm12 = vcmp.eq.s32.totalorder %v21514_v40, %v24615_v53 }
0x1c05   :  { %18535 = vmatprep.subr.msk.bf16.mxu1 %vm18534_vm14, %v26561_v50  ;;  %vm9566_vm14 = vcmp.eq.s32.totalorder %v21517_v58, %v24615_v53  ;;  %v20058_v58 = vld [vmem:[%s26479_s11] sm:$0xff]  }
0x1c06   :  { %vm18544_vm1 = vmpackc.low %vm9566_vm14, %vm9565_vm12  ;;  %vm9587_vm12 = vcmp.eq.s32.totalorder %v26580_v9, %v24615_v53  ;;  %vm9588_vm14 = vcmp.eq.s32.totalorder %v26587_v21, %v24615_v53 }
0x1c07   :  { %vm18554_vm2 = vmpackc.low %vm9588_vm14, %vm9587_vm12 }
0x1c08   :  { %18537 = vmatpush3.bf16.msk.msra.mxu1 %vm18536_vm4, %v26561_v50  ;;  %vm9567_vm4 = vcmp.eq.s32.totalorder %v21542_v11, %v24615_v53 }
0x1c09   :  { %18539 = vmatprep.subr.msk.bf16.mxu1 %vm18538_vm5, %v26561_v50  ;;  %vm9568_vm5 = vcmp.eq.s32.totalorder %v21545_v22, %v24615_v53 }
0x1c0a   :  { %vm18548_vm9 = vmpackc.low %vm9568_vm5, %vm9567_vm4  ;;  %vm9912_vm5 = vcmask 1041408  }
0x1c0c   :  { %18541 = vmatpush3.bf16.msk.msra.mxu1 %vm18540_vm13, %v26561_v50  ;;  %vm9569_vm13 = vcmp.eq.s32.totalorder %v26578_v49, %v24615_v53 }
0x1c0d   :  { %18543 = vmatprep.subr.msk.bf16.mxu1 %vm18542_vm11, %v26561_v50  ;;  %vm9570_vm11 = vcmp.eq.s32.totalorder %v26579_v61, %v24615_v53 }
0x1c0e   :  { %vm18552_vm15 = vmpackc.low %vm9570_vm11, %vm9569_vm13 }
0x1c10   :  { %18545 = vmatpush3.bf16.msk.msra.mxu1 %vm18544_vm1, %v26561_v50  ;;  %vm9571_vm1 = vcmp.eq.s32.totalorder %v26588_v52, %v24615_v53 }
0x1c11   :  { %18547 = vmatprep.subr.msk.bf16.mxu1 %vm18546_vm3, %v26561_v50  ;;  %vm9572_vm3 = vcmp.eq.s32.totalorder %v26589_v30, %v24615_v53  ;;  %v20080_v53 = vld [vmem:[%s26479_s11 + $0xb0] sm:$0xff]  }
0x1c12   :  { %vm18556_vm4 = vmpackc.low %vm9572_vm3, %vm9571_vm1 }
0x1c14   :  { %18549 = vmatpush3.bf16.msk.msra.mxu1 %vm18548_vm9, %v26561_v50 }
0x1c15   :  { %18551 = vmatprep.subr.msk.bf16.mxu1 %vm18550_vm10, %v26561_v50 }
0x1c18   :  { %18553 = vmatpush3.bf16.msk.msra.mxu1 %vm18552_vm15, %v26561_v50 }
0x1c19   :  { %18555 = vmatprep.subr.msk.bf16.mxu1 %vm18554_vm2, %v26561_v50 }
0x1c1c   :  { %18557 = vmatpush3.bf16.msk.msra.mxu1 %vm18556_vm4, %v26561_v50 }
0x1c1d   :  { %18022 = vmatprep.subr.mxu1 %v26572_v26 }
0x1c1f   :  { %9756 = vmatmul.mubr.f32.vlgmr.msra.gmra.mrb[140].mxu1 %v9488_v16 }
0x1c20   :  { %18024 = vmatprep.mubr.msk.f32.mxu1 %vm20549_vm7, %v26572_v26 }
0x1cd2   :  { %v17697_v8 = vpop.f32.mrb[118].mxu1 }
0x1cd3   :  { %v17698_v20 = vpop.f32.mrb[119].mxu1 }
0x1cd4   :  { %v17699_v33 = vadd.f32 %v17698_v20, %v17697_v8  ;;  %v20082_v8 = vld [vmem:[%s26480_s12] sm:$0xff]   ;;  %v20083_v20 = vld [vmem:[%s26480_s12 + $0x8] sm:$0xff]  }
0x1cf2   :  { %v17732_v34 = vpop.f32.mrb[140].mxu1 }
0x1cf3   :  { %v17733_v47 = vpop.f32.mrb[141].mxu1 }
0x1cf4   :  { %v17734_v48 = vadd.f32 %v17733_v47, %v17732_v34  ;;  %v20085_v34 = vld [vmem:[%s26480_s12 + $0x18] sm:$0xff]   ;;  %v20086_v47 = vld [vmem:[%s26480_s12 + $0x20] sm:$0xff]  }
0x1cf6   :  { %v9761_v59 = vmax.f32 %v17699_v33, %v17734_v48  ;;  %v20084_v33 = vld [vmem:[%s26480_s12 + $0x10] sm:$0xff]   ;;  %v20087_v48 = vld [vmem:[%s26480_s12 + $0x28] sm:$0xff]  }
0x1cf8   :  { %18023 = vmatpush3.msra.mxu1 %v9761_v59 }
0x1cf9   :  { %18025 = vmatmul.mubr.msk.f32.vlgmr.msra.gmra.mrb[142].mxu1 %vm7339_vm6, %v26590_v1  ;;  %18027 = vmatprep.subr.mxu1 %v26572_v26 }
0x1cfa   :  { %18028 = vmatpush3.msra.mxu1 %v9761_v59  ;;  %18029 = vmatprep.mubr.msk.f32.mxu1 %vm20549_vm7, %v26572_v26  ;;  %v20088_v59 = vld [vmem:[%s26480_s12 + $0x30] sm:$0xff]  }
0x1cfb   :  { %18032 = vmatprep.subr.bf16.mxu1 %v26572_v26 }
0x1cfd   :  { %18030 = vmatmul.mubr.msk.f32.vlgmr.msra.gmra.mrb[144].mxu1 %vm7339_vm6, %v21953_v25  ;;  %v20066_v25 = vld [vmem:[%s26479_s11 + $0x40] sm:$0xff]   ;;  %s15817_s11 = sshll.u32 %s20554_s29, 4  ;;  %s15818_s11 = int_to_ptr.vmem [resolvable:$true] %s15817_s11 }
0x1cfe   :  { %18034 = vmatprep.mubr.msk.bf16.mxu1 %vm20549_vm7, %v26572_v26  ;;  %p20481_p1 = scmp.lt.s32.totalorder %s15818_s11, %s15818_s11 }
0x1dcc   :  { %v9830_v60 = vpop.f32.mrb[142].mxu1 }
0x1dcd   :  { %v18026_v10 = vpop.f32.mrb[143].mxu1 }
0x1dd0   :  { %v9902_v11 = vpop.f32.mrb[144].mxu1 }
0x1dd1   :  { %v9906_v22 = vmax.f32 %v9830_v60, %v9902_v11  ;;  %v18031_v17 = vpop.f32.mrb[145].mxu1  ;;  %v20089_v60 = vld [vmem:[%s26480_s12 + $0x38] sm:$0xff]   ;;  %v20090_v11 = vld [vmem:[%s26480_s12 + $0x40] sm:$0xff]  }
0x1dd3   :  { %v24719_v24 = vpack.c.bf16 %v9906_v22, %v9906_v22 }
0x1dd5   :  { %v9914_v40 = vsel %vm9912_vm5, %v24719_v24, 0 }
0x1dd6   :  { %18033 = vmatpush3.bf16.msra.mxu1 %v9914_v40  ;;  %18079 = vmatpush3.bf16.msra.mxu0 %v9914_v40 }
0x1dd7   :  { %18038 = vmatprep.subr.bf16.mxu1 %v26572_v26  ;;  %18104 = vmatprep.subr.bf16.mxu0 %v26572_v26 }
0x1dd9   :  { %18035 = vmatmul.mubr.msk.bf16.vlgmr.msra.gmra.mrb[148].mxu1 %vm9909_vm8, %v23779_v43  ;;  %18081 = vmatmul.mubr.msk.bf16.vlgmr.msra.gmra.mrb[144].mxu0 %vm9909_vm8, %v23788_v44 }
0x1dda   :  { %18039 = vmatpush3.bf16.msra.mxu1 %v20058_v58  ;;  %18054 = vmatprep.mubr.msk.bf16.mxu1 %vm20549_vm7, %v26572_v26  ;;  %v20091_v58 = vld [vmem:[%s26480_s12 + $0x48] sm:$0xff]  }
0x1ddb   :  { %18040 = vmatprep.subr.bf16.mxu1 %v26572_v26  ;;  %18106 = vmatprep.mubr.msk.bf16.mxu0 %vm20549_vm7, %v26572_v26 }
0x1dde   :  { %18041 = vmatpush3.bf16.msra.mxu1 %v20059_v37  ;;  %v20092_v37 = vld [vmem:[%s26480_s12 + $0x50] sm:$0xff]  }
0x1ddf   :  { %18042 = vmatprep.subr.bf16.mxu1 %v26572_v26 }
0x1de2   :  { %18043 = vmatpush3.bf16.msra.mxu1 %v20060_v18  ;;  %v20093_v18 = vld [vmem:[%s26480_s12 + $0x58] sm:$0xff]  }
0x1de3   :  { %18044 = vmatprep.subr.bf16.mxu1 %v26572_v26 }
0x1de6   :  { %18045 = vmatpush3.bf16.msra.mxu1 %v20061_v55  ;;  %v20094_v55 = vld [vmem:[%s26480_s12 + $0x60] sm:$0xff]  }
0x1de7   :  { %18046 = vmatprep.subr.bf16.mxu1 %v26572_v26 }
0x1dea   :  { %18047 = vmatpush3.bf16.msra.mxu1 %v20062_v36  ;;  %v20095_v36 = vld [vmem:[%s26480_s12 + $0x68] sm:$0xff]  }
0x1deb   :  { %18048 = vmatprep.subr.bf16.mxu1 %v26572_v26 }
0x1dee   :  { %18049 = vmatpush3.bf16.msra.mxu1 %v20063_v32  ;;  %v20096_v32 = vld [vmem:[%s26480_s12 + $0x70] sm:$0xff]  }
0x1def   :  { %18050 = vmatprep.subr.bf16.mxu1 %v26572_v26 }
0x1df2   :  { %18051 = vmatpush3.bf16.msra.mxu1 %v20064_v3  ;;  %v20097_v3 = vld [vmem:[%s26480_s12 + $0x78] sm:$0xff]  }
0x1df3   :  { %18052 = vmatprep.subr.bf16.mxu1 %v26572_v26 }
0x1df6   :  { %18053 = vmatpush3.bf16.msra.mxu1 %v20065_v46  ;;  %v20098_v46 = vld [vmem:[%s26480_s12 + $0x80] sm:$0xff]  }
0x1df7   :  { %18058 = vmatprep.subr.bf16.mxu1 %v26572_v26 }
0x1eac   :  { %v9950_v50 = vpop.f32.mrb[148].mxu1  ;;  %v10203_v54 = vpop.f32.mrb[144].mxu0 }
0x1ead   :  { %v9956_v49 = vpack.c.bf16 %v9950_v50, %v9950_v50  ;;  %v18036_v61 = vpop.f32.mrb[149].mxu1  ;;  %v18082_v9 = vpop.f32.mrb[145].mxu0  ;;  %v10209_v28 = vpack.c.bf16 %v10203_v54, %v10203_v54  ;;  %v20099_v50 = vld [vmem:[%s26480_s12 + $0x88] sm:$0xff]   ;;  %v20101_v54 = vld [vmem:[%s26480_s12 + $0x98] sm:$0xff]  }
0x1eae   :  { %v9953_v21 = vpop.f32.mrb[150].mxu1  ;;  %v10206_v52 = vpop.f32.mrb[146].mxu0  ;;  %v20103_v61 = vld [vmem:[%s26480_s12 + $0xa8] sm:$0xff]   ;;  %v20104_v9 = vld [vmem:[%s26480_s12 + $0xb0] sm:$0xff]  }
0x1eaf   :  { %v18037_v30 = vpop.f32.mrb[151].mxu1  ;;  %18055 = vmatmul.mubr.bf16.vlgmr.msra.gmra.mrb[152].mxu1 %v9956_v49  ;;  %v18083_v1 = vpop.f32.mrb[147].mxu0  ;;  %v20102_v49 = vld [vmem:[%s26480_s12 + $0xa0] sm:$0xff]   ;;  %v20105_v21 = vld [vmem:[%s26480_s12 + $0xb8] sm:$0xff]  }
0x1eb0   :  { %18059 = vmatpush3.bf16.msra.mxu1 %v20066_v25  ;;  %18074 = vmatprep.mubr.msk.bf16.mxu1 %vm20549_vm7, %v26572_v26  ;;  %v20100_v25 = vld [vmem:[%s26480_s12 + $0x90] sm:$0xff]  }
0x1eb1   :  { %18060 = vmatprep.subr.bf16.mxu1 %v26572_v26 }
0x1eb4   :  { %18061 = vmatpush3.bf16.msra.mxu1 %v20067_v63 }
0x1eb5   :  { %18062 = vmatprep.subr.bf16.mxu1 %v26572_v26 }
0x1eb8   :  { %18063 = vmatpush3.bf16.msra.mxu1 %v20068_v62 }
0x1eb9   :  { %18064 = vmatprep.subr.bf16.mxu1 %v26572_v26 }
0x1ebc   :  { %18065 = vmatpush3.bf16.msra.mxu1 %v20069_v51  ;;  %v10316_v51 = vld [vmem:[%s26482_s14 + $0x13] ss:$0 sm:$0xff] }
0x1ebd   :  { %18066 = vmatprep.subr.bf16.mxu1 %v26572_v26 }
0x1ec0   :  { %18067 = vmatpush3.bf16.msra.mxu1 %v20070_v42 }
0x1ec1   :  { %18068 = vmatprep.subr.bf16.mxu1 %v26572_v26 }
0x1ec4   :  { %18069 = vmatpush3.bf16.msra.mxu1 %v20071_v27 }
0x1ec5   :  { %18070 = vmatprep.subr.bf16.mxu1 %v26572_v26 }
0x1ec8   :  { %18071 = vmatpush3.bf16.msra.mxu1 %v20072_v31 }
0x1ec9   :  { %18072 = vmatprep.subr.bf16.mxu1 %v26572_v26 }
0x1ecc   :  { %18073 = vmatpush3.bf16.msra.mxu1 %v20073_v29 }
0x1ecd   :  { %18084 = vmatprep.subr.bf16.mxu1 %v26572_v26 }
0x1ecf   :  { %18075 = vmatmul.mubr.bf16.vlgmr.msra.gmra.mrb[152].mxu1 %v24719_v24 }
0x1ed0   :  { %18085 = vmatpush3.bf16.msra.mxu1 %v20074_v56  ;;  %18100 = vmatprep.mubr.msk.bf16.mxu1 %vm20549_vm7, %v26572_v26 }
0x1ed1   :  { %18086 = vmatprep.subr.bf16.mxu1 %v26572_v26 }
0x1ed4   :  { %18087 = vmatpush3.bf16.msra.mxu1 %v20075_v39 }
0x1ed5   :  { %18088 = vmatprep.subr.bf16.mxu1 %v26572_v26 }
0x1ed8   :  { %18089 = vmatpush3.bf16.msra.mxu1 %v20076_v4 }
0x1ed9   :  { %18090 = vmatprep.subr.bf16.mxu1 %v26572_v26 }
0x1edc   :  { %18091 = vmatpush3.bf16.msra.mxu1 %v20077_v6 }
0x1edd   :  { %18092 = vmatprep.subr.bf16.mxu1 %v26572_v26 }
0x1ee0   :  { %18093 = vmatpush3.bf16.msra.mxu1 %v20078_v2  ;;  %v20106_v2 = vld [vmem:[%s26481_s13] sm:$0xff]  }
0x1ee1   :  { %18094 = vmatprep.subr.bf16.mxu1 %v26572_v26 }
0x1ee4   :  { %18095 = vmatpush3.bf16.msra.mxu1 %v20079_v38  ;;  %v20107_v38 = vld [vmem:[%s26481_s13 + $0x8] sm:$0xff]  }
0x1ee5   :  { %18096 = vmatprep.subr.bf16.mxu1 %v26572_v26 }
0x1ee8   :  { %18097 = vmatpush3.bf16.msra.mxu1 %v20080_v53  ;;  %v20110_v53 = vld [vmem:[%s26481_s13 + $0x20] sm:$0xff]  }
0x1ee9   :  { %18098 = vmatprep.subr.bf16.mxu1 %v26572_v26 }
0x1eec   :  { %18099 = vmatpush3.bf16.msra.mxu1 %v20081_v23  ;;  %v20111_v23 = vld [vmem:[%s26481_s13 + $0x28] sm:$0xff]  }
0x1eed   :  { %18176 = vmatprep.subr.bf16.mxu1 %v26572_v26 }
0x1eef   :  { %18101 = vmatmul.mubr.bf16.vlgmr.msra.gmra.mrb[152].mxu1 %v10209_v28  ;;  %v20112_v28 = vld [vmem:[%s26481_s13 + $0x30] sm:$0xff]  }
0x1ef0   :  { %18178 = vmatprep.mubr.msk.bf16.mxu1 %vm20549_vm7, %v26572_v26 }
0x1fc2   :  { %v10308_v41 = vpop.f32.mrb[152].mxu1 }
0x1fc3   :  { %v18688_v15 = vadd.f32 %v10308_v41, %v9907_v45  ;;  %v18102_v19 = vpop.f32.mrb[153].mxu1  ;;  %v20113_v45 = vld [vmem:[%s26481_s13 + $0x38] sm:$0xff]  }
0x1fc4   :  { %v10311_v57 = vpop.f32.mrb[154].mxu1 }
0x1fc5   :  { %v10315_v12 = vmax.f32 %v18688_v15, 0.0  ;;  %v18103_v13 = vpop.f32.mrb[155].mxu1  ;;  %v20114_v15 = vld [vmem:[%s26481_s13 + $0x40] sm:$0xff]  }
0x1fc7   :  { %v10317_v5 = vpack.c.bf16 %v10315_v12, %v10315_v12 }
0x1fc9   :  { %v10319_v16 = vsel %vm9912_vm5, %v10317_v5, 0 }
0x1fca   :  { %18105 = vmatpush3.bf16.msra.mxu0 %v10319_v16 }
0x1fcb   :  { %18110 = vmatprep.subr.bf16.mxu0 %v26572_v26 }
0x1fcd   :  { %18107 = vmatmul.mubr.msk.bf16.vlgmr.msra.gmra.mrb[148].mxu0 %vm9909_vm8, %v23779_v43 }
0x1fce   :  { %18111 = vmatpush3.bf16.msra.mxu0 %v20082_v8  ;;  %18126 = vmatprep.mubr.msk.bf16.mxu0 %vm20549_vm7, %v26572_v26 }
0x1fcf   :  { %18112 = vmatprep.subr.bf16.mxu0 %v26572_v26 }
0x1fd2   :  { %18113 = vmatpush3.bf16.msra.mxu0 %v20083_v20 }
0x1fd3   :  { %18114 = vmatprep.subr.bf16.mxu0 %v26572_v26 }
0x1fd6   :  { %18115 = vmatpush3.bf16.msra.mxu0 %v20084_v33  ;;  %v20115_v33 = vld [vmem:[%s26481_s13 + $0x48] sm:$0xff]  }
0x1fd7   :  { %18116 = vmatprep.subr.bf16.mxu0 %v26572_v26 }
0x1fda   :  { %18117 = vmatpush3.bf16.msra.mxu0 %v20085_v34  ;;  %v20116_v34 = vld [vmem:[%s26481_s13 + $0x50] sm:$0xff]  }
0x1fdb   :  { %18118 = vmatprep.subr.bf16.mxu0 %v26572_v26 }
0x1fde   :  { %18119 = vmatpush3.bf16.msra.mxu0 %v20086_v47  ;;  %v20117_v47 = vld [vmem:[%s26481_s13 + $0x58] sm:$0xff]  }
0x1fdf   :  { %18120 = vmatprep.subr.bf16.mxu0 %v26572_v26 }
0x1fe2   :  { %18121 = vmatpush3.bf16.msra.mxu0 %v20087_v48  ;;  %v20118_v48 = vld [vmem:[%s26481_s13 + $0x60] sm:$0xff]  }
0x1fe3   :  { %18122 = vmatprep.subr.bf16.mxu0 %v26572_v26 }
0x1fe6   :  { %18123 = vmatpush3.bf16.msra.mxu0 %v20088_v59  ;;  %v20119_v59 = vld [vmem:[%s26481_s13 + $0x68] sm:$0xff]  }
0x1fe7   :  { %18124 = vmatprep.subr.bf16.mxu0 %v26572_v26 }
0x1fea   :  { %18125 = vmatpush3.bf16.msra.mxu0 %v20089_v60  ;;  %v20120_v60 = vld [vmem:[%s26481_s13 + $0x70] sm:$0xff]  }
0x1feb   :  { %18130 = vmatprep.subr.bf16.mxu0 %v26572_v26 }
0x20a0   :  { %v10355_v10 = vpop.f32.mrb[148].mxu0 }
0x20a1   :  { %v10361_v22 = vpack.c.bf16 %v10355_v10, %v10355_v10  ;;  %v18108_v17 = vpop.f32.mrb[149].mxu0  ;;  %v20121_v10 = vld [vmem:[%s26481_s13 + $0x78] sm:$0xff]  }
0x20a2   :  { %v10358_v24 = vpop.f32.mrb[150].mxu0  ;;  %v20124_v17 = vld [vmem:[%s26481_s13 + $0x90] sm:$0xff]  }
0x20a3   :  { %v18109_v40 = vpop.f32.mrb[151].mxu0  ;;  %18127 = vmatmul.mubr.bf16.vlgmr.msra.gmra.mrb[152].mxu0 %v10361_v22  ;;  %v20123_v22 = vld [vmem:[%s26481_s13 + $0x88] sm:$0xff]   ;;  %v20125_v24 = vld [vmem:[%s26481_s13 + $0x98] sm:$0xff]  }
0x20a4   :  { %18131 = vmatpush3.bf16.msra.mxu0 %v20090_v11  ;;  %18146 = vmatprep.mubr.msk.bf16.mxu0 %vm20549_vm7, %v26572_v26  ;;  %v20122_v11 = vld [vmem:[%s26481_s13 + $0x80] sm:$0xff]  }
0x20a5   :  { %18132 = vmatprep.subr.bf16.mxu0 %v26572_v26  ;;  %v20126_v40 = vld [vmem:[%s26481_s13 + $0xa0] sm:$0xff]  }
0x20a8   :  { %18133 = vmatpush3.bf16.msra.mxu0 %v20091_v58  ;;  %v20127_v58 = vld [vmem:[%s26481_s13 + $0xa8] sm:$0xff]  }
0x20a9   :  { %18134 = vmatprep.subr.bf16.mxu0 %v26572_v26 }
0x20ac   :  { %18135 = vmatpush3.bf16.msra.mxu0 %v20092_v37  ;;  %v20128_v37 = vld [vmem:[%s26481_s13 + $0xb0] sm:$0xff]  }
0x20ad   :  { %18136 = vmatprep.subr.bf16.mxu0 %v26572_v26 }
0x20b0   :  { %18137 = vmatpush3.bf16.msra.mxu0 %v20093_v18  ;;  %v20129_v18 = vld [vmem:[%s26481_s13 + $0xb8] sm:$0xff]  }
0x20b1   :  { %18138 = vmatprep.subr.bf16.mxu0 %v26572_v26 }
0x20b4   :  { %18139 = vmatpush3.bf16.msra.mxu0 %v20094_v55 }
0x20b5   :  { %18140 = vmatprep.subr.bf16.mxu0 %v26572_v26 }
0x20b8   :  { %18141 = vmatpush3.bf16.msra.mxu0 %v20095_v36  ;;  %v20130_v36 = vld [vmem:[%s26483_s15] ss:$8 sps:$4 sm:$0xff]  }
0x20b9   :  { %18142 = vmatprep.subr.bf16.mxu0 %v26572_v26 }
0x20bc   :  { %18143 = vmatpush3.bf16.msra.mxu0 %v20096_v32  ;;  %v20132_v32 = vld [vmem:[%s26483_s15 + $0x4] ss:$8 sps:$4 sm:$0xff]  }
0x20bd   :  { %18144 = vmatprep.subr.bf16.mxu0 %v26572_v26 }
0x20c0   :  { %18145 = vmatpush3.bf16.msra.mxu0 %v20097_v3  ;;  %v20133_v3 = vld [vmem:[%s26483_s15 + $0x100] ss:$8 sps:$4 sm:$0xff]  }
0x20c1   :  { %18150 = vmatprep.subr.bf16.mxu0 %v26572_v26 }
0x20c3   :  { %18147 = vmatmul.mubr.bf16.vlgmr.msra.gmra.mrb[152].mxu0 %v10317_v5 }
0x20c4   :  { %18151 = vmatpush3.bf16.msra.mxu0 %v10319_v16  ;;  %18152 = vmatprep.mubr.msk.bf16.mxu0 %vm20549_vm7, %v26572_v26 }
0x20c5   :  { %18156 = vmatprep.subr.bf16.mxu0 %v26572_v26 }
0x20cb   :  { %18153 = vmatmul.mubr.msk.bf16.vlgmr.msra.gmra.mrb[156].mxu0 %vm9909_vm8, %v23788_v44 }
0x20cc   :  { %18157 = vmatpush3.bf16.msra.mxu0 %v20098_v46  ;;  %18172 = vmatprep.mubr.msk.bf16.mxu0 %vm20549_vm7, %v26572_v26  ;;  %v20138_v46 = vld [vmem:[%s26483_s15 + $0x14] ss:$8 sps:$4 sm:$0xff]  }
0x20cd   :  { %18158 = vmatprep.subr.bf16.mxu0 %v26572_v26 }
0x20d0   :  { %18159 = vmatpush3.bf16.msra.mxu0 %v20099_v50  ;;  %v20141_v50 = vld [vmem:[%s26483_s15 + $0x114] ss:$8 sps:$4 sm:$0xff]  }
0x20d1   :  { %18160 = vmatprep.subr.bf16.mxu0 %v26572_v26 }
0x20d4   :  { %18161 = vmatpush3.bf16.msra.mxu0 %v20100_v25  ;;  %v20136_v25 = vld [vmem:[%s26483_s15 + $0x10] ss:$8 sps:$4 sm:$0xff]  }
0x20d5   :  { %18162 = vmatprep.subr.bf16.mxu0 %v26572_v26 }
0x20d8   :  { %18163 = vmatpush3.bf16.msra.mxu0 %v20101_v54  ;;  %v20139_v54 = vld [vmem:[%s26483_s15 + $0x110] ss:$8 sps:$4 sm:$0xff]  }
0x20d9   :  { %18164 = vmatprep.subr.bf16.mxu0 %v26572_v26 }
0x20dc   :  { %18165 = vmatpush3.bf16.msra.mxu0 %v20102_v49  ;;  %v20144_v49 = vld [vmem:[%s26483_s15 + $0x24] ss:$8 sps:$4 sm:$0xff]  }
0x20dd   :  { %18166 = vmatprep.subr.bf16.mxu0 %v26572_v26 }
0x20e0   :  { %18167 = vmatpush3.bf16.msra.mxu0 %v20103_v61  ;;  %v10719_v61 = vld [vmem:[%s26482_s14 + $0x14] ss:$0 sm:$0xff] }
0x20e1   :  { %18168 = vmatprep.subr.bf16.mxu0 %v26572_v26 }
0x20e4   :  { %18169 = vmatpush3.bf16.msra.mxu0 %v20104_v9 }
0x20e5   :  { %18170 = vmatprep.subr.bf16.mxu0 %v26572_v26 }
0x20e8   :  { %18171 = vmatpush3.bf16.msra.mxu0 %v20105_v21 }
0x20e9   :  { %18222 = vmatprep.subr.bf16.mxu0 %v26572_v26 }
0x219e   :  { %v10606_v52 = vpop.f32.mrb[156].mxu0 }
0x219f   :  { %v10612_v30 = vpack.c.bf16 %v10606_v52, %v10606_v52  ;;  %v18154_v1 = vpop.f32.mrb[157].mxu0 }
0x21a0   :  { %v10609_v63 = vpop.f32.mrb[158].mxu0 }
0x21a1   :  { %v18155_v62 = vpop.f32.mrb[159].mxu0  ;;  %18173 = vmatmul.mubr.bf16.vlgmr.msra.gmra.mrb[152].mxu0 %v10612_v30 }
0x21a2   :  { %18224 = vmatprep.mubr.msk.bf16.mxu0 %vm20549_vm7, %v26572_v26 }
0x2274   :  { %v10711_v42 = vpop.f32.mrb[152].mxu0 }
0x2275   :  { %v18689_v27 = vadd.f32 %v10711_v42, %v10316_v51  ;;  %v18174_v31 = vpop.f32.mrb[153].mxu0 }
0x2276   :  { %v10714_v29 = vpop.f32.mrb[154].mxu0 }
0x2277   :  { %v10718_v56 = vmax.f32 %v18689_v27, 0.0  ;;  %v18175_v39 = vpop.f32.mrb[155].mxu0  ;;  %v20159_v27 = vld [vmem:[%s26483_s15 + $0x144] ss:$8 sps:$4 sm:$0xff]  }
0x2279   :  { %v24955_v4 = vpack.c.bf16 %v10718_v56, %v10718_v56  ;;  %v20142_v56 = vld [vmem:[%s26483_s15 + $0x20] ss:$8 sps:$4 sm:$0xff]  }
0x227b   :  { %v10722_v6 = vsel %vm9912_vm5, %v24955_v4, 0 }
0x227c   :  { %18177 = vmatpush3.bf16.msra.mxu1 %v10722_v6  ;;  %18223 = vmatpush3.bf16.msra.mxu0 %v10722_v6 }
0x227d   :  { %18182 = vmatprep.subr.bf16.mxu1 %v26572_v26  ;;  %11169 = vmatprep.subr.bf16.mxu0 %v20132_v32  ;;  %v20181_v32 = vld [vmem:[%s26483_s15 + $0x1c0] ss:$8 sps:$4 sm:$0xff]  }
0x227f   :  { %18179 = vmatmul.mubr.msk.bf16.vlgmr.msra.gmra.mrb[156].mxu1 %vm9909_vm8, %v23779_v43  ;;  %18225 = vmatmul.mubr.msk.bf16.vlgmr.msra.gmra.mrb[160].mxu0 %vm9909_vm8, %v23788_v44  ;;  %v20108_v43 = vld [vmem:[%s26481_s13 + $0x10] sm:$0xff]   ;;  %v20109_v44 = vld [vmem:[%s26481_s13 + $0x18] sm:$0xff]   ;;  %s20555_s13 = smov [#allocation2]  }
0x2280   :  { %18183 = vmatpush3.bf16.msra.mxu1 %v20106_v2  ;;  %18198 = vmatprep.mubr.msk.bf16.mxu1 %vm20549_vm7, %v26572_v26  ;;  %v20157_v2 = vld [vmem:[%s26483_s15 + $0x140] ss:$8 sps:$4 sm:$0xff]   ;;  %s15807_s7 = sshll.u32 %s20555_s13, 4  ;;  %s15808_s7 = int_to_ptr.vmem [resolvable:$true] %s15807_s7 }
0x2281   :  { %18184 = vmatprep.subr.bf16.mxu1 %v26572_v26  ;;  %11201 = vmatprep.mubr.bf16.mxu0 %v26556_v35 }
0x2282   :  { %11170 = vmatpush1.bf16.msra.mxu0 %v20130_v36  ;;  %v20178_v36 = vld [vmem:[%s26483_s15 + $0xa0] ss:$8 sps:$4 sm:$0xff]  }
0x2283   :  { %11171 = vmatprep.subr.bf16.mxu0 %v20138_v46 }
0x2284   :  { %18185 = vmatpush3.bf16.msra.mxu1 %v20107_v38 }
0x2285   :  { %18186 = vmatprep.subr.bf16.mxu1 %v26572_v26 }
0x2286   :  { %11172 = vmatpush1.bf16.msra.mxu0 %v20136_v25  ;;  %v20187_v25 = vld [vmem:[%s26483_s15 + $0x1d0] ss:$8 sps:$4 sm:$0xff]  }
0x2287   :  { %11253 = vmatprep.subr.bf16.mxu0 %v20144_v49  ;;  %v20195_v49 = vld [vmem:[%s26483_s15 + $0x204] ss:$8 sps:$4 sm:$0xff]  }
0x2288   :  { %18187 = vmatpush3.bf16.msra.mxu1 %v20108_v43 }
0x2289   :  { %18188 = vmatprep.subr.bf16.mxu1 %v26572_v26 }
0x228c   :  { %18189 = vmatpush3.bf16.msra.mxu1 %v20109_v44  ;;  %v20165_v44 = vld [vmem:[%s26483_s15 + $0x154] ss:$8 sps:$4 sm:$0xff]  }
0x228d   :  { %18190 = vmatprep.subr.bf16.mxu1 %v26572_v26 }
0x2290   :  { %18191 = vmatpush3.bf16.msra.mxu1 %v20110_v53  ;;  %v20145_v53 = vld [vmem:[%s26483_s15 + $0x30] ss:$8 sps:$4 sm:$0xff]  }
0x2291   :  { %18192 = vmatprep.subr.bf16.mxu1 %v26572_v26 }
0x2294   :  { %18193 = vmatpush3.bf16.msra.mxu1 %v20111_v23 }
0x2295   :  { %18194 = vmatprep.subr.bf16.mxu1 %v26572_v26 }
0x2298   :  { %18195 = vmatpush3.bf16.msra.mxu1 %v20112_v28  ;;  %v20150_v28 = vld [vmem:[%s26483_s15 + $0x44] ss:$8 sps:$4 sm:$0xff]  }
0x2299   :  { %18196 = vmatprep.subr.bf16.mxu1 %v26572_v26 }
0x229c   :  { %18197 = vmatpush3.bf16.msra.mxu1 %v20113_v45 }
0x229d   :  { %18202 = vmatprep.subr.bf16.mxu1 %v26572_v26 }
0x2352   :  { %v10758_v41 = vpop.f32.mrb[156].mxu1  ;;  %v11009_v19 = vpop.f32.mrb[160].mxu0 }
0x2353   :  { %v10764_v57 = vpack.c.bf16 %v10758_v41, %v10758_v41  ;;  %v18180_v12 = vpop.f32.mrb[157].mxu1  ;;  %v18226_v13 = vpop.f32.mrb[161].mxu0  ;;  %v11015_v55 = vpack.c.bf16 %v11009_v19, %v11009_v19  ;;  %v20163_v41 = vld [vmem:[%s26483_s15 + $0x150] ss:$8 sps:$4 sm:$0xff]  }
0x2354   :  { %v10761_v5 = vpop.f32.mrb[158].mxu1  ;;  %v11012_v16 = vpop.f32.mrb[162].mxu0  ;;  %v20148_v12 = vld [vmem:[%s26483_s15 + $0x40] ss:$8 sps:$4 sm:$0xff]  }
0x2355   :  { %18199 = vmatmul.mubr.bf16.vlgmr.msra.gmra.mrb[160].mxu1 %v10764_v57  ;;  %v18181_v8 = vpop.f32.mrb[159].mxu1  ;;  %v18227_v20 = vpop.f32.mrb[163].mxu0  ;;  %v20171_v57 = vld [vmem:[%s26483_s15 + $0x184] ss:$8 sps:$4 sm:$0xff]   ;;  %v20153_v5 = vld [vmem:[%s26483_s15 + $0x54] ss:$8 sps:$4 sm:$0xff]  }
0x2356   :  { %18203 = vmatpush3.bf16.msra.mxu1 %v20114_v15  ;;  %18218 = vmatprep.mubr.msk.bf16.mxu1 %vm20549_vm7, %v26572_v26  ;;  %v20151_v20 = vld [vmem:[%s26483_s15 + $0x50] ss:$8 sps:$4 sm:$0xff]  }
0x2357   :  { %18204 = vmatprep.subr.bf16.mxu1 %v26572_v26 }
0x235a   :  { %18205 = vmatpush3.bf16.msra.mxu1 %v20115_v33  ;;  %v20156_v33 = vld [vmem:[%s26483_s15 + $0x64] ss:$8 sps:$4 sm:$0xff]  }
0x235b   :  { %18206 = vmatprep.subr.bf16.mxu1 %v26572_v26 }
0x235e   :  { %18207 = vmatpush3.bf16.msra.mxu1 %v20116_v34 }
0x235f   :  { %18208 = vmatprep.subr.bf16.mxu1 %v26572_v26 }
0x2362   :  { %18209 = vmatpush3.bf16.msra.mxu1 %v20117_v47  ;;  %v20154_v47 = vld [vmem:[%s26483_s15 + $0x60] ss:$8 sps:$4 sm:$0xff]  }
0x2363   :  { %18210 = vmatprep.subr.bf16.mxu1 %v26572_v26 }
0x2366   :  { %18211 = vmatpush3.bf16.msra.mxu1 %v20118_v48  ;;  %v20162_v48 = vld [vmem:[%s26483_s15 + $0x74] ss:$8 sps:$4 sm:$0xff]  }
0x2367   :  { %18212 = vmatprep.subr.bf16.mxu1 %v26572_v26 }
0x236a   :  { %18213 = vmatpush3.bf16.msra.mxu1 %v20119_v59 }
0x236b   :  { %18214 = vmatprep.subr.bf16.mxu1 %v26572_v26 }
0x236e   :  { %18215 = vmatpush3.bf16.msra.mxu1 %v20120_v60  ;;  %v20160_v60 = vld [vmem:[%s26483_s15 + $0x70] ss:$8 sps:$4 sm:$0xff]  }
0x236f   :  { %18216 = vmatprep.subr.bf16.mxu1 %v26572_v26 }
0x2372   :  { %18217 = vmatpush3.bf16.msra.mxu1 %v20121_v10  ;;  %v20168_v10 = vld [vmem:[%s26483_s15 + $0x84] ss:$8 sps:$4 sm:$0xff]  }
0x2373   :  { %18228 = vmatprep.subr.bf16.mxu1 %v26572_v26 }
0x2375   :  { %18219 = vmatmul.mubr.bf16.vlgmr.msra.gmra.mrb[160].mxu1 %v24955_v4  ;;  %v20147_v4 = vld [vmem:[%s26483_s15 + $0x34] ss:$8 sps:$4 sm:$0xff]  }
0x2376   :  { %18229 = vmatpush3.bf16.msra.mxu1 %v20122_v11  ;;  %18244 = vmatprep.mubr.msk.bf16.mxu1 %vm20549_vm7, %v26572_v26  ;;  %vm26593_vm7 = vcmask 261120   ;;  %v20166_v11 = vld [vmem:[%s26483_s15 + $0x80] ss:$8 sps:$4 sm:$0xff]  }
0x2377   :  { %18230 = vmatprep.subr.bf16.mxu1 %v26572_v26  ;;  %vm26594_vm6 = vmmov %vm26593_vm7 }
0x2378   :  { %vm26595_vm0 = vmmov %vm26594_vm6 }
0x2379   :  { %vm26596_vm9 = vmmov %vm26595_vm0 }
0x237a   :  { %18231 = vmatpush3.bf16.msra.mxu1 %v20123_v22  ;;  %v20169_v22 = vld [vmem:[%s26483_s15 + $0x180] ss:$8 sps:$4 sm:$0xff]   ;;  %vm26597_vm10 = vmmov %vm26595_vm0 }
0x237b   :  { %18232 = vmatprep.subr.bf16.mxu1 %v26572_v26  ;;  %vm26598_vm13 = vmmov %vm26595_vm0 }
0x237c   :  { %vm26599_vm11 = vmmov %vm26595_vm0 }
0x237d   :  { %vm26600_vm12 = vmmov %vm26595_vm0 }
0x237e   :  { %18233 = vmatpush3.bf16.msra.mxu1 %v20124_v17  ;;  %v20174_v17 = vld [vmem:[%s26483_s15 + $0x94] ss:$8 sps:$4 sm:$0xff]   ;;  %vm26601_vm14 = vmmov %vm26595_vm0 }
0x237f   :  { %18234 = vmatprep.subr.bf16.mxu1 %v26572_v26  ;;  %vm26602_vm15 = vmmov %vm26595_vm0 }
0x2380   :  { %vm26603_vm2 = vmmov %vm26595_vm0 }
0x2381   :  { %vm26604_vm1 = vmmov %vm26595_vm0 }
0x2382   :  { %18235 = vmatpush3.bf16.msra.mxu1 %v20125_v24  ;;  %v20177_v24 = vld [vmem:[%s26483_s15 + $0x194] ss:$8 sps:$4 sm:$0xff]   ;;  %vm26605_vm3 = vmmov %vm26595_vm0 }
0x2383   :  { %18236 = vmatprep.subr.bf16.mxu1 %v26572_v26  ;;  %vm26606_vm4 = vmmov %vm26595_vm0 }
0x2384   :  { %vm26607_vm5 = vmmov %vm26595_vm0 }
0x2385   :  { %vm26608_vm8 = vmmov %vm26595_vm0 }
0x2386   :  { %18237 = vmatpush3.bf16.msra.mxu1 %v20126_v40 }
0x2387   :  { %18238 = vmatprep.subr.bf16.mxu1 %v26572_v26 }
0x238a   :  { %18239 = vmatpush3.bf16.msra.mxu1 %v20127_v58  ;;  %v20172_v58 = vld [vmem:[%s26483_s15 + $0x90] ss:$8 sps:$4 sm:$0xff]  }
0x238b   :  { %18240 = vmatprep.subr.bf16.mxu1 %v26572_v26 }
0x238e   :  { %18241 = vmatpush3.bf16.msra.mxu1 %v20128_v37  ;;  %v20175_v37 = vld [vmem:[%s26483_s15 + $0x190] ss:$8 sps:$4 sm:$0xff]  }
0x238f   :  { %18242 = vmatprep.subr.bf16.mxu1 %v26572_v26  ;;  %v20135_v26 = vld [vmem:[%s26483_s15 + $0x104] ss:$8 sps:$4 sm:$0xff]  }
0x2392   :  { %18243 = vmatpush3.bf16.msra.mxu1 %v20129_v18  ;;  %v20180_v18 = vld [vmem:[%s26483_s15 + $0xa4] ss:$8 sps:$4 sm:$0xff]  }
0x2393   :  { %11855 = vmatprep.subr.bf16.mxu1 %v20135_v26  ;;  %v20189_v26 = vld [vmem:[%s26483_s15 + $0x1d4] ss:$8 sps:$4 sm:$0xff]  }
0x2395   :  { %18245 = vmatmul.mubr.bf16.vlgmr.msra.gmra.mrb[160].mxu1 %v11015_v55  ;;  %v20183_v55 = vld [vmem:[%s26483_s15 + $0x1c4] ss:$8 sps:$4 sm:$0xff]  }
0x2396   :  { %11887 = vmatprep.mubr.bf16.mxu1 %v26556_v35  ;;  %11856 = vmatpush1.bf16.msra.mxu1 %v20133_v3  ;;  %v20186_v3 = vld [vmem:[%s26483_s15 + $0xb4] ss:$8 sps:$4 sm:$0xff]  }
0x2397   :  { %11857 = vmatprep.subr.bf16.mxu1 %v20141_v50  ;;  %v20184_v50 = vld [vmem:[%s26483_s15 + $0xb0] ss:$8 sps:$4 sm:$0xff]  }
0x239a   :  { %11858 = vmatpush1.bf16.msra.mxu1 %v20139_v54  ;;  %v20192_v54 = vld [vmem:[%s26483_s15 + $0xc4] ss:$8 sps:$4 sm:$0xff]  }
0x239b   :  { %12023 = vmatprep.subr.bf16.mxu1 %v20159_v27  ;;  %v20210_v27 = vld [vmem:[%s26483_s15 + $0xf4] ss:$8 sps:$4 sm:$0xff]  }
0x2468   :  { %v11114_v9 = vpop.f32.mrb[160].mxu1 }
0x2469   :  { %v18690_v21 = vadd.f32 %v11114_v9, %v10719_v61  ;;  %v18246_v52 = vpop.f32.mrb[161].mxu1  ;;  %v20190_v61 = vld [vmem:[%s26483_s15 + $0xc0] ss:$8 sps:$4 sm:$0xff]  }
0x246a   :  { %v11117_v30 = vpop.f32.mrb[162].mxu1  ;;  %v20193_v9 = vld [vmem:[%s26483_s15 + $0x200] ss:$8 sps:$4 sm:$0xff]   ;;  %v20201_v52 = vld [vmem:[%s26483_s15 + $0x214] ss:$8 sps:$4 sm:$0xff]  }
0x246b   :  { %v11121_v1 = vmax.f32 %v18690_v21, 0.0  ;;  %v18247_v63 = vpop.f32.mrb[163].mxu1  ;;  %v20198_v21 = vld [vmem:[%s26483_s15 + $0xd4] ss:$8 sps:$4 sm:$0xff]   ;;  %v20196_v30 = vld [vmem:[%s26483_s15 + $0xd0] ss:$8 sps:$4 sm:$0xff]  }
0x246c   :  { %v20204_v63 = vld [vmem:[%s26483_s15 + $0xe4] ss:$8 sps:$4 sm:$0xff]  }
0x246d   :  { %11123 = vrot.lane.b32.xlu0 %v11121_v1, %s20551_s9  ;;  %v25099_v62 = vpack.c.bf16 %v11121_v1, %v11121_v1  ;;  %v11127_v42 = vrot.slane %v11121_v1, 1 }
0x246f   :  { %v11142_v51 = vshrl.u32 %v25099_v62, 16  ;;  %v11129_v43 = vmax.f32 %v11121_v1, %v11127_v42  ;;  %v13539_v34 = vrot.slane %v25099_v62, 1  ;;  %v20207_v62 = vld [vmem:[%s26483_s15 + $0x244] ss:$8 sps:$4 sm:$0xff]  }
0x2471   :  { %11144 = vrot.lane.b32.xlu0 %v11142_v51, %s20551_s9  ;;  %v12927_v19 = vpack.c.bf16 %v11129_v43, %v11129_v43  ;;  %v20222_v43 = vld [vmem:[%s26483_s15 + $0x134] ss:$8 sps:$4 sm:$0xff]  }
0x2473   :  { %v12929_v8 = vshrl.u32 %v12927_v19, 16  ;;  %v20234_v19 = vld [vmem:[%s26483_s15 + $0x174] ss:$8 sps:$4 sm:$0xff]  }
0x2475   :  { %11131 = vrot.lane.b32.xlu0 %v11127_v42, %s20551_s9 }
0x24df   :  { %v11124_v31 = vpop.permute.xlu0 %11123 }
0x24e0   :  { %v11126_v29 = vmax.f32 %v11121_v1, %v11124_v31  ;;  %v20199_v1 = vld [vmem:[%s26483_s15 + $0x210] ss:$8 sps:$4 sm:$0xff]   ;;  %v20213_v31 = vld [vmem:[%s26483_s15 + $0x254] ss:$8 sps:$4 sm:$0xff]  }
0x24e2   :  { %v11401_v39 = vpack.c.bf16 %v11126_v29, %v11126_v29  ;;  %v11130_v23 = vmax.f32 %v11126_v29, %v11127_v42  ;;  %v20205_v42 = vld [vmem:[%s26483_s15 + $0x240] ss:$8 sps:$4 sm:$0xff]   ;;  %v20208_v29 = vld [vmem:[%s26483_s15 + $0xf0] ss:$8 sps:$4 sm:$0xff]  }
0x24e3   :  { %v25113_v6 = vpop.permute.xlu0 %11144 }
0x24e4   :  { %17057 = vmatmul.mubr.msk.bf16.vlgmr.msra.gmra.mrb[164].mxu0 %vm26593_vm7, %v25113_v6  ;;  %17097 = vmatmul.mubr.msk.bf16.vlgmr.msra.gmra.mrb[164].mxu1 %vm26594_vm6, %v25113_v6  ;;  %v11403_v38 = vshrl.u32 %v11401_v39, 16  ;;  %v13798_v59 = vrot.slane %v11401_v39, 1  ;;  %v20216_v39 = vld [vmem:[%s26483_s15 + $0x124] ss:$8 sps:$4 sm:$0xff]   ;;  %vm26609_vm7 = vmmov %vm26595_vm0 }
0x24e5   :  { %11254 = vmatpush1.bf16.msra.mxu0 %v20142_v56  ;;  %11285 = vmatprep.mubr.bf16.mxu0 %v26556_v35  ;;  %v20211_v56 = vld [vmem:[%s26483_s15 + $0x250] ss:$8 sps:$4 sm:$0xff]   ;;  %vm26610_vm6 = vmmov %vm26595_vm0 }
0x24e6   :  { %11405 = vrot.lane.b32.xlu1 %v11403_v38, %s20551_s9  ;;  %11255 = vmatprep.subr.bf16.mxu0 %v20147_v4  ;;  %v20219_v4 = vld [vmem:[%s26483_s15 + $0x284] ss:$8 sps:$4 sm:$0xff]   ;;  %v20217_v38 = vld [vmem:[%s26483_s15 + $0x280] ss:$8 sps:$4 sm:$0xff]  }
0x24e7   :  { %v11132_v45 = vpop.permute.xlu0 %11131  ;;  %12024 = vmatpush1.bf16.msra.mxu1 %v20157_v2  ;;  %12055 = vmatprep.mubr.bf16.mxu1 %v26556_v35  ;;  %v20214_v2 = vld [vmem:[%s26483_s15 + $0x120] ss:$8 sps:$4 sm:$0xff]  }
0x24e8   :  { %v11134_v15 = vmax.f32 %v11130_v23, %v11132_v45  ;;  %12025 = vmatprep.subr.bf16.mxu1 %v20165_v44  ;;  %v20225_v44 = vld [vmem:[%s26483_s15 + $0x294] ss:$8 sps:$4 sm:$0xff]   ;;  %v20223_v23 = vld [vmem:[%s26483_s15 + $0x290] ss:$8 sps:$4 sm:$0xff]   ;;  %v20231_v45 = vld [vmem:[%s26483_s15 + $0x2c4] ss:$8 sps:$4 sm:$0xff]  }
0x24e9   :  { %11256 = vmatpush1.bf16.msra.mxu0 %v20145_v53  ;;  %v20220_v53 = vld [vmem:[%s26483_s15 + $0x130] ss:$8 sps:$4 sm:$0xff]  }
0x24ea   :  { %v13188_v13 = vpack.c.bf16 %v11134_v15, %v11134_v15  ;;  %11494 = vrot.lane.b32.xlu1 %v11142_v51, %s20552_s1  ;;  %11337 = vmatprep.subr.bf16.mxu0 %v20150_v28  ;;  %v20202_v51 = vld [vmem:[%s26483_s15 + $0xe0] ss:$8 sps:$4 sm:$0xff]   ;;  %v20228_v28 = vld [vmem:[%s26483_s15 + $0x164] ss:$8 sps:$4 sm:$0xff]  }
0x24eb   :  { %12026 = vmatpush1.bf16.msra.mxu1 %v20163_v41  ;;  %v20226_v41 = vld [vmem:[%s26483_s15 + $0x160] ss:$8 sps:$4 sm:$0xff]  }
0x24ec   :  { %v13190_v16 = vshrl.u32 %v13188_v13, 16  ;;  %17062 = vmatmul.mubr.msk.bf16.vlgmr.msra.gmra.mrb[168].mxu0 %vm26595_vm0, %v25113_v6  ;;  %12191 = vmatprep.subr.bf16.mxu1 %v20171_v57  ;;  %v20229_v15 = vld [vmem:[%s26483_s15 + $0x2c0] ss:$8 sps:$4 sm:$0xff]   ;;  %v20237_v57 = vld [vmem:[%s26483_s15 + $0x2d4] ss:$8 sps:$4 sm:$0xff]  }
0x24ed   :  { %11338 = vmatpush1.bf16.msra.mxu0 %v20148_v12  ;;  %11369 = vmatprep.mubr.bf16.mxu0 %v26556_v35  ;;  %v20232_v12 = vld [vmem:[%s26483_s15 + $0x170] ss:$8 sps:$4 sm:$0xff]  }
0x24ee   :  { %13192 = vrot.lane.b32.xlu0 %v13190_v16, %s20551_s9  ;;  %12931 = vrot.lane.b32.xlu1 %v12929_v8, %s20551_s9  ;;  %v20235_v13 = vld [vmem:[%s26483_s15 + $0x2d0] ss:$8 sps:$4 sm:$0xff]   ;;  %v20243_v16 = vld [vmem:[%s26483_s15 + $0x304] ss:$8 sps:$4 sm:$0xff]  }
0x24ef   :  { %11339 = vmatprep.subr.bf16.mxu0 %v20153_v5  ;;  %v20240_v5 = vld [vmem:[%s26483_s15 + $0x1a4] ss:$8 sps:$4 sm:$0xff]  }
0x24f1   :  { %11340 = vmatpush1.bf16.msra.mxu0 %v20151_v20  ;;  %v20241_v20 = vld [vmem:[%s26483_s15 + $0x300] ss:$8 sps:$4 sm:$0xff]  }
0x24f2   :  { %13540 = vrot.lane.b32.xlu0 %v13539_v34, %s20551_s9  ;;  %13281 = vrot.lane.b32.xlu1 %v12929_v8, %s20552_s1  ;;  %v20238_v8 = vld [vmem:[%s26483_s15 + $0x1a0] ss:$8 sps:$4 sm:$0xff]  }
0x24f3   :  { %11430 = vmatprep.subr.bf16.mxu0 %v20156_v33  ;;  %v20246_v33 = vld [vmem:[%s26483_s15 + $0x1b4] ss:$8 sps:$4 sm:$0xff]  }
0x24f4   :  { %17067 = vmatmul.mubr.msk.bf16.vlgmr.msra.gmra.mrb[172].mxu0 %vm26596_vm9, %v25113_v6  ;;  %vm26611_vm9 = vmmov %vm26595_vm0 }
0x24f5   :  { %11431 = vmatpush1.bf16.msra.mxu0 %v20154_v47  ;;  %11462 = vmatprep.mubr.bf16.mxu0 %v26556_v35 }
0x24f6   :  { %13888 = vrot.lane.b32.xlu0 %v13539_v34, %s20552_s1  ;;  %13799 = vrot.lane.b32.xlu1 %v13798_v59, %s20551_s9  ;;  %v20249_v34 = vld [vmem:[%s26483_s15 + $0x314] ss:$8 sps:$4 sm:$0xff]   ;;  %v20247_v59 = vld [vmem:[%s26483_s15 + $0x310] ss:$8 sps:$4 sm:$0xff]  }
0x24f7   :  { %11432 = vmatprep.subr.bf16.mxu0 %v20162_v48  ;;  %v20244_v48 = vld [vmem:[%s26483_s15 + $0x1b0] ss:$8 sps:$4 sm:$0xff]  }
0x24f9   :  { %11433 = vmatpush1.bf16.msra.mxu0 %v20160_v60  ;;  %v20252_v60 = vld [vmem:[%s26483_s15 + $0x1e4] ss:$8 sps:$4 sm:$0xff]  }
0x24fa   :  { %11519 = vmatprep.subr.bf16.mxu0 %v20168_v10  ;;  %v20255_v10 = vld [vmem:[%s26483_s15 + $0x344] ss:$8 sps:$4 sm:$0xff]  }
0x2558   :  { %v25187_v40 = vpop.permute.xlu1 %11405 }
0x2559   :  { %17072 = vmatmul.mubr.msk.bf16.vlgmr.msra.gmra.mrb[176].mxu0 %vm26597_vm10, %v25187_v40  ;;  %17107 = vmatmul.mubr.msk.bf16.vlgmr.msra.gmra.mrb[168].mxu1 %vm26598_vm13, %v25187_v40  ;;  %vm26612_vm10 = vmmov %vm26595_vm0 }
0x255a   :  { %11520 = vmatpush1.bf16.msra.mxu0 %v20166_v11  ;;  %12192 = vmatpush1.bf16.msra.mxu1 %v20169_v22  ;;  %v20250_v11 = vld [vmem:[%s26483_s15 + $0x1e0] ss:$8 sps:$4 sm:$0xff]   ;;  %vm26613_vm13 = vmmov %vm26595_vm0 }
0x255b   :  { %11521 = vmatprep.subr.bf16.mxu0 %v20174_v17  ;;  %12193 = vmatprep.subr.bf16.mxu1 %v20177_v24  ;;  %v20253_v22 = vld [vmem:[%s26483_s15 + $0x340] ss:$8 sps:$4 sm:$0xff]   ;;  %v20258_v17 = vld [vmem:[%s26483_s15 + $0x1f4] ss:$8 sps:$4 sm:$0xff]  }
0x255c   :  { %11551 = vmatprep.mubr.bf16.mxu0 %v26556_v35  ;;  %12223 = vmatprep.mubr.bf16.mxu1 %v26556_v35  ;;  %v25219_v46 = vpop.permute.xlu1 %11494  ;;  %v20261_v24 = vld [vmem:[%s26483_s15 + $0x354] ss:$8 sps:$4 sm:$0xff]  }
0x255e   :  { %11522 = vmatpush1.bf16.msra.mxu0 %v20172_v58  ;;  %12194 = vmatpush1.bf16.msra.mxu1 %v20175_v37  ;;  %v20256_v37 = vld [vmem:[%s26483_s15 + $0x1f0] ss:$8 sps:$4 sm:$0xff]  }
0x255f   :  { %11603 = vmatprep.subr.bf16.mxu0 %v20180_v18  ;;  %12359 = vmatprep.subr.bf16.mxu1 %v20183_v55  ;;  %v20259_v18 = vld [vmem:[%s26483_s15 + $0x350] ss:$8 sps:$4 sm:$0xff]   ;;  %v20264_v55 = vld [vmem:[%s26483_s15 + $0x224] ss:$8 sps:$4 sm:$0xff]  }
0x2560   :  { %v25371_v47 = vpop.permute.xlu1 %12931  ;;  %v13193_v58 = vpop.permute.xlu0 %13192 }
0x2561   :  { %17077 = vmatmul.mubr.msk.bf16.vlgmr.msra.gmra.mrb[180].mxu0 %vm26599_vm11, %v25219_v46  ;;  %17117 = vmatmul.mubr.msk.bf16.vlgmr.msra.gmra.mrb[172].mxu1 %vm26600_vm12, %v25219_v46  ;;  %vm26614_vm11 = vmmov %vm26595_vm0 }
0x2562   :  { %11604 = vmatpush1.bf16.msra.mxu0 %v20178_v36  ;;  %12360 = vmatpush1.bf16.msra.mxu1 %v20181_v32  ;;  %v20267_v36 = vld [vmem:[%s26483_s15 + $0x384] ss:$8 sps:$4 sm:$0xff]   ;;  %v20262_v32 = vld [vmem:[%s26483_s15 + $0x220] ss:$8 sps:$4 sm:$0xff]   ;;  %vm26615_vm12 = vmmov %vm26595_vm0 }
0x2563   :  { %11605 = vmatprep.subr.bf16.mxu0 %v20186_v3  ;;  %12361 = vmatprep.subr.bf16.mxu1 %v20189_v26  ;;  %v20265_v3 = vld [vmem:[%s26483_s15 + $0x380] ss:$8 sps:$4 sm:$0xff]   ;;  %v20270_v26 = vld [vmem:[%s26483_s15 + $0x234] ss:$8 sps:$4 sm:$0xff]  }
0x2564   :  { %11635 = vmatprep.mubr.bf16.mxu0 %v26556_v35  ;;  %12391 = vmatprep.mubr.bf16.mxu1 %v26556_v35 }
0x2566   :  { %11606 = vmatpush1.bf16.msra.mxu0 %v20184_v50  ;;  %12362 = vmatpush1.bf16.msra.mxu1 %v20187_v25  ;;  %v20273_v50 = vld [vmem:[%s26483_s15 + $0x394] ss:$8 sps:$4 sm:$0xff]   ;;  %v25432_v25 = vpop.permute.xlu1 %13281 }
0x2567   :  { %11687 = vmatprep.subr.bf16.mxu0 %v20192_v54  ;;  %12527 = vmatprep.subr.bf16.mxu1 %v20195_v49  ;;  %v20268_v54 = vld [vmem:[%s26483_s15 + $0x230] ss:$8 sps:$4 sm:$0xff]  }
0x2568   :  { %v20271_v49 = vld [vmem:[%s26483_s15 + $0x390] ss:$8 sps:$4 sm:$0xff]  }
0x2569   :  { %17082 = vmatmul.mubr.msk.bf16.vlgmr.msra.gmra.mrb[184].mxu0 %vm26601_vm14, %v25219_v46  ;;  %17127 = vmatmul.mubr.msk.bf16.vlgmr.msra.gmra.mrb[176].mxu1 %vm26602_vm15, %v25113_v6  ;;  %vm26616_vm14 = vmmov %vm26595_vm0 }
0x256a   :  { %11688 = vmatpush1.bf16.msra.mxu0 %v20190_v61  ;;  %12528 = vmatpush1.bf16.msra.mxu1 %v20193_v9  ;;  %v20276_v61 = vld [vmem:[%s26483_s15 + $0x264] ss:$8 sps:$4 sm:$0xff]   ;;  %v20274_v9 = vld [vmem:[%s26483_s15 + $0x260] ss:$8 sps:$4 sm:$0xff]   ;;  %vm26617_vm15 = vmmov %vm26595_vm0 }
0x256b   :  { %11689 = vmatprep.subr.bf16.mxu0 %v20198_v21  ;;  %12529 = vmatprep.subr.bf16.mxu1 %v20201_v52  ;;  %v20277_v21 = vld [vmem:[%s26483_s15 + $0x3c0] ss:$8 sps:$4 sm:$0xff]   ;;  %v20282_v52 = vld [vmem:[%s26483_s15 + $0x274] ss:$8 sps:$4 sm:$0xff]  }
0x256c   :  { %11719 = vmatprep.mubr.bf16.mxu0 %v26556_v35  ;;  %12559 = vmatprep.mubr.bf16.mxu1 %v26556_v35 }
0x256e   :  { %11690 = vmatpush1.bf16.msra.mxu0 %v20196_v30  ;;  %12530 = vmatpush1.bf16.msra.mxu1 %v20199_v1  ;;  %v20285_v30 = vld [vmem:[%s26483_s15 + $0x3d4] ss:$8 sps:$4 sm:$0xff]   ;;  %v25464_v1 = vpop.permute.xlu0 %13540 }
0x256f   :  { %11771 = vmatprep.subr.bf16.mxu0 %v20204_v63  ;;  %12695 = vmatprep.subr.bf16.mxu1 %v20207_v62  ;;  %v20280_v63 = vld [vmem:[%s26483_s15 + $0x270] ss:$8 sps:$4 sm:$0xff]  }
0x2570   :  { %v20283_v62 = vld [vmem:[%s26483_s15 + $0x3d0] ss:$8 sps:$4 sm:$0xff]  }
0x2571   :  { %17087 = vmatmul.mubr.msk.bf16.vlgmr.msra.gmra.mrb[188].mxu0 %vm26603_vm2, %v25219_v46  ;;  %17137 = vmatmul.mubr.msk.bf16.vlgmr.msra.gmra.mrb[180].mxu1 %vm26604_vm1, %v25113_v6  ;;  %vm26618_vm2 = vmmov %vm26595_vm0 }
0x2572   :  { %11772 = vmatpush1.bf16.msra.mxu0 %v20202_v51  ;;  %12696 = vmatpush1.bf16.msra.mxu1 %v20205_v42  ;;  %v20288_v51 = vld [vmem:[%s26483_s15 + $0x2a4] ss:$8 sps:$4 sm:$0xff]   ;;  %v20286_v42 = vld [vmem:[%s26483_s15 + $0x2a0] ss:$8 sps:$4 sm:$0xff]   ;;  %vm26619_vm1 = vmmov %vm26595_vm0 }
0x2573   :  { %11773 = vmatprep.subr.bf16.mxu0 %v20210_v27  ;;  %12697 = vmatprep.subr.bf16.mxu1 %v20213_v31  ;;  %v20289_v27 = vld [vmem:[%s26483_s15 + $0x400] ss:$8 sps:$4 sm:$0xff]   ;;  %v20294_v31 = vld [vmem:[%s26483_s15 + $0x2b4] ss:$8 sps:$4 sm:$0xff]  }
0x2574   :  { %11803 = vmatprep.mubr.bf16.mxu0 %v26556_v35  ;;  %12727 = vmatprep.mubr.bf16.mxu1 %v26556_v35 }
0x2576   :  { %11774 = vmatpush1.bf16.msra.mxu0 %v20208_v29  ;;  %12698 = vmatpush1.bf16.msra.mxu1 %v20211_v56  ;;  %v20297_v29 = vld [vmem:[%s26483_s15 + $0x414] ss:$8 sps:$4 sm:$0xff]   ;;  %v20292_v56 = vld [vmem:[%s26483_s15 + $0x2b0] ss:$8 sps:$4 sm:$0xff]  }
0x2577   :  { %11939 = vmatprep.subr.bf16.mxu0 %v20216_v39  ;;  %12863 = vmatprep.subr.bf16.mxu1 %v20219_v4  ;;  %v20295_v39 = vld [vmem:[%s26483_s15 + $0x410] ss:$8 sps:$4 sm:$0xff]   ;;  %v20300_v4 = vld [vmem:[%s26483_s15 + $0x2e4] ss:$8 sps:$4 sm:$0xff]  }
0x2579   :  { %17092 = vmatmul.mubr.msk.bf16.vlgmr.msra.gmra.mrb[192].mxu0 %vm26605_vm3, %v25113_v6  ;;  %17147 = vmatmul.mubr.msk.bf16.vlgmr.msra.gmra.mrb[184].mxu1 %vm26606_vm4, %v25219_v46  ;;  %vm26620_vm3 = vmmov %vm26595_vm0 }
0x257a   :  { %11940 = vmatpush1.bf16.msra.mxu0 %v20214_v2  ;;  %12864 = vmatpush1.bf16.msra.mxu1 %v20217_v38  ;;  %v20298_v2 = vld [vmem:[%s26483_s15 + $0x2e0] ss:$8 sps:$4 sm:$0xff]   ;;  %vm26621_vm4 = vmmov %vm26595_vm0 }
0x257b   :  { %11941 = vmatprep.subr.bf16.mxu0 %v20222_v43  ;;  %12865 = vmatprep.subr.bf16.mxu1 %v20225_v44  ;;  %v20301_v38 = vld [vmem:[%s26483_s15 + $0x440] ss:$8 sps:$4 sm:$0xff]   ;;  %v20306_v43 = vld [vmem:[%s26483_s15 + $0x2f4] ss:$8 sps:$4 sm:$0xff]  }
0x257c   :  { %11971 = vmatprep.mubr.bf16.mxu0 %v26556_v35  ;;  %12895 = vmatprep.mubr.bf16.mxu1 %v26556_v35  ;;  %v20309_v44 = vld [vmem:[%s26483_s15 + $0x454] ss:$8 sps:$4 sm:$0xff]  }
0x257e   :  { %11942 = vmatpush1.bf16.msra.mxu0 %v20220_v53  ;;  %12866 = vmatpush1.bf16.msra.mxu1 %v20223_v23  ;;  %v25526_v53 = vpop.permute.xlu0 %13888  ;;  %v20553_v23 = vmov 1966171168  }
0x257f   :  { %12107 = vmatprep.subr.bf16.mxu0 %v20228_v28  ;;  %13040 = vmatprep.subr.bf16.mxu1 %v20231_v45  ;;  %v11214_v28 = vunpack.c.l.s4 %v20553_v23  ;;  %v20304_v45 = vld [vmem:[%s26483_s15 + $0x2f0] ss:$8 sps:$4 sm:$0xff]  }
0x2581   :  { %17102 = vmatmul.mubr.msk.bf16.vlgmr.msra.gmra.mrb[196].mxu0 %vm26607_vm5, %v25113_v6  ;;  %17157 = vmatmul.mubr.msk.bf16.vlgmr.msra.gmra.mrb[188].mxu1 %vm26608_vm8, %v25219_v46  ;;  %vm26622_vm5 = vmmov %vm26595_vm0 }
0x2582   :  { %12108 = vmatpush1.bf16.msra.mxu0 %v20226_v41  ;;  %13041 = vmatpush1.bf16.msra.mxu1 %v20229_v15  ;;  %v20307_v41 = vld [vmem:[%s26483_s15 + $0x450] ss:$8 sps:$4 sm:$0xff]   ;;  %v20312_v15 = vld [vmem:[%s26483_s15 + $0x324] ss:$8 sps:$4 sm:$0xff]   ;;  %vm26623_vm8 = vmmov %vm26595_vm0 }
0x2583   :  { %12109 = vmatprep.subr.bf16.mxu0 %v20234_v19  ;;  %13042 = vmatprep.subr.bf16.mxu1 %v20237_v57  ;;  %v20315_v19 = vld [vmem:[%s26483_s15 + $0x484] ss:$8 sps:$4 sm:$0xff]   ;;  %v11215_v57 = vunpack.c.0.s8 %v11214_v28 }
0x2584   :  { %12139 = vmatprep.mubr.bf16.mxu0 %v26556_v35  ;;  %13072 = vmatprep.mubr.bf16.mxu1 %v26556_v35  ;;  %v20351_v28 = vld [vmem:[%s26483_s15 + $0x544] ss:$8 sps:$4 sm:$0xff]  }
0x2586   :  { %12110 = vmatpush1.bf16.msra.mxu0 %v20232_v12  ;;  %13043 = vmatpush1.bf16.msra.mxu1 %v20235_v13  ;;  %v20310_v12 = vld [vmem:[%s26483_s15 + $0x320] ss:$8 sps:$4 sm:$0xff]  }
0x2587   :  { %12275 = vmatprep.subr.bf16.mxu0 %v20240_v5  ;;  %13217 = vmatprep.subr.bf16.mxu1 %v20243_v16  ;;  %v20313_v13 = vld [vmem:[%s26483_s15 + $0x480] ss:$8 sps:$4 sm:$0xff]  }
0x2589   :  { %17112 = vmatmul.mubr.msk.bf16.vlgmr.msra.gmra.mrb[200].mxu0 %vm26609_vm7, %v25219_v46  ;;  %17167 = vmatmul.mubr.msk.bf16.vlgmr.msra.gmra.mrb[192].mxu1 %vm26610_vm6, %v25371_v47  ;;  %vm26624_vm7 = vmmov %vm26595_vm0 }
0x258a   :  { %12276 = vmatpush1.bf16.msra.mxu0 %v20238_v8  ;;  %13218 = vmatpush1.bf16.msra.mxu1 %v20241_v20  ;;  %v20318_v8 = vld [vmem:[%s26483_s15 + $0x334] ss:$8 sps:$4 sm:$0xff]   ;;  %vm26625_vm6 = vmmov %vm26595_vm0 }
0x258b   :  { %12277 = vmatprep.subr.bf16.mxu0 %v20246_v33  ;;  %13219 = vmatprep.subr.bf16.mxu1 %v20249_v34  ;;  %v20321_v20 = vld [vmem:[%s26483_s15 + $0x494] ss:$8 sps:$4 sm:$0xff]  }
0x258c   :  { %12307 = vmatprep.mubr.bf16.mxu0 %v26556_v35  ;;  %13249 = vmatprep.mubr.bf16.mxu1 %v26556_v35 }
0x258e   :  { %12278 = vmatpush1.bf16.msra.mxu0 %v20244_v48  ;;  %13220 = vmatpush1.bf16.msra.mxu1 %v20247_v59  ;;  %v25563_v59 = vsub.s32 %v11215_v57, %v20706_v14  ;;  %v20316_v14 = vld [vmem:[%s26483_s15 + $0x330] ss:$8 sps:$4 sm:$0xff]   ;;  %v20354_v57 = vld [vmem:[%s26483_s15 + $0x3f4] ss:$8 sps:$4 sm:$0xff]  }
0x258f   :  { %12443 = vmatprep.subr.bf16.mxu0 %v20252_v60  ;;  %13390 = vmatprep.subr.bf16.mxu1 %v20255_v10 }
0x2591   :  { %17122 = vmatmul.mubr.msk.bf16.vlgmr.msra.gmra.mrb[204].mxu0 %vm26595_vm0, %v25219_v46  ;;  %17177 = vmatmul.mubr.msk.bf16.vlgmr.msra.gmra.mrb[196].mxu1 %vm26611_vm9, %v13193_v58  ;;  %v20327_v58 = vld [vmem:[%s26483_s15 + $0x4c4] ss:$8 sps:$4 sm:$0xff]   ;;  %vm26626_vm9 = vmmov %vm26595_vm0 }
0x2592   :  { %12444 = vmatpush1.bf16.msra.mxu0 %v20250_v11  ;;  %13391 = vmatpush1.bf16.msra.mxu1 %v20253_v22 }
0x2593   :  { %12445 = vmatprep.subr.bf16.mxu0 %v20258_v17  ;;  %13392 = vmatprep.subr.bf16.mxu1 %v20261_v24  ;;  %v20319_v24 = vld [vmem:[%s26483_s15 + $0x490] ss:$8 sps:$4 sm:$0xff]  }
0x2594   :  { %12475 = vmatprep.mubr.bf16.mxu0 %v26556_v35  ;;  %13422 = vmatprep.mubr.bf16.mxu1 %v26556_v35 }
0x2596   :  { %12446 = vmatpush1.bf16.msra.mxu0 %v20256_v37  ;;  %13393 = vmatpush1.bf16.msra.mxu1 %v20259_v18  ;;  %v20322_v18 = vld [vmem:[%s26483_s15 + $0x360] ss:$8 sps:$4 sm:$0xff]  }
0x2597   :  { %12611 = vmatprep.subr.bf16.mxu0 %v20264_v55  ;;  %13565 = vmatprep.subr.bf16.mxu1 %v20267_v36  ;;  %v20325_v55 = vld [vmem:[%s26483_s15 + $0x4c0] ss:$8 sps:$4 sm:$0xff]  }
0x2599   :  { %17132 = vmatmul.mubr.msk.bf16.vlgmr.msra.gmra.mrb[208].mxu0 %vm26612_vm10, %v25113_v6  ;;  %17187 = vmatmul.mubr.msk.bf16.vlgmr.msra.gmra.mrb[200].mxu1 %vm26613_vm13, %v25432_v25  ;;  %v20279_v6 = vld [vmem:[%s26483_s15 + $0x3c4] ss:$8 sps:$4 sm:$0xff]   ;;  %vm26627_vm10 = vmmov %vm26595_vm0 }
0x259a   :  { %12612 = vmatpush1.bf16.msra.mxu0 %v20262_v32  ;;  %13566 = vmatpush1.bf16.msra.mxu1 %v20265_v3  ;;  %v20330_v32 = vld [vmem:[%s26483_s15 + $0x374] ss:$8 sps:$4 sm:$0xff]   ;;  %vm26628_vm13 = vmmov %vm26595_vm0 }
0x259b   :  { %12613 = vmatprep.subr.bf16.mxu0 %v20270_v26  ;;  %13567 = vmatprep.subr.bf16.mxu1 %v20273_v50  ;;  %v20333_v3 = vld [vmem:[%s26483_s15 + $0x4d4] ss:$8 sps:$4 sm:$0xff]   ;;  %v11135_v50 = vld [vmem:[%s26487_s19] ss:$4 sm:$0x3] }
0x259c   :  { %12643 = vmatprep.mubr.bf16.mxu0 %v26556_v35  ;;  %13597 = vmatprep.mubr.bf16.mxu1 %v26556_v35 }
0x259e   :  { %12614 = vmatpush1.bf16.msra.mxu0 %v20268_v54  ;;  %13568 = vmatpush1.bf16.msra.mxu1 %v20271_v49 }
0x259f   :  { %12779 = vmatprep.subr.bf16.mxu0 %v20276_v61  ;;  %13733 = vmatprep.subr.bf16.mxu1 %v20279_v6 }
0x25a1   :  { %17142 = vmatmul.mubr.msk.bf16.vlgmr.msra.gmra.mrb[212].mxu0 %vm26614_vm11, %v25187_v40  ;;  %17197 = vmatmul.mubr.msk.bf16.vlgmr.msra.gmra.mrb[204].mxu1 %vm26615_vm12, %v25464_v1  ;;  %v20291_v40 = vld [vmem:[%s26483_s15 + $0x404] ss:$8 sps:$4 sm:$0xff]   ;;  %vm26629_vm11 = vmmov %vm26595_vm0 }
0x25a2   :  { %12780 = vmatpush1.bf16.msra.mxu0 %v20274_v9  ;;  %13734 = vmatpush1.bf16.msra.mxu1 %v20277_v21  ;;  %v20328_v9 = vld [vmem:[%s26483_s15 + $0x370] ss:$8 sps:$4 sm:$0xff]   ;;  %vm26630_vm12 = vmmov %vm26595_vm0 }
0x25a3   :  { %12781 = vmatprep.subr.bf16.mxu0 %v20282_v52  ;;  %13735 = vmatprep.subr.bf16.mxu1 %v20285_v30  ;;  %v20331_v21 = vld [vmem:[%s26483_s15 + $0x4d0] ss:$8 sps:$4 sm:$0xff]   ;;  %v20336_v30 = vld [vmem:[%s26483_s15 + $0x3a4] ss:$8 sps:$4 sm:$0xff]  }
0x25a4   :  { %12811 = vmatprep.mubr.bf16.mxu0 %v26556_v35  ;;  %13765 = vmatprep.mubr.bf16.mxu1 %v26556_v35 }
0x25a6   :  { %12782 = vmatpush1.bf16.msra.mxu0 %v20280_v63  ;;  %13736 = vmatpush1.bf16.msra.mxu1 %v20283_v62  ;;  %v20339_v63 = vld [vmem:[%s26483_s15 + $0x504] ss:$8 sps:$4 sm:$0xff]  }
0x25a7   :  { %12956 = vmatprep.subr.bf16.mxu0 %v20288_v51  ;;  %13913 = vmatprep.subr.bf16.mxu1 %v20291_v40  ;;  %v20334_v40 = vld [vmem:[%s26483_s15 + $0x3a0] ss:$8 sps:$4 sm:$0xff]  }
0x25a9   :  { %17152 = vmatmul.mubr.msk.bf16.vlgmr.msra.gmra.mrb[216].mxu0 %vm26616_vm14, %v25219_v46  ;;  %17207 = vmatmul.mubr.msk.bf16.vlgmr.msra.gmra.mrb[208].mxu1 %vm26617_vm15, %v25464_v1  ;;  %v20303_v46 = vld [vmem:[%s26483_s15 + $0x444] ss:$8 sps:$4 sm:$0xff]   ;;  %vm26631_vm14 = vmmov %vm26595_vm0 }
0x25aa   :  { %12957 = vmatpush1.bf16.msra.mxu0 %v20286_v42  ;;  %13914 = vmatpush1.bf16.msra.mxu1 %v20289_v27  ;;  %v20337_v42 = vld [vmem:[%s26483_s15 + $0x500] ss:$8 sps:$4 sm:$0xff]   ;;  %vm26632_vm15 = vmmov %vm26595_vm0 }
0x25ab   :  { %12958 = vmatprep.subr.bf16.mxu0 %v20294_v31  ;;  %13915 = vmatprep.subr.bf16.mxu1 %v20297_v29  ;;  %v20342_v29 = vld [vmem:[%s26483_s15 + $0x3b4] ss:$8 sps:$4 sm:$0xff]  }
0x25ac   :  { %12988 = vmatprep.mubr.bf16.mxu0 %v26556_v35  ;;  %13945 = vmatprep.mubr.bf16.mxu1 %v26556_v35 }
0x25ae   :  { %12959 = vmatpush1.bf16.msra.mxu0 %v20292_v56  ;;  %13916 = vmatpush1.bf16.msra.mxu1 %v20295_v39  ;;  %v20345_v56 = vld [vmem:[%s26483_s15 + $0x514] ss:$8 sps:$4 sm:$0xff]   ;;  %v25634_v39 = vpop.permute.xlu1 %13799 }
0x25af   :  { %13124 = vmatprep.subr.bf16.mxu0 %v20300_v4  ;;  %14081 = vmatprep.subr.bf16.mxu1 %v20303_v46 }
0x25b1   :  { %17162 = vmatmul.mubr.msk.bf16.vlgmr.msra.gmra.mrb[220].mxu0 %vm26618_vm2, %v25371_v47  ;;  %17217 = vmatmul.mubr.msk.bf16.vlgmr.msra.gmra.mrb[212].mxu1 %vm26619_vm1, %v25526_v53  ;;  %vm26633_vm2 = vmmov %vm26595_vm0 }
0x25b2   :  { %13125 = vmatpush1.bf16.msra.mxu0 %v20298_v2  ;;  %14082 = vmatpush1.bf16.msra.mxu1 %v20301_v38  ;;  %vm26634_vm1 = vmmov %vm26595_vm0 }
0x25b3   :  { %13126 = vmatprep.subr.bf16.mxu0 %v20306_v43  ;;  %14083 = vmatprep.subr.bf16.mxu1 %v20309_v44  ;;  %v20340_v43 = vld [vmem:[%s26483_s15 + $0x3b0] ss:$8 sps:$4 sm:$0xff]  }
0x25b4   :  { %13156 = vmatprep.mubr.bf16.mxu0 %v26556_v35  ;;  %14113 = vmatprep.mubr.bf16.mxu1 %v26556_v35  ;;  %v20343_v44 = vld [vmem:[%s26483_s15 + $0x510] ss:$8 sps:$4 sm:$0xff]  }
0x25b6   :  { %13127 = vmatpush1.bf16.msra.mxu0 %v20304_v45  ;;  %14084 = vmatpush1.bf16.msra.mxu1 %v20307_v41  ;;  %v20346_v41 = vld [vmem:[%s26483_s15 + $0x3e0] ss:$8 sps:$4 sm:$0xff]  }
0x25b7   :  { %v11203_v5 = vpop.f32.mrb[164].mxu0  ;;  %v25552_v16 = vpop.f32.mrb[164].mxu1  ;;  %13306 = vmatprep.subr.bf16.mxu0 %v20312_v15  ;;  %14249 = vmatprep.subr.bf16.mxu1 %v20315_v19  ;;  %v20349_v15 = vld [vmem:[%s26483_s15 + $0x540] ss:$8 sps:$4 sm:$0xff]  }
0x25b8   :  { %v11205_v33 = vpop.f32.mrb[165].mxu0  ;;  %v25560_v34 = vpop.f32.mrb[165].mxu1 }
0x25b9   :  { %v11212_v48 = vcombine.low %v11203_v5, %v11205_v33  ;;  %v11898_v60 = vcombine.low %v25552_v16, %v25560_v34  ;;  %v11207_v10 = vpop.f32.mrb[166].mxu0  ;;  %v11893_v11 = vpop.f32.mrb[166].mxu1  ;;  %17172 = vmatmul.mubr.msk.bf16.vlgmr.msra.gmra.mrb[224].mxu0 %vm26620_vm3, %v25371_v47  ;;  %17227 = vmatmul.mubr.msk.bf16.vlgmr.msra.gmra.mrb[216].mxu1 %vm26621_vm4, %v25526_v53  ;;  %v20324_v47 = vld [vmem:[%s26483_s15 + $0x364] ss:$8 sps:$4 sm:$0xff]   ;;  %v20355_v5 = vld [vmem:[%s26483_s15 + $0x550] ss:$8 sps:$4 sm:$0xff]   ;;  %vm26635_vm3 = vmmov %vm26595_vm0 }
0x25ba   :  { %v11208_v22 = vpop.f32.mrb[167].mxu0  ;;  %v11894_v17 = vpop.f32.mrb[167].mxu1  ;;  %13307 = vmatpush1.bf16.msra.mxu0 %v20310_v12  ;;  %14250 = vmatpush1.bf16.msra.mxu1 %v20313_v13  ;;  %v20357_v12 = vld [vmem:[%s26483_s15 + $0x554] ss:$8 sps:$4 sm:$0xff]   ;;  %v20352_v13 = vld [vmem:[%s26483_s15 + $0x3f0] ss:$8 sps:$4 sm:$0xff]   ;;  %vm26636_vm4 = vmmov %vm26595_vm0 }
0x25bb   :  { %13308 = vmatprep.subr.bf16.mxu0 %v20318_v8  ;;  %14251 = vmatprep.subr.bf16.mxu1 %v20321_v20  ;;  %v11219_v37 = vrot.slane %v11212_v48, %v25563_v59  ;;  %v20360_v8 = vld [vmem:[%s26483_s15 + $0x424] ss:$8 sps:$4 sm:$0xff]   ;;  %v20358_v33 = vld [vmem:[%s26483_s15 + $0x420] ss:$8 sps:$4 sm:$0xff]   ;;  %v20366_v10 = vld [vmem:[%s26483_s15 + $0x434] ss:$8 sps:$4 sm:$0xff]  }
0x25bc   :  { %13338 = vmatprep.mubr.bf16.mxu0 %v26556_v35  ;;  %14281 = vmatprep.mubr.bf16.mxu1 %v26556_v35  ;;  %v20363_v20 = vld [vmem:[%s26483_s15 + $0x584] ss:$8 sps:$4 sm:$0xff]   ;;  %v20361_v48 = vld [vmem:[%s26483_s15 + $0x580] ss:$8 sps:$4 sm:$0xff]   ;;  %v20369_v11 = vld [vmem:[%s26483_s15 + $0x594] ss:$8 sps:$4 sm:$0xff]  }
0x25bd   :  { %v11226_v54 = vrot.slane %v11219_v37, %v25563_v59  ;;  %v20364_v22 = vld [vmem:[%s26483_s15 + $0x430] ss:$8 sps:$4 sm:$0xff]   ;;  %v20378_v37 = vld [vmem:[%s26483_s15 + $0x474] ss:$8 sps:$4 sm:$0xff]  }
0x25be   :  { %13309 = vmatpush1.bf16.msra.mxu0 %v20316_v14  ;;  %14252 = vmatpush1.bf16.msra.mxu1 %v20319_v24  ;;  %v20367_v17 = vld [vmem:[%s26483_s15 + $0x590] ss:$8 sps:$4 sm:$0xff]   ;;  %v20372_v14 = vld [vmem:[%s26483_s15 + $0x464] ss:$8 sps:$4 sm:$0xff]  }
0x25bf   :  { %v11287_v36 = vpop.f32.mrb[168].mxu0  ;;  %13474 = vmatprep.subr.bf16.mxu0 %v20324_v47  ;;  %14417 = vmatprep.subr.bf16.mxu1 %v20327_v58  ;;  %v11228_v62 = vadd.f32 %v11226_v54, %v11135_v50  ;;  %v20375_v24 = vld [vmem:[%s26483_s15 + $0x5c4] ss:$8 sps:$4 sm:$0xff]   ;;  %v20370_v47 = vld [vmem:[%s26483_s15 + $0x460] ss:$8 sps:$4 sm:$0xff]  }
0x25c0   :  { %v11289_v26 = vpop.f32.mrb[169].mxu0  ;;  %v20373_v58 = vld [vmem:[%s26483_s15 + $0x5c0] ss:$8 sps:$4 sm:$0xff]   ;;  %v20390_v54 = vld [vmem:[%s26483_s15 + $0x4b4] ss:$8 sps:$4 sm:$0xff]  }
0x25c1   :  { %v11296_v49 = vcombine.low %v11287_v36, %v11289_v26  ;;  %v11291_v61 = vpop.f32.mrb[170].mxu0  ;;  %17182 = vmatmul.mubr.msk.bf16.vlgmr.msra.gmra.mrb[228].mxu0 %vm26622_vm5, %v25432_v25  ;;  %17237 = vmatmul.mubr.msk.bf16.vlgmr.msra.gmra.mrb[220].mxu1 %vm26623_vm8, %v25464_v1  ;;  %v20379_v36 = vld [vmem:[%s26483_s15 + $0x5d0] ss:$8 sps:$4 sm:$0xff]   ;;  %v20382_v26 = vld [vmem:[%s26483_s15 + $0x4a0] ss:$8 sps:$4 sm:$0xff]   ;;  %vm26637_vm5 = vmmov %vm26595_vm0 }
0x25c2   :  { %v11292_v6 = vpop.f32.mrb[171].mxu0  ;;  %13475 = vmatpush1.bf16.msra.mxu0 %v20322_v18  ;;  %14418 = vmatpush1.bf16.msra.mxu1 %v20325_v55  ;;  %v20381_v18 = vld [vmem:[%s26483_s15 + $0x5d4] ss:$8 sps:$4 sm:$0xff]   ;;  %v20376_v55 = vld [vmem:[%s26483_s15 + $0x470] ss:$8 sps:$4 sm:$0xff]   ;;  %vm26638_vm8 = vmmov %vm26595_vm0 }
0x25c3   :  { %v11303_v52 = vrot.slane %v11296_v49, %v25563_v59  ;;  %13476 = vmatprep.subr.bf16.mxu0 %v20330_v32  ;;  %14419 = vmatprep.subr.bf16.mxu1 %v20333_v3  ;;  %v20384_v32 = vld [vmem:[%s26483_s15 + $0x4a4] ss:$8 sps:$4 sm:$0xff]   ;;  %v20385_v50 = vld [vmem:[%s26483_s15 + $0x600] ss:$8 sps:$4 sm:$0xff]   ;;  %v20393_v49 = vld [vmem:[%s26483_s15 + $0x614] ss:$8 sps:$4 sm:$0xff]  }
0x25c4   :  { %13506 = vmatprep.mubr.bf16.mxu0 %v26556_v35  ;;  %14449 = vmatprep.mubr.bf16.mxu1 %v26556_v35  ;;  %v20387_v3 = vld [vmem:[%s26483_s15 + $0x604] ss:$8 sps:$4 sm:$0xff]   ;;  %v20388_v61 = vld [vmem:[%s26483_s15 + $0x4b0] ss:$8 sps:$4 sm:$0xff]  }
0x25c5   :  { %v11310_v51 = vrot.slane %v11303_v52, %v25563_v59  ;;  %v20391_v6 = vld [vmem:[%s26483_s15 + $0x610] ss:$8 sps:$4 sm:$0xff]   ;;  %v20399_v52 = vld [vmem:[%s26483_s15 + $0x4f4] ss:$8 sps:$4 sm:$0xff]  }
0x25c6   :  { %13477 = vmatpush1.bf16.msra.mxu0 %v20328_v9  ;;  %14420 = vmatpush1.bf16.msra.mxu1 %v20331_v21  ;;  %v20396_v9 = vld [vmem:[%s26483_s15 + $0x4e4] ss:$8 sps:$4 sm:$0xff]   ;;  %v20394_v21 = vld [vmem:[%s26483_s15 + $0x4e0] ss:$8 sps:$4 sm:$0xff]  }
0x25c7   :  { %v11312_v27 = vadd.f32 %v11310_v51, %v11228_v62  ;;  %v11371_v31 = vpop.f32.mrb[172].mxu0  ;;  %13649 = vmatprep.subr.bf16.mxu0 %v20336_v30  ;;  %14585 = vmatprep.subr.bf16.mxu1 %v20339_v63  ;;  %v20397_v30 = vld [vmem:[%s26483_s15 + $0x4f0] ss:$8 sps:$4 sm:$0xff]   ;;  %v20402_v63 = vld [vmem:[%s26483_s15 + $0x524] ss:$8 sps:$4 sm:$0xff]  }
0x25c8   :  { %v11373_v4 = vpop.f32.mrb[173].mxu0  ;;  %v20400_v62 = vld [vmem:[%s26483_s15 + $0x520] ss:$8 sps:$4 sm:$0xff]   ;;  %v20405_v51 = vld [vmem:[%s26483_s15 + $0x534] ss:$8 sps:$4 sm:$0xff]  }
0x25c9   :  { %v11380_v46 = vcombine.low %v11371_v31, %v11373_v4  ;;  %v11375_v2 = vpop.f32.mrb[174].mxu0  ;;  %17192 = vmatmul.mubr.msk.bf16.vlgmr.msra.gmra.mrb[232].mxu0 %vm26624_vm7, %v25432_v25  ;;  %17247 = vmatmul.mubr.msk.bf16.vlgmr.msra.gmra.mrb[224].mxu1 %vm26625_vm6, %v25634_v39  ;;  %v20348_v25 = vld [vmem:[%s26483_s15 + $0x3e4] ss:$8 sps:$4 sm:$0xff]   ;;  %v20411_v31 = vld [vmem:[%s26483_s15 + $0x574] ss:$8 sps:$4 sm:$0xff]   ;;  %vm26639_vm7 = vmmov %vm26595_vm0  ;;  %vm15785_vm6 = vcmask 32768  }
0x25ca   :  { %v11376_v38 = vpop.f32.mrb[175].mxu0  ;;  %13650 = vmatpush1.bf16.msra.mxu0 %v20334_v40  ;;  %14586 = vmatpush1.bf16.msra.mxu1 %v20337_v42  ;;  %v20403_v40 = vld [vmem:[%s26483_s15 + $0x530] ss:$8 sps:$4 sm:$0xff]   ;;  %v20408_v42 = vld [vmem:[%s26483_s15 + $0x564] ss:$8 sps:$4 sm:$0xff]  }
0x25cb   :  { %v11387_v23 = vrot.slane %v11380_v46, %v25563_v59  ;;  %13651 = vmatprep.subr.bf16.mxu0 %v20342_v29  ;;  %14587 = vmatprep.subr.bf16.mxu1 %v20345_v56  ;;  %v20409_v29 = vld [vmem:[%s26483_s15 + $0x570] ss:$8 sps:$4 sm:$0xff]   ;;  %v20414_v56 = vld [vmem:[%s26483_s15 + $0x5a4] ss:$8 sps:$4 sm:$0xff]   ;;  %v20412_v4 = vld [vmem:[%s26483_s15 + $0x5a0] ss:$8 sps:$4 sm:$0xff]  }
0x25cc   :  { %13681 = vmatprep.mubr.bf16.mxu0 %v26556_v35  ;;  %14617 = vmatprep.mubr.bf16.mxu1 %v26556_v35  ;;  %v20417_v46 = vld [vmem:[%s26483_s15 + $0x5b4] ss:$8 sps:$4 sm:$0xff]   ;;  %v20415_v2 = vld [vmem:[%s26483_s15 + $0x5b0] ss:$8 sps:$4 sm:$0xff]   ;;  %v20420_v38 = vld [vmem:[%s26483_s15 + $0x5e4] ss:$8 sps:$4 sm:$0xff]  }
0x25cd   :  { %v11394_v45 = vrot.slane %v11387_v23, %v25563_v59 }
0x25ce   :  { %13652 = vmatpush1.bf16.msra.mxu0 %v20340_v43  ;;  %14588 = vmatpush1.bf16.msra.mxu1 %v20343_v44  ;;  %v20418_v43 = vld [vmem:[%s26483_s15 + $0x5e0] ss:$8 sps:$4 sm:$0xff]   ;;  %v20421_v44 = vld [vmem:[%s26483_s15 + $0x5f0] ss:$8 sps:$4 sm:$0xff]  }
0x25cf   :  { %v25662_v19 = vadd.f32 %v11394_v45, %v11312_v27  ;;  %13824 = vmatprep.subr.bf16.mxu0 %v20348_v25  ;;  %14753 = vmatprep.subr.bf16.mxu1 %v20351_v28  ;;  %v20406_v27 = vld [vmem:[%s26483_s15 + $0x560] ss:$8 sps:$4 sm:$0xff]  }
0x25d1   :  { %17202 = vmatmul.mubr.msk.bf16.vlgmr.msra.gmra.mrb[236].mxu0 %vm26595_vm0, %v25464_v1  ;;  %17257 = vmatmul.mubr.msk.bf16.vlgmr.msra.gmra.mrb[228].mxu1 %vm26626_vm9, %v25526_v53  ;;  %vm15787_vm0 = vcmask 155648  }
0x25d2   :  { %13825 = vmatpush1.bf16.msra.mxu0 %v20346_v41  ;;  %14754 = vmatpush1.bf16.msra.mxu1 %v20349_v15 }
0x25d3   :  { %13826 = vmatprep.subr.bf16.mxu0 %v20354_v57  ;;  %14755 = vmatprep.subr.bf16.mxu1 %v20357_v12 }
0x25d4   :  { %13856 = vmatprep.mubr.bf16.mxu0 %v26556_v35  ;;  %14785 = vmatprep.mubr.bf16.mxu1 %v26556_v35 }
0x25d6   :  { %13827 = vmatpush1.bf16.msra.mxu0 %v20352_v13  ;;  %14756 = vmatpush1.bf16.msra.mxu1 %v20355_v5 }
0x25d7   :  { %13997 = vmatprep.subr.bf16.mxu0 %v20360_v8  ;;  %14921 = vmatprep.subr.bf16.mxu1 %v20363_v20 }
0x25d9   :  { %17212 = vmatmul.mubr.msk.bf16.vlgmr.msra.gmra.mrb[240].mxu0 %vm26627_vm10, %v25634_v39  ;;  %17267 = vmatmul.mubr.msk.bf16.vlgmr.msra.gmra.mrb[232].mxu1 %vm26628_vm13, %v25464_v1 }
0x25da   :  { %13998 = vmatpush1.bf16.msra.mxu0 %v20358_v33  ;;  %14922 = vmatpush1.bf16.msra.mxu1 %v20361_v48 }
0x25db   :  { %13999 = vmatprep.subr.bf16.mxu0 %v20366_v10  ;;  %14923 = vmatprep.subr.bf16.mxu1 %v20369_v11 }
0x25dc   :  { %14029 = vmatprep.mubr.bf16.mxu0 %v26556_v35  ;;  %14953 = vmatprep.mubr.bf16.mxu1 %v26556_v35 }
0x25de   :  { %14000 = vmatpush1.bf16.msra.mxu0 %v20364_v22  ;;  %14924 = vmatpush1.bf16.msra.mxu1 %v20367_v17 }
0x25df   :  { %14165 = vmatprep.subr.bf16.mxu0 %v20372_v14  ;;  %15089 = vmatprep.subr.bf16.mxu1 %v20375_v24 }
0x25e1   :  { %17222 = vmatmul.mubr.msk.bf16.vlgmr.msra.gmra.mrb[244].mxu0 %vm26629_vm11, %v25526_v53  ;;  %17277 = vmatmul.mubr.msk.bf16.vlgmr.msra.gmra.mrb[236].mxu1 %vm26630_vm12, %v25464_v1 }
0x25e2   :  { %14166 = vmatpush1.bf16.msra.mxu0 %v20370_v47  ;;  %15090 = vmatpush1.bf16.msra.mxu1 %v20373_v58 }
0x25e3   :  { %14167 = vmatprep.subr.bf16.mxu0 %v20378_v37  ;;  %15091 = vmatprep.subr.bf16.mxu1 %v20381_v18 }
0x25e4   :  { %14197 = vmatprep.mubr.bf16.mxu0 %v26556_v35  ;;  %15121 = vmatprep.mubr.bf16.mxu1 %v26556_v35 }
0x25e6   :  { %14168 = vmatpush1.bf16.msra.mxu0 %v20376_v55  ;;  %15092 = vmatpush1.bf16.msra.mxu1 %v20379_v36 }
0x25e7   :  { %14333 = vmatprep.subr.bf16.mxu0 %v20384_v32  ;;  %15257 = vmatprep.subr.bf16.mxu1 %v20387_v3  ;;  %v20426_v32 = vld [vmem:[%s26484_s16 + $0x4] ss:$8 sps:$4 sm:$0xff]  }
0x25e9   :  { %17232 = vmatmul.mubr.msk.bf16.vlgmr.msra.gmra.mrb[248].mxu0 %vm26631_vm14, %v25464_v1  ;;  %17287 = vmatmul.mubr.msk.bf16.vlgmr.msra.gmra.mrb[240].mxu1 %vm26632_vm15, %v25526_v53 }
0x25ea   :  { %14334 = vmatpush1.bf16.msra.mxu0 %v20382_v26  ;;  %15258 = vmatpush1.bf16.msra.mxu1 %v20385_v50 }
0x25eb   :  { %14335 = vmatprep.subr.bf16.mxu0 %v20390_v54  ;;  %15259 = vmatprep.subr.bf16.mxu1 %v20393_v49  ;;  %v20424_v49 = vld [vmem:[%s26484_s16] ss:$8 sps:$4 sm:$0xff]  }
0x25ec   :  { %14365 = vmatprep.mubr.bf16.mxu0 %v26556_v35  ;;  %15289 = vmatprep.mubr.bf16.mxu1 %v26556_v35 }
0x25ee   :  { %14336 = vmatpush1.bf16.msra.mxu0 %v20388_v61  ;;  %15260 = vmatpush1.bf16.msra.mxu1 %v20391_v6 }
0x25ef   :  { %14501 = vmatprep.subr.bf16.mxu0 %v20396_v9 }
0x25f1   :  { %17242 = vmatmul.mubr.msk.bf16.vlgmr.msra.gmra.mrb[252].mxu0 %vm26633_vm2, %v25464_v1  ;;  %17297 = vmatmul.mubr.msk.bf16.vlgmr.msra.gmra.mrb[244].mxu1 %vm26634_vm1, %v25526_v53 }
0x25f2   :  { %14502 = vmatpush1.bf16.msra.mxu0 %v20394_v21  ;;  %14533 = vmatprep.mubr.bf16.mxu0 %v26556_v35  ;;  %v20429_v21 = vld [vmem:[%s26484_s16 + $0x14] ss:$8 sps:$4 sm:$0xff]  }
0x25f3   :  { %14503 = vmatprep.subr.bf16.mxu0 %v20399_v52 }
0x25f6   :  { %14504 = vmatpush1.bf16.msra.mxu0 %v20397_v30  ;;  %v20427_v30 = vld [vmem:[%s26484_s16 + $0x10] ss:$8 sps:$4 sm:$0xff]  }
0x25f7   :  { %14669 = vmatprep.subr.bf16.mxu0 %v20402_v63 }
0x25f9   :  { %17252 = vmatmul.mubr.msk.bf16.vlgmr.msra.gmra.mrb[0].mxu0 %vm26635_vm3, %v25526_v53 }
0x25fa   :  { %14670 = vmatpush1.bf16.msra.mxu0 %v20400_v62  ;;  %14701 = vmatprep.mubr.bf16.mxu0 %v26556_v35 }
0x25fb   :  { %14671 = vmatprep.subr.bf16.mxu0 %v20405_v51 }
0x25fe   :  { %14672 = vmatpush1.bf16.msra.mxu0 %v20403_v40 }
0x25ff   :  { %14837 = vmatprep.subr.bf16.mxu0 %v20408_v42 }
0x2601   :  { %17262 = vmatmul.mubr.msk.bf16.vlgmr.msra.gmra.mrb[4].mxu0 %vm26636_vm4, %v25526_v53 }
0x2602   :  { %14838 = vmatpush1.bf16.msra.mxu0 %v20406_v27  ;;  %14869 = vmatprep.mubr.bf16.mxu0 %v26556_v35  ;;  %v20432_v27 = vld [vmem:[%s26484_s16 + $0x24] ss:$8 sps:$4 sm:$0xff]  }
0x2603   :  { %14839 = vmatprep.subr.bf16.mxu0 %v20411_v31 }
0x2606   :  { %14840 = vmatpush1.bf16.msra.mxu0 %v20409_v29 }
0x2607   :  { %15005 = vmatprep.subr.bf16.mxu0 %v20414_v56 }
0x2609   :  { %17272 = vmatmul.mubr.msk.bf16.vlgmr.msra.gmra.mrb[8].mxu0 %vm26637_vm5, %v25464_v1  ;;  %v20423_v1 = vld [vmem:[%s26483_s15 + $0x5f4] ss:$8 sps:$4 sm:$0xff]   ;;  %s20480_s15 = scalar_lea.vmem %s15818_s11, 32 }
0x260a   :  { %15006 = vmatpush1.bf16.msra.mxu0 %v20412_v4  ;;  %15037 = vmatprep.mubr.bf16.mxu0 %v26556_v35 }
0x260b   :  { %15007 = vmatprep.subr.bf16.mxu0 %v20417_v46  ;;  %v20430_v46 = vld [vmem:[%s26484_s16 + $0x20] ss:$8 sps:$4 sm:$0xff]  }
0x260e   :  { %15008 = vmatpush1.bf16.msra.mxu0 %v20415_v2 }
0x260f   :  { %15173 = vmatprep.subr.bf16.mxu0 %v20420_v38 }
0x2611   :  { %17282 = vmatmul.mubr.msk.bf16.vlgmr.msra.gmra.mrb[12].mxu0 %vm26638_vm8, %v25634_v39 }
0x2612   :  { %15174 = vmatpush1.bf16.msra.mxu0 %v20418_v43  ;;  %15205 = vmatprep.mubr.bf16.mxu0 %v26556_v35 }
0x2613   :  { %15175 = vmatprep.subr.bf16.mxu0 %v20423_v1  ;;  %v20435_v1 = vld [vmem:[%s26484_s16 + $0x34] ss:$8 sps:$4 sm:$0xff]  }
0x2616   :  { %15176 = vmatpush1.bf16.msra.mxu0 %v20421_v44 }
0x2617   :  { %15536 = vmatprep.subr.bf16.mxu0 %v20426_v32  ;;  %v20444_v32 = vld [vmem:[%s26484_s16 + $0x64] ss:$8 sps:$4 sm:$0xff]  }
0x2619   :  { %17292 = vmatmul.mubr.msk.bf16.vlgmr.msra.gmra.mrb[16].mxu0 %vm26639_vm7, %v25526_v53 }
0x261a   :  { %15537 = vmatpush1.bf16.msra.mxu0 %v20424_v49 }
0x261b   :  { %15538 = vmatprep.subr.bf16.mxu0 %v20429_v21 }
0x261e   :  { %15539 = vmatpush1.bf16.msra.mxu0 %v20427_v30 }
0x261f   :  { %15540 = vmatprep.subr.bf16.mxu0 %v20432_v27 }
0x2622   :  { %15541 = vmatpush1.bf16.msra.mxu0 %v20430_v46 }
0x2623   :  { %15542 = vmatprep.subr.bf16.mxu0 %v20435_v1 }
0x262c   :  { %v11464_v23 = vpop.f32.mrb[176].mxu0  ;;  %v25851_v25 = vpop.f32.mrb[168].mxu1 }
0x262d   :  { %v11466_v28 = vpop.f32.mrb[177].mxu0  ;;  %v25853_v45 = vpop.f32.mrb[169].mxu1 }
0x262e   :  { %v11473_v41 = vcombine.low %v11464_v23, %v11466_v28  ;;  %v12066_v39 = vcombine.low %v25851_v25, %v25853_v45  ;;  %v11468_v15 = vpop.f32.mrb[178].mxu0  ;;  %v12061_v57 = vpop.f32.mrb[170].mxu1  ;;  %v20433_v23 = vld [vmem:[%s26484_s16 + $0x30] ss:$8 sps:$4 sm:$0xff]  }
0x262f   :  { %v11469_v12 = vpop.f32.mrb[179].mxu0  ;;  %v12062_v13 = vpop.f32.mrb[171].mxu1  ;;  %15543 = vmatpush1.bf16.msra.mxu0 %v20433_v23 }
0x2630   :  { %v11480_v35 = vrot.slane %v11473_v41, %v25563_v59  ;;  %v20438_v13 = vld [vmem:[%s26484_s16 + $0x44] ss:$8 sps:$4 sm:$0xff]  }
0x2631   :  { %15544 = vmatprep.subr.bf16.mxu0 %v20438_v13  ;;  %v20453_v13 = vld [vmem:[%s26484_s16 + $0x94] ss:$8 sps:$4 sm:$0xff]  }
0x2632   :  { %v11487_v5 = vrot.slane %v11480_v35, %v25563_v59 }
0x2634   :  { %v11489_v53 = vadd.f32 %v11487_v5, %v25662_v19  ;;  %v11553_v8 = vpop.f32.mrb[180].mxu0  ;;  %v25860_v20 = vpop.f32.mrb[172].mxu1 }
0x2635   :  { %v11555_v33 = vpop.f32.mrb[181].mxu0  ;;  %v25862_v48 = vpop.f32.mrb[173].mxu1 }
0x2636   :  { %v11562_v10 = vcombine.low %v11553_v8, %v11555_v33  ;;  %v12234_v11 = vcombine.low %v25860_v20, %v25862_v48  ;;  %v11557_v22 = vpop.f32.mrb[182].mxu0  ;;  %v12229_v17 = vpop.f32.mrb[174].mxu1  ;;  %v20436_v33 = vld [vmem:[%s26484_s16 + $0x40] ss:$8 sps:$4 sm:$0xff]  }
0x2637   :  { %v11558_v14 = vpop.f32.mrb[183].mxu0  ;;  %v12230_v24 = vpop.f32.mrb[175].mxu1  ;;  %v11905_v17 = vrot.slane %v11898_v60, %v25563_v59  ;;  %15545 = vmatpush1.bf16.msra.mxu0 %v20436_v33 }
0x2638   :  { %v11569_v47 = vrot.slane %v11562_v10, %v25563_v59  ;;  %v20441_v24 = vld [vmem:[%s26484_s16 + $0x54] ss:$8 sps:$4 sm:$0xff]  }
0x2639   :  { %15546 = vmatprep.subr.bf16.mxu0 %v20441_v24 }
0x263a   :  { %v11576_v58 = vrot.slane %v11569_v47, %v25563_v59 }
0x263c   :  { %v11578_v37 = vadd.f32 %v11576_v58, %v11489_v53  ;;  %v11637_v19 = vpop.f32.mrb[184].mxu0  ;;  %v25868_v18 = vpop.f32.mrb[176].mxu1  ;;  %v20439_v58 = vld [vmem:[%s26484_s16 + $0x50] ss:$8 sps:$4 sm:$0xff]  }
0x263d   :  { %v11639_v55 = vpop.f32.mrb[185].mxu0  ;;  %v25870_v36 = vpop.f32.mrb[177].mxu1  ;;  %15547 = vmatpush1.bf16.msra.mxu0 %v20439_v58 }
0x263e   :  { %v11646_v3 = vcombine.low %v11637_v19, %v11639_v55  ;;  %v12402_v26 = vcombine.low %v25868_v18, %v25870_v36  ;;  %v11641_v50 = vpop.f32.mrb[186].mxu0  ;;  %v12397_v54 = vpop.f32.mrb[178].mxu1  ;;  %15548 = vmatprep.subr.bf16.mxu0 %v20444_v32 }
0x263f   :  { %v11642_v61 = vpop.f32.mrb[187].mxu0  ;;  %v12398_v6 = vpop.f32.mrb[179].mxu1 }
0x2640   :  { %v11653_v9 = vrot.slane %v11646_v3, %v25563_v59  ;;  %v20442_v6 = vld [vmem:[%s26484_s16 + $0x60] ss:$8 sps:$4 sm:$0xff]  }
0x2641   :  { %15549 = vmatpush1.bf16.msra.mxu0 %v20442_v6 }
0x2642   :  { %v11660_v52 = vrot.slane %v11653_v9, %v25563_v59 }
0x2644   :  { %v11662_v63 = vadd.f32 %v11660_v52, %v11578_v37  ;;  %v11721_v62 = vpop.f32.mrb[188].mxu0  ;;  %v25888_v51 = vpop.f32.mrb[180].mxu1  ;;  %v11912_v37 = vrot.slane %v11905_v17, %v25563_v59  ;;  %v12073_v52 = vrot.slane %v12066_v39, %v25563_v59 }
0x2645   :  { %v11723_v40 = vpop.f32.mrb[189].mxu0  ;;  %v25890_v42 = vpop.f32.mrb[181].mxu1 }
0x2646   :  { %v11730_v31 = vcombine.low %v11721_v62, %v11723_v40  ;;  %v12570_v29 = vcombine.low %v25888_v51, %v25890_v42  ;;  %v11725_v56 = vpop.f32.mrb[190].mxu0  ;;  %v12565_v4 = vpop.f32.mrb[182].mxu1  ;;  %v20445_v40 = vld [vmem:[%s26484_s16 + $0x70] ss:$8 sps:$4 sm:$0xff]   ;;  %v12080_v27 = vrot.slane %v12073_v52, %v25563_v59  ;;  %v20466_v42 = vld [vmem:[%s26484_s16 + $0xe0] ss:$8 sps:$4 sm:$0xff]  }
0x2647   :  { %v11726_v2 = vpop.f32.mrb[191].mxu0  ;;  %v12566_v38 = vpop.f32.mrb[183].mxu1  ;;  %v20450_v4 = vld [vmem:[%s26484_s16 + $0x84] ss:$8 sps:$4 sm:$0xff]  }
0x2648   :  { %v11737_v43 = vrot.slane %v11730_v31, %v25563_v59 }
0x264a   :  { %v11744_v44 = vrot.slane %v11737_v43, %v25563_v59 }
0x264c   :  { %v11746_v28 = vadd.f32 %v11744_v44, %v11662_v63  ;;  %v11805_v41 = vpop.f32.mrb[192].mxu0  ;;  %v25908_v15 = vpop.f32.mrb[184].mxu1  ;;  %v20447_v63 = vld [vmem:[%s26484_s16 + $0x74] ss:$8 sps:$4 sm:$0xff]   ;;  %v20448_v44 = vld [vmem:[%s26484_s16 + $0x80] ss:$8 sps:$4 sm:$0xff]  }
0x264d   :  { %v11807_v57 = vpop.f32.mrb[193].mxu0  ;;  %v25910_v12 = vpop.f32.mrb[185].mxu1  ;;  %15550 = vmatprep.subr.bf16.mxu0 %v20447_v63 }
0x264e   :  { %v11814_v35 = vcombine.low %v11805_v41, %v11807_v57  ;;  %v12738_v5 = vcombine.low %v25908_v15, %v25910_v12  ;;  %v11809_v53 = vpop.f32.mrb[194].mxu0  ;;  %v12733_v8 = vpop.f32.mrb[186].mxu1  ;;  %15551 = vmatpush1.bf16.msra.mxu0 %v20445_v40  ;;  %v12241_v41 = vrot.slane %v12234_v11, %v25563_v59 }
0x264f   :  { %v11810_v10 = vpop.f32.mrb[195].mxu0  ;;  %v12734_v22 = vpop.f32.mrb[187].mxu1  ;;  %15552 = vmatprep.subr.bf16.mxu0 %v20450_v4  ;;  %v20451_v53 = vld [vmem:[%s26484_s16 + $0x90] ss:$8 sps:$4 sm:$0xff]  }
0x2650   :  { %v11821_v14 = vrot.slane %v11814_v35, %v25563_v59  ;;  %v12248_v8 = vrot.slane %v12241_v41, %v25563_v59  ;;  %v20456_v22 = vld [vmem:[%s26484_s16 + $0xa4] ss:$8 sps:$4 sm:$0xff]  }
0x2652   :  { %v11828_v47 = vrot.slane %v11821_v14, %v25563_v59  ;;  %15553 = vmatpush1.bf16.msra.mxu0 %v20448_v44 }
0x2653   :  { %15554 = vmatprep.subr.bf16.mxu0 %v20453_v13 }
0x2654   :  { %v11830_v19 = vadd.f32 %v11828_v47, %v11746_v28  ;;  %v11973_v55 = vpop.f32.mrb[196].mxu0  ;;  %v25933_v16 = vpop.f32.mrb[188].mxu1 }
0x2655   :  { %v11975_v34 = vpop.f32.mrb[197].mxu0  ;;  %v25935_v60 = vpop.f32.mrb[189].mxu1 }
0x2656   :  { %v11914_v3 = vadd.f32 %v11912_v37, %v11830_v19  ;;  %v11982_v50 = vcombine.low %v11973_v55, %v11975_v34  ;;  %v12906_v54 = vcombine.low %v25933_v16, %v25935_v60  ;;  %v11977_v49 = vpop.f32.mrb[198].mxu0  ;;  %v12901_v61 = vpop.f32.mrb[190].mxu1  ;;  %15555 = vmatpush1.bf16.msra.mxu0 %v20451_v53  ;;  %v20454_v37 = vld [vmem:[%s26484_s16 + $0xa0] ss:$8 sps:$4 sm:$0xff]   ;;  %v12409_v34 = vrot.slane %v12402_v26, %v25563_v59  ;;  %v15581_v16 = vld [vmem:[%s26485_s17 + $0x10] sm:$0xff]  ;;  %v15582_v60 = vld [vmem:[%s26485_s17 + $0x18] sm:$0xff] }
0x2657   :  { %v11978_v9 = vpop.f32.mrb[199].mxu0  ;;  %v12902_v21 = vpop.f32.mrb[191].mxu1  ;;  %15556 = vmatprep.subr.bf16.mxu0 %v20456_v22  ;;  %v20457_v49 = vld [vmem:[%s26484_s16 + $0xb0] ss:$8 sps:$4 sm:$0xff]   ;;  %v12745_v22 = vrot.slane %v12738_v5, %v25563_v59 }
0x2658   :  { %v11989_v30 = vrot.slane %v11982_v50, %v25563_v59  ;;  %v12416_v61 = vrot.slane %v12409_v34, %v25563_v59  ;;  %v20462_v21 = vld [vmem:[%s26484_s16 + $0xc4] ss:$8 sps:$4 sm:$0xff]  }
0x265a   :  { %v11996_v62 = vrot.slane %v11989_v30, %v25563_v59  ;;  %15557 = vmatpush1.bf16.msra.mxu0 %v20454_v37 }
0x265c   :  { %v11998_v31 = vadd.f32 %v11996_v62, %v11914_v3  ;;  %v12141_v56 = vpop.f32.mrb[200].mxu0  ;;  %v25958_v25 = vpop.f32.mrb[192].mxu1  ;;  %v20459_v3 = vld [vmem:[%s26484_s16 + $0xb4] ss:$8 sps:$4 sm:$0xff]  }
0x265d   :  { %v12143_v45 = vpop.f32.mrb[201].mxu0  ;;  %v25960_v39 = vpop.f32.mrb[193].mxu1  ;;  %15558 = vmatprep.subr.bf16.mxu0 %v20459_v3 }
0x265e   :  { %v12082_v46 = vadd.f32 %v12080_v27, %v11998_v31  ;;  %v12150_v2 = vcombine.low %v12141_v56, %v12143_v45  ;;  %v13083_v38 = vcombine.low %v25958_v25, %v25960_v39  ;;  %v12145_v43 = vpop.f32.mrb[202].mxu0  ;;  %v13078_v1 = vpop.f32.mrb[194].mxu1  ;;  %15559 = vmatpush1.bf16.msra.mxu0 %v20457_v49  ;;  %v20460_v27 = vld [vmem:[%s26484_s16 + $0xc0] ss:$8 sps:$4 sm:$0xff]   ;;  %v12577_v45 = vrot.slane %v12570_v29, %v25563_v59  ;;  %v20468_v29 = vld [vmem:[%s26484_s16 + $0xe4] ss:$8 sps:$4 sm:$0xff]  }
0x265f   :  { %v12146_v23 = vpop.f32.mrb[203].mxu0  ;;  %v13079_v28 = vpop.f32.mrb[195].mxu1  ;;  %15560 = vmatprep.subr.bf16.mxu0 %v20462_v21  ;;  %v20463_v43 = vld [vmem:[%s26484_s16 + $0xd0] ss:$8 sps:$4 sm:$0xff]   ;;  %v12913_v21 = vrot.slane %v12906_v54, %v25563_v59  ;;  %v15599_v54 = vld [vmem:[%s26485_s17 + $0xa0] sm:$0xff]  ;;  %v15604_v25 = vld [vmem:[%s26485_s17 + $0xc8] sm:$0xff] }
0x2660   :  { %v12157_v57 = vrot.slane %v12150_v2, %v25563_v59  ;;  %v12584_v1 = vrot.slane %v12577_v45, %v25563_v59 }
0x2662   :  { %v12164_v35 = vrot.slane %v12157_v57, %v25563_v59  ;;  %15561 = vmatpush1.bf16.msra.mxu0 %v20460_v27  ;;  %v20471_v57 = vld [vmem:[%s26484_s16 + $0xf4] ss:$8 sps:$4 sm:$0xff]  }
0x2663   :  { %v15598_v27 = vld [vmem:[%s26485_s17 + $0x98] sm:$0xff] }
0x2664   :  { %v12166_v33 = vadd.f32 %v12164_v35, %v12082_v46  ;;  %v12309_v10 = vpop.f32.mrb[204].mxu0  ;;  %v25983_v20 = vpop.f32.mrb[196].mxu1  ;;  %v20465_v46 = vld [vmem:[%s26484_s16 + $0xd4] ss:$8 sps:$4 sm:$0xff]  }
0x2665   :  { %v12311_v48 = vpop.f32.mrb[205].mxu0  ;;  %v25985_v11 = vpop.f32.mrb[197].mxu1  ;;  %15562 = vmatprep.subr.bf16.mxu0 %v20465_v46  ;;  %v18564_v46 = vpack.c.bf16 %v15582_v60, %v15581_v16 }
0x2666   :  { %v12250_v17 = vadd.f32 %v12248_v8, %v12166_v33  ;;  %v12318_v14 = vcombine.low %v12309_v10, %v12311_v48  ;;  %v13260_v24 = vcombine.low %v25983_v20, %v25985_v11  ;;  %v12313_v47 = vpop.f32.mrb[206].mxu0  ;;  %v13255_v58 = vpop.f32.mrb[198].mxu1  ;;  %15563 = vmatpush1.bf16.msra.mxu0 %v20463_v43  ;;  %v15608_v20 = vld [vmem:[%s26485_s17 + $0xe8] sm:$0xff] }
0x2667   :  { %v12314_v19 = vpop.f32.mrb[207].mxu0  ;;  %v13256_v55 = vpop.f32.mrb[199].mxu1  ;;  %15564 = vmatprep.subr.bf16.mxu0 %v20468_v29  ;;  %v12752_v58 = vrot.slane %v12745_v22, %v25563_v59  ;;  %v15584_v29 = vld [vmem:[%s26485_s17 + $0x28] sm:$0xff] }
0x2668   :  { %v12325_v32 = vrot.slane %v12318_v14, %v25563_v59  ;;  %v20469_v14 = vld [vmem:[%s26484_s16 + $0xf0] ss:$8 sps:$4 sm:$0xff]  }
0x266a   :  { %v12332_v50 = vrot.slane %v12325_v32, %v25563_v59  ;;  %15565 = vmatpush1.bf16.msra.mxu0 %v20466_v42  ;;  %v15583_v42 = vld [vmem:[%s26485_s17 + $0x20] sm:$0xff] }
0x266b   :  { %15566 = vmatprep.subr.bf16.mxu0 %v20471_v57 }
0x266c   :  { %v12334_v6 = vadd.f32 %v12332_v50, %v12250_v17  ;;  %v12477_v9 = vpop.f32.mrb[208].mxu0  ;;  %v26008_v18 = vpop.f32.mrb[200].mxu1 }
0x266d   :  { %v12479_v36 = vpop.f32.mrb[209].mxu0  ;;  %v26010_v26 = vpop.f32.mrb[201].mxu1 }
0x266e   :  { %v12418_v52 = vadd.f32 %v12416_v61, %v12334_v6  ;;  %v12486_v30 = vcombine.low %v12477_v9, %v12479_v36  ;;  %v13433_v63 = vcombine.low %v26008_v18, %v26010_v26  ;;  %v12481_v62 = vpop.f32.mrb[210].mxu0  ;;  %v13428_v40 = vpop.f32.mrb[202].mxu1  ;;  %15567 = vmatpush1.bf16.msra.mxu0 %v20469_v14  ;;  %v15595_v6 = vld [vmem:[%s26485_s17 + $0x80] sm:$0xff]  ;;  %v15596_v9 = vld [vmem:[%s26485_s17 + $0x88] sm:$0xff] }
0x266f   :  { %v12482_v31 = vpop.f32.mrb[211].mxu0  ;;  %v13429_v56 = vpop.f32.mrb[203].mxu1  ;;  %v15579_v36 = vld [vmem:[%s26485_s17] sm:$0xff]  ;;  %v15580_v62 = vld [vmem:[%s26485_s17 + $0x8] sm:$0xff]  ;;  %v15597_v40 = vld [vmem:[%s26485_s17 + $0x90] sm:$0xff] }
0x2670   :  { %v12493_v4 = vrot.slane %v12486_v30, %v25563_v59  ;;  %v18558_v30 = vpack.c.bf16 %v15596_v9, %v15595_v6  ;;  %v18560_v31 = vpack.c.bf16 %v15580_v62, %v15579_v36  ;;  %v18562_v56 = vpack.c.bf16 %v15598_v27, %v15597_v40  ;;  %v15587_v9 = vld [vmem:[%s26485_s17 + $0x40] sm:$0xff]  ;;  %v15588_v36 = vld [vmem:[%s26485_s17 + $0x48] sm:$0xff]  ;;  %v15606_v62 = vld [vmem:[%s26485_s17 + $0xd8] sm:$0xff] }
0x2672   :  { %v12500_v2 = vrot.slane %v12493_v4, %v25563_v59  ;;  %18559 = vmatprep.subr.bf16.mxu1 %v18558_v30  ;;  %v15600_v4 = vld [vmem:[%s26485_s17 + $0xa8] sm:$0xff]  ;;  %v15605_v30 = vld [vmem:[%s26485_s17 + $0xd0] sm:$0xff] }
0x2673   :  { %18561 = vmatpush3.bf16.msra.mxu1 %v18560_v31 }
0x2674   :  { %v12502_v44 = vadd.f32 %v12500_v2, %v12418_v52  ;;  %v12645_v23 = vpop.f32.mrb[212].mxu0  ;;  %v26033_v51 = vpop.f32.mrb[204].mxu1  ;;  %v12920_v2 = vrot.slane %v12913_v21, %v25563_v59  ;;  %18563 = vmatprep.subr.bf16.mxu1 %v18562_v56 }
0x2675   :  { %v12647_v28 = vpop.f32.mrb[213].mxu0  ;;  %v26041_v41 = vpop.f32.mrb[205].mxu1 }
0x2676   :  { %v12586_v13 = vadd.f32 %v12584_v1, %v12502_v44  ;;  %v12654_v35 = vcombine.low %v12645_v23, %v12647_v28  ;;  %v13608_v53 = vcombine.low %v26033_v51, %v26041_v41  ;;  %v12649_v8 = vpop.f32.mrb[214].mxu0  ;;  %v13603_v33 = vpop.f32.mrb[206].mxu1  ;;  %v18566_v23 = vpack.c.bf16 %v15600_v4, %v15599_v54 }
0x2677   :  { %v12650_v10 = vpop.f32.mrb[215].mxu0  ;;  %v13604_v48 = vpop.f32.mrb[207].mxu1  ;;  %18565 = vmatpush3.bf16.msra.mxu1 %v18564_v46  ;;  %v13267_v4 = vrot.slane %v13260_v24, %v25563_v59 }
0x2678   :  { %v12661_v17 = vrot.slane %v12654_v35, %v25563_v59  ;;  %v15602_v35 = vld [vmem:[%s26485_s17 + $0xb8] sm:$0xff]  ;;  %18567 = vmatprep.subr.bf16.mxu1 %v18566_v23  ;;  %v15607_v23 = vld [vmem:[%s26485_s17 + $0xe0] sm:$0xff] }
0x267a   :  { %v12668_v47 = vrot.slane %v12661_v17, %v25563_v59 }
0x267c   :  { %v12670_v37 = vadd.f32 %v12668_v47, %v12586_v13  ;;  %v12813_v19 = vpop.f32.mrb[216].mxu0  ;;  %v26058_v55 = vpop.f32.mrb[208].mxu1  ;;  %v15601_v13 = vld [vmem:[%s26485_s17 + $0xb0] sm:$0xff]  ;;  %v18568_v47 = vpack.c.bf16 %v15584_v29, %v15583_v42  ;;  %v13274_v42 = vrot.slane %v13267_v4, %v25563_v59 }
0x267d   :  { %v12815_v34 = vpop.f32.mrb[217].mxu0  ;;  %v26060_v15 = vpop.f32.mrb[209].mxu1 }
0x267e   :  { %v12754_v12 = vadd.f32 %v12752_v58, %v12670_v37  ;;  %v12822_v5 = vcombine.low %v12813_v19, %v12815_v34  ;;  %v13776_v32 = vcombine.low %v26058_v55, %v26060_v15  ;;  %v12817_v3 = vpop.f32.mrb[218].mxu0  ;;  %v13771_v50 = vpop.f32.mrb[210].mxu1  ;;  %v13090_v58 = vrot.slane %v13083_v38, %v25563_v59  ;;  %v15585_v34 = vld [vmem:[%s26485_s17 + $0x30] sm:$0xff]  ;;  %18569 = vmatpush3.bf16.msra.mxu1 %v18568_v47 }
0x267f   :  { %v12818_v49 = vpop.f32.mrb[219].mxu0  ;;  %v13772_v61 = vpop.f32.mrb[211].mxu1  ;;  %v18570_v19 = vpack.c.bf16 %v15602_v35, %v15601_v13  ;;  %v18582_v35 = vpack.c.bf16 %v15608_v20, %v15607_v23 }
0x2680   :  { %v12829_v52 = vrot.slane %v12822_v5, %v25563_v59  ;;  %v15603_v5 = vld [vmem:[%s26485_s17 + $0xc0] sm:$0xff]  ;;  %v13097_v3 = vrot.slane %v13090_v58, %v25563_v59  ;;  %v13783_v20 = vrot.slane %v13776_v32, %v25563_v59 }
0x2681   :  { %18571 = vmatprep.subr.bf16.mxu1 %v18570_v19  ;;  %v18574_v6 = vpack.c.bf16 %v15604_v25, %v15603_v5  ;;  %v13440_v5 = vrot.slane %v13433_v63, %v25563_v59 }
0x2682   :  { %v12836_v45 = vrot.slane %v12829_v52, %v25563_v59 }
0x2684   :  { %v12838_v43 = vadd.f32 %v12836_v45, %v12754_v12  ;;  %v12990_v1 = vpop.f32.mrb[220].mxu0  ;;  %v26101_v44 = vpop.f32.mrb[212].mxu1  ;;  %v15586_v12 = vld [vmem:[%s26485_s17 + $0x38] sm:$0xff]  ;;  %v18576_v45 = vpack.c.bf16 %v15588_v36, %v15587_v9 }
0x2685   :  { %v12992_v28 = vpop.f32.mrb[221].mxu0  ;;  %v26109_v57 = vpop.f32.mrb[213].mxu1  ;;  %v18572_v38 = vpack.c.bf16 %v15586_v12, %v15585_v34 }
0x2686   :  { %v12922_v8 = vadd.f32 %v12920_v2, %v12838_v43  ;;  %v12999_v33 = vcombine.low %v12990_v1, %v12992_v28  ;;  %v13956_v10 = vcombine.low %v26101_v44, %v26109_v57  ;;  %v12994_v48 = vpop.f32.mrb[222].mxu0  ;;  %v13951_v22 = vpop.f32.mrb[214].mxu1  ;;  %v18578_v2 = vpack.c.bf16 %v15606_v62, %v15605_v30  ;;  %v15589_v43 = vld [vmem:[%s26485_s17 + $0x50] sm:$0xff]  ;;  %v15590_v1 = vld [vmem:[%s26485_s17 + $0x58] sm:$0xff] }
0x2687   :  { %v12995_v17 = vpop.f32.mrb[223].mxu0  ;;  %v13952_v14 = vpop.f32.mrb[215].mxu1  ;;  %18573 = vmatpush3.bf16.msra.mxu1 %v18572_v38  ;;  %v18580_v24 = vpack.c.bf16 %v15590_v1, %v15589_v43  ;;  %v13447_v38 = vrot.slane %v13440_v5, %v25563_v59 }
0x2688   :  { %v13006_v37 = vrot.slane %v12999_v33, %v25563_v59  ;;  %18575 = vmatprep.subr.bf16.mxu1 %v18574_v6  ;;  %v15592_v33 = vld [vmem:[%s26485_s17 + $0x68] sm:$0xff] }
0x268a   :  { %v13013_v39 = vrot.slane %v13006_v37, %v25563_v59 }
0x268b   :  { %18577 = vmatpush3.bf16.msra.mxu1 %v18576_v45 }
0x268c   :  { %v13015_v50 = vadd.f32 %v13013_v39, %v12922_v8  ;;  %v13158_v49 = vpop.f32.mrb[224].mxu0  ;;  %v26138_v61 = vpop.f32.mrb[216].mxu1  ;;  %18579 = vmatprep.subr.bf16.mxu1 %v18578_v2  ;;  %v15591_v8 = vld [vmem:[%s26485_s17 + $0x60] sm:$0xff] }
0x268d   :  { %v13160_v21 = vpop.f32.mrb[225].mxu0  ;;  %v26146_v52 = vpop.f32.mrb[217].mxu1  ;;  %v18584_v12 = vpack.c.bf16 %v15592_v33, %v15591_v8 }
0x268e   :  { %v13099_v40 = vadd.f32 %v13097_v3, %v13015_v50  ;;  %v13167_v27 = vcombine.low %v13158_v49, %v13160_v21  ;;  %v14124_v31 = vcombine.low %v26138_v61, %v26146_v52  ;;  %v13162_v56 = vpop.f32.mrb[226].mxu0  ;;  %v14119_v16 = vpop.f32.mrb[218].mxu1 }
0x268f   :  { %v13163_v60 = vpop.f32.mrb[227].mxu0  ;;  %v14120_v54 = vpop.f32.mrb[219].mxu1  ;;  %18581 = vmatpush3.bf16.msra.mxu1 %v18580_v24 }
0x2690   :  { %v13174_v46 = vrot.slane %v13167_v27, %v25563_v59  ;;  %18583 = vmatprep.subr.bf16.mxu1 %v18582_v35 }
0x2692   :  { %v13181_v11 = vrot.slane %v13174_v46, %v25563_v59 }
0x2693   :  { %18585 = vmatpush3.bf16.msra.mxu1 %v18584_v12 }
0x2694   :  { %v13183_v29 = vadd.f32 %v13181_v11, %v13099_v40  ;;  %v13340_v28 = vpop.f32.mrb[228].mxu0  ;;  %v26175_v13 = vpop.f32.mrb[220].mxu1  ;;  %v13615_v40 = vrot.slane %v13608_v53, %v25563_v59 }
0x2695   :  { %v13342_v48 = vpop.f32.mrb[229].mxu0  ;;  %v26183_v22 = vpop.f32.mrb[221].mxu1 }
0x2696   :  { %v13276_v17 = vadd.f32 %v13274_v42, %v13183_v29  ;;  %v13349_v14 = vcombine.low %v13340_v28, %v13342_v48  ;;  %v14292_v47 = vcombine.low %v26175_v13, %v26183_v22  ;;  %v13344_v58 = vpop.f32.mrb[230].mxu0  ;;  %v14287_v37 = vpop.f32.mrb[222].mxu1  ;;  %v13622_v16 = vrot.slane %v13615_v40, %v25563_v59 }
0x2697   :  { %v13345_v19 = vpop.f32.mrb[231].mxu0  ;;  %v14288_v34 = vpop.f32.mrb[223].mxu1  ;;  %v13790_v42 = vrot.slane %v13783_v20, %v25563_v59  ;;  %v13963_v37 = vrot.slane %v13956_v10, %v25563_v59 }
0x2698   :  { %v13356_v25 = vrot.slane %v13349_v14, %v25563_v59 }
0x2699   :  { %v13970_v12 = vrot.slane %v13963_v37, %v25563_v59 }
0x269a   :  { %v13363_v39 = vrot.slane %v13356_v25, %v25563_v59 }
0x269c   :  { %v13365_v3 = vadd.f32 %v13363_v39, %v13276_v17  ;;  %v13508_v50 = vpop.f32.mrb[232].mxu0  ;;  %v26194_v49 = vpop.f32.mrb[224].mxu1 }
0x269d   :  { %v13510_v6 = vpop.f32.mrb[233].mxu0  ;;  %v26196_v9 = vpop.f32.mrb[225].mxu1 }
0x269e   :  { %v13449_v36 = vadd.f32 %v13447_v38, %v13365_v3  ;;  %v13517_v21 = vcombine.low %v13508_v50, %v13510_v6  ;;  %v14460_v18 = vcombine.low %v26194_v49, %v26196_v9  ;;  %v13512_v26 = vpop.f32.mrb[234].mxu0  ;;  %v14455_v63 = vpop.f32.mrb[226].mxu1 }
0x269f   :  { %v13513_v30 = vpop.f32.mrb[235].mxu0  ;;  %v14456_v62 = vpop.f32.mrb[227].mxu1  ;;  %v14131_v26 = vrot.slane %v14124_v31, %v25563_v59 }
0x26a0   :  { %v13524_v27 = vrot.slane %v13517_v21, %v25563_v59 }
0x26a1   :  { %v14138_v62 = vrot.slane %v14131_v26, %v25563_v59 }
0x26a2   :  { %v13531_v56 = vrot.slane %v13524_v27, %v25563_v59 }
0x26a4   :  { %v13533_v60 = vadd.f32 %v13531_v56, %v13449_v36  ;;  %v13683_v54 = vpop.f32.mrb[236].mxu0  ;;  %v26207_v45 = vpop.f32.mrb[228].mxu1 }
0x26a5   :  { %v13685_v4 = vpop.f32.mrb[237].mxu0  ;;  %v26209_v46 = vpop.f32.mrb[229].mxu1 }
0x26a6   :  { %v13624_v2 = vadd.f32 %v13622_v16, %v13533_v60  ;;  %v13692_v43 = vcombine.low %v13683_v54, %v13685_v4  ;;  %v14628_v1 = vcombine.low %v26207_v45, %v26209_v46  ;;  %v13687_v51 = vpop.f32.mrb[238].mxu0  ;;  %v14623_v41 = vpop.f32.mrb[230].mxu1 }
0x26a7   :  { %v13688_v53 = vpop.f32.mrb[239].mxu0  ;;  %v14624_v23 = vpop.f32.mrb[231].mxu1  ;;  %v14299_v51 = vrot.slane %v14292_v47, %v25563_v59 }
0x26a8   :  { %v13699_v11 = vrot.slane %v13692_v43, %v25563_v59 }
0x26a9   :  { %v14306_v23 = vrot.slane %v14299_v51, %v25563_v59 }
0x26aa   :  { %v13706_v24 = vrot.slane %v13699_v11, %v25563_v59 }
0x26ac   :  { %v13708_v29 = vadd.f32 %v13706_v24, %v13624_v2  ;;  %v13858_v28 = vpop.f32.mrb[240].mxu0  ;;  %v26220_v35 = vpop.f32.mrb[232].mxu1 }
0x26ad   :  { %v13860_v8 = vpop.f32.mrb[241].mxu0  ;;  %v26222_v33 = vpop.f32.mrb[233].mxu1 }
0x26ae   :  { %v13792_v48 = vadd.f32 %v13790_v42, %v13708_v29  ;;  %v13867_v17 = vcombine.low %v13858_v28, %v13860_v8  ;;  %v14796_v14 = vcombine.low %v26220_v35, %v26222_v33  ;;  %v13862_v55 = vpop.f32.mrb[242].mxu0  ;;  %v14791_v15 = vpop.f32.mrb[234].mxu1 }
0x26af   :  { %v13863_v32 = vpop.f32.mrb[243].mxu0  ;;  %v14792_v58 = vpop.f32.mrb[235].mxu1  ;;  %v14467_v55 = vrot.slane %v14460_v18, %v25563_v59 }
0x26b0   :  { %v13874_v19 = vrot.slane %v13867_v17, %v25563_v59 }
0x26b1   :  { %v14474_v58 = vrot.slane %v14467_v55, %v25563_v59 }
0x26b2   :  { %v13881_v34 = vrot.slane %v13874_v19, %v25563_v59 }
0x26b4   :  { %v13883_v5 = vadd.f32 %v13881_v34, %v13792_v48  ;;  %v14031_v25 = vpop.f32.mrb[244].mxu0  ;;  %v26233_v39 = vpop.f32.mrb[236].mxu1 }
0x26b5   :  { %v14033_v38 = vpop.f32.mrb[245].mxu0  ;;  %v26235_v3 = vpop.f32.mrb[237].mxu1 }
0x26b6   :  { %v13972_v50 = vadd.f32 %v13970_v12, %v13883_v5  ;;  %v14040_v6 = vcombine.low %v14031_v25, %v14033_v38  ;;  %v14964_v36 = vcombine.low %v26233_v39, %v26235_v3  ;;  %v14035_v44 = vpop.f32.mrb[246].mxu0  ;;  %v14959_v57 = vpop.f32.mrb[238].mxu1 }
0x26b7   :  { %v14036_v10 = vpop.f32.mrb[247].mxu0  ;;  %v14960_v21 = vpop.f32.mrb[239].mxu1 }
0x26b8   :  { %v14047_v63 = vrot.slane %v14040_v6, %v25563_v59 }
0x26ba   :  { %v14054_v30 = vrot.slane %v14047_v63, %v25563_v59 }
0x26bc   :  { %v14056_v40 = vadd.f32 %v14054_v30, %v13972_v50  ;;  %v14199_v27 = vpop.f32.mrb[248].mxu0  ;;  %v26246_v56 = vpop.f32.mrb[240].mxu1  ;;  %v14635_v50 = vrot.slane %v14628_v1, %v25563_v59  ;;  %v14803_v30 = vrot.slane %v14796_v14, %v25563_v59 }
0x26bd   :  { %v14201_v16 = vpop.f32.mrb[249].mxu0  ;;  %v26248_v60 = vpop.f32.mrb[241].mxu1 }
0x26be   :  { %v14140_v54 = vadd.f32 %v14138_v62, %v14056_v40  ;;  %v14208_v4 = vcombine.low %v14199_v27, %v14201_v16  ;;  %v15132_v2 = vcombine.low %v26246_v56, %v26248_v60  ;;  %v14203_v61 = vpop.f32.mrb[250].mxu0  ;;  %v15127_v52 = vpop.f32.mrb[242].mxu1  ;;  %v14642_v18 = vrot.slane %v14635_v50, %v25563_v59  ;;  %v15699_v50 = vld [vmem:[%s26486_s18 + $0x88] sm:$0xff] }
0x26bf   :  { %v14204_v31 = vpop.f32.mrb[251].mxu0  ;;  %v15128_v43 = vpop.f32.mrb[243].mxu1  ;;  %v14810_v1 = vrot.slane %v14803_v30, %v25563_v59  ;;  %v14971_v52 = vrot.slane %v14964_v36, %v25563_v59 }
0x26c0   :  { %v14215_v41 = vrot.slane %v14208_v4, %v25563_v59 }
0x26c1   :  { %v14978_v14 = vrot.slane %v14971_v52, %v25563_v59 }
0x26c2   :  { %v14222_v53 = vrot.slane %v14215_v41, %v25563_v59 }
0x26c4   :  { %v14224_v20 = vadd.f32 %v14222_v53, %v14140_v54  ;;  %v14367_v11 = vpop.f32.mrb[252].mxu0  ;;  %v26259_v24 = vpop.f32.mrb[244].mxu1 }
0x26c5   :  { %v14369_v42 = vpop.f32.mrb[253].mxu0  ;;  %v26261_v29 = vpop.f32.mrb[245].mxu1 }
0x26c6   :  { %v14308_v28 = vadd.f32 %v14306_v23, %v14224_v20  ;;  %v14376_v8 = vcombine.low %v14367_v11, %v14369_v42  ;;  %v15300_v48 = vcombine.low %v26259_v24, %v26261_v29  ;;  %v14371_v13 = vpop.f32.mrb[254].mxu0  ;;  %v15295_v22 = vpop.f32.mrb[246].mxu1  ;;  %v15139_v11 = vrot.slane %v15132_v2, %v25563_v59 }
0x26c7   :  { %v14372_v47 = vpop.f32.mrb[255].mxu0  ;;  %v15296_v17 = vpop.f32.mrb[247].mxu1 }
0x26c8   :  { %v14383_v15 = vrot.slane %v14376_v8, %v25563_v59  ;;  %v15146_v36 = vrot.slane %v15139_v11, %v25563_v59  ;;  %v15307_v47 = vrot.slane %v15300_v48, %v25563_v59  ;;  %v15609_v48 = vld [vmem:[%s26485_s17 + $0xf0] sm:$0xff] }
0x26ca   :  { %v14390_v32 = vrot.slane %v14383_v15, %v25563_v59  ;;  %v15314_v60 = vrot.slane %v15307_v47, %v25563_v59  ;;  %v15711_v47 = vld [vmem:[%s26486_s18 + $0xe8] sm:$0xff] }
0x26cc   :  { %v14392_v37 = vadd.f32 %v14390_v32, %v14308_v28  ;;  %v14535_v19 = vpop.f32.mrb[0].mxu0 }
0x26cd   :  { %v14537_v34 = vpop.f32.mrb[1].mxu0 }
0x26ce   :  { %v14476_v12 = vadd.f32 %v14474_v58, %v14392_v37  ;;  %v14544_v5 = vcombine.low %v14535_v19, %v14537_v34  ;;  %v14539_v25 = vpop.f32.mrb[2].mxu0  ;;  %v15610_v34 = vld [vmem:[%s26485_s17 + $0xf8] sm:$0xff] }
0x26cf   :  { %v14540_v38 = vpop.f32.mrb[3].mxu0 }
0x26d0   :  { %v14551_v49 = vrot.slane %v14544_v5, %v25563_v59  ;;  %v15594_v5 = vld [vmem:[%s26485_s17 + $0x78] sm:$0xff]  ;;  %v15698_v38 = vld [vmem:[%s26486_s18 + $0x80] sm:$0xff] }
0x26d2   :  { %v14558_v9 = vrot.slane %v14551_v49, %v25563_v59  ;;  %v18590_v49 = vpack.c.bf16 %v15699_v50, %v15698_v38 }
0x26d4   :  { %v14560_v6 = vadd.f32 %v14558_v9, %v14476_v12  ;;  %v14703_v44 = vpop.f32.mrb[4].mxu0  ;;  %v15593_v12 = vld [vmem:[%s26485_s17 + $0x70] sm:$0xff]  ;;  %v17298_v9 = vld [vmem:[%s26487_s19 + $0x1] ss:$4 sm:$0x3] }
0x26d5   :  { %v14705_v57 = vpop.f32.mrb[5].mxu0  ;;  %v18588_v25 = vpack.c.bf16 %v15594_v5, %v15593_v12 }
0x26d6   :  { %v14644_v10 = vadd.f32 %v14642_v18, %v14560_v6  ;;  %v14712_v21 = vcombine.low %v14703_v44, %v14705_v57  ;;  %v14707_v26 = vpop.f32.mrb[6].mxu0  ;;  %v15529_v18 = vrot.slane %v17298_v9, %v21164_v0  ;;  %v15533_v6 = vrot.slane %v17298_v9, %v21170_v7 }
0x26d7   :  { %v14708_v63 = vpop.f32.mrb[7].mxu0  ;;  %v15683_v26 = vld [vmem:[%s26486_s18 + $0x8] sm:$0xff] }
0x26d8   :  { %v14719_v45 = vrot.slane %v14712_v21, %v25563_v59  ;;  %v15682_v21 = vld [vmem:[%s26486_s18] sm:$0xff] }
0x26da   :  { %v14726_v46 = vrot.slane %v14719_v45, %v25563_v59 }
0x26dc   :  { %v14728_v62 = vadd.f32 %v14726_v46, %v14644_v10  ;;  %v14871_v40 = vpop.f32.mrb[8].mxu0 }
0x26dd   :  { %v14873_v27 = vpop.f32.mrb[9].mxu0 }
0x26de   :  { %v14812_v16 = vadd.f32 %v14810_v1, %v14728_v62  ;;  %v14880_v54 = vcombine.low %v14871_v40, %v14873_v27  ;;  %v14875_v4 = vpop.f32.mrb[10].mxu0  ;;  %v18592_v1 = vpack.c.bf16 %v15683_v26, %v15682_v21  ;;  %v15684_v27 = vld [vmem:[%s26486_s18 + $0x10] sm:$0xff] }
0x26df   :  { %v14876_v61 = vpop.f32.mrb[11].mxu0  ;;  %v15703_v4 = vld [vmem:[%s26486_s18 + $0xa8] sm:$0xff] }
0x26e0   :  { %v14887_v35 = vrot.slane %v14880_v54, %v25563_v59  ;;  %v15702_v54 = vld [vmem:[%s26486_s18 + $0xa0] sm:$0xff] }
0x26e1   :  { %v18598_v52 = vpack.c.bf16 %v15703_v4, %v15702_v54 }
0x26e2   :  { %v14894_v33 = vrot.slane %v14887_v35, %v25563_v59  ;;  %v15686_v35 = vld [vmem:[%s26486_s18 + $0x20] sm:$0xff] }
0x26e4   :  { %v14896_v31 = vadd.f32 %v14894_v33, %v14812_v16  ;;  %v15039_v43 = vpop.f32.mrb[12].mxu0  ;;  %v15685_v16 = vld [vmem:[%s26486_s18 + $0x18] sm:$0xff]  ;;  %v15687_v33 = vld [vmem:[%s26486_s18 + $0x28] sm:$0xff] }
0x26e5   :  { %v15041_v51 = vpop.f32.mrb[13].mxu0  ;;  %v18596_v61 = vpack.c.bf16 %v15685_v16, %v15684_v27 }
0x26e6   :  { %v14980_v41 = vadd.f32 %v14978_v14, %v14896_v31  ;;  %v15048_v53 = vcombine.low %v15039_v43, %v15041_v51  ;;  %v15043_v23 = vpop.f32.mrb[14].mxu0  ;;  %v15704_v14 = vld [vmem:[%s26486_s18 + $0xb0] sm:$0xff]  ;;  %v15705_v31 = vld [vmem:[%s26486_s18 + $0xb8] sm:$0xff]  ;;  %v18600_v43 = vpack.c.bf16 %v15687_v33, %v15686_v35 }
0x26e7   :  { %v15044_v20 = vpop.f32.mrb[15].mxu0  ;;  %v18602_v51 = vpack.c.bf16 %v15705_v31, %v15704_v14  ;;  %v15706_v23 = vld [vmem:[%s26486_s18 + $0xc0] sm:$0xff] }
0x26e8   :  { %v15055_v39 = vrot.slane %v15048_v53, %v25563_v59  ;;  %v15689_v53 = vld [vmem:[%s26486_s18 + $0x38] sm:$0xff]  ;;  %v15707_v20 = vld [vmem:[%s26486_s18 + $0xc8] sm:$0xff] }
0x26ea   :  { %v15062_v3 = vrot.slane %v15055_v39, %v25563_v59  ;;  %v18606_v39 = vpack.c.bf16 %v15707_v20, %v15706_v23 }
0x26ec   :  { %v15064_v24 = vadd.f32 %v15062_v3, %v14980_v41  ;;  %v15207_v42 = vpop.f32.mrb[16].mxu0  ;;  %v15688_v41 = vld [vmem:[%s26486_s18 + $0x30] sm:$0xff]  ;;  %v15690_v3 = vld [vmem:[%s26486_s18 + $0x40] sm:$0xff] }
0x26ed   :  { %v15209_v29 = vpop.f32.mrb[17].mxu0  ;;  %v18604_v11 = vpack.c.bf16 %v15689_v53, %v15688_v41 }
0x26ee   :  { %v15148_v28 = vadd.f32 %v15146_v36, %v15064_v24  ;;  %v15216_v8 = vcombine.low %v15207_v42, %v15209_v29  ;;  %v15211_v13 = vpop.f32.mrb[18].mxu0  ;;  %v15691_v36 = vld [vmem:[%s26486_s18 + $0x48] sm:$0xff]  ;;  %v15708_v24 = vld [vmem:[%s26486_s18 + $0xd0] sm:$0xff]  ;;  %v15709_v42 = vld [vmem:[%s26486_s18 + $0xd8] sm:$0xff] }
0x26ef   :  { %v15212_v22 = vpop.f32.mrb[19].mxu0  ;;  %v18608_v29 = vpack.c.bf16 %v15691_v36, %v15690_v3  ;;  %v15693_v13 = vld [vmem:[%s26486_s18 + $0x58] sm:$0xff] }
0x26f0   :  { %v15223_v17 = vrot.slane %v15216_v8, %v25563_v59  ;;  %v15692_v8 = vld [vmem:[%s26486_s18 + $0x50] sm:$0xff]  ;;  %v15710_v22 = vld [vmem:[%s26486_s18 + $0xe0] sm:$0xff] }
0x26f2   :  { %v15230_v56 = vrot.slane %v15223_v17, %v25563_v59  ;;  %v18586_v59 = vpack.c.bf16 %v15610_v34, %v15609_v48  ;;  %v18612_v17 = vpack.c.bf16 %v15693_v13, %v15692_v8 }
0x26f4   :  { %v15232_v2 = vadd.f32 %v15230_v56, %v15148_v28  ;;  %18587 = vmatprep.subr.bf16.mxu1 %v18586_v59  ;;  %v18610_v28 = vpack.c.bf16 %v15709_v42, %v15708_v24  ;;  %v18614_v56 = vpack.c.bf16 %v15711_v47, %v15710_v22  ;;  %v15611_v59 = vld [vmem:[%s26487_s19 + $0x2] sm:$0x1] }
0x26f5   :  { %18589 = vmatpush3.bf16.msra.mxu1 %v18588_v25 }
0x26f6   :  { %v15316_v55 = vadd.f32 %v15314_v60, %v15232_v2  ;;  %18591 = vmatprep.subr.bf16.mxu1 %v18590_v49  ;;  %v15694_v60 = vld [vmem:[%s26486_s18 + $0x60] sm:$0xff]  ;;  %v15695_v2 = vld [vmem:[%s26486_s18 + $0x68] sm:$0xff] }
0x26f7   :  { %v15714_v49 = vld [vmem:[%s26487_s19 + $0x3] sm:$0x1]  ;;  %s20476_s19 = scalar_lea.vmem %s15818_s11, 16 }
0x26f8   :  { %v15317_v15 = vmax.f32 %v15316_v55, 0.0  ;;  %v15712_v55 = vld [vmem:[%s26486_s18 + $0xf0] sm:$0xff]  ;;  %p20477_p0 = scmp.ne.s32.totalorder %s15818_s11, %s20476_s19  ;;  %p20482_p2 = scmp.lt.s32.totalorder %s20480_s15, %s20476_s19 }
0x26fa   :  { %v15322_v32 = vrot.slane %v15317_v15, %v21164_v0  ;;  %v15326_v58 = vrot.slane %v15317_v15, %v21170_v7  ;;  %v15700_v0 = vld [vmem:[%s26486_s18 + $0x90] sm:$0xff]  ;;  %v15701_v7 = vld [vmem:[%s26486_s18 + $0x98] sm:$0xff]  ;;  %p20483_p3 = por %p20482_p2, %p20481_p1 }
0x26fb   :  { %v18594_v40 = vpack.c.bf16 %v15701_v7, %v15700_v0  ;;  %v15713_v15 = vld [vmem:[%s26486_s18 + $0xf8] sm:$0xff] }
0x26fc   :  { %v15329_v37 = vpack.c.bf16 %v15322_v32, %v15322_v32  ;;  %v15330_v19 = vpack.c.bf16 %v15326_v58, %v15326_v58  ;;  %v18616_v32 = vpack.c.bf16 %v15695_v2, %v15694_v60  ;;  %v18618_v58 = vpack.c.bf16 %v15713_v15, %v15712_v55  ;;  %p20484_p4 = pnand %p20483_p3, %p20477_p0 }
0x26fe   :  { %15568 = vmatprep.mubr.bf16.mxu0 %v15330_v19  ;;  %v15697_v19 = vld [vmem:[%s26486_s18 + $0x78] sm:$0xff] }
0x26ff   :  { %15569 = vmatmul.mubr.bf16.vlgmr.msra.gmra.mrb[20].mxu0 %v15329_v37  ;;  %v15696_v37 = vld [vmem:[%s26486_s18 + $0x70] sm:$0xff] }
0x2700   :  { %v18620_v48 = vpack.c.bf16 %v15697_v19, %v15696_v37 }
0x27d2   :  { %v15570_v44 = vpop.f32.mrb[20].mxu0 }
0x27d3   :  { %v26329_v57 = vadd.f32 %v15570_v44, %v15529_v18  ;;  %v15572_v10 = vpop.f32.mrb[21].mxu0 }
0x27d4   :  { %v15573_v63 = vadd.f32 %v15572_v10, %v15533_v6  ;;  %v15574_v30 = vpop.f32.mrb[22].mxu0 }
0x27d5   :  { %v15575_v45 = vpop.f32.mrb[23].mxu0  ;;  %v15577_v62 = vmax.f32 %v26329_v57, 0.0 }
0x27d6   :  { %v15578_v46 = vmax.f32 %v15573_v63, 0.0 }
0x27d8   :  { %15676 = vmatprep.mubr.f32.mxu1 %v15578_v46 }
0x27d9   :  { %15677 = vmatmul.mubr.f32.vlgmr.msra.gmra.mrb[146].mxu1 %v15577_v62 }
0x27da   :  { %18593 = vmatpush3.bf16.msra.mxu1 %v18592_v1  ;;  %15779 = vmatprep.mubr.f32.mxu1 %v15578_v46 }
0x27db   :  { %18595 = vmatprep.subr.bf16.mxu1 %v18594_v40 }
0x27de   :  { %18597 = vmatpush3.bf16.msra.mxu1 %v18596_v61 }
0x27df   :  { %18599 = vmatprep.subr.bf16.mxu1 %v18598_v52 }
0x27e2   :  { %18601 = vmatpush3.bf16.msra.mxu1 %v18600_v43 }
0x27e3   :  { %18603 = vmatprep.subr.bf16.mxu1 %v18602_v51 }
0x27e6   :  { %18605 = vmatpush3.bf16.msra.mxu1 %v18604_v11 }
0x27e7   :  { %18607 = vmatprep.subr.bf16.mxu1 %v18606_v39 }
0x27ea   :  { %18609 = vmatpush3.bf16.msra.mxu1 %v18608_v29 }
0x27eb   :  { %18611 = vmatprep.subr.bf16.mxu1 %v18610_v28 }
0x27ee   :  { %18613 = vmatpush3.bf16.msra.mxu1 %v18612_v17 }
0x27ef   :  { %18615 = vmatprep.subr.bf16.mxu1 %v18614_v56 }
0x27f2   :  { %18617 = vmatpush3.bf16.msra.mxu1 %v18616_v32 }
0x27f3   :  { %18619 = vmatprep.subr.bf16.mxu1 %v18618_v58 }
0x27f6   :  { %18621 = vmatpush3.bf16.msra.mxu1 %v18620_v48 }
0x27f9   :  { %15780 = vmatmul.mubr.f32.vlgmr.msra.gmra.mrb[248].mxu1 %v15577_v62 }
0x28ac   :  { %v17864_v34 = vpop.f32.mrb[146].mxu1 }
0x28ad   :  { %v17865_v12 = vpop.f32.mrb[147].mxu1 }
0x28ae   :  { %v17866_v5 = vadd.f32 %v17865_v12, %v17864_v34 }
0x28b0   :  { %v15679_v25 = vadd.f32 %v17866_v5, %v15611_v59 }
0x28b2   :  { %v15789_v38 = vsel %vm15785_vm6, %v15679_v25, -inf  ;;  %15786 = vst.msk [vmem:[#allocation2] sm:$0x1] %vm15785_vm6, %v15679_v25 }
0x28b3   :  { %15790 = vmax.xlane.f32.xlu1 %v15789_v38 }
0x28cc   :  { %v17899_v50 = vpop.f32.mrb[248].mxu1 }
0x28cd   :  { %v17900_v9 = vpop.f32.mrb[249].mxu1 }
0x28ce   :  { %v17901_v18 = vadd.f32 %v17900_v9, %v17899_v50 }
0x28d0   :  { %v15782_v6 = vadd.f32 %v17901_v18, %v15714_v49 }
0x28d2   :  { %15788 = vst.msk [vmem:[#allocation4] sm:$0x1] %vm15787_vm0, %v15782_v6 }
0x2940   :  { %v15791_v44 = vpop.xlane.xlu1 %15790 }
0x2941   :  { %v15792_v57 = vsub.f32 %v15679_v25, %v15791_v44 }
0x2943   :  { %v15793_v10 = vmul.f32 1.442695, %v15792_v57 }
0x2945   :  { %20472 = vpow2.f32 %v15793_v10 }
0x294f   :  { %v20473_v21 = vpop.eup %20472 }
0x2950   :  { %v15795_v26 = vsel %vm15785_vm6, %v20473_v21, 0.0 }
0x2951   :  { %15796 = vadd.xlane.f32.xlu0 %v15795_v26 }
0x2952   :  { %20487 = shalt.err (!%p20484_p4)
}
0x2953   :  { %s20488_s0 = scalar_lea.hbm %s26489_s21, 16 }
0x2954   :  { %p20489_p5 = scmp.ne.s32.totalorder %s26489_s21, %s20488_s0  ;;  %p20492_p6 = scmp.lt.u32.totalorder %s20488_s0, %s26489_s21 }
0x2956   :  { %p20494_p7 = pnand %p20492_p6, %p20489_p5 }
0x2958   :  { %20497 = shalt.err (!%p20494_p7)
}
0x2959   :  { %15820 = dma.vmem_to_hbm [thread:$0]  %s15818_s11, 16, %s26489_s21, [#allocation5]  }
0x295a   :  { %s20498_s9 = scalar_lea.vmem %s15808_s7, 16  ;;  %s20502_s17 = scalar_lea.vmem %s15808_s7, 32 }
0x295b   :  { %p20499_p8 = scmp.ne.s32.totalorder %s15808_s7, %s20498_s9  ;;  %p20503_p9 = scmp.lt.s32.totalorder %s15808_s7, %s15808_s7 }
0x295c   :  { %p20504_p10 = scmp.lt.s32.totalorder %s20502_s17, %s20498_s9 }
0x295e   :  { %p20505_p11 = por %p20504_p10, %p20503_p9 }
0x2960   :  { %p20506_p12 = pnand %p20505_p11, %p20499_p8 }
0x2962   :  { %20509 = shalt.err (!%p20506_p12)
}
0x2963   :  { %s20510_s6 = scalar_lea.hbm %s26488_s20, 16 }
0x2964   :  { %p20511_p13 = scmp.ne.s32.totalorder %s26488_s20, %s20510_s6  ;;  %p20514_p0 = scmp.lt.u32.totalorder %s20510_s6, %s26488_s20 }
0x2966   :  { %p20516_p1 = pnand %p20514_p0, %p20511_p13 }
0x2968   :  { %20519 = shalt.err (!%p20516_p1)
}
0x2969   :  { %15810 = dma.vmem_to_hbm [thread:$0]  %s15808_s7, 16, %s26488_s20, [#allocation3]  }
0x296a   :  { %s20556_s27 = smov [#allocation6]  }
0x296b   :  { %s15827_s18 = sshll.u32 %s20556_s27, 4  ;;  %s15828_s18 = int_to_ptr.vmem [resolvable:$true] %s15827_s18 }
0x296c   :  { %s20520_s3 = scalar_lea.vmem %s15828_s18, 16  ;;  %s20524_s29 = scalar_lea.vmem %s15828_s18, 32 }
0x296d   :  { %p20521_p2 = scmp.ne.s32.totalorder %s15828_s18, %s20520_s3  ;;  %p20525_p3 = scmp.lt.s32.totalorder %s15828_s18, %s15828_s18 }
0x296e   :  { %p20526_p4 = scmp.lt.s32.totalorder %s20524_s29, %s20520_s3 }
0x2970   :  { %p20527_p5 = por %p20526_p4, %p20525_p3 }
0x2972   :  { %p20528_p6 = pnand %p20527_p5, %p20521_p2 }
0x29de   :  { %v15797_v63 = vpop.xlane.xlu0 %15796 }
0x29df   :  { %20474 = vrcp.f32 %v15797_v63 }
0x29e9   :  { %v20475_v30 = vpop.eup %20474 }
0x29ea   :  { %v15799_v0 = vmul.f32 %v20475_v30, %v20473_v21 }
0x29ec   :  { %15800 = vst.msk [vmem:[#allocation6] sm:$0x1] %vm15785_vm6, %v15799_v0 }
0x29ed   :  { %20531 = shalt.err (!%p20528_p6)
}
0x29ee   :  { %s20532_s20 = scalar_lea.hbm %s26490_s22, 16 }
0x29ef   :  { %p20533_p7 = scmp.ne.s32.totalorder %s26490_s22, %s20532_s20  ;;  %p20536_p8 = scmp.lt.u32.totalorder %s20532_s20, %s26490_s22 }
0x29f1   :  { %p20538_p9 = pnand %p20536_p8, %p20533_p7 }
0x29f3   :  { %20541 = shalt.err (!%p20538_p9)
}
0x29f4   :  { %15830 = dma.vmem_to_hbm [thread:$0]  %s15828_s18, 16, %s26490_s22, [#allocation5]  }
0x29f5   :  { %20542 = dma.done.wait [#allocation3], 16  }
0x29f6   :  { %20543 = vsyncadd [#allocation3], 4294967280 }
0x29f7   :  { %20544 = dma.done.wait [#allocation5], 32  }
0x29f8   :  { %20545 = vsyncadd [#allocation5], 4294967264 }
0x29f9   :  { %15840 = vsyncpa [#allocation3], 1 }
0x29fa   :  { %15841 = vsyncpa [#allocation5], 1 }

</bundles_post_ra>
